<compile_context>
chip_gen: v7x
topology: tpu7x:2x2x1
jax: 0.10.0
libtpu: 0.0.40
codegen_flags: <defaults>
</compile_context>

<pallas_src>
import functools

import jax
import jax.numpy as jnp
from jax.experimental import pallas as pl
from jax.experimental.pallas import tpu as pltpu

_WOFF = 8  # sublane-aligned W offset of the interior inside the padded buffer


# ---------------------------------------------------------------------------
# Fused kernel (nb batch elements per grid step)
# ---------------------------------------------------------------------------
def _fused_kernel(x_ref, w1_ref, b1_ref, w2_ref, b2_ref, w3_ref, b3_ref,
                  w4_ref, b4_ref, out_ref, xpad_ref, *, NB, H, W, C):
    """4 fused 3x3 'same' convs + tanh head; all activations stay in VMEM.

    x_ref:    (NB, H, W, 4)            NHWC input block = concat(p, v, mask)
    w*_ref:   (9, cin, cout)           per-tap weights (tap index = 3*dy + dx)
    b*_ref:   (1, cout)
    out_ref:  (NB, 3, H*W)             channel-major head output (lane-dense)
    xpad_ref: (NB, H+2, W+_WOFF+1, C)  padded activations; interior lives at
              [:, 1:H+1, _WOFF:_WOFF+W, :] (sublane-aligned stores); halo =
              rows 0 / H+1 and cols _WOFF-1 / _WOFF+W; cols < _WOFF-1 unused.
    """
    f32 = jnp.float32
    HW = H * W
    M = NB * HW
    wpad = xpad_ref.shape[2]

    # Zero only the 1-pixel halo strips; the interior is always overwritten
    # before it is read, and columns < _WOFF-1 are never read at all.
    zrow = jnp.zeros((NB, 1, wpad, C), f32)
    xpad_ref[:, 0:1, :, :] = zrow
    xpad_ref[:, H + 1:H + 2, :, :] = zrow
    zcol = jnp.zeros((NB, H + 2, 1, C), f32)
    xpad_ref[:, :, _WOFF - 1:_WOFF, :] = zcol
    xpad_ref[:, :, _WOFF + W:_WOFF + W + 1, :] = zcol

    # Layer-1 input: 4 real channels into lanes 0:4 of the aligned interior.
    # (Lanes 4:C of the interior are never read by layer 1.)
    xpad_ref[:, 1:H + 1, _WOFF:_WOFF + W, 0:4] = x_ref[...]

    def conv_layer(w_ref, b_ref, cin, relu):
        # 9 accumulating dots, one per 3x3 tap, fed straight from ref slices
        # of the padded buffer -- no im2col patch materialization.
        y = None
        for i in range(9):
            dy, dx = divmod(i, 3)
            w0 = _WOFF - 1 + dx
            tap = xpad_ref[:, dy:dy + H, w0:w0 + W, 0:cin].reshape(M, cin)
            d = jnp.dot(tap, w_ref[i], preferred_element_type=f32)
            y = d if y is None else y + d
        y = y + b_ref[...]
        if relu:
            y = jnp.maximum(y, 0.0)
        return y                                             # (M, cout)

    h = conv_layer(w1_ref, b1_ref, cin=4, relu=True)
    xpad_ref[:, 1:H + 1, _WOFF:_WOFF + W, :] = h.reshape(NB, H, W, C)
    h = conv_layer(w2_ref, b2_ref, cin=C, relu=True)
    xpad_ref[:, 1:H + 1, _WOFF:_WOFF + W, :] = h.reshape(NB, H, W, C)
    h = conv_layer(w3_ref, b3_ref, cin=C, relu=True)
    xpad_ref[:, 1:H + 1, _WOFF:_WOFF + W, :] = h.reshape(NB, H, W, C)
    y4 = conv_layer(w4_ref, b4_ref, cin=C, relu=False)       # (M, 3)

    # Head: p_new = 4*tanh((p_old + y[...,0])/4), v_new likewise on 1:3.
    # Transpose each batch element to (3, H*W) BEFORE the tanh so the
    # EUP/store path runs lane-dense instead of at 3/128 lane occupancy.
    pv_old = x_ref[:, :, :, 0:3].reshape(M, 3)
    pre = pv_old + y4                                        # (M, 3)
    for n in range(NB):
        pn = pre[n * HW:(n + 1) * HW, :]                     # (HW, 3)
        out_ref[n] = 4.0 * jnp.tanh(0.25 * pn.T)             # (3, HW), dense


# ---------------------------------------------------------------------------
# Wrapper
# ---------------------------------------------------------------------------
def _pick_batch_block(n, max_block=8):
    """Largest divisor of n <= max_block that still leaves >= 2 grid steps
    (so both v7x TensorCores get work when n >= 2)."""
    best = 1
    for nb in range(1, min(n, max_block) + 1):
        if n % nb:
            continue
        if n >= 2 and n // nb < 2:
            continue
        best = nb
    return best


@jax.jit
def conv2d_4layer_forward(params, p_old, v_old, field_masks):
    """NCHW in / NCHW out, matching the PyTorch module (f32 throughout)."""
    (w1, b1), (w2, b2), (w3, b3), (w4, b4) = params          # w: (3,3,cin,cout)
    C = w2.shape[2]                                          # hidden size

    # One concat + one transpose at the input boundary; the kernel emits a
    # channel-major (N, 3, H*W) result so the output side is reshape-only.
    x = jnp.transpose(jnp.concatenate([p_old, v_old, field_masks], axis=1),
                      (0, 2, 3, 1))                          # (N, H, W, 4)
    N, H, W, _ = x.shape

    tapify = lambda w: w.reshape(9, w.shape[2], w.shape[3])  # (3,3,ci,co)->(9,ci,co)
    w1t, w2t, w3t, w4t = map(tapify, (w1, w2, w3, w4))
    b1r, b2r, b3r, b4r = (b.reshape(1, -1) for b in (b1, b2, b3, b4))

    nb = _pick_batch_block(N)
    kern = functools.partial(_fused_kernel, NB=nb, H=H, W=W, C=C)

    def full(shape):
        return pl.BlockSpec(shape, lambda n: (0,) * len(shape))

    out = pl.pallas_call(
        kern,
        out_shape=jax.ShapeDtypeStruct((N, 3, H * W), jnp.float32),
        grid_spec=pltpu.PrefetchScalarGridSpec(
            num_scalar_prefetch=0,
            grid=(N // nb,),
            in_specs=[
                pl.BlockSpec((nb, H, W, 4), lambda n: (n, 0, 0, 0)),
                full((9, 4, C)), full((1, C)),
                full((9, C, C)), full((1, C)),
                full((9, C, C)), full((1, C)),
                full((9, C, 3)), full((1, 3)),
            ],
            out_specs=pl.BlockSpec((nb, 3, H * W), lambda n: (n, 0, 0)),
            scratch_shapes=[
                pltpu.VMEM((nb, H + 2, W + _WOFF + 1, C), jnp.float32),
            ],
        ),
        compiler_params=pltpu.CompilerParams(
            dimension_semantics=("parallel",)),
    )(x, w1t, b1r, w2t, b2r, w3t, b3r, w4t, b4r)

    out = out.reshape(N, 3, H, W)                            # already NCHW
    return out[:, 0:1], out[:, 1:3]


# ---------------------------------------------------------------------------
# Parameter init (deterministic, PyTorch-default-like uniform bounds)
# ---------------------------------------------------------------------------
def init_params(key, hidden_size):
    shapes = [  # (cin, cout) per conv layer, 3x3 kernels
        (4, hidden_size),
        (hidden_size, hidden_size),
        (hidden_size, hidden_size),
        (hidden_size, 3),
    ]
    params = []
    for cin, cout in shapes:
        key, kw, kb = jax.random.split(key, 3)
        bound = 1.0 / jnp.sqrt(cin * 9.0)
        w = jax.random.uniform(kw, (3, 3, cin, cout), jnp.float32, -bound, bound)
        b = jax.random.uniform(kb, (cout,), jnp.float32, -bound, bound)
        params.append((w, b))
    return params


# ---------------------------------------------------------------------------
# Pure-JAX reference for correctness checking
# ---------------------------------------------------------------------------
def _reference_forward(params, p_old, v_old, field_masks):
    x = jnp.concatenate([p_old, v_old, field_masks], axis=1)  # NCHW
    dn = jax.lax.conv_dimension_numbers(x.shape, (1, 1, 3, 3),
                                        ("NCHW", "OIHW", "NCHW"))

    def conv(x, w_hwio, b):
        w_oihw = jnp.transpose(w_hwio, (3, 2, 0, 1))
        y = jax.lax.conv_general_dilated(x, w_oihw, (1, 1), "SAME",
                                         dimension_numbers=dn)
        return y + b[None, :, None, None]

    (w1, b1), (w2, b2), (w3, b3), (w4, b4) = params
    x = jax.nn.relu(conv(x, w1, b1))
    x = jax.nn.relu(conv(x, w2, b2))
    x = jax.nn.relu(conv(x, w3, b3))
    x = conv(x, w4, b4)
    p_new = 4.0 * jnp.tanh(0.25 * (p_old + x[:, 0:1]))
    v_new = 4.0 * jnp.tanh(0.25 * (v_old + x[:, 1:3]))
    return p_new, v_new


if __name__ == "__main__":
    HIDDEN = 32
    N, H, W = 2, 16, 16

    key = jax.random.PRNGKey(0)
    kparams, kp, kv, km = jax.random.split(key, 4)
    params = init_params(kparams, HIDDEN)

    p_old = jax.random.normal(kp, (N, 1, H, W), jnp.float32)
    v_old = jax.random.normal(kv, (N, 2, H, W), jnp.float32)
    field_masks = (jax.random.uniform(km, (N, 1, H, W)) > 0.5).astype(jnp.float32)

    p_new, v_new = conv2d_4layer_forward(params, p_old, v_old, field_masks)
    jax.block_until_ready((p_new, v_new))

    p_ref, v_ref = _reference_forward(params, p_old, v_old, field_masks)
    assert p_new.shape == (N, 1, H, W) and v_new.shape == (N, 2, H, W)
    assert jnp.allclose(p_new, p_ref, rtol=1e-4, atol=1e-4)
    assert jnp.allclose(v_new, v_ref, rtol=1e-4, atol=1e-4)

    print("KERNEL_OK")
</pallas_src>

<mosaic_0001>
module attributes {stable_mosaic.version = 11 : i64} {
  func.func @_fused_kernel(%arg0: i32, %arg1: memref<1x16x16x4xf32, #tpu.memory_space<vmem>>, %arg2: memref<9x4x32xf32, #tpu.memory_space<vmem>>, %arg3: memref<1x32xf32, #tpu.memory_space<vmem>>, %arg4: memref<9x32x32xf32, #tpu.memory_space<vmem>>, %arg5: memref<1x32xf32, #tpu.memory_space<vmem>>, %arg6: memref<9x32x32xf32, #tpu.memory_space<vmem>>, %arg7: memref<1x32xf32, #tpu.memory_space<vmem>>, %arg8: memref<9x32x3xf32, #tpu.memory_space<vmem>>, %arg9: memref<1x3xf32, #tpu.memory_space<vmem>>, %arg10: memref<1x3x256xf32, #tpu.memory_space<vmem>>, %arg11: memref<1x18x25x32xf32, #tpu.memory_space<vmem>>) attributes {dimension_semantics = [#tpu.dimension_semantics<parallel>], iteration_bounds = array<i64: 2>, scalar_prefetch = 0 : i64, scratch_operands = 1 : i64, tpu.core_type = #tpu.core_type<tc>, window_params = [{transform_indices = @transform_0, window_bounds = array<i64: 1, 16, 16, 4>}, {pipeline_mode = #tpu.pipeline_mode<synchronous>, transform_indices = @transform_1, window_bounds = array<i64: 9, 4, 32>}, {pipeline_mode = #tpu.pipeline_mode<synchronous>, transform_indices = @transform_2, window_bounds = array<i64: 1, 32>}, {pipeline_mode = #tpu.pipeline_mode<synchronous>, transform_indices = @transform_3, window_bounds = array<i64: 9, 32, 32>}, {pipeline_mode = #tpu.pipeline_mode<synchronous>, transform_indices = @transform_4, window_bounds = array<i64: 1, 32>}, {pipeline_mode = #tpu.pipeline_mode<synchronous>, transform_indices = @transform_5, window_bounds = array<i64: 9, 32, 32>}, {pipeline_mode = #tpu.pipeline_mode<synchronous>, transform_indices = @transform_6, window_bounds = array<i64: 1, 32>}, {pipeline_mode = #tpu.pipeline_mode<synchronous>, transform_indices = @transform_7, window_bounds = array<i64: 9, 32, 3>}, {pipeline_mode = #tpu.pipeline_mode<synchronous>, transform_indices = @transform_8, window_bounds = array<i64: 1, 3>}, {transform_indices = @transform_9, window_bounds = array<i64: 1, 3, 256>}]} {
    %cst = arith.constant 0.000000e+00 : f32
    %0 = vector.broadcast %cst : f32 to vector<1x1x25x32xf32>
    %c0 = arith.constant 0 : index
    %c0_0 = arith.constant 0 : index
    %c0_1 = arith.constant 0 : index
    %c0_2 = arith.constant 0 : index
    %1 = vector.load %arg11[%c0, %c0_0, %c0_1, %c0_2] : memref<1x18x25x32xf32, #tpu.memory_space<vmem>>, vector<1x1x25x32xf32>
    tpu.vector_store %arg11[%c0, %c0_0, %c0_1, %c0_2], %0 {strides = array<i32>} : memref<1x18x25x32xf32, #tpu.memory_space<vmem>>, vector<1x1x25x32xf32>,
    %c0_3 = arith.constant 0 : index
    %c17 = arith.constant 17 : index
    %c0_4 = arith.constant 0 : index
    %c0_5 = arith.constant 0 : index
    %2 = vector.load %arg11[%c0_3, %c17, %c0_4, %c0_5] : memref<1x18x25x32xf32, #tpu.memory_space<vmem>>, vector<1x1x25x32xf32>
    tpu.vector_store %arg11[%c0_3, %c17, %c0_4, %c0_5], %0 {strides = array<i32>} : memref<1x18x25x32xf32, #tpu.memory_space<vmem>>, vector<1x1x25x32xf32>,
    %cst_6 = arith.constant 0.000000e+00 : f32
    %3 = vector.broadcast %cst_6 : f32 to vector<1x18x1x32xf32>
    %c0_7 = arith.constant 0 : index
    %c0_8 = arith.constant 0 : index
    %c7 = arith.constant 7 : index
    %c0_9 = arith.constant 0 : index
    %4 = vector.load %arg11[%c0_7, %c0_8, %c7, %c0_9] : memref<1x18x25x32xf32, #tpu.memory_space<vmem>>, vector<1x18x1x32xf32>
    tpu.vector_store %arg11[%c0_7, %c0_8, %c7, %c0_9], %3 {strides = array<i32>} : memref<1x18x25x32xf32, #tpu.memory_space<vmem>>, vector<1x18x1x32xf32>,
    %c0_10 = arith.constant 0 : index
    %c0_11 = arith.constant 0 : index
    %c24 = arith.constant 24 : index
    %c0_12 = arith.constant 0 : index
    %5 = vector.load %arg11[%c0_10, %c0_11, %c24, %c0_12] : memref<1x18x25x32xf32, #tpu.memory_space<vmem>>, vector<1x18x1x32xf32>
    tpu.vector_store %arg11[%c0_10, %c0_11, %c24, %c0_12], %3 {strides = array<i32>} : memref<1x18x25x32xf32, #tpu.memory_space<vmem>>, vector<1x18x1x32xf32>,
    %c0_13 = arith.constant 0 : index
    %c0_14 = arith.constant 0 : index
    %c0_15 = arith.constant 0 : index
    %c0_16 = arith.constant 0 : index
    %6 = vector.load %arg1[%c0_13, %c0_14, %c0_15, %c0_16] : memref<1x16x16x4xf32, #tpu.memory_space<vmem>>, vector<1x16x16x4xf32>
    %c0_17 = arith.constant 0 : index
    %c1 = arith.constant 1 : index
    %c8 = arith.constant 8 : index
    %c0_18 = arith.constant 0 : index
    %7 = vector.load %arg11[%c0_17, %c1, %c8, %c0_18] : memref<1x18x25x32xf32, #tpu.memory_space<vmem>>, vector<1x16x16x4xf32>
    tpu.vector_store %arg11[%c0_17, %c1, %c8, %c0_18], %6 {strides = array<i32>} : memref<1x18x25x32xf32, #tpu.memory_space<vmem>>, vector<1x16x16x4xf32>,
    %c0_19 = arith.constant 0 : index
    %c0_20 = arith.constant 0 : index
    %c7_21 = arith.constant 7 : index
    %c0_22 = arith.constant 0 : index
    %8 = vector.load %arg11[%c0_19, %c0_20, %c7_21, %c0_22] : memref<1x18x25x32xf32, #tpu.memory_space<vmem>>, vector<1x16x16x4xf32>
    %9 = vector.shape_cast %8 : vector<1x16x16x4xf32> to vector<256x4xf32>
    %c0_23 = arith.constant 0 : index
    %c0_24 = arith.constant 0 : index
    %c0_25 = arith.constant 0 : index
    %10 = vector.load %arg2[%c0_23, %c0_24, %c0_25] : memref<9x4x32xf32, #tpu.memory_space<vmem>>, vector<1x4x32xf32>
    %11 = vector.shape_cast %10 : vector<1x4x32xf32> to vector<4x32xf32>
    %cst_26 = arith.constant dense<0.000000e+00> : vector<256x32xf32>
    %12 = tpu.matmul %9, %11, %cst_26 {dimension_numbers = #tpu.dot_dimension_numbers<[1], [0], [0], [1], [0, 0, 1, 1], [], []>} : vector<256x4xf32>, vector<4x32xf32>, vector<256x32xf32> -> vector<256x32xf32>
    %c0_27 = arith.constant 0 : index
    %c0_28 = arith.constant 0 : index
    %c8_29 = arith.constant 8 : index
    %c0_30 = arith.constant 0 : index
    %13 = vector.load %arg11[%c0_27, %c0_28, %c8_29, %c0_30] : memref<1x18x25x32xf32, #tpu.memory_space<vmem>>, vector<1x16x16x4xf32>
    %14 = vector.shape_cast %13 : vector<1x16x16x4xf32> to vector<256x4xf32>
    %c1_31 = arith.constant 1 : index
    %c0_32 = arith.constant 0 : index
    %c0_33 = arith.constant 0 : index
    %15 = vector.load %arg2[%c1_31, %c0_32, %c0_33] : memref<9x4x32xf32, #tpu.memory_space<vmem>>, vector<1x4x32xf32>
    %16 = vector.shape_cast %15 : vector<1x4x32xf32> to vector<4x32xf32>
    %cst_34 = arith.constant dense<0.000000e+00> : vector<256x32xf32>
    %17 = tpu.matmul %14, %16, %cst_34 {dimension_numbers = #tpu.dot_dimension_numbers<[1], [0], [0], [1], [0, 0, 1, 1], [], []>} : vector<256x4xf32>, vector<4x32xf32>, vector<256x32xf32> -> vector<256x32xf32>
    %18 = arith.addf %12, %17 : vector<256x32xf32>
    %c0_35 = arith.constant 0 : index
    %c0_36 = arith.constant 0 : index
    %c9 = arith.constant 9 : index
    %c0_37 = arith.constant 0 : index
    %19 = vector.load %arg11[%c0_35, %c0_36, %c9, %c0_37] : memref<1x18x25x32xf32, #tpu.memory_space<vmem>>, vector<1x16x16x4xf32>
    %20 = vector.shape_cast %19 : vector<1x16x16x4xf32> to vector<256x4xf32>
    %c2 = arith.constant 2 : index
    %c0_38 = arith.constant 0 : index
    %c0_39 = arith.constant 0 : index
    %21 = vector.load %arg2[%c2, %c0_38, %c0_39] : memref<9x4x32xf32, #tpu.memory_space<vmem>>, vector<1x4x32xf32>
    %22 = vector.shape_cast %21 : vector<1x4x32xf32> to vector<4x32xf32>
    %cst_40 = arith.constant dense<0.000000e+00> : vector<256x32xf32>
    %23 = tpu.matmul %20, %22, %cst_40 {dimension_numbers = #tpu.dot_dimension_numbers<[1], [0], [0], [1], [0, 0, 1, 1], [], []>} : vector<256x4xf32>, vector<4x32xf32>, vector<256x32xf32> -> vector<256x32xf32>
    %24 = arith.addf %18, %23 : vector<256x32xf32>
    %c0_41 = arith.constant 0 : index
    %c1_42 = arith.constant 1 : index
    %c7_43 = arith.constant 7 : index
    %c0_44 = arith.constant 0 : index
    %25 = vector.load %arg11[%c0_41, %c1_42, %c7_43, %c0_44] : memref<1x18x25x32xf32, #tpu.memory_space<vmem>>, vector<1x16x16x4xf32>
    %26 = vector.shape_cast %25 : vector<1x16x16x4xf32> to vector<256x4xf32>
    %c3 = arith.constant 3 : index
    %c0_45 = arith.constant 0 : index
    %c0_46 = arith.constant 0 : index
    %27 = vector.load %arg2[%c3, %c0_45, %c0_46] : memref<9x4x32xf32, #tpu.memory_space<vmem>>, vector<1x4x32xf32>
    %28 = vector.shape_cast %27 : vector<1x4x32xf32> to vector<4x32xf32>
    %cst_47 = arith.constant dense<0.000000e+00> : vector<256x32xf32>
    %29 = tpu.matmul %26, %28, %cst_47 {dimension_numbers = #tpu.dot_dimension_numbers<[1], [0], [0], [1], [0, 0, 1, 1], [], []>} : vector<256x4xf32>, vector<4x32xf32>, vector<256x32xf32> -> vector<256x32xf32>
    %30 = arith.addf %24, %29 : vector<256x32xf32>
    %c0_48 = arith.constant 0 : index
    %c1_49 = arith.constant 1 : index
    %c8_50 = arith.constant 8 : index
    %c0_51 = arith.constant 0 : index
    %31 = vector.load %arg11[%c0_48, %c1_49, %c8_50, %c0_51] : memref<1x18x25x32xf32, #tpu.memory_space<vmem>>, vector<1x16x16x4xf32>
    %32 = vector.shape_cast %31 : vector<1x16x16x4xf32> to vector<256x4xf32>
    %c4 = arith.constant 4 : index
    %c0_52 = arith.constant 0 : index
    %c0_53 = arith.constant 0 : index
    %33 = vector.load %arg2[%c4, %c0_52, %c0_53] : memref<9x4x32xf32, #tpu.memory_space<vmem>>, vector<1x4x32xf32>
    %34 = vector.shape_cast %33 : vector<1x4x32xf32> to vector<4x32xf32>
    %cst_54 = arith.constant dense<0.000000e+00> : vector<256x32xf32>
    %35 = tpu.matmul %32, %34, %cst_54 {dimension_numbers = #tpu.dot_dimension_numbers<[1], [0], [0], [1], [0, 0, 1, 1], [], []>} : vector<256x4xf32>, vector<4x32xf32>, vector<256x32xf32> -> vector<256x32xf32>
    %36 = arith.addf %30, %35 : vector<256x32xf32>
    %c0_55 = arith.constant 0 : index
    %c1_56 = arith.constant 1 : index
    %c9_57 = arith.constant 9 : index
    %c0_58 = arith.constant 0 : index
    %37 = vector.load %arg11[%c0_55, %c1_56, %c9_57, %c0_58] : memref<1x18x25x32xf32, #tpu.memory_space<vmem>>, vector<1x16x16x4xf32>
    %38 = vector.shape_cast %37 : vector<1x16x16x4xf32> to vector<256x4xf32>
    %c5 = arith.constant 5 : index
    %c0_59 = arith.constant 0 : index
    %c0_60 = arith.constant 0 : index
    %39 = vector.load %arg2[%c5, %c0_59, %c0_60] : memref<9x4x32xf32, #tpu.memory_space<vmem>>, vector<1x4x32xf32>
    %40 = vector.shape_cast %39 : vector<1x4x32xf32> to vector<4x32xf32>
    %cst_61 = arith.constant dense<0.000000e+00> : vector<256x32xf32>
    %41 = tpu.matmul %38, %40, %cst_61 {dimension_numbers = #tpu.dot_dimension_numbers<[1], [0], [0], [1], [0, 0, 1, 1], [], []>} : vector<256x4xf32>, vector<4x32xf32>, vector<256x32xf32> -> vector<256x32xf32>
    %42 = arith.addf %36, %41 : vector<256x32xf32>
    %c0_62 = arith.constant 0 : index
    %c2_63 = arith.constant 2 : index
    %c7_64 = arith.constant 7 : index
    %c0_65 = arith.constant 0 : index
    %43 = vector.load %arg11[%c0_62, %c2_63, %c7_64, %c0_65] : memref<1x18x25x32xf32, #tpu.memory_space<vmem>>, vector<1x16x16x4xf32>
    %44 = vector.shape_cast %43 : vector<1x16x16x4xf32> to vector<256x4xf32>
    %c6 = arith.constant 6 : index
    %c0_66 = arith.constant 0 : index
    %c0_67 = arith.constant 0 : index
    %45 = vector.load %arg2[%c6, %c0_66, %c0_67] : memref<9x4x32xf32, #tpu.memory_space<vmem>>, vector<1x4x32xf32>
    %46 = vector.shape_cast %45 : vector<1x4x32xf32> to vector<4x32xf32>
    %cst_68 = arith.constant dense<0.000000e+00> : vector<256x32xf32>
    %47 = tpu.matmul %44, %46, %cst_68 {dimension_numbers = #tpu.dot_dimension_numbers<[1], [0], [0], [1], [0, 0, 1, 1], [], []>} : vector<256x4xf32>, vector<4x32xf32>, vector<256x32xf32> -> vector<256x32xf32>
    %48 = arith.addf %42, %47 : vector<256x32xf32>
    %c0_69 = arith.constant 0 : index
    %c2_70 = arith.constant 2 : index
    %c8_71 = arith.constant 8 : index
    %c0_72 = arith.constant 0 : index
    %49 = vector.load %arg11[%c0_69, %c2_70, %c8_71, %c0_72] : memref<1x18x25x32xf32, #tpu.memory_space<vmem>>, vector<1x16x16x4xf32>
    %50 = vector.shape_cast %49 : vector<1x16x16x4xf32> to vector<256x4xf32>
    %c7_73 = arith.constant 7 : index
    %c0_74 = arith.constant 0 : index
    %c0_75 = arith.constant 0 : index
    %51 = vector.load %arg2[%c7_73, %c0_74, %c0_75] : memref<9x4x32xf32, #tpu.memory_space<vmem>>, vector<1x4x32xf32>
    %52 = vector.shape_cast %51 : vector<1x4x32xf32> to vector<4x32xf32>
    %cst_76 = arith.constant dense<0.000000e+00> : vector<256x32xf32>
    %53 = tpu.matmul %50, %52, %cst_76 {dimension_numbers = #tpu.dot_dimension_numbers<[1], [0], [0], [1], [0, 0, 1, 1], [], []>} : vector<256x4xf32>, vector<4x32xf32>, vector<256x32xf32> -> vector<256x32xf32>
    %54 = arith.addf %48, %53 : vector<256x32xf32>
    %c0_77 = arith.constant 0 : index
    %c2_78 = arith.constant 2 : index
    %c9_79 = arith.constant 9 : index
    %c0_80 = arith.constant 0 : index
    %55 = vector.load %arg11[%c0_77, %c2_78, %c9_79, %c0_80] : memref<1x18x25x32xf32, #tpu.memory_space<vmem>>, vector<1x16x16x4xf32>
    %56 = vector.shape_cast %55 : vector<1x16x16x4xf32> to vector<256x4xf32>
    %c8_81 = arith.constant 8 : index
    %c0_82 = arith.constant 0 : index
    %c0_83 = arith.constant 0 : index
    %57 = vector.load %arg2[%c8_81, %c0_82, %c0_83] : memref<9x4x32xf32, #tpu.memory_space<vmem>>, vector<1x4x32xf32>
    %58 = vector.shape_cast %57 : vector<1x4x32xf32> to vector<4x32xf32>
    %cst_84 = arith.constant dense<0.000000e+00> : vector<256x32xf32>
    %59 = tpu.matmul %56, %58, %cst_84 {dimension_numbers = #tpu.dot_dimension_numbers<[1], [0], [0], [1], [0, 0, 1, 1], [], []>} : vector<256x4xf32>, vector<4x32xf32>, vector<256x32xf32> -> vector<256x32xf32>
    %60 = arith.addf %54, %59 : vector<256x32xf32>
    %c0_85 = arith.constant 0 : index
    %c0_86 = arith.constant 0 : index
    %61 = vector.load %arg3[%c0_85, %c0_86] : memref<1x32xf32, #tpu.memory_space<vmem>>, vector<1x32xf32>
    %62 = vector.broadcast %61 : vector<1x32xf32> to vector<256x32xf32>
    %63 = arith.addf %60, %62 : vector<256x32xf32>
    %cst_87 = arith.constant 0.000000e+00 : f32
    %64 = vector.broadcast %cst_87 : f32 to vector<256x32xf32>
    %65 = arith.maximumf %63, %64 : vector<256x32xf32>
    %66 = vector.shape_cast %65 : vector<256x32xf32> to vector<1x16x16x32xf32>
    %c0_88 = arith.constant 0 : index
    %c1_89 = arith.constant 1 : index
    %c8_90 = arith.constant 8 : index
    %c0_91 = arith.constant 0 : index
    %67 = vector.load %arg11[%c0_88, %c1_89, %c8_90, %c0_91] : memref<1x18x25x32xf32, #tpu.memory_space<vmem>>, vector<1x16x16x32xf32>
    tpu.vector_store %arg11[%c0_88, %c1_89, %c8_90, %c0_91], %66 {strides = array<i32>} : memref<1x18x25x32xf32, #tpu.memory_space<vmem>>, vector<1x16x16x32xf32>,
    %c0_92 = arith.constant 0 : index
    %c0_93 = arith.constant 0 : index
    %c7_94 = arith.constant 7 : index
    %c0_95 = arith.constant 0 : index
    %68 = vector.load %arg11[%c0_92, %c0_93, %c7_94, %c0_95] : memref<1x18x25x32xf32, #tpu.memory_space<vmem>>, vector<1x16x16x32xf32>
    %69 = vector.shape_cast %68 : vector<1x16x16x32xf32> to vector<256x32xf32>
    %c0_96 = arith.constant 0 : index
    %c0_97 = arith.constant 0 : index
    %c0_98 = arith.constant 0 : index
    %70 = vector.load %arg4[%c0_96, %c0_97, %c0_98] : memref<9x32x32xf32, #tpu.memory_space<vmem>>, vector<1x32x32xf32>
    %71 = vector.shape_cast %70 : vector<1x32x32xf32> to vector<32x32xf32>
    %cst_99 = arith.constant dense<0.000000e+00> : vector<256x32xf32>
    %72 = tpu.matmul %69, %71, %cst_99 {dimension_numbers = #tpu.dot_dimension_numbers<[1], [0], [0], [1], [0, 0, 1, 1], [], []>} : vector<256x32xf32>, vector<32x32xf32>, vector<256x32xf32> -> vector<256x32xf32>
    %c0_100 = arith.constant 0 : index
    %c0_101 = arith.constant 0 : index
    %c8_102 = arith.constant 8 : index
    %c0_103 = arith.constant 0 : index
    %73 = vector.load %arg11[%c0_100, %c0_101, %c8_102, %c0_103] : memref<1x18x25x32xf32, #tpu.memory_space<vmem>>, vector<1x16x16x32xf32>
    %74 = vector.shape_cast %73 : vector<1x16x16x32xf32> to vector<256x32xf32>
    %c1_104 = arith.constant 1 : index
    %c0_105 = arith.constant 0 : index
    %c0_106 = arith.constant 0 : index
    %75 = vector.load %arg4[%c1_104, %c0_105, %c0_106] : memref<9x32x32xf32, #tpu.memory_space<vmem>>, vector<1x32x32xf32>
    %76 = vector.shape_cast %75 : vector<1x32x32xf32> to vector<32x32xf32>
    %cst_107 = arith.constant dense<0.000000e+00> : vector<256x32xf32>
    %77 = tpu.matmul %74, %76, %cst_107 {dimension_numbers = #tpu.dot_dimension_numbers<[1], [0], [0], [1], [0, 0, 1, 1], [], []>} : vector<256x32xf32>, vector<32x32xf32>, vector<256x32xf32> -> vector<256x32xf32>
    %78 = arith.addf %72, %77 : vector<256x32xf32>
    %c0_108 = arith.constant 0 : index
    %c0_109 = arith.constant 0 : index
    %c9_110 = arith.constant 9 : index
    %c0_111 = arith.constant 0 : index
    %79 = vector.load %arg11[%c0_108, %c0_109, %c9_110, %c0_111] : memref<1x18x25x32xf32, #tpu.memory_space<vmem>>, vector<1x16x16x32xf32>
    %80 = vector.shape_cast %79 : vector<1x16x16x32xf32> to vector<256x32xf32>
    %c2_112 = arith.constant 2 : index
    %c0_113 = arith.constant 0 : index
    %c0_114 = arith.constant 0 : index
    %81 = vector.load %arg4[%c2_112, %c0_113, %c0_114] : memref<9x32x32xf32, #tpu.memory_space<vmem>>, vector<1x32x32xf32>
    %82 = vector.shape_cast %81 : vector<1x32x32xf32> to vector<32x32xf32>
    %cst_115 = arith.constant dense<0.000000e+00> : vector<256x32xf32>
    %83 = tpu.matmul %80, %82, %cst_115 {dimension_numbers = #tpu.dot_dimension_numbers<[1], [0], [0], [1], [0, 0, 1, 1], [], []>} : vector<256x32xf32>, vector<32x32xf32>, vector<256x32xf32> -> vector<256x32xf32>
    %84 = arith.addf %78, %83 : vector<256x32xf32>
    %c0_116 = arith.constant 0 : index
    %c1_117 = arith.constant 1 : index
    %c7_118 = arith.constant 7 : index
    %c0_119 = arith.constant 0 : index
    %85 = vector.load %arg11[%c0_116, %c1_117, %c7_118, %c0_119] : memref<1x18x25x32xf32, #tpu.memory_space<vmem>>, vector<1x16x16x32xf32>
    %86 = vector.shape_cast %85 : vector<1x16x16x32xf32> to vector<256x32xf32>
    %c3_120 = arith.constant 3 : index
    %c0_121 = arith.constant 0 : index
    %c0_122 = arith.constant 0 : index
    %87 = vector.load %arg4[%c3_120, %c0_121, %c0_122] : memref<9x32x32xf32, #tpu.memory_space<vmem>>, vector<1x32x32xf32>
    %88 = vector.shape_cast %87 : vector<1x32x32xf32> to vector<32x32xf32>
    %cst_123 = arith.constant dense<0.000000e+00> : vector<256x32xf32>
    %89 = tpu.matmul %86, %88, %cst_123 {dimension_numbers = #tpu.dot_dimension_numbers<[1], [0], [0], [1], [0, 0, 1, 1], [], []>} : vector<256x32xf32>, vector<32x32xf32>, vector<256x32xf32> -> vector<256x32xf32>
    %90 = arith.addf %84, %89 : vector<256x32xf32>
    %c0_124 = arith.constant 0 : index
    %c1_125 = arith.constant 1 : index
    %c8_126 = arith.constant 8 : index
    %c0_127 = arith.constant 0 : index
    %91 = vector.load %arg11[%c0_124, %c1_125, %c8_126, %c0_127] : memref<1x18x25x32xf32, #tpu.memory_space<vmem>>, vector<1x16x16x32xf32>
    %92 = vector.shape_cast %91 : vector<1x16x16x32xf32> to vector<256x32xf32>
    %c4_128 = arith.constant 4 : index
    %c0_129 = arith.constant 0 : index
    %c0_130 = arith.constant 0 : index
    %93 = vector.load %arg4[%c4_128, %c0_129, %c0_130] : memref<9x32x32xf32, #tpu.memory_space<vmem>>, vector<1x32x32xf32>
    %94 = vector.shape_cast %93 : vector<1x32x32xf32> to vector<32x32xf32>
    %cst_131 = arith.constant dense<0.000000e+00> : vector<256x32xf32>
    %95 = tpu.matmul %92, %94, %cst_131 {dimension_numbers = #tpu.dot_dimension_numbers<[1], [0], [0], [1], [0, 0, 1, 1], [], []>} : vector<256x32xf32>, vector<32x32xf32>, vector<256x32xf32> -> vector<256x32xf32>
    %96 = arith.addf %90, %95 : vector<256x32xf32>
    %c0_132 = arith.constant 0 : index
    %c1_133 = arith.constant 1 : index
    %c9_134 = arith.constant 9 : index
    %c0_135 = arith.constant 0 : index
    %97 = vector.load %arg11[%c0_132, %c1_133, %c9_134, %c0_135] : memref<1x18x25x32xf32, #tpu.memory_space<vmem>>, vector<1x16x16x32xf32>
    %98 = vector.shape_cast %97 : vector<1x16x16x32xf32> to vector<256x32xf32>
    %c5_136 = arith.constant 5 : index
    %c0_137 = arith.constant 0 : index
    %c0_138 = arith.constant 0 : index
    %99 = vector.load %arg4[%c5_136, %c0_137, %c0_138] : memref<9x32x32xf32, #tpu.memory_space<vmem>>, vector<1x32x32xf32>
    %100 = vector.shape_cast %99 : vector<1x32x32xf32> to vector<32x32xf32>
    %cst_139 = arith.constant dense<0.000000e+00> : vector<256x32xf32>
    %101 = tpu.matmul %98, %100, %cst_139 {dimension_numbers = #tpu.dot_dimension_numbers<[1], [0], [0], [1], [0, 0, 1, 1], [], []>} : vector<256x32xf32>, vector<32x32xf32>, vector<256x32xf32> -> vector<256x32xf32>
    %102 = arith.addf %96, %101 : vector<256x32xf32>
    %c0_140 = arith.constant 0 : index
    %c2_141 = arith.constant 2 : index
    %c7_142 = arith.constant 7 : index
    %c0_143 = arith.constant 0 : index
    %103 = vector.load %arg11[%c0_140, %c2_141, %c7_142, %c0_143] : memref<1x18x25x32xf32, #tpu.memory_space<vmem>>, vector<1x16x16x32xf32>
    %104 = vector.shape_cast %103 : vector<1x16x16x32xf32> to vector<256x32xf32>
    %c6_144 = arith.constant 6 : index
    %c0_145 = arith.constant 0 : index
    %c0_146 = arith.constant 0 : index
    %105 = vector.load %arg4[%c6_144, %c0_145, %c0_146] : memref<9x32x32xf32, #tpu.memory_space<vmem>>, vector<1x32x32xf32>
    %106 = vector.shape_cast %105 : vector<1x32x32xf32> to vector<32x32xf32>
    %cst_147 = arith.constant dense<0.000000e+00> : vector<256x32xf32>
    %107 = tpu.matmul %104, %106, %cst_147 {dimension_numbers = #tpu.dot_dimension_numbers<[1], [0], [0], [1], [0, 0, 1, 1], [], []>} : vector<256x32xf32>, vector<32x32xf32>, vector<256x32xf32> -> vector<256x32xf32>
    %108 = arith.addf %102, %107 : vector<256x32xf32>
    %c0_148 = arith.constant 0 : index
    %c2_149 = arith.constant 2 : index
    %c8_150 = arith.constant 8 : index
    %c0_151 = arith.constant 0 : index
    %109 = vector.load %arg11[%c0_148, %c2_149, %c8_150, %c0_151] : memref<1x18x25x32xf32, #tpu.memory_space<vmem>>, vector<1x16x16x32xf32>
    %110 = vector.shape_cast %109 : vector<1x16x16x32xf32> to vector<256x32xf32>
    %c7_152 = arith.constant 7 : index
    %c0_153 = arith.constant 0 : index
    %c0_154 = arith.constant 0 : index
    %111 = vector.load %arg4[%c7_152, %c0_153, %c0_154] : memref<9x32x32xf32, #tpu.memory_space<vmem>>, vector<1x32x32xf32>
    %112 = vector.shape_cast %111 : vector<1x32x32xf32> to vector<32x32xf32>
    %cst_155 = arith.constant dense<0.000000e+00> : vector<256x32xf32>
    %113 = tpu.matmul %110, %112, %cst_155 {dimension_numbers = #tpu.dot_dimension_numbers<[1], [0], [0], [1], [0, 0, 1, 1], [], []>} : vector<256x32xf32>, vector<32x32xf32>, vector<256x32xf32> -> vector<256x32xf32>
    %114 = arith.addf %108, %113 : vector<256x32xf32>
    %c0_156 = arith.constant 0 : index
    %c2_157 = arith.constant 2 : index
    %c9_158 = arith.constant 9 : index
    %c0_159 = arith.constant 0 : index
    %115 = vector.load %arg11[%c0_156, %c2_157, %c9_158, %c0_159] : memref<1x18x25x32xf32, #tpu.memory_space<vmem>>, vector<1x16x16x32xf32>
    %116 = vector.shape_cast %115 : vector<1x16x16x32xf32> to vector<256x32xf32>
    %c8_160 = arith.constant 8 : index
    %c0_161 = arith.constant 0 : index
    %c0_162 = arith.constant 0 : index
    %117 = vector.load %arg4[%c8_160, %c0_161, %c0_162] : memref<9x32x32xf32, #tpu.memory_space<vmem>>, vector<1x32x32xf32>
    %118 = vector.shape_cast %117 : vector<1x32x32xf32> to vector<32x32xf32>
    %cst_163 = arith.constant dense<0.000000e+00> : vector<256x32xf32>
    %119 = tpu.matmul %116, %118, %cst_163 {dimension_numbers = #tpu.dot_dimension_numbers<[1], [0], [0], [1], [0, 0, 1, 1], [], []>} : vector<256x32xf32>, vector<32x32xf32>, vector<256x32xf32> -> vector<256x32xf32>
    %120 = arith.addf %114, %119 : vector<256x32xf32>
    %c0_164 = arith.constant 0 : index
    %c0_165 = arith.constant 0 : index
    %121 = vector.load %arg5[%c0_164, %c0_165] : memref<1x32xf32, #tpu.memory_space<vmem>>, vector<1x32xf32>
    %122 = vector.broadcast %121 : vector<1x32xf32> to vector<256x32xf32>
    %123 = arith.addf %120, %122 : vector<256x32xf32>
    %cst_166 = arith.constant 0.000000e+00 : f32
    %124 = vector.broadcast %cst_166 : f32 to vector<256x32xf32>
    %125 = arith.maximumf %123, %124 : vector<256x32xf32>
    %126 = vector.shape_cast %125 : vector<256x32xf32> to vector<1x16x16x32xf32>
    %c0_167 = arith.constant 0 : index
    %c1_168 = arith.constant 1 : index
    %c8_169 = arith.constant 8 : index
    %c0_170 = arith.constant 0 : index
    %127 = vector.load %arg11[%c0_167, %c1_168, %c8_169, %c0_170] : memref<1x18x25x32xf32, #tpu.memory_space<vmem>>, vector<1x16x16x32xf32>
    tpu.vector_store %arg11[%c0_167, %c1_168, %c8_169, %c0_170], %126 {strides = array<i32>} : memref<1x18x25x32xf32, #tpu.memory_space<vmem>>, vector<1x16x16x32xf32>,
    %c0_171 = arith.constant 0 : index
    %c0_172 = arith.constant 0 : index
    %c7_173 = arith.constant 7 : index
    %c0_174 = arith.constant 0 : index
    %128 = vector.load %arg11[%c0_171, %c0_172, %c7_173, %c0_174] : memref<1x18x25x32xf32, #tpu.memory_space<vmem>>, vector<1x16x16x32xf32>
    %129 = vector.shape_cast %128 : vector<1x16x16x32xf32> to vector<256x32xf32>
    %c0_175 = arith.constant 0 : index
    %c0_176 = arith.constant 0 : index
    %c0_177 = arith.constant 0 : index
    %130 = vector.load %arg6[%c0_175, %c0_176, %c0_177] : memref<9x32x32xf32, #tpu.memory_space<vmem>>, vector<1x32x32xf32>
    %131 = vector.shape_cast %130 : vector<1x32x32xf32> to vector<32x32xf32>
    %cst_178 = arith.constant dense<0.000000e+00> : vector<256x32xf32>
    %132 = tpu.matmul %129, %131, %cst_178 {dimension_numbers = #tpu.dot_dimension_numbers<[1], [0], [0], [1], [0, 0, 1, 1], [], []>} : vector<256x32xf32>, vector<32x32xf32>, vector<256x32xf32> -> vector<256x32xf32>
    %c0_179 = arith.constant 0 : index
    %c0_180 = arith.constant 0 : index
    %c8_181 = arith.constant 8 : index
    %c0_182 = arith.constant 0 : index
    %133 = vector.load %arg11[%c0_179, %c0_180, %c8_181, %c0_182] : memref<1x18x25x32xf32, #tpu.memory_space<vmem>>, vector<1x16x16x32xf32>
    %134 = vector.shape_cast %133 : vector<1x16x16x32xf32> to vector<256x32xf32>
    %c1_183 = arith.constant 1 : index
    %c0_184 = arith.constant 0 : index
    %c0_185 = arith.constant 0 : index
    %135 = vector.load %arg6[%c1_183, %c0_184, %c0_185] : memref<9x32x32xf32, #tpu.memory_space<vmem>>, vector<1x32x32xf32>
    %136 = vector.shape_cast %135 : vector<1x32x32xf32> to vector<32x32xf32>
    %cst_186 = arith.constant dense<0.000000e+00> : vector<256x32xf32>
    %137 = tpu.matmul %134, %136, %cst_186 {dimension_numbers = #tpu.dot_dimension_numbers<[1], [0], [0], [1], [0, 0, 1, 1], [], []>} : vector<256x32xf32>, vector<32x32xf32>, vector<256x32xf32> -> vector<256x32xf32>
    %138 = arith.addf %132, %137 : vector<256x32xf32>
    %c0_187 = arith.constant 0 : index
    %c0_188 = arith.constant 0 : index
    %c9_189 = arith.constant 9 : index
    %c0_190 = arith.constant 0 : index
    %139 = vector.load %arg11[%c0_187, %c0_188, %c9_189, %c0_190] : memref<1x18x25x32xf32, #tpu.memory_space<vmem>>, vector<1x16x16x32xf32>
    %140 = vector.shape_cast %139 : vector<1x16x16x32xf32> to vector<256x32xf32>
    %c2_191 = arith.constant 2 : index
    %c0_192 = arith.constant 0 : index
    %c0_193 = arith.constant 0 : index
    %141 = vector.load %arg6[%c2_191, %c0_192, %c0_193] : memref<9x32x32xf32, #tpu.memory_space<vmem>>, vector<1x32x32xf32>
    %142 = vector.shape_cast %141 : vector<1x32x32xf32> to vector<32x32xf32>
    %cst_194 = arith.constant dense<0.000000e+00> : vector<256x32xf32>
    %143 = tpu.matmul %140, %142, %cst_194 {dimension_numbers = #tpu.dot_dimension_numbers<[1], [0], [0], [1], [0, 0, 1, 1], [], []>} : vector<256x32xf32>, vector<32x32xf32>, vector<256x32xf32> -> vector<256x32xf32>
    %144 = arith.addf %138, %143 : vector<256x32xf32>
    %c0_195 = arith.constant 0 : index
    %c1_196 = arith.constant 1 : index
    %c7_197 = arith.constant 7 : index
    %c0_198 = arith.constant 0 : index
    %145 = vector.load %arg11[%c0_195, %c1_196, %c7_197, %c0_198] : memref<1x18x25x32xf32, #tpu.memory_space<vmem>>, vector<1x16x16x32xf32>
    %146 = vector.shape_cast %145 : vector<1x16x16x32xf32> to vector<256x32xf32>
    %c3_199 = arith.constant 3 : index
    %c0_200 = arith.constant 0 : index
    %c0_201 = arith.constant 0 : index
    %147 = vector.load %arg6[%c3_199, %c0_200, %c0_201] : memref<9x32x32xf32, #tpu.memory_space<vmem>>, vector<1x32x32xf32>
    %148 = vector.shape_cast %147 : vector<1x32x32xf32> to vector<32x32xf32>
    %cst_202 = arith.constant dense<0.000000e+00> : vector<256x32xf32>
    %149 = tpu.matmul %146, %148, %cst_202 {dimension_numbers = #tpu.dot_dimension_numbers<[1], [0], [0], [1], [0, 0, 1, 1], [], []>} : vector<256x32xf32>, vector<32x32xf32>, vector<256x32xf32> -> vector<256x32xf32>
    %150 = arith.addf %144, %149 : vector<256x32xf32>
    %c0_203 = arith.constant 0 : index
    %c1_204 = arith.constant 1 : index
    %c8_205 = arith.constant 8 : index
    %c0_206 = arith.constant 0 : index
    %151 = vector.load %arg11[%c0_203, %c1_204, %c8_205, %c0_206] : memref<1x18x25x32xf32, #tpu.memory_space<vmem>>, vector<1x16x16x32xf32>
    %152 = vector.shape_cast %151 : vector<1x16x16x32xf32> to vector<256x32xf32>
    %c4_207 = arith.constant 4 : index
    %c0_208 = arith.constant 0 : index
    %c0_209 = arith.constant 0 : index
    %153 = vector.load %arg6[%c4_207, %c0_208, %c0_209] : memref<9x32x32xf32, #tpu.memory_space<vmem>>, vector<1x32x32xf32>
    %154 = vector.shape_cast %153 : vector<1x32x32xf32> to vector<32x32xf32>
    %cst_210 = arith.constant dense<0.000000e+00> : vector<256x32xf32>
    %155 = tpu.matmul %152, %154, %cst_210 {dimension_numbers = #tpu.dot_dimension_numbers<[1], [0], [0], [1], [0, 0, 1, 1], [], []>} : vector<256x32xf32>, vector<32x32xf32>, vector<256x32xf32> -> vector<256x32xf32>
    %156 = arith.addf %150, %155 : vector<256x32xf32>
    %c0_211 = arith.constant 0 : index
    %c1_212 = arith.constant 1 : index
    %c9_213 = arith.constant 9 : index
    %c0_214 = arith.constant 0 : index
    %157 = vector.load %arg11[%c0_211, %c1_212, %c9_213, %c0_214] : memref<1x18x25x32xf32, #tpu.memory_space<vmem>>, vector<1x16x16x32xf32>
    %158 = vector.shape_cast %157 : vector<1x16x16x32xf32> to vector<256x32xf32>
    %c5_215 = arith.constant 5 : index
    %c0_216 = arith.constant 0 : index
    %c0_217 = arith.constant 0 : index
    %159 = vector.load %arg6[%c5_215, %c0_216, %c0_217] : memref<9x32x32xf32, #tpu.memory_space<vmem>>, vector<1x32x32xf32>
    %160 = vector.shape_cast %159 : vector<1x32x32xf32> to vector<32x32xf32>
    %cst_218 = arith.constant dense<0.000000e+00> : vector<256x32xf32>
    %161 = tpu.matmul %158, %160, %cst_218 {dimension_numbers = #tpu.dot_dimension_numbers<[1], [0], [0], [1], [0, 0, 1, 1], [], []>} : vector<256x32xf32>, vector<32x32xf32>, vector<256x32xf32> -> vector<256x32xf32>
    %162 = arith.addf %156, %161 : vector<256x32xf32>
    %c0_219 = arith.constant 0 : index
    %c2_220 = arith.constant 2 : index
    %c7_221 = arith.constant 7 : index
    %c0_222 = arith.constant 0 : index
    %163 = vector.load %arg11[%c0_219, %c2_220, %c7_221, %c0_222] : memref<1x18x25x32xf32, #tpu.memory_space<vmem>>, vector<1x16x16x32xf32>
    %164 = vector.shape_cast %163 : vector<1x16x16x32xf32> to vector<256x32xf32>
    %c6_223 = arith.constant 6 : index
    %c0_224 = arith.constant 0 : index
    %c0_225 = arith.constant 0 : index
    %165 = vector.load %arg6[%c6_223, %c0_224, %c0_225] : memref<9x32x32xf32, #tpu.memory_space<vmem>>, vector<1x32x32xf32>
    %166 = vector.shape_cast %165 : vector<1x32x32xf32> to vector<32x32xf32>
    %cst_226 = arith.constant dense<0.000000e+00> : vector<256x32xf32>
    %167 = tpu.matmul %164, %166, %cst_226 {dimension_numbers = #tpu.dot_dimension_numbers<[1], [0], [0], [1], [0, 0, 1, 1], [], []>} : vector<256x32xf32>, vector<32x32xf32>, vector<256x32xf32> -> vector<256x32xf32>
    %168 = arith.addf %162, %167 : vector<256x32xf32>
    %c0_227 = arith.constant 0 : index
    %c2_228 = arith.constant 2 : index
    %c8_229 = arith.constant 8 : index
    %c0_230 = arith.constant 0 : index
    %169 = vector.load %arg11[%c0_227, %c2_228, %c8_229, %c0_230] : memref<1x18x25x32xf32, #tpu.memory_space<vmem>>, vector<1x16x16x32xf32>
    %170 = vector.shape_cast %169 : vector<1x16x16x32xf32> to vector<256x32xf32>
    %c7_231 = arith.constant 7 : index
    %c0_232 = arith.constant 0 : index
    %c0_233 = arith.constant 0 : index
    %171 = vector.load %arg6[%c7_231, %c0_232, %c0_233] : memref<9x32x32xf32, #tpu.memory_space<vmem>>, vector<1x32x32xf32>
    %172 = vector.shape_cast %171 : vector<1x32x32xf32> to vector<32x32xf32>
    %cst_234 = arith.constant dense<0.000000e+00> : vector<256x32xf32>
    %173 = tpu.matmul %170, %172, %cst_234 {dimension_numbers = #tpu.dot_dimension_numbers<[1], [0], [0], [1], [0, 0, 1, 1], [], []>} : vector<256x32xf32>, vector<32x32xf32>, vector<256x32xf32> -> vector<256x32xf32>
    %174 = arith.addf %168, %173 : vector<256x32xf32>
    %c0_235 = arith.constant 0 : index
    %c2_236 = arith.constant 2 : index
    %c9_237 = arith.constant 9 : index
    %c0_238 = arith.constant 0 : index
    %175 = vector.load %arg11[%c0_235, %c2_236, %c9_237, %c0_238] : memref<1x18x25x32xf32, #tpu.memory_space<vmem>>, vector<1x16x16x32xf32>
    %176 = vector.shape_cast %175 : vector<1x16x16x32xf32> to vector<256x32xf32>
    %c8_239 = arith.constant 8 : index
    %c0_240 = arith.constant 0 : index
    %c0_241 = arith.constant 0 : index
    %177 = vector.load %arg6[%c8_239, %c0_240, %c0_241] : memref<9x32x32xf32, #tpu.memory_space<vmem>>, vector<1x32x32xf32>
    %178 = vector.shape_cast %177 : vector<1x32x32xf32> to vector<32x32xf32>
    %cst_242 = arith.constant dense<0.000000e+00> : vector<256x32xf32>
    %179 = tpu.matmul %176, %178, %cst_242 {dimension_numbers = #tpu.dot_dimension_numbers<[1], [0], [0], [1], [0, 0, 1, 1], [], []>} : vector<256x32xf32>, vector<32x32xf32>, vector<256x32xf32> -> vector<256x32xf32>
    %180 = arith.addf %174, %179 : vector<256x32xf32>
    %c0_243 = arith.constant 0 : index
    %c0_244 = arith.constant 0 : index
    %181 = vector.load %arg7[%c0_243, %c0_244] : memref<1x32xf32, #tpu.memory_space<vmem>>, vector<1x32xf32>
    %182 = vector.broadcast %181 : vector<1x32xf32> to vector<256x32xf32>
    %183 = arith.addf %180, %182 : vector<256x32xf32>
    %cst_245 = arith.constant 0.000000e+00 : f32
    %184 = vector.broadcast %cst_245 : f32 to vector<256x32xf32>
    %185 = arith.maximumf %183, %184 : vector<256x32xf32>
    %186 = vector.shape_cast %185 : vector<256x32xf32> to vector<1x16x16x32xf32>
    %c0_246 = arith.constant 0 : index
    %c1_247 = arith.constant 1 : index
    %c8_248 = arith.constant 8 : index
    %c0_249 = arith.constant 0 : index
    %187 = vector.load %arg11[%c0_246, %c1_247, %c8_248, %c0_249] : memref<1x18x25x32xf32, #tpu.memory_space<vmem>>, vector<1x16x16x32xf32>
    tpu.vector_store %arg11[%c0_246, %c1_247, %c8_248, %c0_249], %186 {strides = array<i32>} : memref<1x18x25x32xf32, #tpu.memory_space<vmem>>, vector<1x16x16x32xf32>,
    %c0_250 = arith.constant 0 : index
    %c0_251 = arith.constant 0 : index
    %c7_252 = arith.constant 7 : index
    %c0_253 = arith.constant 0 : index
    %188 = vector.load %arg11[%c0_250, %c0_251, %c7_252, %c0_253] : memref<1x18x25x32xf32, #tpu.memory_space<vmem>>, vector<1x16x16x32xf32>
    %189 = vector.shape_cast %188 : vector<1x16x16x32xf32> to vector<256x32xf32>
    %c0_254 = arith.constant 0 : index
    %c0_255 = arith.constant 0 : index
    %c0_256 = arith.constant 0 : index
    %190 = vector.load %arg8[%c0_254, %c0_255, %c0_256] : memref<9x32x3xf32, #tpu.memory_space<vmem>>, vector<1x32x3xf32>
    %191 = vector.shape_cast %190 : vector<1x32x3xf32> to vector<32x3xf32>
    %cst_257 = arith.constant dense<0.000000e+00> : vector<256x3xf32>
    %192 = tpu.matmul %189, %191, %cst_257 {dimension_numbers = #tpu.dot_dimension_numbers<[1], [0], [0], [1], [0, 0, 1, 1], [], []>} : vector<256x32xf32>, vector<32x3xf32>, vector<256x3xf32> -> vector<256x3xf32>
    %c0_258 = arith.constant 0 : index
    %c0_259 = arith.constant 0 : index
    %c8_260 = arith.constant 8 : index
    %c0_261 = arith.constant 0 : index
    %193 = vector.load %arg11[%c0_258, %c0_259, %c8_260, %c0_261] : memref<1x18x25x32xf32, #tpu.memory_space<vmem>>, vector<1x16x16x32xf32>
    %194 = vector.shape_cast %193 : vector<1x16x16x32xf32> to vector<256x32xf32>
    %c1_262 = arith.constant 1 : index
    %c0_263 = arith.constant 0 : index
    %c0_264 = arith.constant 0 : index
    %195 = vector.load %arg8[%c1_262, %c0_263, %c0_264] : memref<9x32x3xf32, #tpu.memory_space<vmem>>, vector<1x32x3xf32>
    %196 = vector.shape_cast %195 : vector<1x32x3xf32> to vector<32x3xf32>
    %cst_265 = arith.constant dense<0.000000e+00> : vector<256x3xf32>
    %197 = tpu.matmul %194, %196, %cst_265 {dimension_numbers = #tpu.dot_dimension_numbers<[1], [0], [0], [1], [0, 0, 1, 1], [], []>} : vector<256x32xf32>, vector<32x3xf32>, vector<256x3xf32> -> vector<256x3xf32>
    %198 = arith.addf %192, %197 : vector<256x3xf32>
    %c0_266 = arith.constant 0 : index
    %c0_267 = arith.constant 0 : index
    %c9_268 = arith.constant 9 : index
    %c0_269 = arith.constant 0 : index
    %199 = vector.load %arg11[%c0_266, %c0_267, %c9_268, %c0_269] : memref<1x18x25x32xf32, #tpu.memory_space<vmem>>, vector<1x16x16x32xf32>
    %200 = vector.shape_cast %199 : vector<1x16x16x32xf32> to vector<256x32xf32>
    %c2_270 = arith.constant 2 : index
    %c0_271 = arith.constant 0 : index
    %c0_272 = arith.constant 0 : index
    %201 = vector.load %arg8[%c2_270, %c0_271, %c0_272] : memref<9x32x3xf32, #tpu.memory_space<vmem>>, vector<1x32x3xf32>
    %202 = vector.shape_cast %201 : vector<1x32x3xf32> to vector<32x3xf32>
    %cst_273 = arith.constant dense<0.000000e+00> : vector<256x3xf32>
    %203 = tpu.matmul %200, %202, %cst_273 {dimension_numbers = #tpu.dot_dimension_numbers<[1], [0], [0], [1], [0, 0, 1, 1], [], []>} : vector<256x32xf32>, vector<32x3xf32>, vector<256x3xf32> -> vector<256x3xf32>
    %204 = arith.addf %198, %203 : vector<256x3xf32>
    %c0_274 = arith.constant 0 : index
    %c1_275 = arith.constant 1 : index
    %c7_276 = arith.constant 7 : index
    %c0_277 = arith.constant 0 : index
    %205 = vector.load %arg11[%c0_274, %c1_275, %c7_276, %c0_277] : memref<1x18x25x32xf32, #tpu.memory_space<vmem>>, vector<1x16x16x32xf32>
    %206 = vector.shape_cast %205 : vector<1x16x16x32xf32> to vector<256x32xf32>
    %c3_278 = arith.constant 3 : index
    %c0_279 = arith.constant 0 : index
    %c0_280 = arith.constant 0 : index
    %207 = vector.load %arg8[%c3_278, %c0_279, %c0_280] : memref<9x32x3xf32, #tpu.memory_space<vmem>>, vector<1x32x3xf32>
    %208 = vector.shape_cast %207 : vector<1x32x3xf32> to vector<32x3xf32>
    %cst_281 = arith.constant dense<0.000000e+00> : vector<256x3xf32>
    %209 = tpu.matmul %206, %208, %cst_281 {dimension_numbers = #tpu.dot_dimension_numbers<[1], [0], [0], [1], [0, 0, 1, 1], [], []>} : vector<256x32xf32>, vector<32x3xf32>, vector<256x3xf32> -> vector<256x3xf32>
    %210 = arith.addf %204, %209 : vector<256x3xf32>
    %c0_282 = arith.constant 0 : index
    %c1_283 = arith.constant 1 : index
    %c8_284 = arith.constant 8 : index
    %c0_285 = arith.constant 0 : index
    %211 = vector.load %arg11[%c0_282, %c1_283, %c8_284, %c0_285] : memref<1x18x25x32xf32, #tpu.memory_space<vmem>>, vector<1x16x16x32xf32>
    %212 = vector.shape_cast %211 : vector<1x16x16x32xf32> to vector<256x32xf32>
    %c4_286 = arith.constant 4 : index
    %c0_287 = arith.constant 0 : index
    %c0_288 = arith.constant 0 : index
    %213 = vector.load %arg8[%c4_286, %c0_287, %c0_288] : memref<9x32x3xf32, #tpu.memory_space<vmem>>, vector<1x32x3xf32>
    %214 = vector.shape_cast %213 : vector<1x32x3xf32> to vector<32x3xf32>
    %cst_289 = arith.constant dense<0.000000e+00> : vector<256x3xf32>
    %215 = tpu.matmul %212, %214, %cst_289 {dimension_numbers = #tpu.dot_dimension_numbers<[1], [0], [0], [1], [0, 0, 1, 1], [], []>} : vector<256x32xf32>, vector<32x3xf32>, vector<256x3xf32> -> vector<256x3xf32>
    %216 = arith.addf %210, %215 : vector<256x3xf32>
    %c0_290 = arith.constant 0 : index
    %c1_291 = arith.constant 1 : index
    %c9_292 = arith.constant 9 : index
    %c0_293 = arith.constant 0 : index
    %217 = vector.load %arg11[%c0_290, %c1_291, %c9_292, %c0_293] : memref<1x18x25x32xf32, #tpu.memory_space<vmem>>, vector<1x16x16x32xf32>
    %218 = vector.shape_cast %217 : vector<1x16x16x32xf32> to vector<256x32xf32>
    %c5_294 = arith.constant 5 : index
    %c0_295 = arith.constant 0 : index
    %c0_296 = arith.constant 0 : index
    %219 = vector.load %arg8[%c5_294, %c0_295, %c0_296] : memref<9x32x3xf32, #tpu.memory_space<vmem>>, vector<1x32x3xf32>
    %220 = vector.shape_cast %219 : vector<1x32x3xf32> to vector<32x3xf32>
    %cst_297 = arith.constant dense<0.000000e+00> : vector<256x3xf32>
    %221 = tpu.matmul %218, %220, %cst_297 {dimension_numbers = #tpu.dot_dimension_numbers<[1], [0], [0], [1], [0, 0, 1, 1], [], []>} : vector<256x32xf32>, vector<32x3xf32>, vector<256x3xf32> -> vector<256x3xf32>
    %222 = arith.addf %216, %221 : vector<256x3xf32>
    %c0_298 = arith.constant 0 : index
    %c2_299 = arith.constant 2 : index
    %c7_300 = arith.constant 7 : index
    %c0_301 = arith.constant 0 : index
    %223 = vector.load %arg11[%c0_298, %c2_299, %c7_300, %c0_301] : memref<1x18x25x32xf32, #tpu.memory_space<vmem>>, vector<1x16x16x32xf32>
    %224 = vector.shape_cast %223 : vector<1x16x16x32xf32> to vector<256x32xf32>
    %c6_302 = arith.constant 6 : index
    %c0_303 = arith.constant 0 : index
    %c0_304 = arith.constant 0 : index
    %225 = vector.load %arg8[%c6_302, %c0_303, %c0_304] : memref<9x32x3xf32, #tpu.memory_space<vmem>>, vector<1x32x3xf32>
    %226 = vector.shape_cast %225 : vector<1x32x3xf32> to vector<32x3xf32>
    %cst_305 = arith.constant dense<0.000000e+00> : vector<256x3xf32>
    %227 = tpu.matmul %224, %226, %cst_305 {dimension_numbers = #tpu.dot_dimension_numbers<[1], [0], [0], [1], [0, 0, 1, 1], [], []>} : vector<256x32xf32>, vector<32x3xf32>, vector<256x3xf32> -> vector<256x3xf32>
    %228 = arith.addf %222, %227 : vector<256x3xf32>
    %c0_306 = arith.constant 0 : index
    %c2_307 = arith.constant 2 : index
    %c8_308 = arith.constant 8 : index
    %c0_309 = arith.constant 0 : index
    %229 = vector.load %arg11[%c0_306, %c2_307, %c8_308, %c0_309] : memref<1x18x25x32xf32, #tpu.memory_space<vmem>>, vector<1x16x16x32xf32>
    %230 = vector.shape_cast %229 : vector<1x16x16x32xf32> to vector<256x32xf32>
    %c7_310 = arith.constant 7 : index
    %c0_311 = arith.constant 0 : index
    %c0_312 = arith.constant 0 : index
    %231 = vector.load %arg8[%c7_310, %c0_311, %c0_312] : memref<9x32x3xf32, #tpu.memory_space<vmem>>, vector<1x32x3xf32>
    %232 = vector.shape_cast %231 : vector<1x32x3xf32> to vector<32x3xf32>
    %cst_313 = arith.constant dense<0.000000e+00> : vector<256x3xf32>
    %233 = tpu.matmul %230, %232, %cst_313 {dimension_numbers = #tpu.dot_dimension_numbers<[1], [0], [0], [1], [0, 0, 1, 1], [], []>} : vector<256x32xf32>, vector<32x3xf32>, vector<256x3xf32> -> vector<256x3xf32>
    %234 = arith.addf %228, %233 : vector<256x3xf32>
    %c0_314 = arith.constant 0 : index
    %c2_315 = arith.constant 2 : index
    %c9_316 = arith.constant 9 : index
    %c0_317 = arith.constant 0 : index
    %235 = vector.load %arg11[%c0_314, %c2_315, %c9_316, %c0_317] : memref<1x18x25x32xf32, #tpu.memory_space<vmem>>, vector<1x16x16x32xf32>
    %236 = vector.shape_cast %235 : vector<1x16x16x32xf32> to vector<256x32xf32>
    %c8_318 = arith.constant 8 : index
    %c0_319 = arith.constant 0 : index
    %c0_320 = arith.constant 0 : index
    %237 = vector.load %arg8[%c8_318, %c0_319, %c0_320] : memref<9x32x3xf32, #tpu.memory_space<vmem>>, vector<1x32x3xf32>
    %238 = vector.shape_cast %237 : vector<1x32x3xf32> to vector<32x3xf32>
    %cst_321 = arith.constant dense<0.000000e+00> : vector<256x3xf32>
    %239 = tpu.matmul %236, %238, %cst_321 {dimension_numbers = #tpu.dot_dimension_numbers<[1], [0], [0], [1], [0, 0, 1, 1], [], []>} : vector<256x32xf32>, vector<32x3xf32>, vector<256x3xf32> -> vector<256x3xf32>
    %240 = arith.addf %234, %239 : vector<256x3xf32>
    %c0_322 = arith.constant 0 : index
    %c0_323 = arith.constant 0 : index
    %241 = vector.load %arg9[%c0_322, %c0_323] : memref<1x3xf32, #tpu.memory_space<vmem>>, vector<1x3xf32>
    %242 = vector.broadcast %241 : vector<1x3xf32> to vector<256x3xf32>
    %243 = arith.addf %240, %242 : vector<256x3xf32>
    %c0_324 = arith.constant 0 : index
    %c0_325 = arith.constant 0 : index
    %c0_326 = arith.constant 0 : index
    %c0_327 = arith.constant 0 : index
    %244 = vector.load %arg1[%c0_324, %c0_325, %c0_326, %c0_327] : memref<1x16x16x4xf32, #tpu.memory_space<vmem>>, vector<1x16x16x3xf32>
    %245 = vector.shape_cast %244 : vector<1x16x16x3xf32> to vector<256x3xf32>
    %246 = arith.addf %245, %243 : vector<256x3xf32>
    %247 = tpu.transpose %246, [1, 0] : vector<256x3xf32> -> vector<3x256xf32>
    %cst_328 = arith.constant 2.500000e-01 : f32
    %248 = vector.broadcast %cst_328 : f32 to vector<3x256xf32>
    %249 = arith.mulf %248, %247 : vector<3x256xf32>
    %250 = math.tanh %249 : vector<3x256xf32>
    %cst_329 = arith.constant 4.000000e+00 : f32
    %251 = vector.broadcast %cst_329 : f32 to vector<3x256xf32>
    %252 = arith.mulf %251, %250 : vector<3x256xf32>
    %c0_330 = arith.constant 0 : index
    %c0_331 = arith.constant 0 : index
    %c0_332 = arith.constant 0 : index
    %253 = vector.load %arg10[%c0_330, %c0_331, %c0_332] : memref<1x3x256xf32, #tpu.memory_space<vmem>>, vector<1x3x256xf32>
    %254 = vector.shape_cast %253 : vector<1x3x256xf32> to vector<3x256xf32>
    %255 = vector.shape_cast %252 : vector<3x256xf32> to vector<1x3x256xf32>
    tpu.vector_store %arg10[%c0_330, %c0_331, %c0_332], %255 {strides = array<i32>} : memref<1x3x256xf32, #tpu.memory_space<vmem>>, vector<1x3x256xf32>,
    return
  }
  func.func @transform_0(%arg0: i32) -> (i32, i32, i32, i32) {
    %c0_i32 = arith.constant 0 : i32
    %c0_i32_0 = arith.constant 0 : i32
    %c0_i32_1 = arith.constant 0 : i32
    %c0_i32_2 = arith.constant 0 : i32
    return %arg0, %c0_i32, %c0_i32_0, %c0_i32_1 : i32, i32, i32, i32
  }
  func.func @transform_1(%arg0: i32) -> (i32, i32, i32) {
    %c0_i32 = arith.constant 0 : i32
    %c0_i32_0 = arith.constant 0 : i32
    %c0_i32_1 = arith.constant 0 : i32
    %c0_i32_2 = arith.constant 0 : i32
    return %c0_i32, %c0_i32_0, %c0_i32_1 : i32, i32, i32
  }
  func.func @transform_2(%arg0: i32) -> (i32, i32) {
    %c0_i32 = arith.constant 0 : i32
    %c0_i32_0 = arith.constant 0 : i32
    %c0_i32_1 = arith.constant 0 : i32
    return %c0_i32, %c0_i32_0 : i32, i32
  }
  func.func @transform_3(%arg0: i32) -> (i32, i32, i32) {
    %c0_i32 = arith.constant 0 : i32
    %c0_i32_0 = arith.constant 0 : i32
    %c0_i32_1 = arith.constant 0 : i32
    %c0_i32_2 = arith.constant 0 : i32
    return %c0_i32, %c0_i32_0, %c0_i32_1 : i32, i32, i32
  }
  func.func @transform_4(%arg0: i32) -> (i32, i32) {
    %c0_i32 = arith.constant 0 : i32
    %c0_i32_0 = arith.constant 0 : i32
    %c0_i32_1 = arith.constant 0 : i32
    return %c0_i32, %c0_i32_0 : i32, i32
  }
  func.func @transform_5(%arg0: i32) -> (i32, i32, i32) {
    %c0_i32 = arith.constant 0 : i32
    %c0_i32_0 = arith.constant 0 : i32
    %c0_i32_1 = arith.constant 0 : i32
    %c0_i32_2 = arith.constant 0 : i32
    return %c0_i32, %c0_i32_0, %c0_i32_1 : i32, i32, i32
  }
  func.func @transform_6(%arg0: i32) -> (i32, i32) {
    %c0_i32 = arith.constant 0 : i32
    %c0_i32_0 = arith.constant 0 : i32
    %c0_i32_1 = arith.constant 0 : i32
    return %c0_i32, %c0_i32_0 : i32, i32
  }
  func.func @transform_7(%arg0: i32) -> (i32, i32, i32) {
    %c0_i32 = arith.constant 0 : i32
    %c0_i32_0 = arith.constant 0 : i32
    %c0_i32_1 = arith.constant 0 : i32
    %c0_i32_2 = arith.constant 0 : i32
    return %c0_i32, %c0_i32_0, %c0_i32_1 : i32, i32, i32
  }
  func.func @transform_8(%arg0: i32) -> (i32, i32) {
    %c0_i32 = arith.constant 0 : i32
    %c0_i32_0 = arith.constant 0 : i32
    %c0_i32_1 = arith.constant 0 : i32
    return %c0_i32, %c0_i32_0 : i32, i32
  }
  func.func @transform_9(%arg0: i32) -> (i32, i32, i32) {
    %c0_i32 = arith.constant 0 : i32
    %c0_i32_0 = arith.constant 0 : i32
    %c0_i32_1 = arith.constant 0 : i32
    return %arg0, %c0_i32, %c0_i32_0 : i32, i32, i32
  }
}

</mosaic_0001>

<bundles_post_ra>
// kernel: conv2d_4layer_forward.1
= control target key start
LH: loop header
LB: loop body
LE: loop exit
PB: predicated region body
PF: predicated region fallthrough
CT: control target
= control target key end

     0   :  { %s20595_s30 = smov 0   ;;  %s24374_s0 = inlined_call_operand.vmem [shape: f32[2,16,16,4], index: 0, kind: input, shape index: {}]   ;;  %s24375_s1 = inlined_call_operand.vmem [shape: f32[9,4,32], index: 1, kind: input, shape index: {}]   ;;  %s24376_s2 = inlined_call_operand.vmem [shape: f32[1,32], index: 2, kind: input, shape index: {}]   ;;  %s24377_s3 = inlined_call_operand.vmem [shape: f32[9,32,32], index: 3, kind: input, shape index: {}]   ;;  %s24378_s4 = inlined_call_operand.vmem [shape: f32[1,32], index: 4, kind: input, shape index: {}]   ;;  %s24379_s5 = inlined_call_operand.vmem [shape: f32[9,32,32], index: 5, kind: input, shape index: {}]   ;;  %s24380_s6 = inlined_call_operand.vmem [shape: f32[1,32], index: 6, kind: input, shape index: {}]   ;;  %s24381_s7 = inlined_call_operand.vmem [shape: f32[9,32,3], index: 7, kind: input, shape index: {}]   ;;  %s24382_s8 = inlined_call_operand.vmem [shape: f32[1,3], index: 8, kind: input, shape index: {}]   ;;  %s24383_s9 = inlined_call_operand.vmem [shape: f32[2,3,256], index: 9, kind: output, shape index: {}]  }
   0x1 LB: > { %s14770_s10 = sadd.s32 4294967295, %s20542_s30   ;;  %p14774_p0 = scmp.ge.s32.totalorder %s20542_s30, 1  ;;  %s20542_s30 = sphi %s20595_s30, %s19_s30  }
   0x2   : > { %p287_p1 = scmp.lt.s32.totalorder %s20542_s30, 3 }
   0x4   : > { %p288_p2 = pnand %p14774_p0, %p287_p1 }
   0x6   : > { %291 = sbr.rel (%p288_p2) target bundleno = 3151 (0xc4f), region = 56 }
   0xd   : > { %v14779_v0 = vld [vmem:[%s24375_s1 + $0x4] sm:$0xf]  ;;  %vm609_vm0 = vcmask 1043456   ;;  %vm333_vm1 = vcmask 261120   ;;  %v20544_v1 = vmov 0.0   ;;  %p20620_p3 = scmp.lt.s32.totalorder %s14770_s10, 1 }
   0xe   : > { %17321 = vmatprep.subr.msk.mxu0 %vm609_vm0, %v14779_v0  ;;  %335 = vst.msk [vmem:[#allocation2 + $0x8] sm:$0xff] %vm333_vm1, %v20544_v1  ;;  %334 = vst.msk [vmem:[#allocation2] sm:$0xff] %vm333_vm1, %v20544_v1  ;;  %v20616_v2 = vld [vmem:[%s24375_s1] sm:$0xf]  ;;  %vm337_vm2 = vcmask 253952   ;;  %vm413_vm3 = vcmask 31744  }
   0xf   : > { %336 = vst.msk [vmem:[#allocation2 + $0x10] sm:$0xff] %vm333_vm1, %v20544_v1  ;;  %340 = vst.msk [vmem:[#allocation2 + $0x220] sm:$0xff] %vm333_vm1, %v20544_v1  ;;  %17322 = vmatpush3.msk.msra.mxu0 %vm609_vm0, %v14779_v0  ;;  %s24944_s10 = smov (!%p20620_p3, %s14770_s10), 1  ;;  %v20683_v6 = vld [vmem:[%s24375_s1 + $0x8] sm:$0xf] }
  0x10   : > { %341 = vst.msk [vmem:[#allocation2 + $0x228] sm:$0xff] %vm333_vm1, %v20544_v1  ;;  %342 = vst.msk [vmem:[#allocation2 + $0x230] sm:$0xff] %vm333_vm1, %v20544_v1  ;;  %17371 = vmatprep.subr.msk.mxu0 %vm609_vm0, %v20616_v2  ;;  %s16050_s16 = sshll.u32 %s24944_s10, 8  ;;  %s16051_s24 = sshll.u32 %s24944_s10, 3 }
  0x11   : > { %344 = vst.msk [vmem:[#allocation2 + $0x7] sm:$0x1] %vm337_vm2, %v20544_v1  ;;  %338 = vst.msk [vmem:[#allocation2 + $0x18] sm:$0x1] %vm337_vm2, %v20544_v1  ;;  %s20675_s19 = scalar_lea.vmem %s24374_s0, %s16050_s16  ;;  %s332_s27 = scalar_lea.vmem %s24383_s9, %s16051_s24 }
  0x12   : > { %343 = vst.msk [vmem:[#allocation2 + $0x238] sm:$0x1] %vm337_vm2, %v20544_v1  ;;  %345 = vst.msk [vmem:[#allocation2 + $0x27] sm:$0x1] %vm337_vm2, %v20544_v1  ;;  %v380_v3 = vld [vmem:[%s20675_s19] sm:$0xff]  ;;  %v381_v4 = vld [vmem:[%s20675_s19 + $0x8] sm:$0xff] }
  0x13   : > { %346 = vst.msk [vmem:[#allocation2 + $0x47] sm:$0x1] %vm337_vm2, %v20544_v1  ;;  %347 = vst.msk [vmem:[#allocation2 + $0x67] sm:$0x1] %vm337_vm2, %v20544_v1  ;;  %v382_v5 = vld [vmem:[%s20675_s19 + $0x10] sm:$0xff]  ;;  %v383_v9 = vld [vmem:[%s20675_s19 + $0x18] sm:$0xff] }
  0x14   : > { %348 = vst.msk [vmem:[#allocation2 + $0x87] sm:$0x1] %vm337_vm2, %v20544_v1  ;;  %349 = vst.msk [vmem:[#allocation2 + $0xa7] sm:$0x1] %vm337_vm2, %v20544_v1  ;;  %v384_v10 = vld [vmem:[%s20675_s19 + $0x20] sm:$0xff]  ;;  %v385_v11 = vld [vmem:[%s20675_s19 + $0x28] sm:$0xff] }
  0x15   : > { %350 = vst.msk [vmem:[#allocation2 + $0xc7] sm:$0x1] %vm337_vm2, %v20544_v1  ;;  %351 = vst.msk [vmem:[#allocation2 + $0xe7] sm:$0x1] %vm337_vm2, %v20544_v1  ;;  %v479_v7 = vld [vmem:[#allocation2 + $0x8] sm:$0xff]  ;;  %v386_v12 = vld [vmem:[%s20675_s19 + $0x30] sm:$0xff] }
  0x16   : > { %352 = vst.msk [vmem:[#allocation2 + $0x107] sm:$0x1] %vm337_vm2, %v20544_v1  ;;  %353 = vst.msk [vmem:[#allocation2 + $0x127] sm:$0x1] %vm337_vm2, %v20544_v1  ;;  %v480_v8 = vld [vmem:[#allocation2 + $0x10] sm:$0xff]  ;;  %17323 = vmatprep.mubr.msk.f32.mxu0 %vm413_vm3, %v479_v7  ;;  %v387_v13 = vld [vmem:[%s20675_s19 + $0x38] sm:$0xff] }
  0x17   : > { %354 = vst.msk [vmem:[#allocation2 + $0x147] sm:$0x1] %vm337_vm2, %v20544_v1  ;;  %355 = vst.msk [vmem:[#allocation2 + $0x167] sm:$0x1] %vm337_vm2, %v20544_v1  ;;  %17324 = vmatmul.mubr.msk.f32.vlgmr.msra.gmra.mrb[0].mxu0 %vm413_vm3, %v480_v8  ;;  %v388_v14 = vld [vmem:[%s20675_s19 + $0x40] sm:$0xff]  ;;  %v389_v15 = vld [vmem:[%s20675_s19 + $0x48] sm:$0xff] }
  0x18   : > { %356 = vst.msk [vmem:[#allocation2 + $0x187] sm:$0x1] %vm337_vm2, %v20544_v1  ;;  %357 = vst.msk [vmem:[#allocation2 + $0x1a7] sm:$0x1] %vm337_vm2, %v20544_v1  ;;  %17372 = vmatpush3.msk.msra.mxu0 %vm609_vm0, %v20616_v2  ;;  %v390_v16 = vld [vmem:[%s20675_s19 + $0x50] sm:$0xff]  ;;  %v391_v17 = vld [vmem:[%s20675_s19 + $0x58] sm:$0xff] }
  0x19   : > { %358 = vst.msk [vmem:[#allocation2 + $0x1c7] sm:$0x1] %vm337_vm2, %v20544_v1  ;;  %359 = vst.msk [vmem:[#allocation2 + $0x1e7] sm:$0x1] %vm337_vm2, %v20544_v1  ;;  %v392_v18 = vld [vmem:[%s20675_s19 + $0x60] sm:$0xff]  ;;  %v393_v19 = vld [vmem:[%s20675_s19 + $0x68] sm:$0xff]  ;;  %17421 = vmatprep.subr.msk.mxu0 %vm609_vm0, %v20683_v6 }
  0x1a   : > { %360 = vst.msk [vmem:[#allocation2 + $0x207] sm:$0x1] %vm337_vm2, %v20544_v1  ;;  %361 = vst.msk [vmem:[#allocation2 + $0x227] sm:$0x1] %vm337_vm2, %v20544_v1  ;;  %v394_v20 = vld [vmem:[%s20675_s19 + $0x70] sm:$0xff]  ;;  %v395_v21 = vld [vmem:[%s20675_s19 + $0x78] sm:$0xff] }
  0x1b   : > { %363 = vst.msk [vmem:[#allocation2 + $0x38] sm:$0x1] %vm337_vm2, %v20544_v1  ;;  %364 = vst.msk [vmem:[#allocation2 + $0x58] sm:$0x1] %vm337_vm2, %v20544_v1  ;;  %v396_v22 = vld [vmem:[%s20675_s19 + $0x80] sm:$0xff]  ;;  %v397_v23 = vld [vmem:[%s20675_s19 + $0x88] sm:$0xff] }
  0x1c   : > { %365 = vst.msk [vmem:[#allocation2 + $0x78] sm:$0x1] %vm337_vm2, %v20544_v1  ;;  %366 = vst.msk [vmem:[#allocation2 + $0x98] sm:$0x1] %vm337_vm2, %v20544_v1  ;;  %v398_v24 = vld [vmem:[%s20675_s19 + $0x90] sm:$0xff]  ;;  %v399_v25 = vld [vmem:[%s20675_s19 + $0x98] sm:$0xff] }
  0x1d   : > { %367 = vst.msk [vmem:[#allocation2 + $0xb8] sm:$0x1] %vm337_vm2, %v20544_v1  ;;  %368 = vst.msk [vmem:[#allocation2 + $0xd8] sm:$0x1] %vm337_vm2, %v20544_v1  ;;  %v400_v26 = vld [vmem:[%s20675_s19 + $0xa0] sm:$0xff]  ;;  %v401_v27 = vld [vmem:[%s20675_s19 + $0xa8] sm:$0xff] }
  0x1e   : > { %369 = vst.msk [vmem:[#allocation2 + $0xf8] sm:$0x1] %vm337_vm2, %v20544_v1  ;;  %370 = vst.msk [vmem:[#allocation2 + $0x118] sm:$0x1] %vm337_vm2, %v20544_v1  ;;  %v402_v31 = vld [vmem:[%s20675_s19 + $0xb0] sm:$0xff]  ;;  %v403_v32 = vld [vmem:[%s20675_s19 + $0xb8] sm:$0xff] }
  0x1f   : > { %371 = vst.msk [vmem:[#allocation2 + $0x138] sm:$0x1] %vm337_vm2, %v20544_v1  ;;  %372 = vst.msk [vmem:[#allocation2 + $0x158] sm:$0x1] %vm337_vm2, %v20544_v1  ;;  %v404_v37 = vld [vmem:[%s20675_s19 + $0xc0] sm:$0xff]  ;;  %v405_v38 = vld [vmem:[%s20675_s19 + $0xc8] sm:$0xff] }
  0x20   : > { %373 = vst.msk [vmem:[#allocation2 + $0x178] sm:$0x1] %vm337_vm2, %v20544_v1  ;;  %374 = vst.msk [vmem:[#allocation2 + $0x198] sm:$0x1] %vm337_vm2, %v20544_v1  ;;  %v406_v39 = vld [vmem:[%s20675_s19 + $0xd0] sm:$0xff]  ;;  %v407_v40 = vld [vmem:[%s20675_s19 + $0xd8] sm:$0xff] }
  0x21   : > { %375 = vst.msk [vmem:[#allocation2 + $0x1b8] sm:$0x1] %vm337_vm2, %v20544_v1  ;;  %376 = vst.msk [vmem:[#allocation2 + $0x1d8] sm:$0x1] %vm337_vm2, %v20544_v1  ;;  %v408_v41 = vld [vmem:[%s20675_s19 + $0xe0] sm:$0xff]  ;;  %v409_v42 = vld [vmem:[%s20675_s19 + $0xe8] sm:$0xff] }
  0x22   : > { %377 = vst.msk [vmem:[#allocation2 + $0x1f8] sm:$0x1] %vm337_vm2, %v20544_v1  ;;  %378 = vst.msk [vmem:[#allocation2 + $0x218] sm:$0x1] %vm337_vm2, %v20544_v1  ;;  %v446_v2 = vld [vmem:[#allocation2 + $0x7] sm:$0xff] }
  0x23   : > { %362 = vst.msk [vmem:[#allocation2 + $0x18] sm:$0x1] %vm337_vm2, %v20544_v1  ;;  %379 = vst.msk [vmem:[#allocation2 + $0x238] sm:$0x1] %vm337_vm2, %v20544_v1 }
  0x24   : > { %414 = vst.msk [vmem:[#allocation2 + $0x28] sm:$0xff] %vm413_vm3, %v380_v3  ;;  %415 = vst.msk [vmem:[#allocation2 + $0x30] sm:$0xff] %vm413_vm3, %v381_v4  ;;  %v447_v3 = vld [vmem:[#allocation2 + $0xf] sm:$0xff] }
  0x25   : > { %416 = vst.msk [vmem:[#allocation2 + $0x48] sm:$0xff] %vm413_vm3, %v382_v5  ;;  %417 = vst.msk [vmem:[#allocation2 + $0x50] sm:$0xff] %vm413_vm3, %v383_v9  ;;  %v20874_v5 = vld [vmem:[%s24375_s1 + $0xc] sm:$0xf] }
  0x26   : > { %418 = vst.msk [vmem:[#allocation2 + $0x68] sm:$0xff] %vm413_vm3, %v384_v10  ;;  %419 = vst.msk [vmem:[#allocation2 + $0x70] sm:$0xff] %vm413_vm3, %v385_v11 }
  0x27   : > { %420 = vst.msk [vmem:[#allocation2 + $0x88] sm:$0xff] %vm413_vm3, %v386_v12  ;;  %421 = vst.msk [vmem:[#allocation2 + $0x90] sm:$0xff] %vm413_vm3, %v387_v13 }
  0x28   : > { %422 = vst.msk [vmem:[#allocation2 + $0xa8] sm:$0xff] %vm413_vm3, %v388_v14  ;;  %423 = vst.msk [vmem:[#allocation2 + $0xb0] sm:$0xff] %vm413_vm3, %v389_v15 }
  0x29   : > { %424 = vst.msk [vmem:[#allocation2 + $0xc8] sm:$0xff] %vm413_vm3, %v390_v16  ;;  %425 = vst.msk [vmem:[#allocation2 + $0xd0] sm:$0xff] %vm413_vm3, %v391_v17 }
  0x2a   : > { %426 = vst.msk [vmem:[#allocation2 + $0xe8] sm:$0xff] %vm413_vm3, %v392_v18  ;;  %427 = vst.msk [vmem:[#allocation2 + $0xf0] sm:$0xff] %vm413_vm3, %v393_v19 }
  0x2b   : > { %428 = vst.msk [vmem:[#allocation2 + $0x108] sm:$0xff] %vm413_vm3, %v394_v20  ;;  %429 = vst.msk [vmem:[#allocation2 + $0x110] sm:$0xff] %vm413_vm3, %v395_v21  ;;  %v20729_v28 = vld [vmem:[#allocation2 + $0x28] sm:$0xff]  ;;  %v20731_v29 = vld [vmem:[#allocation2 + $0x30] sm:$0xff] }
  0x2c   : > { %430 = vst.msk [vmem:[#allocation2 + $0x128] sm:$0xff] %vm413_vm3, %v396_v22  ;;  %431 = vst.msk [vmem:[#allocation2 + $0x130] sm:$0xff] %vm413_vm3, %v397_v23  ;;  %v20733_v30 = vld [vmem:[#allocation2 + $0x48] sm:$0xff]  ;;  %17326 = vmatprep.mubr.msk.f32.mxu0 %vm413_vm3, %v20729_v28  ;;  %v20748_v33 = vld [vmem:[#allocation2 + $0x50] sm:$0xff] }
  0x2d   : > { %432 = vst.msk [vmem:[#allocation2 + $0x148] sm:$0xff] %vm413_vm3, %v398_v24  ;;  %433 = vst.msk [vmem:[#allocation2 + $0x150] sm:$0xff] %vm413_vm3, %v399_v25  ;;  %17327 = vmatmul.mubr.msk.f32.gmra.mrb[2].mxu0 %vm413_vm3, %v20731_v29  ;;  %v20750_v34 = vld [vmem:[#allocation2 + $0x68] sm:$0xff]  ;;  %v20756_v35 = vld [vmem:[#allocation2 + $0x70] sm:$0xff] }
  0x2e   : > { %434 = vst.msk [vmem:[#allocation2 + $0x168] sm:$0xff] %vm413_vm3, %v400_v26  ;;  %435 = vst.msk [vmem:[#allocation2 + $0x170] sm:$0xff] %vm413_vm3, %v401_v27  ;;  %17329 = vmatprep.mubr.msk.f32.mxu0 %vm413_vm3, %v20733_v30  ;;  %v20758_v36 = vld [vmem:[#allocation2 + $0x88] sm:$0xff]  ;;  %v20774_v43 = vld [vmem:[#allocation2 + $0x90] sm:$0xff] }
  0x2f   : > { %436 = vst.msk [vmem:[#allocation2 + $0x188] sm:$0xff] %vm413_vm3, %v402_v31  ;;  %437 = vst.msk [vmem:[#allocation2 + $0x190] sm:$0xff] %vm413_vm3, %v403_v32  ;;  %v20778_v44 = vld [vmem:[#allocation2 + $0xa8] sm:$0xff]  ;;  %v20784_v45 = vld [vmem:[#allocation2 + $0xb0] sm:$0xff] }
  0x30   : > { %438 = vst.msk [vmem:[#allocation2 + $0x1a8] sm:$0xff] %vm413_vm3, %v404_v37  ;;  %439 = vst.msk [vmem:[#allocation2 + $0x1b0] sm:$0xff] %vm413_vm3, %v405_v38  ;;  %v20786_v46 = vld [vmem:[#allocation2 + $0xc8] sm:$0xff]  ;;  %v20792_v47 = vld [vmem:[#allocation2 + $0xd0] sm:$0xff] }
  0x31   : > { %17330 = vmatmul.mubr.msk.f32.gmra.mrb[4].mxu0 %vm413_vm3, %v20748_v33  ;;  %440 = vst.msk [vmem:[#allocation2 + $0x1c8] sm:$0xff] %vm413_vm3, %v406_v39  ;;  %441 = vst.msk [vmem:[#allocation2 + $0x1d0] sm:$0xff] %vm413_vm3, %v407_v40  ;;  %v20794_v48 = vld [vmem:[#allocation2 + $0xe8] sm:$0xff]  ;;  %v20800_v49 = vld [vmem:[#allocation2 + $0xf0] sm:$0xff] }
  0x32   : > { %17332 = vmatprep.mubr.msk.f32.mxu0 %vm413_vm3, %v20750_v34  ;;  %442 = vst.msk [vmem:[#allocation2 + $0x1e8] sm:$0xff] %vm413_vm3, %v408_v41  ;;  %443 = vst.msk [vmem:[#allocation2 + $0x1f0] sm:$0xff] %vm413_vm3, %v409_v42  ;;  %v20802_v50 = vld [vmem:[#allocation2 + $0x108] sm:$0xff]  ;;  %v20808_v51 = vld [vmem:[#allocation2 + $0x110] sm:$0xff] }
  0x33   : > { %v20810_v52 = vld [vmem:[#allocation2 + $0x128] sm:$0xff]  ;;  %v20816_v53 = vld [vmem:[#allocation2 + $0x130] sm:$0xff]  ;;  %v411_v40 = vld [vmem:[%s20675_s19 + $0xf8] sm:$0xff] }
  0x34   : > { %v20818_v54 = vld [vmem:[#allocation2 + $0x148] sm:$0xff]  ;;  %v20824_v55 = vld [vmem:[#allocation2 + $0x150] sm:$0xff]  ;;  %445 = vst.msk [vmem:[#allocation2 + $0x210] sm:$0xff] %vm413_vm3, %v411_v40 }
  0x35   : > { %17333 = vmatmul.mubr.msk.f32.gmra.mrb[6].mxu0 %vm413_vm3, %v20756_v35  ;;  %v20826_v56 = vld [vmem:[#allocation2 + $0x168] sm:$0xff]  ;;  %v20832_v57 = vld [vmem:[#allocation2 + $0x170] sm:$0xff] }
  0x36   : > { %17335 = vmatprep.mubr.msk.f32.mxu0 %vm413_vm3, %v20758_v36  ;;  %v20834_v58 = vld [vmem:[#allocation2 + $0x188] sm:$0xff]  ;;  %v20840_v59 = vld [vmem:[#allocation2 + $0x190] sm:$0xff] }
  0x37   : > { %v20842_v60 = vld [vmem:[#allocation2 + $0x1a8] sm:$0xff]  ;;  %v20848_v61 = vld [vmem:[#allocation2 + $0x1b0] sm:$0xff] }
  0x38   : > { %v20850_v62 = vld [vmem:[#allocation2 + $0x1c8] sm:$0xff]  ;;  %v20856_v63 = vld [vmem:[#allocation2 + $0x1d0] sm:$0xff] }
  0x39   : > { %17336 = vmatmul.mubr.msk.f32.gmra.mrb[8].mxu0 %vm413_vm3, %v20774_v43  ;;  %24644 = vst [vmem:[#allocation3_spill] sm:$0xff] %v20856_v63  ;;  %v20858_v0 = vld [vmem:[#allocation2 + $0x1e8] sm:$0xff]  ;;  %v20864_v1 = vld [vmem:[#allocation2 + $0x1f0] sm:$0xff] }
  0x3a   : > { %17338 = vmatprep.mubr.msk.f32.mxu0 %vm413_vm3, %v20778_v44  ;;  %24645 = vst [vmem:[#allocation4_spill] sm:$0xff] %v20858_v0  ;;  %24646 = vst [vmem:[#allocation5_spill] sm:$0xff] %v20864_v1  ;;  %v20869_v4 = vld [vmem:[#allocation2 + $0x27] sm:$0xff]  ;;  %v20881_v7 = vld [vmem:[#allocation2 + $0x2f] sm:$0xff] }
  0x3b   : > { %v20883_v8 = vld [vmem:[#allocation2 + $0x47] sm:$0xff]  ;;  %v20891_v9 = vld [vmem:[#allocation2 + $0x4f] sm:$0xff] }
  0x3c   : > { %v20893_v10 = vld [vmem:[#allocation2 + $0x67] sm:$0xff]  ;;  %v20907_v12 = vld [vmem:[#allocation2 + $0x8f] sm:$0xff] }
  0x3d   : > { %17339 = vmatmul.mubr.msk.f32.gmra.mrb[10].mxu0 %vm413_vm3, %v20784_v45  ;;  %v20901_v11 = vld [vmem:[#allocation2 + $0x87] sm:$0xff]  ;;  %v20915_v14 = vld [vmem:[#allocation2 + $0xaf] sm:$0xff] }
  0x3e   : > { %17341 = vmatprep.mubr.msk.f32.mxu0 %vm413_vm3, %v20786_v46  ;;  %v20909_v13 = vld [vmem:[#allocation2 + $0xa7] sm:$0xff]  ;;  %v20923_v16 = vld [vmem:[#allocation2 + $0xcf] sm:$0xff] }
  0x3f   : > { %v20917_v15 = vld [vmem:[#allocation2 + $0xc7] sm:$0xff]  ;;  %v20931_v18 = vld [vmem:[#allocation2 + $0xef] sm:$0xff] }
  0x40   : > { %v20925_v17 = vld [vmem:[#allocation2 + $0xe7] sm:$0xff]  ;;  %v20939_v20 = vld [vmem:[#allocation2 + $0x10f] sm:$0xff] }
  0x41   : > { %17342 = vmatmul.mubr.msk.f32.gmra.mrb[12].mxu0 %vm413_vm3, %v20792_v47  ;;  %v20933_v19 = vld [vmem:[#allocation2 + $0x107] sm:$0xff]  ;;  %v20947_v22 = vld [vmem:[#allocation2 + $0x12f] sm:$0xff] }
  0x42   : > { %17344 = vmatprep.mubr.msk.f32.mxu0 %vm413_vm3, %v20794_v48  ;;  %v20941_v21 = vld [vmem:[#allocation2 + $0x127] sm:$0xff]  ;;  %v20955_v24 = vld [vmem:[#allocation2 + $0x14f] sm:$0xff] }
  0x43   : > { %v20949_v23 = vld [vmem:[#allocation2 + $0x147] sm:$0xff]  ;;  %v20963_v26 = vld [vmem:[#allocation2 + $0x16f] sm:$0xff] }
  0x44   : > { %v20957_v25 = vld [vmem:[#allocation2 + $0x167] sm:$0xff]  ;;  %v20971_v31 = vld [vmem:[#allocation2 + $0x18f] sm:$0xff] }
  0x45   : > { %17345 = vmatmul.mubr.msk.f32.gmra.mrb[14].mxu0 %vm413_vm3, %v20800_v49  ;;  %v20965_v27 = vld [vmem:[#allocation2 + $0x187] sm:$0xff]  ;;  %v20979_v37 = vld [vmem:[#allocation2 + $0x1af] sm:$0xff] }
  0x46   : > { %17347 = vmatprep.mubr.msk.f32.mxu0 %vm413_vm3, %v20802_v50  ;;  %v20973_v32 = vld [vmem:[#allocation2 + $0x1a7] sm:$0xff]  ;;  %v410_v39 = vld [vmem:[%s20675_s19 + $0xf0] sm:$0xff] }
  0x47   : > { %v20981_v38 = vld [vmem:[#allocation2 + $0x1c7] sm:$0xff]  ;;  %444 = vst.msk [vmem:[#allocation2 + $0x208] sm:$0xff] %vm413_vm3, %v410_v39  ;;  %v20991_v41 = vld [vmem:[#allocation2 + $0x1cf] sm:$0xff] }
  0x48   : > { %v20993_v42 = vld [vmem:[#allocation2 + $0x1e7] sm:$0xff]  ;;  %v1163_v39 = vld [vmem:[#allocation2 + $0x11] sm:$0xff] }
  0x49   : > { %17348 = vmatmul.mubr.msk.f32.gmra.mrb[16].mxu0 %vm413_vm3, %v20808_v51  ;;  %v21004_v40 = vld [vmem:[#allocation2 + $0x29] sm:$0xff] }
  0x4a   : > { %17350 = vmatprep.mubr.msk.f32.mxu0 %vm413_vm3, %v20810_v52  ;;  %24647 = vst [vmem:[#allocation6_spill] sm:$0xff] %v21004_v40 }
  0x4d   : > { %17351 = vmatmul.mubr.msk.f32.gmra.mrb[18].mxu0 %vm413_vm3, %v20816_v53 }
  0x4e   : > { %17353 = vmatprep.mubr.msk.f32.mxu0 %vm413_vm3, %v20818_v54 }
  0x51   : > { %17354 = vmatmul.mubr.msk.f32.gmra.mrb[20].mxu0 %vm413_vm3, %v20824_v55 }
  0x52   : > { %17356 = vmatprep.mubr.msk.f32.mxu0 %vm413_vm3, %v20826_v56 }
  0x55   : > { %17357 = vmatmul.mubr.msk.f32.gmra.mrb[22].mxu0 %vm413_vm3, %v20832_v57 }
  0x56   : > { %17359 = vmatprep.mubr.msk.f32.mxu0 %vm413_vm3, %v20834_v58 }
  0x59   : > { %17360 = vmatmul.mubr.msk.f32.gmra.mrb[24].mxu0 %vm413_vm3, %v20840_v59 }
  0x5a   : > { %17362 = vmatprep.mubr.msk.f32.mxu0 %vm413_vm3, %v20842_v60 }
  0x5d   : > { %17363 = vmatmul.mubr.msk.f32.gmra.mrb[26].mxu0 %vm413_vm3, %v20848_v61 }
  0x5e   : > { %17365 = vmatprep.mubr.msk.f32.mxu0 %vm413_vm3, %v20850_v62 }
  0x61   : > { %17366 = vmatmul.mubr.msk.f32.gmra.mrb[28].mxu0 %vm413_vm3, %v20856_v63  ;;  %v21018_v63 = vld [vmem:[#allocation2 + $0x49] sm:$0xff] }
  0x62   : > { %17368 = vmatprep.mubr.msk.f32.mxu0 %vm413_vm3, %v20858_v0  ;;  %v21016_v0 = vld [vmem:[#allocation2 + $0x31] sm:$0xff]  ;;  %24649 = vst [vmem:[#allocation8_spill] sm:$0xff] %v21018_v63 }
  0x63   : > { %24648 = vst [vmem:[#allocation7_spill] sm:$0xff] %v21016_v0 }
  0x65   : > { %17369 = vmatmul.mubr.msk.f32.gmra.mrb[30].mxu0 %vm413_vm3, %v20864_v1  ;;  %v21009_v1 = vld [vmem:[%s24375_s1 + $0x10] sm:$0xf] }
  0x66   : > { %17373 = vmatprep.mubr.msk.f32.mxu0 %vm413_vm3, %v446_v2  ;;  %v20999_v2 = vld [vmem:[#allocation2 + $0x1ef] sm:$0xff] }
  0x69   : > { %17374 = vmatmul.mubr.msk.f32.vlgmr.msra.gmra.mrb[0].mxu0 %vm413_vm3, %v447_v3  ;;  %v1162_v3 = vld [vmem:[#allocation2 + $0x9] sm:$0xff] }
  0x6a   : > { %17422 = vmatpush3.msk.msra.mxu0 %vm609_vm0, %v20683_v6  ;;  %17376 = vmatprep.mubr.msk.f32.mxu0 %vm413_vm3, %v20869_v4  ;;  %v20899_v6 = vld [vmem:[#allocation2 + $0x6f] sm:$0xff] }
  0x6b   : > { %17471 = vmatprep.subr.msk.mxu0 %vm609_vm0, %v20874_v5 }
  0x6d   : > { %17377 = vmatmul.mubr.msk.f32.gmra.mrb[2].mxu0 %vm413_vm3, %v20881_v7 }
  0x6e   : > { %17379 = vmatprep.mubr.msk.f32.mxu0 %vm413_vm3, %v20883_v8 }
  0x71   : > { %17380 = vmatmul.mubr.msk.f32.gmra.mrb[4].mxu0 %vm413_vm3, %v20891_v9 }
  0x72   : > { %17382 = vmatprep.mubr.msk.f32.mxu0 %vm413_vm3, %v20893_v10 }
  0x75   : > { %17383 = vmatmul.mubr.msk.f32.gmra.mrb[6].mxu0 %vm413_vm3, %v20899_v6 }
  0x76   : > { %17385 = vmatprep.mubr.msk.f32.mxu0 %vm413_vm3, %v20901_v11 }
  0x79   : > { %17386 = vmatmul.mubr.msk.f32.gmra.mrb[8].mxu0 %vm413_vm3, %v20907_v12 }
  0x7a   : > { %17388 = vmatprep.mubr.msk.f32.mxu0 %vm413_vm3, %v20909_v13 }
  0x7d   : > { %17389 = vmatmul.mubr.msk.f32.gmra.mrb[10].mxu0 %vm413_vm3, %v20915_v14 }
  0x7e   : > { %17391 = vmatprep.mubr.msk.f32.mxu0 %vm413_vm3, %v20917_v15 }
  0x81   : > { %17392 = vmatmul.mubr.msk.f32.gmra.mrb[12].mxu0 %vm413_vm3, %v20923_v16 }
  0x82   : > { %17394 = vmatprep.mubr.msk.f32.mxu0 %vm413_vm3, %v20925_v17 }
  0x85   : > { %17395 = vmatmul.mubr.msk.f32.gmra.mrb[14].mxu0 %vm413_vm3, %v20931_v18 }
  0x86   : > { %17397 = vmatprep.mubr.msk.f32.mxu0 %vm413_vm3, %v20933_v19 }
  0x89   : > { %17398 = vmatmul.mubr.msk.f32.gmra.mrb[16].mxu0 %vm413_vm3, %v20939_v20 }
  0x8a   : > { %17400 = vmatprep.mubr.msk.f32.mxu0 %vm413_vm3, %v20941_v21 }
  0x8d   : > { %17401 = vmatmul.mubr.msk.f32.gmra.mrb[18].mxu0 %vm413_vm3, %v20947_v22 }
  0x8e   : > { %17403 = vmatprep.mubr.msk.f32.mxu0 %vm413_vm3, %v20949_v23 }
  0x91   : > { %17404 = vmatmul.mubr.msk.f32.gmra.mrb[20].mxu0 %vm413_vm3, %v20955_v24 }
  0x92   : > { %17406 = vmatprep.mubr.msk.f32.mxu0 %vm413_vm3, %v20957_v25 }
  0x95   : > { %17407 = vmatmul.mubr.msk.f32.gmra.mrb[22].mxu0 %vm413_vm3, %v20963_v26 }
  0x96   : > { %17409 = vmatprep.mubr.msk.f32.mxu0 %vm413_vm3, %v20965_v27 }
  0x99   : > { %17410 = vmatmul.mubr.msk.f32.gmra.mrb[24].mxu0 %vm413_vm3, %v20971_v31 }
  0x9a   : > { %17412 = vmatprep.mubr.msk.f32.mxu0 %vm413_vm3, %v20973_v32 }
  0x9d   : > { %17413 = vmatmul.mubr.msk.f32.gmra.mrb[26].mxu0 %vm413_vm3, %v20979_v37 }
  0x9e   : > { %17415 = vmatprep.mubr.msk.f32.mxu0 %vm413_vm3, %v20981_v38 }
  0xa1   : > { %17416 = vmatmul.mubr.msk.f32.gmra.mrb[28].mxu0 %vm413_vm3, %v20991_v41 }
  0xa2   : > { %17418 = vmatprep.mubr.msk.f32.mxu0 %vm413_vm3, %v20993_v42 }
  0xa5   : > { %17419 = vmatmul.mubr.msk.f32.gmra.mrb[30].mxu0 %vm413_vm3, %v20999_v2 }
  0xa6   : > { %17423 = vmatprep.mubr.msk.f32.mxu0 %vm413_vm3, %v1162_v3  ;;  %v21026_v3 = vld [vmem:[#allocation2 + $0x51] sm:$0xff] }
  0xa7   : > { %24650 = vst [vmem:[#allocation9_spill] sm:$0xff] %v21026_v3 }
  0xa9   : > { %17424 = vmatmul.mubr.msk.f32.vlgmr.msra.gmra.mrb[0].mxu0 %vm413_vm3, %v1163_v39  ;;  %v21028_v39 = vld [vmem:[#allocation2 + $0x69] sm:$0xff] }
  0xaa   : > { %17472 = vmatpush3.msk.msra.mxu0 %vm609_vm0, %v20874_v5  ;;  %17426 = vmatprep.mubr.msk.f32.mxu0 %vm413_vm3, %v21004_v40  ;;  %24651 = vst [vmem:[#allocation10_spill] sm:$0xff] %v21028_v39  ;;  %v21034_v5 = vld [vmem:[#allocation2 + $0x71] sm:$0xff]  ;;  %v21036_v40 = vld [vmem:[#allocation2 + $0x89] sm:$0xff] }
  0xab   : > { %17521 = vmatprep.subr.msk.mxu0 %vm609_vm0, %v21009_v1  ;;  %24652 = vst [vmem:[#allocation11_spill] sm:$0xff] %v21034_v5  ;;  %24653 = vst [vmem:[#allocation12_spill] sm:$0xff] %v21036_v40 }
  0xad   : > { %17427 = vmatmul.mubr.msk.f32.gmra.mrb[2].mxu0 %vm413_vm3, %v21016_v0  ;;  %v21044_v0 = vld [vmem:[#allocation2 + $0xa9] sm:$0xff] }
  0xae   : > { %17429 = vmatprep.mubr.msk.f32.mxu0 %vm413_vm3, %v21018_v63  ;;  %v21042_v63 = vld [vmem:[#allocation2 + $0x91] sm:$0xff]  ;;  %24655 = vst [vmem:[#allocation14_spill] sm:$0xff] %v21044_v0 }
  0xaf   : > { %24654 = vst [vmem:[#allocation13_spill] sm:$0xff] %v21042_v63 }
  0xb1   : > { %17430 = vmatmul.mubr.msk.f32.gmra.mrb[4].mxu0 %vm413_vm3, %v21026_v3  ;;  %v21052_v3 = vld [vmem:[#allocation2 + $0xc9] sm:$0xff] }
  0xb2   : > { %17432 = vmatprep.mubr.msk.f32.mxu0 %vm413_vm3, %v21028_v39  ;;  %v21050_v39 = vld [vmem:[#allocation2 + $0xb1] sm:$0xff]  ;;  %24657 = vst [vmem:[#allocation16_spill] sm:$0xff] %v21052_v3 }
  0xb3   : > { %24656 = vst [vmem:[#allocation15_spill] sm:$0xff] %v21050_v39 }
  0xb5   : > { %17433 = vmatmul.mubr.msk.f32.gmra.mrb[6].mxu0 %vm413_vm3, %v21034_v5  ;;  %v21060_v5 = vld [vmem:[#allocation2 + $0xe9] sm:$0xff] }
  0xb6   : > { %17435 = vmatprep.mubr.msk.f32.mxu0 %vm413_vm3, %v21036_v40  ;;  %v21058_v40 = vld [vmem:[#allocation2 + $0xd1] sm:$0xff]  ;;  %24659 = vst [vmem:[#allocation18_spill] sm:$0xff] %v21060_v5 }
  0xb7   : > { %24658 = vst [vmem:[#allocation17_spill] sm:$0xff] %v21058_v40 }
  0xb9   : > { %17436 = vmatmul.mubr.msk.f32.gmra.mrb[8].mxu0 %vm413_vm3, %v21042_v63  ;;  %v21068_v63 = vld [vmem:[#allocation2 + $0x109] sm:$0xff] }
  0xba   : > { %17438 = vmatprep.mubr.msk.f32.mxu0 %vm413_vm3, %v21044_v0  ;;  %v21066_v0 = vld [vmem:[#allocation2 + $0xf1] sm:$0xff]  ;;  %24661 = vst [vmem:[#allocation20_spill] sm:$0xff] %v21068_v63 }
  0xbb   : > { %24660 = vst [vmem:[#allocation19_spill] sm:$0xff] %v21066_v0 }
  0xbd   : > { %17439 = vmatmul.mubr.msk.f32.gmra.mrb[10].mxu0 %vm413_vm3, %v21050_v39  ;;  %v21076_v39 = vld [vmem:[#allocation2 + $0x129] sm:$0xff] }
  0xbe   : > { %17441 = vmatprep.mubr.msk.f32.mxu0 %vm413_vm3, %v21052_v3  ;;  %v21074_v3 = vld [vmem:[#allocation2 + $0x111] sm:$0xff]  ;;  %24663 = vst [vmem:[#allocation22_spill] sm:$0xff] %v21076_v39 }
  0xbf   : > { %24662 = vst [vmem:[#allocation21_spill] sm:$0xff] %v21074_v3 }
  0xc1   : > { %17442 = vmatmul.mubr.msk.f32.gmra.mrb[12].mxu0 %vm413_vm3, %v21058_v40  ;;  %v21084_v40 = vld [vmem:[#allocation2 + $0x149] sm:$0xff] }
  0xc2   : > { %17444 = vmatprep.mubr.msk.f32.mxu0 %vm413_vm3, %v21060_v5  ;;  %v21082_v5 = vld [vmem:[#allocation2 + $0x131] sm:$0xff]  ;;  %24665 = vst [vmem:[#allocation24_spill] sm:$0xff] %v21084_v40 }
  0xc3   : > { %24664 = vst [vmem:[#allocation23_spill] sm:$0xff] %v21082_v5 }
  0xc5   : > { %17445 = vmatmul.mubr.msk.f32.gmra.mrb[14].mxu0 %vm413_vm3, %v21066_v0  ;;  %v21092_v0 = vld [vmem:[#allocation2 + $0x169] sm:$0xff] }
  0xc6   : > { %17447 = vmatprep.mubr.msk.f32.mxu0 %vm413_vm3, %v21068_v63  ;;  %v21090_v63 = vld [vmem:[#allocation2 + $0x151] sm:$0xff]  ;;  %24667 = vst [vmem:[#allocation26_spill] sm:$0xff] %v21092_v0 }
  0xc7   : > { %24666 = vst [vmem:[#allocation25_spill] sm:$0xff] %v21090_v63 }
  0xc9   : > { %17448 = vmatmul.mubr.msk.f32.gmra.mrb[16].mxu0 %vm413_vm3, %v21074_v3  ;;  %v21100_v3 = vld [vmem:[#allocation2 + $0x189] sm:$0xff] }
  0xca   : > { %17450 = vmatprep.mubr.msk.f32.mxu0 %vm413_vm3, %v21076_v39  ;;  %v21098_v39 = vld [vmem:[#allocation2 + $0x171] sm:$0xff]  ;;  %24669 = vst [vmem:[#allocation28_spill] sm:$0xff] %v21100_v3 }
  0xcb   : > { %24668 = vst [vmem:[#allocation27_spill] sm:$0xff] %v21098_v39 }
  0xcd   : > { %17451 = vmatmul.mubr.msk.f32.gmra.mrb[18].mxu0 %vm413_vm3, %v21082_v5  ;;  %v21108_v5 = vld [vmem:[#allocation2 + $0x1a9] sm:$0xff] }
  0xce   : > { %17453 = vmatprep.mubr.msk.f32.mxu0 %vm413_vm3, %v21084_v40  ;;  %v21106_v40 = vld [vmem:[#allocation2 + $0x191] sm:$0xff]  ;;  %24670 = vst [vmem:[#allocation29_spill] sm:$0xff] %v21108_v5 }
  0xd1   : > { %17454 = vmatmul.mubr.msk.f32.gmra.mrb[20].mxu0 %vm413_vm3, %v21090_v63  ;;  %v21116_v63 = vld [vmem:[#allocation2 + $0x1c9] sm:$0xff] }
  0xd2   : > { %17456 = vmatprep.mubr.msk.f32.mxu0 %vm413_vm3, %v21092_v0  ;;  %v21114_v0 = vld [vmem:[#allocation2 + $0x1b1] sm:$0xff]  ;;  %24671 = vst [vmem:[#allocation30_spill] sm:$0xff] %v21116_v63 }
  0xd5   : > { %17457 = vmatmul.mubr.msk.f32.gmra.mrb[22].mxu0 %vm413_vm3, %v21098_v39  ;;  %v21124_v39 = vld [vmem:[#allocation2 + $0x1e9] sm:$0xff] }
  0xd6   : > { %17459 = vmatprep.mubr.msk.f32.mxu0 %vm413_vm3, %v21100_v3  ;;  %v21122_v3 = vld [vmem:[#allocation2 + $0x1d1] sm:$0xff]  ;;  %24672 = vst [vmem:[#allocation31_spill] sm:$0xff] %v21124_v39 }
  0xd9   : > { %17460 = vmatmul.mubr.msk.f32.gmra.mrb[24].mxu0 %vm413_vm3, %v21106_v40 }
  0xda   : > { %17462 = vmatprep.mubr.msk.f32.mxu0 %vm413_vm3, %v21108_v5  ;;  %v21130_v5 = vld [vmem:[#allocation2 + $0x1f1] sm:$0xff] }
  0xdd   : > { %17463 = vmatmul.mubr.msk.f32.gmra.mrb[26].mxu0 %vm413_vm3, %v21114_v0 }
  0xde   : > { %17465 = vmatprep.mubr.msk.f32.mxu0 %vm413_vm3, %v21116_v63  ;;  %v14948_v63 = vld [vmem:[%s24375_s1 + $0x14] sm:$0xf] }
  0xe1   : > { %17466 = vmatmul.mubr.msk.f32.gmra.mrb[28].mxu0 %vm413_vm3, %v21122_v3 }
  0xe2   : > { %17468 = vmatprep.mubr.msk.f32.mxu0 %vm413_vm3, %v21124_v39 }
  0xe5   : > { %17469 = vmatmul.mubr.msk.f32.gmra.mrb[30].mxu0 %vm413_vm3, %v21130_v5 }
  0xe6   : > { %17473 = vmatprep.mubr.msk.f32.mxu0 %vm413_vm3, %v20869_v4  ;;  %v21204_v4 = vld [vmem:[#allocation2 + $0x20f] sm:$0xff] }
  0xe9   : > { %17474 = vmatmul.mubr.msk.f32.vlgmr.msra.gmra.mrb[0].mxu0 %vm413_vm3, %v20881_v7  ;;  %v14982_v7 = vld [vmem:[%s24375_s1 + $0x18] sm:$0xf] }
  0xea   : > { %17522 = vmatpush3.msk.msra.mxu0 %vm609_vm0, %v21009_v1  ;;  %17476 = vmatprep.mubr.msk.f32.mxu0 %vm413_vm3, %v20883_v8  ;;  %v21198_v1 = vld [vmem:[#allocation2 + $0x207] sm:$0xff] }
  0xeb   : > { %17571 = vmatprep.subr.msk.mxu0 %vm609_vm0, %v14948_v63 }
  0xed   : > { %17477 = vmatmul.mubr.msk.f32.gmra.mrb[2].mxu0 %vm413_vm3, %v20891_v9 }
  0xee   : > { %17479 = vmatprep.mubr.msk.f32.mxu0 %vm413_vm3, %v20893_v10 }
  0xf1   : > { %17480 = vmatmul.mubr.msk.f32.gmra.mrb[4].mxu0 %vm413_vm3, %v20899_v6 }
  0xf2   : > { %17482 = vmatprep.mubr.msk.f32.mxu0 %vm413_vm3, %v20901_v11 }
  0xf5   : > { %17483 = vmatmul.mubr.msk.f32.gmra.mrb[6].mxu0 %vm413_vm3, %v20907_v12 }
  0xf6   : > { %17485 = vmatprep.mubr.msk.f32.mxu0 %vm413_vm3, %v20909_v13 }
  0xf9   : > { %17486 = vmatmul.mubr.msk.f32.gmra.mrb[8].mxu0 %vm413_vm3, %v20915_v14 }
  0xfa   : > { %17488 = vmatprep.mubr.msk.f32.mxu0 %vm413_vm3, %v20917_v15 }
  0xfd   : > { %17489 = vmatmul.mubr.msk.f32.gmra.mrb[10].mxu0 %vm413_vm3, %v20923_v16 }
  0xfe   : > { %17491 = vmatprep.mubr.msk.f32.mxu0 %vm413_vm3, %v20925_v17 }
 0x101   : > { %17492 = vmatmul.mubr.msk.f32.gmra.mrb[12].mxu0 %vm413_vm3, %v20931_v18 }
 0x102   : > { %17494 = vmatprep.mubr.msk.f32.mxu0 %vm413_vm3, %v20933_v19 }
 0x105   : > { %17495 = vmatmul.mubr.msk.f32.gmra.mrb[14].mxu0 %vm413_vm3, %v20939_v20 }
 0x106   : > { %17497 = vmatprep.mubr.msk.f32.mxu0 %vm413_vm3, %v20941_v21 }
 0x109   : > { %17498 = vmatmul.mubr.msk.f32.gmra.mrb[16].mxu0 %vm413_vm3, %v20947_v22 }
 0x10a   : > { %17500 = vmatprep.mubr.msk.f32.mxu0 %vm413_vm3, %v20949_v23 }
 0x10d   : > { %17501 = vmatmul.mubr.msk.f32.gmra.mrb[18].mxu0 %vm413_vm3, %v20955_v24 }
 0x10e   : > { %17503 = vmatprep.mubr.msk.f32.mxu0 %vm413_vm3, %v20957_v25 }
 0x111   : > { %17504 = vmatmul.mubr.msk.f32.gmra.mrb[20].mxu0 %vm413_vm3, %v20963_v26 }
 0x112   : > { %17506 = vmatprep.mubr.msk.f32.mxu0 %vm413_vm3, %v20965_v27 }
 0x115   : > { %17507 = vmatmul.mubr.msk.f32.gmra.mrb[22].mxu0 %vm413_vm3, %v20971_v31 }
 0x116   : > { %17509 = vmatprep.mubr.msk.f32.mxu0 %vm413_vm3, %v20973_v32 }
 0x119   : > { %17510 = vmatmul.mubr.msk.f32.gmra.mrb[24].mxu0 %vm413_vm3, %v20979_v37 }
 0x11a   : > { %17512 = vmatprep.mubr.msk.f32.mxu0 %vm413_vm3, %v20981_v38 }
 0x11d   : > { %17513 = vmatmul.mubr.msk.f32.gmra.mrb[26].mxu0 %vm413_vm3, %v20991_v41 }
 0x11e   : > { %17515 = vmatprep.mubr.msk.f32.mxu0 %vm413_vm3, %v20993_v42 }
 0x121   : > { %17516 = vmatmul.mubr.msk.f32.gmra.mrb[28].mxu0 %vm413_vm3, %v20999_v2 }
 0x122   : > { %17518 = vmatprep.mubr.msk.f32.mxu0 %vm413_vm3, %v21198_v1 }
 0x125   : > { %17519 = vmatmul.mubr.msk.f32.gmra.mrb[30].mxu0 %vm413_vm3, %v21204_v4 }
 0x126   : > { %17523 = vmatprep.mubr.msk.f32.mxu0 %vm413_vm3, %v20729_v28  ;;  %v24673_v28 = vld [vmem:[#allocation3_spill] sm:$0xff] }
 0x129   : > { %17524 = vmatmul.mubr.msk.f32.vlgmr.msra.gmra.mrb[0].mxu0 %vm413_vm3, %v20731_v29  ;;  %v24674_v29 = vld [vmem:[#allocation4_spill] sm:$0xff] }
 0x12a   : > { %17572 = vmatpush3.msk.msra.mxu0 %vm609_vm0, %v14948_v63  ;;  %17526 = vmatprep.mubr.msk.f32.mxu0 %vm413_vm3, %v20733_v30  ;;  %v21271_v30 = vld [vmem:[#allocation2 + $0x208] sm:$0xff]  ;;  %v24695_v63 = vld [vmem:[#allocation25_spill] sm:$0xff] }
 0x12b   : > { %17621 = vmatprep.subr.msk.mxu0 %vm609_vm0, %v14982_v7 }
 0x12d   : > { %17527 = vmatmul.mubr.msk.f32.gmra.mrb[2].mxu0 %vm413_vm3, %v20748_v33  ;;  %v24675_v33 = vld [vmem:[#allocation5_spill] sm:$0xff] }
 0x12e   : > { %17529 = vmatprep.mubr.msk.f32.mxu0 %vm413_vm3, %v20750_v34  ;;  %v21277_v34 = vld [vmem:[#allocation2 + $0x210] sm:$0xff] }
 0x131   : > { %17530 = vmatmul.mubr.msk.f32.gmra.mrb[4].mxu0 %vm413_vm3, %v20756_v35  ;;  %v24676_v35 = vld [vmem:[#allocation6_spill] sm:$0xff] }
 0x132   : > { %17532 = vmatprep.mubr.msk.f32.mxu0 %vm413_vm3, %v20758_v36  ;;  %v15016_v36 = vld [vmem:[%s24375_s1 + $0x1c] sm:$0xf] }
 0x135   : > { %17533 = vmatmul.mubr.msk.f32.gmra.mrb[6].mxu0 %vm413_vm3, %v20774_v43  ;;  %v24677_v43 = vld [vmem:[#allocation7_spill] sm:$0xff] }
 0x136   : > { %17535 = vmatprep.mubr.msk.f32.mxu0 %vm413_vm3, %v20778_v44  ;;  %v24678_v44 = vld [vmem:[#allocation8_spill] sm:$0xff] }
 0x139   : > { %17536 = vmatmul.mubr.msk.f32.gmra.mrb[8].mxu0 %vm413_vm3, %v20784_v45  ;;  %v24679_v45 = vld [vmem:[#allocation9_spill] sm:$0xff] }
 0x13a   : > { %17538 = vmatprep.mubr.msk.f32.mxu0 %vm413_vm3, %v20786_v46  ;;  %v24680_v46 = vld [vmem:[#allocation10_spill] sm:$0xff] }
 0x13d   : > { %17539 = vmatmul.mubr.msk.f32.gmra.mrb[10].mxu0 %vm413_vm3, %v20792_v47  ;;  %v24681_v47 = vld [vmem:[#allocation11_spill] sm:$0xff] }
 0x13e   : > { %17541 = vmatprep.mubr.msk.f32.mxu0 %vm413_vm3, %v20794_v48  ;;  %v24682_v48 = vld [vmem:[#allocation12_spill] sm:$0xff] }
 0x141   : > { %17542 = vmatmul.mubr.msk.f32.gmra.mrb[12].mxu0 %vm413_vm3, %v20800_v49  ;;  %v24683_v49 = vld [vmem:[#allocation13_spill] sm:$0xff] }
 0x142   : > { %17544 = vmatprep.mubr.msk.f32.mxu0 %vm413_vm3, %v20802_v50  ;;  %v24684_v50 = vld [vmem:[#allocation14_spill] sm:$0xff] }
 0x145   : > { %17545 = vmatmul.mubr.msk.f32.gmra.mrb[14].mxu0 %vm413_vm3, %v20808_v51  ;;  %v24685_v51 = vld [vmem:[#allocation15_spill] sm:$0xff] }
 0x146   : > { %17547 = vmatprep.mubr.msk.f32.mxu0 %vm413_vm3, %v20810_v52  ;;  %v24686_v52 = vld [vmem:[#allocation16_spill] sm:$0xff] }
 0x149   : > { %17548 = vmatmul.mubr.msk.f32.gmra.mrb[16].mxu0 %vm413_vm3, %v20816_v53  ;;  %v24687_v53 = vld [vmem:[#allocation17_spill] sm:$0xff] }
 0x14a   : > { %17550 = vmatprep.mubr.msk.f32.mxu0 %vm413_vm3, %v20818_v54  ;;  %v24688_v54 = vld [vmem:[#allocation18_spill] sm:$0xff] }
 0x14d   : > { %17551 = vmatmul.mubr.msk.f32.gmra.mrb[18].mxu0 %vm413_vm3, %v20824_v55  ;;  %v24689_v55 = vld [vmem:[#allocation19_spill] sm:$0xff] }
 0x14e   : > { %17553 = vmatprep.mubr.msk.f32.mxu0 %vm413_vm3, %v20826_v56  ;;  %v24690_v56 = vld [vmem:[#allocation20_spill] sm:$0xff] }
 0x151   : > { %17554 = vmatmul.mubr.msk.f32.gmra.mrb[20].mxu0 %vm413_vm3, %v20832_v57  ;;  %v24691_v57 = vld [vmem:[#allocation21_spill] sm:$0xff] }
 0x152   : > { %17556 = vmatprep.mubr.msk.f32.mxu0 %vm413_vm3, %v20834_v58  ;;  %v24692_v58 = vld [vmem:[#allocation22_spill] sm:$0xff] }
 0x155   : > { %17557 = vmatmul.mubr.msk.f32.gmra.mrb[22].mxu0 %vm413_vm3, %v20840_v59  ;;  %v24693_v59 = vld [vmem:[#allocation23_spill] sm:$0xff] }
 0x156   : > { %17559 = vmatprep.mubr.msk.f32.mxu0 %vm413_vm3, %v20842_v60  ;;  %v24694_v60 = vld [vmem:[#allocation24_spill] sm:$0xff] }
 0x159   : > { %17560 = vmatmul.mubr.msk.f32.gmra.mrb[24].mxu0 %vm413_vm3, %v20848_v61 }
 0x15a   : > { %17562 = vmatprep.mubr.msk.f32.mxu0 %vm413_vm3, %v20850_v62 }
 0x15d   : > { %17563 = vmatmul.mubr.msk.f32.gmra.mrb[26].mxu0 %vm413_vm3, %v24673_v28 }
 0x15e   : > { %17565 = vmatprep.mubr.msk.f32.mxu0 %vm413_vm3, %v24674_v29 }
 0x161   : > { %17566 = vmatmul.mubr.msk.f32.gmra.mrb[28].mxu0 %vm413_vm3, %v24675_v33 }
 0x162   : > { %17568 = vmatprep.mubr.msk.f32.mxu0 %vm413_vm3, %v21271_v30 }
 0x165   : > { %17569 = vmatmul.mubr.msk.f32.gmra.mrb[30].mxu0 %vm413_vm3, %v21277_v34 }
 0x166   : > { %17573 = vmatprep.mubr.msk.f32.mxu0 %vm413_vm3, %v24676_v35  ;;  %v24697_v35 = vld [vmem:[#allocation27_spill] sm:$0xff] }
 0x169   : > { %17574 = vmatmul.mubr.msk.f32.vlgmr.msra.gmra.mrb[0].mxu0 %vm413_vm3, %v24677_v43  ;;  %v24698_v43 = vld [vmem:[#allocation28_spill] sm:$0xff] }
 0x16a   : > { %17622 = vmatpush3.msk.msra.mxu0 %vm609_vm0, %v14982_v7  ;;  %17576 = vmatprep.mubr.msk.f32.mxu0 %vm413_vm3, %v24678_v44  ;;  %v24696_v7 = vld [vmem:[#allocation26_spill] sm:$0xff] }
 0x16b   : > { %17671 = vmatprep.subr.msk.mxu0 %vm609_vm0, %v15016_v36 }
 0x16d   : > { %17577 = vmatmul.mubr.msk.f32.gmra.mrb[2].mxu0 %vm413_vm3, %v24679_v45 }
 0x16e   : > { %17579 = vmatprep.mubr.msk.f32.mxu0 %vm413_vm3, %v24680_v46 }
 0x171   : > { %17580 = vmatmul.mubr.msk.f32.gmra.mrb[4].mxu0 %vm413_vm3, %v24681_v47 }
 0x172   : > { %17582 = vmatprep.mubr.msk.f32.mxu0 %vm413_vm3, %v24682_v48 }
 0x175   : > { %17583 = vmatmul.mubr.msk.f32.gmra.mrb[6].mxu0 %vm413_vm3, %v24683_v49 }
 0x176   : > { %17585 = vmatprep.mubr.msk.f32.mxu0 %vm413_vm3, %v24684_v50 }
 0x179   : > { %17586 = vmatmul.mubr.msk.f32.gmra.mrb[8].mxu0 %vm413_vm3, %v24685_v51 }
 0x17a   : > { %17588 = vmatprep.mubr.msk.f32.mxu0 %vm413_vm3, %v24686_v52 }
 0x17d   : > { %17589 = vmatmul.mubr.msk.f32.gmra.mrb[10].mxu0 %vm413_vm3, %v24687_v53 }
 0x17e   : > { %17591 = vmatprep.mubr.msk.f32.mxu0 %vm413_vm3, %v24688_v54 }
 0x181   : > { %17592 = vmatmul.mubr.msk.f32.gmra.mrb[12].mxu0 %vm413_vm3, %v24689_v55 }
 0x182   : > { %17594 = vmatprep.mubr.msk.f32.mxu0 %vm413_vm3, %v24690_v56 }
 0x185   : > { %17595 = vmatmul.mubr.msk.f32.gmra.mrb[14].mxu0 %vm413_vm3, %v24691_v57 }
 0x186   : > { %17597 = vmatprep.mubr.msk.f32.mxu0 %vm413_vm3, %v24692_v58  ;;  %v24699_v58 = vld [vmem:[#allocation29_spill] sm:$0xff] }
 0x189   : > { %17598 = vmatmul.mubr.msk.f32.gmra.mrb[16].mxu0 %vm413_vm3, %v24693_v59 }
 0x18a   : > { %17600 = vmatprep.mubr.msk.f32.mxu0 %vm413_vm3, %v24694_v60  ;;  %v24700_v60 = vld [vmem:[#allocation30_spill] sm:$0xff] }
 0x18d   : > { %17601 = vmatmul.mubr.msk.f32.gmra.mrb[18].mxu0 %vm413_vm3, %v24695_v63 }
 0x18e   : > { %17603 = vmatprep.mubr.msk.f32.mxu0 %vm413_vm3, %v24696_v7 }
 0x191   : > { %17604 = vmatmul.mubr.msk.f32.gmra.mrb[20].mxu0 %vm413_vm3, %v24697_v35  ;;  %v21344_v35 = vld [vmem:[#allocation2 + $0x209] sm:$0xff] }
 0x192   : > { %17606 = vmatprep.mubr.msk.f32.mxu0 %vm413_vm3, %v24698_v43 }
 0x195   : > { %17607 = vmatmul.mubr.msk.f32.gmra.mrb[22].mxu0 %vm413_vm3, %v21106_v40 }
 0x196   : > { %17609 = vmatprep.mubr.msk.f32.mxu0 %vm413_vm3, %v24699_v58  ;;  %v21350_v58 = vld [vmem:[#allocation2 + $0x211] sm:$0xff] }
 0x199   : > { %17610 = vmatmul.mubr.msk.f32.gmra.mrb[24].mxu0 %vm413_vm3, %v21114_v0 }
 0x19a   : > { %17612 = vmatprep.mubr.msk.f32.mxu0 %vm413_vm3, %v24700_v60 }
 0x19d   : > { %17613 = vmatmul.mubr.msk.f32.gmra.mrb[26].mxu0 %vm413_vm3, %v21122_v3 }
 0x19e   : > { %17615 = vmatprep.mubr.msk.f32.mxu0 %vm413_vm3, %v21124_v39  ;;  %v15050_v39 = vld [vmem:[%s24375_s1 + $0x20] sm:$0xf] }
 0x1a1   : > { %17616 = vmatmul.mubr.msk.f32.gmra.mrb[28].mxu0 %vm413_vm3, %v21130_v5 }
 0x1a2   : > { %17618 = vmatprep.mubr.msk.f32.mxu0 %vm413_vm3, %v21344_v35 }
 0x1a5   : > { %17619 = vmatmul.mubr.msk.f32.gmra.mrb[30].mxu0 %vm413_vm3, %v21350_v58 }
 0x1a6   : > { %17623 = vmatprep.mubr.msk.f32.mxu0 %vm413_vm3, %v20883_v8  ;;  %v2753_v8 = vld [vmem:[#allocation2 + $0x227] sm:$0xff] }
 0x1a9   : > { %17624 = vmatmul.mubr.msk.f32.vlgmr.msra.gmra.mrb[0].mxu0 %vm413_vm3, %v20891_v9  ;;  %v2754_v9 = vld [vmem:[#allocation2 + $0x22f] sm:$0xff] }
 0x1aa   : > { %17672 = vmatpush3.msk.msra.mxu0 %vm609_vm0, %v15016_v36  ;;  %17626 = vmatprep.mubr.msk.f32.mxu0 %vm413_vm3, %v20893_v10  ;;  %v3113_v10 = vld [vmem:[#allocation2 + $0x48] sm:$0xff]  ;;  %v4028_v36 = vld [vmem:[%s24377_s3] sm:$0xff] }
 0x1ab   : > { %17721 = vmatprep.subr.msk.mxu0 %vm609_vm0, %v15050_v39 }
 0x1ad   : > { %17627 = vmatmul.mubr.msk.f32.gmra.mrb[2].mxu0 %vm413_vm3, %v20899_v6  ;;  %v3114_v6 = vld [vmem:[#allocation2 + $0x50] sm:$0xff] }
 0x1ae   : > { %17629 = vmatprep.mubr.msk.f32.mxu0 %vm413_vm3, %v20901_v11  ;;  %v3115_v11 = vld [vmem:[#allocation2 + $0x68] sm:$0xff] }
 0x1b1   : > { %17630 = vmatmul.mubr.msk.f32.gmra.mrb[4].mxu0 %vm413_vm3, %v20907_v12  ;;  %v3116_v12 = vld [vmem:[#allocation2 + $0x70] sm:$0xff] }
 0x1b2   : > { %17632 = vmatprep.mubr.msk.f32.mxu0 %vm413_vm3, %v20909_v13  ;;  %v3117_v13 = vld [vmem:[#allocation2 + $0x88] sm:$0xff] }
 0x1b5   : > { %17633 = vmatmul.mubr.msk.f32.gmra.mrb[6].mxu0 %vm413_vm3, %v20915_v14  ;;  %v3118_v14 = vld [vmem:[#allocation2 + $0x90] sm:$0xff] }
 0x1b6   : > { %17635 = vmatprep.mubr.msk.f32.mxu0 %vm413_vm3, %v20917_v15  ;;  %v3119_v15 = vld [vmem:[#allocation2 + $0xa8] sm:$0xff] }
 0x1b9   : > { %17636 = vmatmul.mubr.msk.f32.gmra.mrb[8].mxu0 %vm413_vm3, %v20923_v16  ;;  %v3120_v16 = vld [vmem:[#allocation2 + $0xb0] sm:$0xff] }
 0x1ba   : > { %17638 = vmatprep.mubr.msk.f32.mxu0 %vm413_vm3, %v20925_v17  ;;  %v3121_v17 = vld [vmem:[#allocation2 + $0xc8] sm:$0xff] }
 0x1bd   : > { %17639 = vmatmul.mubr.msk.f32.gmra.mrb[10].mxu0 %vm413_vm3, %v20931_v18  ;;  %v3122_v18 = vld [vmem:[#allocation2 + $0xd0] sm:$0xff] }
 0x1be   : > { %17641 = vmatprep.mubr.msk.f32.mxu0 %vm413_vm3, %v20933_v19  ;;  %v3123_v19 = vld [vmem:[#allocation2 + $0xe8] sm:$0xff] }
 0x1c1   : > { %17642 = vmatmul.mubr.msk.f32.gmra.mrb[12].mxu0 %vm413_vm3, %v20939_v20  ;;  %v3124_v20 = vld [vmem:[#allocation2 + $0xf0] sm:$0xff] }
 0x1c2   : > { %17644 = vmatprep.mubr.msk.f32.mxu0 %vm413_vm3, %v20941_v21  ;;  %v3125_v21 = vld [vmem:[#allocation2 + $0x108] sm:$0xff] }
 0x1c5   : > { %17645 = vmatmul.mubr.msk.f32.gmra.mrb[14].mxu0 %vm413_vm3, %v20947_v22  ;;  %v3126_v22 = vld [vmem:[#allocation2 + $0x110] sm:$0xff] }
 0x1c6   : > { %17647 = vmatprep.mubr.msk.f32.mxu0 %vm413_vm3, %v20949_v23  ;;  %v3127_v23 = vld [vmem:[#allocation2 + $0x128] sm:$0xff] }
 0x1c9   : > { %17648 = vmatmul.mubr.msk.f32.gmra.mrb[16].mxu0 %vm413_vm3, %v20955_v24  ;;  %v3128_v24 = vld [vmem:[#allocation2 + $0x130] sm:$0xff] }
 0x1ca   : > { %17650 = vmatprep.mubr.msk.f32.mxu0 %vm413_vm3, %v20957_v25  ;;  %v3129_v25 = vld [vmem:[#allocation2 + $0x148] sm:$0xff] }
 0x1cd   : > { %17651 = vmatmul.mubr.msk.f32.gmra.mrb[18].mxu0 %vm413_vm3, %v20963_v26  ;;  %v3130_v26 = vld [vmem:[#allocation2 + $0x150] sm:$0xff] }
 0x1ce   : > { %17653 = vmatprep.mubr.msk.f32.mxu0 %vm413_vm3, %v20965_v27  ;;  %v3131_v27 = vld [vmem:[#allocation2 + $0x168] sm:$0xff] }
 0x1d1   : > { %17654 = vmatmul.mubr.msk.f32.gmra.mrb[20].mxu0 %vm413_vm3, %v20971_v31  ;;  %v3132_v31 = vld [vmem:[#allocation2 + $0x170] sm:$0xff] }
 0x1d2   : > { %17656 = vmatprep.mubr.msk.f32.mxu0 %vm413_vm3, %v20973_v32  ;;  %v3133_v32 = vld [vmem:[#allocation2 + $0x188] sm:$0xff] }
 0x1d5   : > { %17657 = vmatmul.mubr.msk.f32.gmra.mrb[22].mxu0 %vm413_vm3, %v20979_v37  ;;  %v3134_v37 = vld [vmem:[#allocation2 + $0x190] sm:$0xff] }
 0x1d6   : > { %17659 = vmatprep.mubr.msk.f32.mxu0 %vm413_vm3, %v20981_v38  ;;  %v3135_v38 = vld [vmem:[#allocation2 + $0x1a8] sm:$0xff] }
 0x1d9   : > { %17660 = vmatmul.mubr.msk.f32.gmra.mrb[24].mxu0 %vm413_vm3, %v20991_v41  ;;  %v3143_v41 = vld [vmem:[#allocation2 + $0x228] sm:$0xff] }
 0x1da   : > { %17662 = vmatprep.mubr.msk.f32.mxu0 %vm413_vm3, %v20993_v42  ;;  %v24702_v42 = vld [vmem:[#allocation24_spill] sm:$0xff] }
 0x1dd   : > { %17663 = vmatmul.mubr.msk.f32.gmra.mrb[26].mxu0 %vm413_vm3, %v20999_v2  ;;  %v24703_v2 = vld [vmem:[#allocation27_spill] sm:$0xff] }
 0x1de   : > { %17665 = vmatprep.mubr.msk.f32.mxu0 %vm413_vm3, %v21198_v1  ;;  %v24705_v1 = vld [vmem:[#allocation31_spill] sm:$0xff] }
 0x1e1   : > { %17666 = vmatmul.mubr.msk.f32.gmra.mrb[28].mxu0 %vm413_vm3, %v21204_v4 }
 0x1e2   : > { %17668 = vmatprep.mubr.msk.f32.mxu0 %vm413_vm3, %v2753_v8 }
 0x1e5   : > { %17669 = vmatmul.mubr.msk.f32.gmra.mrb[30].mxu0 %vm413_vm3, %v2754_v9 }
 0x1e6   : > { %17673 = vmatprep.mubr.msk.f32.mxu0 %vm413_vm3, %v3113_v10 }
 0x1e9   : > { %17674 = vmatmul.mubr.msk.f32.vlgmr.msra.gmra.mrb[0].mxu0 %vm413_vm3, %v3114_v6 }
 0x1ea   : > { %17722 = vmatpush3.msk.msra.mxu0 %vm609_vm0, %v15050_v39  ;;  %17676 = vmatprep.mubr.msk.f32.mxu0 %vm413_vm3, %v3115_v11  ;;  %v24704_v39 = vld [vmem:[#allocation29_spill] sm:$0xff] }
 0x1ed   : > { %17677 = vmatmul.mubr.msk.f32.gmra.mrb[2].mxu0 %vm413_vm3, %v3116_v12 }
 0x1ee   : > { %17679 = vmatprep.mubr.msk.f32.mxu0 %vm413_vm3, %v3117_v13 }
 0x1f1   : > { %17680 = vmatmul.mubr.msk.f32.gmra.mrb[4].mxu0 %vm413_vm3, %v3118_v14 }
 0x1f2   : > { %17682 = vmatprep.mubr.msk.f32.mxu0 %vm413_vm3, %v3119_v15 }
 0x1f5   : > { %17683 = vmatmul.mubr.msk.f32.gmra.mrb[6].mxu0 %vm413_vm3, %v3120_v16 }
 0x1f6   : > { %17685 = vmatprep.mubr.msk.f32.mxu0 %vm413_vm3, %v3121_v17 }
 0x1f9   : > { %17686 = vmatmul.mubr.msk.f32.gmra.mrb[8].mxu0 %vm413_vm3, %v3122_v18 }
 0x1fa   : > { %17688 = vmatprep.mubr.msk.f32.mxu0 %vm413_vm3, %v3123_v19 }
 0x1fd   : > { %17689 = vmatmul.mubr.msk.f32.gmra.mrb[10].mxu0 %vm413_vm3, %v3124_v20 }
 0x1fe   : > { %17691 = vmatprep.mubr.msk.f32.mxu0 %vm413_vm3, %v3125_v21 }
 0x201   : > { %17692 = vmatmul.mubr.msk.f32.gmra.mrb[12].mxu0 %vm413_vm3, %v3126_v22 }
 0x202   : > { %17694 = vmatprep.mubr.msk.f32.mxu0 %vm413_vm3, %v3127_v23 }
 0x205   : > { %17695 = vmatmul.mubr.msk.f32.gmra.mrb[14].mxu0 %vm413_vm3, %v3128_v24 }
 0x206   : > { %17697 = vmatprep.mubr.msk.f32.mxu0 %vm413_vm3, %v3129_v25 }
 0x209   : > { %17698 = vmatmul.mubr.msk.f32.gmra.mrb[16].mxu0 %vm413_vm3, %v3130_v26 }
 0x20a   : > { %17700 = vmatprep.mubr.msk.f32.mxu0 %vm413_vm3, %v3131_v27 }
 0x20d   : > { %17701 = vmatmul.mubr.msk.f32.gmra.mrb[18].mxu0 %vm413_vm3, %v3132_v31 }
 0x20e   : > { %17703 = vmatprep.mubr.msk.f32.mxu0 %vm413_vm3, %v3133_v32 }
 0x211   : > { %17704 = vmatmul.mubr.msk.f32.gmra.mrb[20].mxu0 %vm413_vm3, %v3134_v37 }
 0x212   : > { %17706 = vmatprep.mubr.msk.f32.mxu0 %vm413_vm3, %v3135_v38 }
 0x215   : > { %17707 = vmatmul.mubr.msk.f32.gmra.mrb[22].mxu0 %vm413_vm3, %v20848_v61  ;;  %v3144_v61 = vld [vmem:[#allocation2 + $0x230] sm:$0xff] }
 0x216   : > { %17709 = vmatprep.mubr.msk.f32.mxu0 %vm413_vm3, %v20850_v62  ;;  %v24701_v62 = vld [vmem:[#allocation22_spill] sm:$0xff] }
 0x219   : > { %17710 = vmatmul.mubr.msk.f32.gmra.mrb[24].mxu0 %vm413_vm3, %v24673_v28  ;;  %v15087_v28 = vld [vmem:[%s24377_s3 + $0x30] sm:$0xff] }
 0x21a   : > { %17712 = vmatprep.mubr.msk.f32.mxu0 %vm413_vm3, %v24674_v29  ;;  %v15088_v29 = vld [vmem:[%s24377_s3 + $0x38] sm:$0xff] }
 0x21d   : > { %17713 = vmatmul.mubr.msk.f32.gmra.mrb[26].mxu0 %vm413_vm3, %v24675_v33  ;;  %v4032_v33 = vld [vmem:[#allocation2 + $0x8] sm:$0xff] }
 0x21e   : > { %17715 = vmatprep.mubr.msk.f32.mxu0 %vm413_vm3, %v21271_v30  ;;  %v19287_v30 = vpack.c.bf16 %v15088_v29, %v15087_v28  ;;  %17779 = vmatprep.mubr.msk.f32.mxu1 %vm333_vm1, %v4032_v33 }
 0x221   : > { %17716 = vmatmul.mubr.msk.f32.gmra.mrb[28].mxu0 %vm413_vm3, %v21277_v34  ;;  %v4033_v34 = vld [vmem:[#allocation2 + $0x10] sm:$0xff] }
 0x222   : > { %17718 = vmatprep.mubr.msk.f32.mxu0 %vm413_vm3, %v3143_v41 }
 0x225   : > { %17719 = vmatmul.mubr.msk.f32.gmra.mrb[30].mxu0 %vm413_vm3, %v3144_v61 }
 0x226   : > { %17723 = vmatprep.mubr.msk.f32.mxu0 %vm413_vm3, %v24678_v44  ;;  %v4029_v44 = vld [vmem:[%s24377_s3 + $0x8] sm:$0xff] }
 0x229   : > { %17724 = vmatmul.mubr.msk.f32.vlgmr.msra.gmra.mrb[0].mxu0 %vm413_vm3, %v24679_v45  ;;  %v19291_v45 = vpack.c.bf16 %v4029_v44, %v4028_v36 }
 0x22a   : > { %17726 = vmatprep.mubr.msk.f32.mxu0 %vm413_vm3, %v24680_v46  ;;  %v4030_v46 = vld [vmem:[%s24377_s3 + $0x10] sm:$0xff] }
 0x22d   : > { %17727 = vmatmul.mubr.msk.f32.gmra.mrb[2].mxu0 %vm413_vm3, %v24681_v47  ;;  %v4031_v47 = vld [vmem:[%s24377_s3 + $0x18] sm:$0xff] }
 0x22e   : > { %17729 = vmatprep.mubr.msk.f32.mxu0 %vm413_vm3, %v24682_v48  ;;  %v19295_v48 = vpack.c.bf16 %v4031_v47, %v4030_v46 }
 0x231   : > { %17730 = vmatmul.mubr.msk.f32.gmra.mrb[4].mxu0 %vm413_vm3, %v24683_v49  ;;  %v15153_v49 = vld [vmem:[%s24377_s3 + $0x40] sm:$0xff] }
 0x232   : > { %17732 = vmatprep.mubr.msk.f32.mxu0 %vm413_vm3, %v24684_v50  ;;  %v15154_v50 = vld [vmem:[%s24377_s3 + $0x48] sm:$0xff] }
 0x235   : > { %17733 = vmatmul.mubr.msk.f32.gmra.mrb[6].mxu0 %vm413_vm3, %v24685_v51  ;;  %v21555_v51 = vpack.c.bf16 %v15154_v50, %v15153_v49 }
 0x236   : > { %17735 = vmatprep.mubr.msk.f32.mxu0 %vm413_vm3, %v24686_v52  ;;  %v21561_v52 = vld [vmem:[%s24376_s2] ss:$0 sm:$0xff] }
 0x239   : > { %17736 = vmatmul.mubr.msk.f32.gmra.mrb[8].mxu0 %vm413_vm3, %v24687_v53 }
 0x23a   : > { %17738 = vmatprep.mubr.msk.f32.mxu0 %vm413_vm3, %v24688_v54 }
 0x23d   : > { %17739 = vmatmul.mubr.msk.f32.gmra.mrb[10].mxu0 %vm413_vm3, %v24689_v55 }
 0x23e   : > { %17741 = vmatprep.mubr.msk.f32.mxu0 %vm413_vm3, %v24690_v56 }
 0x241   : > { %17742 = vmatmul.mubr.msk.f32.gmra.mrb[12].mxu0 %vm413_vm3, %v24691_v57 }
 0x242   : > { %17744 = vmatprep.mubr.msk.f32.mxu0 %vm413_vm3, %v24701_v62 }
 0x245   : > { %17745 = vmatmul.mubr.msk.f32.gmra.mrb[14].mxu0 %vm413_vm3, %v24693_v59 }
 0x246   : > { %17747 = vmatprep.mubr.msk.f32.mxu0 %vm413_vm3, %v24702_v42 }
 0x249   : > { %17748 = vmatmul.mubr.msk.f32.gmra.mrb[16].mxu0 %vm413_vm3, %v24695_v63 }
 0x24a   : > { %17750 = vmatprep.mubr.msk.f32.mxu0 %vm413_vm3, %v24696_v7 }
 0x24d   : > { %17751 = vmatmul.mubr.msk.f32.gmra.mrb[18].mxu0 %vm413_vm3, %v24703_v2 }
 0x24e   : > { %17753 = vmatprep.mubr.msk.f32.mxu0 %vm413_vm3, %v24698_v43 }
 0x251   : > { %17754 = vmatmul.mubr.msk.f32.gmra.mrb[20].mxu0 %vm413_vm3, %v21106_v40  ;;  %v3533_v40 = vld [vmem:[#allocation2 + $0x229] sm:$0xff] }
 0x252   : > { %17756 = vmatprep.mubr.msk.f32.mxu0 %vm413_vm3, %v24704_v39 }
 0x255   : > { %17757 = vmatmul.mubr.msk.f32.gmra.mrb[22].mxu0 %vm413_vm3, %v21114_v0  ;;  %v3534_v0 = vld [vmem:[#allocation2 + $0x231] sm:$0xff] }
 0x256   : > { %17759 = vmatprep.mubr.msk.f32.mxu0 %vm413_vm3, %v24700_v60 }
 0x259   : > { %17760 = vmatmul.mubr.msk.f32.gmra.mrb[24].mxu0 %vm413_vm3, %v21122_v3  ;;  %v15085_v3 = vld [vmem:[%s24377_s3 + $0x20] sm:$0xff] }
 0x25a   : > { %17762 = vmatprep.mubr.msk.f32.mxu0 %vm413_vm3, %v24705_v1 }
 0x25d   : > { %17763 = vmatmul.mubr.msk.f32.gmra.mrb[26].mxu0 %vm413_vm3, %v21130_v5  ;;  %v15086_v5 = vld [vmem:[%s24377_s3 + $0x28] sm:$0xff] }
 0x25e   : > { %17765 = vmatprep.mubr.msk.f32.mxu0 %vm413_vm3, %v21344_v35  ;;  %v19283_v4 = vpack.c.bf16 %v15086_v5, %v15085_v3 }
 0x260   : > { %19284 = vmatprep.subr.bf16.mxu1 %v19283_v4 }
 0x261   : > { %17766 = vmatmul.mubr.msk.f32.gmra.mrb[28].mxu0 %vm413_vm3, %v21350_v58  ;;  %19286 = vmatpush3.bf16.msra.mxu1 %v19283_v4 }
 0x262   : > { %17768 = vmatprep.mubr.msk.f32.mxu0 %vm413_vm3, %v3533_v40  ;;  %19288 = vmatprep.subr.bf16.mxu1 %v19287_v30 }
 0x265   : > { %17769 = vmatmul.mubr.msk.f32.gmra.mrb[30].mxu0 %vm413_vm3, %v3534_v0  ;;  %19290 = vmatpush3.bf16.msra.mxu1 %v19287_v30 }
 0x266   : > { %19292 = vmatprep.subr.bf16.mxu1 %v19291_v45 }
 0x268   : > { %17780 = vmatmul.mubr.msk.f32.vlgmr.msra.gmra.mrb[0].mxu1 %vm333_vm1, %v4033_v34 }
 0x269   : > { %19294 = vmatpush3.bf16.msra.mxu1 %v19291_v45 }
 0x26a   : > { %19296 = vmatprep.subr.bf16.mxu1 %v19295_v48 }
 0x26d   : > { %19298 = vmatpush3.bf16.msra.mxu1 %v19295_v48 }
 0x26e   : > { %19300 = vmatprep.subr.bf16.mxu1 %v21555_v51 }
 0x2fc   : > { %v17725_v53 = vpop.f32.mrb[0].mxu0 }
 0x2fd   : > { %v3901_v54 = vadd.f32 %v17725_v53, %v21561_v52  ;;  %v3702_v55 = vpop.f32.mrb[1].mxu0 }
 0x2fe   : > { %v3900_v56 = vadd.f32 %v21561_v52, %v3702_v55 }
 0x2ff   : > { %v3933_v57 = vmax.f32 %v3901_v54, 0.0 }
 0x300   : > { %v3932_v58 = vmax.f32 %v3900_v56, 0.0  ;;  %v17728_v59 = vpop.f32.mrb[2].mxu0 }
 0x301   : > { %3965 = vst.msk [vmem:[#allocation2 + $0x30] sm:$0xff] %vm333_vm1, %v3933_v57  ;;  %v3903_v60 = vadd.f32 %v17728_v59, %v21561_v52  ;;  %v3712_v63 = vpop.f32.mrb[3].mxu0 }
 0x302   : > { %3964 = vst.msk [vmem:[#allocation2 + $0x28] sm:$0xff] %vm333_vm1, %v3932_v58  ;;  %v3902_v7 = vadd.f32 %v21561_v52, %v3712_v63 }
 0x303   : > { %v3935_v35 = vmax.f32 %v3903_v60, 0.0 }
 0x304   : > { %v3934_v43 = vmax.f32 %v3902_v7, 0.0  ;;  %v17731_v8 = vpop.f32.mrb[4].mxu0 }
 0x305   : > { %3967 = vst.msk [vmem:[#allocation2 + $0x50] sm:$0xff] %vm333_vm1, %v3935_v35  ;;  %v3905_v9 = vadd.f32 %v17731_v8, %v21561_v52  ;;  %v3722_v10 = vpop.f32.mrb[5].mxu0 }
 0x306   : > { %3966 = vst.msk [vmem:[#allocation2 + $0x48] sm:$0xff] %vm333_vm1, %v3934_v43  ;;  %v3904_v6 = vadd.f32 %v21561_v52, %v3722_v10 }
 0x307   : > { %v3937_v11 = vmax.f32 %v3905_v9, 0.0 }
 0x308   : > { %v3936_v12 = vmax.f32 %v3904_v6, 0.0  ;;  %v17734_v13 = vpop.f32.mrb[6].mxu0  ;;  %v21581_v18 = vld [vmem:[#allocation2 + $0x30] sm:$0xff] }
 0x309   : > { %3969 = vst.msk [vmem:[#allocation2 + $0x70] sm:$0xff] %vm333_vm1, %v3937_v11  ;;  %v3907_v14 = vadd.f32 %v17734_v13, %v21561_v52  ;;  %v3732_v15 = vpop.f32.mrb[7].mxu0  ;;  %v21575_v16 = vld [vmem:[#allocation2 + $0x28] sm:$0xff] }
 0x30a   : > { %3968 = vst.msk [vmem:[#allocation2 + $0x68] sm:$0xff] %vm333_vm1, %v3936_v12  ;;  %v3906_v17 = vadd.f32 %v21561_v52, %v3732_v15  ;;  %17782 = vmatprep.mubr.msk.f32.mxu1 %vm333_vm1, %v21575_v16 }
 0x30b   : > { %v3939_v19 = vmax.f32 %v3907_v14, 0.0  ;;  %17783 = vmatmul.mubr.msk.f32.gmra.mrb[2].mxu1 %vm333_vm1, %v21581_v18 }
 0x30c   : > { %v3938_v20 = vmax.f32 %v3906_v17, 0.0  ;;  %v17737_v21 = vpop.f32.mrb[8].mxu0  ;;  %v21593_v26 = vld [vmem:[#allocation2 + $0x50] sm:$0xff] }
 0x30d   : > { %3971 = vst.msk [vmem:[#allocation2 + $0x90] sm:$0xff] %vm333_vm1, %v3939_v19  ;;  %v3909_v22 = vadd.f32 %v17737_v21, %v21561_v52  ;;  %v3742_v23 = vpop.f32.mrb[9].mxu0  ;;  %v21587_v24 = vld [vmem:[#allocation2 + $0x48] sm:$0xff] }
 0x30e   : > { %3970 = vst.msk [vmem:[#allocation2 + $0x88] sm:$0xff] %vm333_vm1, %v3938_v20  ;;  %v3908_v25 = vadd.f32 %v21561_v52, %v3742_v23  ;;  %17785 = vmatprep.mubr.msk.f32.mxu1 %vm333_vm1, %v21587_v24 }
 0x30f   : > { %v3941_v27 = vmax.f32 %v3909_v22, 0.0  ;;  %17786 = vmatmul.mubr.msk.f32.gmra.mrb[4].mxu1 %vm333_vm1, %v21593_v26 }
 0x310   : > { %v3940_v31 = vmax.f32 %v3908_v25, 0.0  ;;  %v17740_v32 = vpop.f32.mrb[10].mxu0  ;;  %v21605_v62 = vld [vmem:[#allocation2 + $0x70] sm:$0xff] }
 0x311   : > { %3973 = vst.msk [vmem:[#allocation2 + $0xb0] sm:$0xff] %vm333_vm1, %v3941_v27  ;;  %v3911_v37 = vadd.f32 %v17740_v32, %v21561_v52  ;;  %v3752_v38 = vpop.f32.mrb[11].mxu0  ;;  %v21599_v41 = vld [vmem:[#allocation2 + $0x68] sm:$0xff] }
 0x312   : > { %3972 = vst.msk [vmem:[#allocation2 + $0xa8] sm:$0xff] %vm333_vm1, %v3940_v31  ;;  %v3910_v61 = vadd.f32 %v21561_v52, %v3752_v38  ;;  %17788 = vmatprep.mubr.msk.f32.mxu1 %vm333_vm1, %v21599_v41 }
 0x313   : > { %v3943_v42 = vmax.f32 %v3911_v37, 0.0  ;;  %17789 = vmatmul.mubr.msk.f32.gmra.mrb[6].mxu1 %vm333_vm1, %v21605_v62 }
 0x314   : > { %v3942_v2 = vmax.f32 %v3910_v61, 0.0  ;;  %v17743_v39 = vpop.f32.mrb[12].mxu0  ;;  %v21617_v5 = vld [vmem:[#allocation2 + $0x90] sm:$0xff] }
 0x315   : > { %3975 = vst.msk [vmem:[#allocation2 + $0xd0] sm:$0xff] %vm333_vm1, %v3943_v42  ;;  %v3913_v1 = vadd.f32 %v17743_v39, %v21561_v52  ;;  %v3762_v40 = vpop.f32.mrb[13].mxu0  ;;  %v21611_v0 = vld [vmem:[#allocation2 + $0x88] sm:$0xff] }
 0x316   : > { %3974 = vst.msk [vmem:[#allocation2 + $0xc8] sm:$0xff] %vm333_vm1, %v3942_v2  ;;  %v3912_v3 = vadd.f32 %v21561_v52, %v3762_v40  ;;  %17791 = vmatprep.mubr.msk.f32.mxu1 %vm333_vm1, %v21611_v0 }
 0x317   : > { %v3945_v4 = vmax.f32 %v3913_v1, 0.0  ;;  %17792 = vmatmul.mubr.msk.f32.gmra.mrb[8].mxu1 %vm333_vm1, %v21617_v5 }
 0x318   : > { %v3944_v28 = vmax.f32 %v3912_v3, 0.0  ;;  %v17746_v29 = vpop.f32.mrb[14].mxu0  ;;  %v21629_v44 = vld [vmem:[#allocation2 + $0xb0] sm:$0xff] }
 0x319   : > { %3977 = vst.msk [vmem:[#allocation2 + $0xf0] sm:$0xff] %vm333_vm1, %v3945_v4  ;;  %v3915_v30 = vadd.f32 %v17746_v29, %v21561_v52  ;;  %v3772_v33 = vpop.f32.mrb[15].mxu0  ;;  %v21623_v34 = vld [vmem:[#allocation2 + $0xa8] sm:$0xff] }
 0x31a   : > { %3976 = vst.msk [vmem:[#allocation2 + $0xe8] sm:$0xff] %vm333_vm1, %v3944_v28  ;;  %v3914_v36 = vadd.f32 %v21561_v52, %v3772_v33  ;;  %17794 = vmatprep.mubr.msk.f32.mxu1 %vm333_vm1, %v21623_v34 }
 0x31b   : > { %v3947_v45 = vmax.f32 %v3915_v30, 0.0  ;;  %17795 = vmatmul.mubr.msk.f32.gmra.mrb[10].mxu1 %vm333_vm1, %v21629_v44 }
 0x31c   : > { %v3946_v46 = vmax.f32 %v3914_v36, 0.0  ;;  %v17749_v47 = vpop.f32.mrb[16].mxu0  ;;  %v21641_v54 = vld [vmem:[#allocation2 + $0xd0] sm:$0xff] }
 0x31d   : > { %3979 = vst.msk [vmem:[#allocation2 + $0x110] sm:$0xff] %vm333_vm1, %v3947_v45  ;;  %v3917_v48 = vadd.f32 %v17749_v47, %v21561_v52  ;;  %v3782_v49 = vpop.f32.mrb[17].mxu0  ;;  %v21635_v50 = vld [vmem:[#allocation2 + $0xc8] sm:$0xff] }
 0x31e   : > { %3978 = vst.msk [vmem:[#allocation2 + $0x108] sm:$0xff] %vm333_vm1, %v3946_v46  ;;  %v3916_v53 = vadd.f32 %v21561_v52, %v3782_v49  ;;  %17797 = vmatprep.mubr.msk.f32.mxu1 %vm333_vm1, %v21635_v50 }
 0x31f   : > { %v3949_v55 = vmax.f32 %v3917_v48, 0.0  ;;  %17798 = vmatmul.mubr.msk.f32.gmra.mrb[12].mxu1 %vm333_vm1, %v21641_v54 }
 0x320   : > { %v3948_v56 = vmax.f32 %v3916_v53, 0.0  ;;  %v17752_v57 = vpop.f32.mrb[18].mxu0  ;;  %v21653_v7 = vld [vmem:[#allocation2 + $0xf0] sm:$0xff] }
 0x321   : > { %3981 = vst.msk [vmem:[#allocation2 + $0x130] sm:$0xff] %vm333_vm1, %v3949_v55  ;;  %v3919_v58 = vadd.f32 %v17752_v57, %v21561_v52  ;;  %v3792_v59 = vpop.f32.mrb[19].mxu0  ;;  %v21647_v60 = vld [vmem:[#allocation2 + $0xe8] sm:$0xff] }
 0x322   : > { %3980 = vst.msk [vmem:[#allocation2 + $0x128] sm:$0xff] %vm333_vm1, %v3948_v56  ;;  %v3918_v63 = vadd.f32 %v21561_v52, %v3792_v59  ;;  %17800 = vmatprep.mubr.msk.f32.mxu1 %vm333_vm1, %v21647_v60 }
 0x323   : > { %v3951_v35 = vmax.f32 %v3919_v58, 0.0  ;;  %17801 = vmatmul.mubr.msk.f32.gmra.mrb[14].mxu1 %vm333_vm1, %v21653_v7 }
 0x324   : > { %v3950_v43 = vmax.f32 %v3918_v63, 0.0  ;;  %v17755_v8 = vpop.f32.mrb[20].mxu0  ;;  %v21665_v12 = vld [vmem:[#allocation2 + $0x110] sm:$0xff] }
 0x325   : > { %3983 = vst.msk [vmem:[#allocation2 + $0x150] sm:$0xff] %vm333_vm1, %v3951_v35  ;;  %v3921_v9 = vadd.f32 %v17755_v8, %v21561_v52  ;;  %v3802_v10 = vpop.f32.mrb[21].mxu0  ;;  %v21659_v6 = vld [vmem:[#allocation2 + $0x108] sm:$0xff] }
 0x326   : > { %3982 = vst.msk [vmem:[#allocation2 + $0x148] sm:$0xff] %vm333_vm1, %v3950_v43  ;;  %v3920_v11 = vadd.f32 %v21561_v52, %v3802_v10  ;;  %17803 = vmatprep.mubr.msk.f32.mxu1 %vm333_vm1, %v21659_v6  ;;  %v3996_v10 = vld [vmem:[#allocation2 + $0x7] sm:$0xff] }
 0x327   : > { %v3953_v13 = vmax.f32 %v3921_v9, 0.0  ;;  %17804 = vmatmul.mubr.msk.f32.gmra.mrb[16].mxu1 %vm333_vm1, %v21665_v12 }
 0x328   : > { %v3952_v14 = vmax.f32 %v3920_v11, 0.0  ;;  %v17758_v15 = vpop.f32.mrb[22].mxu0  ;;  %v21677_v22 = vld [vmem:[#allocation2 + $0x130] sm:$0xff] }
 0x329   : > { %3985 = vst.msk [vmem:[#allocation2 + $0x170] sm:$0xff] %vm333_vm1, %v3953_v13  ;;  %v3923_v17 = vadd.f32 %v17758_v15, %v21561_v52  ;;  %v3812_v19 = vpop.f32.mrb[23].mxu0  ;;  %v21671_v20 = vld [vmem:[#allocation2 + $0x128] sm:$0xff]  ;;  %v15155_v13 = vld [vmem:[%s24377_s3 + $0x50] sm:$0xff] }
 0x32a   : > { %3984 = vst.msk [vmem:[#allocation2 + $0x168] sm:$0xff] %vm333_vm1, %v3952_v14  ;;  %v3922_v21 = vadd.f32 %v21561_v52, %v3812_v19  ;;  %17806 = vmatprep.mubr.msk.f32.mxu1 %vm333_vm1, %v21671_v20  ;;  %v15156_v14 = vld [vmem:[%s24377_s3 + $0x58] sm:$0xff]  ;;  %v3997_v15 = vld [vmem:[#allocation2 + $0xf] sm:$0xff]  ;;  %v15189_v19 = vld [vmem:[%s24377_s3 + $0x60] sm:$0xff] }
 0x32b   : > { %v3955_v23 = vmax.f32 %v3923_v17, 0.0  ;;  %17807 = vmatmul.mubr.msk.f32.gmra.mrb[18].mxu1 %vm333_vm1, %v21677_v22  ;;  %v19303_v17 = vpack.c.bf16 %v15156_v14, %v15155_v13 }
 0x32c   : > { %v3954_v25 = vmax.f32 %v3922_v21, 0.0  ;;  %v17761_v27 = vpop.f32.mrb[24].mxu0  ;;  %v21689_v61 = vld [vmem:[#allocation2 + $0x150] sm:$0xff]  ;;  %v15190_v21 = vld [vmem:[%s24377_s3 + $0x68] sm:$0xff] }
 0x32d   : > { %3987 = vst.msk [vmem:[#allocation2 + $0x190] sm:$0xff] %vm333_vm1, %v3955_v23  ;;  %v3925_v31 = vadd.f32 %v17761_v27, %v21561_v52  ;;  %v3822_v32 = vpop.f32.mrb[25].mxu0  ;;  %v21683_v37 = vld [vmem:[#allocation2 + $0x148] sm:$0xff] }
 0x32e   : > { %3986 = vst.msk [vmem:[#allocation2 + $0x188] sm:$0xff] %vm333_vm1, %v3954_v25  ;;  %v3924_v38 = vadd.f32 %v21561_v52, %v3822_v32  ;;  %17809 = vmatprep.mubr.msk.f32.mxu1 %vm333_vm1, %v21683_v37  ;;  %v21761_v23 = vld [vmem:[#allocation2 + $0x27] sm:$0xff]  ;;  %v21766_v25 = vpack.c.bf16 %v15190_v21, %v15189_v19  ;;  %v21768_v27 = vld [vmem:[#allocation2 + $0x2f] sm:$0xff]  ;;  %v15192_v21 = vld [vmem:[%s24377_s3 + $0x78] sm:$0xff] }
 0x32f   : > { %v3957_v42 = vmax.f32 %v3925_v31, 0.0  ;;  %17810 = vmatmul.mubr.msk.f32.gmra.mrb[20].mxu1 %vm333_vm1, %v21689_v61  ;;  %v21772_v31 = vld [vmem:[#allocation2 + $0x47] sm:$0xff]  ;;  %v15191_v19 = vld [vmem:[%s24377_s3 + $0x70] sm:$0xff] }
 0x330   : > { %v3956_v2 = vmax.f32 %v3924_v38, 0.0  ;;  %v17764_v39 = vpop.f32.mrb[26].mxu0  ;;  %v21701_v28 = vld [vmem:[#allocation2 + $0x170] sm:$0xff]  ;;  %v21781_v32 = vld [vmem:[#allocation2 + $0x67] sm:$0xff] }
 0x331   : > { %3989 = vst.msk [vmem:[#allocation2 + $0x1b0] sm:$0xff] %vm333_vm1, %v3957_v42  ;;  %v3927_v1 = vadd.f32 %v17764_v39, %v21561_v52  ;;  %v3832_v40 = vpop.f32.mrb[27].mxu0  ;;  %v21695_v3 = vld [vmem:[#allocation2 + $0x168] sm:$0xff] }
 0x332   : > { %3988 = vst.msk [vmem:[#allocation2 + $0x1a8] sm:$0xff] %vm333_vm1, %v3956_v2  ;;  %v3926_v4 = vadd.f32 %v21561_v52, %v3832_v40  ;;  %17812 = vmatprep.mubr.msk.f32.mxu1 %vm333_vm1, %v21695_v3  ;;  %v21785_v38 = vld [vmem:[#allocation2 + $0x6f] sm:$0xff]  ;;  %v21789_v42 = vld [vmem:[#allocation2 + $0x87] sm:$0xff] }
 0x333   : > { %v3959_v29 = vmax.f32 %v3927_v1, 0.0  ;;  %17813 = vmatmul.mubr.msk.f32.gmra.mrb[22].mxu1 %vm333_vm1, %v21701_v28  ;;  %v21793_v2 = vld [vmem:[#allocation2 + $0x8f] sm:$0xff]  ;;  %v21797_v39 = vld [vmem:[#allocation2 + $0xa7] sm:$0xff] }
 0x334   : > { %v3958_v30 = vmax.f32 %v3926_v4, 0.0  ;;  %v17767_v33 = vpop.f32.mrb[28].mxu0  ;;  %v21713_v48 = vld [vmem:[#allocation2 + $0x190] sm:$0xff]  ;;  %v21805_v40 = vld [vmem:[#allocation2 + $0xc7] sm:$0xff] }
 0x335   : > { %3991 = vst.msk [vmem:[#allocation2 + $0x1d0] sm:$0xff] %vm333_vm1, %v3959_v29  ;;  %v3929_v36 = vadd.f32 %v17767_v33, %v21561_v52  ;;  %v3842_v45 = vpop.f32.mrb[29].mxu0  ;;  %v21707_v46 = vld [vmem:[#allocation2 + $0x188] sm:$0xff] }
 0x336   : > { %3990 = vst.msk [vmem:[#allocation2 + $0x1c8] sm:$0xff] %vm333_vm1, %v3958_v30  ;;  %v3928_v47 = vadd.f32 %v21561_v52, %v3842_v45  ;;  %17815 = vmatprep.mubr.msk.f32.mxu1 %vm333_vm1, %v21707_v46  ;;  %v21801_v1 = vld [vmem:[#allocation2 + $0xaf] sm:$0xff]  ;;  %v21813_v29 = vld [vmem:[#allocation2 + $0xe7] sm:$0xff] }
 0x337   : > { %v3961_v49 = vmax.f32 %v3929_v36, 0.0  ;;  %17816 = vmatmul.mubr.msk.f32.gmra.mrb[24].mxu1 %vm333_vm1, %v21713_v48  ;;  %v21809_v4 = vld [vmem:[#allocation2 + $0xcf] sm:$0xff]  ;;  %v21821_v33 = vld [vmem:[#allocation2 + $0x107] sm:$0xff] }
 0x338   : > { %v3960_v53 = vmax.f32 %v3928_v47, 0.0  ;;  %v17770_v55 = vpop.f32.mrb[30].mxu0  ;;  %v21725_v63 = vld [vmem:[#allocation2 + $0x1b0] sm:$0xff]  ;;  %v21829_v45 = vld [vmem:[#allocation2 + $0x127] sm:$0xff] }
 0x339   : > { %3993 = vst.msk [vmem:[#allocation2 + $0x1f0] sm:$0xff] %vm333_vm1, %v3961_v49  ;;  %v3931_v56 = vadd.f32 %v17770_v55, %v21561_v52  ;;  %v3852_v57 = vpop.f32.mrb[31].mxu0  ;;  %v21719_v58 = vld [vmem:[#allocation2 + $0x1a8] sm:$0xff]  ;;  %24706 = vst [vmem:[#allocation3_spill] sm:$0xff] %v21725_v63 }
 0x33a   : > { %3992 = vst.msk [vmem:[#allocation2 + $0x1e8] sm:$0xff] %vm333_vm1, %v3960_v53  ;;  %v3930_v59 = vadd.f32 %v21561_v52, %v3852_v57  ;;  %17818 = vmatprep.mubr.msk.f32.mxu1 %vm333_vm1, %v21719_v58  ;;  %v21817_v30 = vld [vmem:[#allocation2 + $0xef] sm:$0xff]  ;;  %v21837_v49 = vld [vmem:[#allocation2 + $0x147] sm:$0xff] }
 0x33b   : > { %v3963_v35 = vmax.f32 %v3931_v56, 0.0  ;;  %17819 = vmatmul.mubr.msk.f32.gmra.mrb[26].mxu1 %vm333_vm1, %v21725_v63  ;;  %v21825_v36 = vld [vmem:[#allocation2 + $0x10f] sm:$0xff]  ;;  %v21845_v55 = vld [vmem:[#allocation2 + $0x167] sm:$0xff] }
 0x33c   : > { %v3962_v43 = vmax.f32 %v3930_v59, 0.0  ;;  %v21735_v52 = vld [vmem:[#allocation2 + $0x1d0] sm:$0xff]  ;;  %v21853_v57 = vld [vmem:[#allocation2 + $0x187] sm:$0xff] }
 0x33d   : > { %3995 = vst.msk [vmem:[#allocation2 + $0x210] sm:$0xff] %vm333_vm1, %v3963_v35  ;;  %v21730_v8 = vld [vmem:[#allocation2 + $0x1c8] sm:$0xff]  ;;  %24708 = vst [vmem:[#allocation5_spill] sm:$0xff] %v21735_v52 }
 0x33e   : > { %24707 = vst [vmem:[#allocation4_spill] sm:$0xff] %v21730_v8  ;;  %3994 = vst.msk [vmem:[#allocation2 + $0x208] sm:$0xff] %vm333_vm1, %v3962_v43  ;;  %17821 = vmatprep.mubr.msk.f32.mxu1 %vm333_vm1, %v21730_v8  ;;  %v21833_v47 = vld [vmem:[#allocation2 + $0x12f] sm:$0xff]  ;;  %v21861_v35 = vld [vmem:[#allocation2 + $0x1a7] sm:$0xff] }
 0x33f   : > { %17822 = vmatmul.mubr.msk.f32.gmra.mrb[28].mxu1 %vm333_vm1, %v21735_v52  ;;  %v21841_v53 = vld [vmem:[#allocation2 + $0x14f] sm:$0xff]  ;;  %v15225_v52 = vld [vmem:[%s24377_s3 + $0x80] sm:$0xff] }
 0x340   : > { %v21743_v11 = vld [vmem:[#allocation2 + $0x1f0] sm:$0xff]  ;;  %v15226_v8 = vld [vmem:[%s24377_s3 + $0x88] sm:$0xff] }
 0x341   : > { %v21739_v9 = vld [vmem:[#allocation2 + $0x1e8] sm:$0xff]  ;;  %24710 = vst [vmem:[#allocation7_spill] sm:$0xff] %v21743_v11 }
 0x342   : > { %24709 = vst [vmem:[#allocation6_spill] sm:$0xff] %v21739_v9  ;;  %17824 = vmatprep.mubr.msk.f32.mxu1 %vm333_vm1, %v21739_v9  ;;  %v21849_v56 = vld [vmem:[#allocation2 + $0x16f] sm:$0xff]  ;;  %v21877_v14 = vld [vmem:[#allocation2 + $0x1e7] sm:$0xff]  ;;  %v19311_v9 = vpack.c.bf16 %v15192_v21, %v15191_v19 }
 0x343   : > { %17825 = vmatmul.mubr.msk.f32.gmra.mrb[30].mxu1 %vm333_vm1, %v21743_v11  ;;  %v21857_v59 = vld [vmem:[#allocation2 + $0x18f] sm:$0xff] }
 0x344   : > { %17835 = vmatprep.mubr.msk.f32.mxu1 %vm333_vm1, %v3996_v10  ;;  %v21865_v43 = vld [vmem:[#allocation2 + $0x1af] sm:$0xff]  ;;  %v21869_v10 = vld [vmem:[#allocation2 + $0x1c7] sm:$0xff] }
 0x345   : > { %v21873_v13 = vld [vmem:[#allocation2 + $0x1cf] sm:$0xff] }
 0x346   : > { %v4712_v11 = vld [vmem:[#allocation2 + $0x11] sm:$0xff]  ;;  %v21899_v63 = vld [vmem:[#allocation2 + $0x29] sm:$0xff] }
 0x347   : > { %17836 = vmatmul.mubr.msk.f32.vlgmr.msra.gmra.mrb[0].mxu1 %vm333_vm1, %v3997_v15  ;;  %v4711_v15 = vld [vmem:[#allocation2 + $0x9] sm:$0xff]  ;;  %v21906_v19 = vld [vmem:[#allocation2 + $0x31] sm:$0xff] }
 0x348   : > { %19302 = vmatpush3.bf16.msra.mxu1 %v21555_v51  ;;  %17838 = vmatprep.mubr.msk.f32.mxu1 %vm333_vm1, %v21761_v23  ;;  %v21777_v51 = vld [vmem:[#allocation2 + $0x4f] sm:$0xff] }
 0x349   : > { %19304 = vmatprep.subr.bf16.mxu1 %v19303_v17  ;;  %v21910_v21 = vld [vmem:[#allocation2 + $0x49] sm:$0xff] }
 0x34a   : > { %24711 = vst [vmem:[#allocation8_spill] sm:$0xff] %v21910_v21 }
 0x34b   : > { %17839 = vmatmul.mubr.msk.f32.gmra.mrb[2].mxu1 %vm333_vm1, %v21768_v27 }
 0x34c   : > { %17841 = vmatprep.mubr.msk.f32.mxu1 %vm333_vm1, %v21772_v31  ;;  %19306 = vmatpush3.bf16.msra.mxu1 %v19303_v17  ;;  %v21881_v17 = vld [vmem:[#allocation2 + $0x1ef] sm:$0xff] }
 0x34d   : > { %19308 = vmatprep.subr.bf16.mxu1 %v21766_v25 }
 0x34f   : > { %17842 = vmatmul.mubr.msk.f32.gmra.mrb[4].mxu1 %vm333_vm1, %v21777_v51 }
 0x350   : > { %17844 = vmatprep.mubr.msk.f32.mxu1 %vm333_vm1, %v21781_v32 }
 0x353   : > { %17845 = vmatmul.mubr.msk.f32.gmra.mrb[6].mxu1 %vm333_vm1, %v21785_v38 }
 0x354   : > { %17847 = vmatprep.mubr.msk.f32.mxu1 %vm333_vm1, %v21789_v42 }
 0x357   : > { %17848 = vmatmul.mubr.msk.f32.gmra.mrb[8].mxu1 %vm333_vm1, %v21793_v2 }
 0x358   : > { %17850 = vmatprep.mubr.msk.f32.mxu1 %vm333_vm1, %v21797_v39 }
 0x35b   : > { %17851 = vmatmul.mubr.msk.f32.gmra.mrb[10].mxu1 %vm333_vm1, %v21801_v1 }
 0x35c   : > { %17853 = vmatprep.mubr.msk.f32.mxu1 %vm333_vm1, %v21805_v40 }
 0x35f   : > { %17854 = vmatmul.mubr.msk.f32.gmra.mrb[12].mxu1 %vm333_vm1, %v21809_v4 }
 0x360   : > { %17856 = vmatprep.mubr.msk.f32.mxu1 %vm333_vm1, %v21813_v29 }
 0x363   : > { %17857 = vmatmul.mubr.msk.f32.gmra.mrb[14].mxu1 %vm333_vm1, %v21817_v30 }
 0x364   : > { %17859 = vmatprep.mubr.msk.f32.mxu1 %vm333_vm1, %v21821_v33 }
 0x367   : > { %17860 = vmatmul.mubr.msk.f32.gmra.mrb[16].mxu1 %vm333_vm1, %v21825_v36 }
 0x368   : > { %17862 = vmatprep.mubr.msk.f32.mxu1 %vm333_vm1, %v21829_v45 }
 0x36b   : > { %17863 = vmatmul.mubr.msk.f32.gmra.mrb[18].mxu1 %vm333_vm1, %v21833_v47 }
 0x36c   : > { %17865 = vmatprep.mubr.msk.f32.mxu1 %vm333_vm1, %v21837_v49 }
 0x36f   : > { %17866 = vmatmul.mubr.msk.f32.gmra.mrb[20].mxu1 %vm333_vm1, %v21841_v53 }
 0x370   : > { %17868 = vmatprep.mubr.msk.f32.mxu1 %vm333_vm1, %v21845_v55 }
 0x373   : > { %17869 = vmatmul.mubr.msk.f32.gmra.mrb[22].mxu1 %vm333_vm1, %v21849_v56 }
 0x374   : > { %17871 = vmatprep.mubr.msk.f32.mxu1 %vm333_vm1, %v21853_v57 }
 0x377   : > { %17872 = vmatmul.mubr.msk.f32.gmra.mrb[24].mxu1 %vm333_vm1, %v21857_v59 }
 0x378   : > { %17874 = vmatprep.mubr.msk.f32.mxu1 %vm333_vm1, %v21861_v35 }
 0x37b   : > { %17875 = vmatmul.mubr.msk.f32.gmra.mrb[26].mxu1 %vm333_vm1, %v21865_v43 }
 0x37c   : > { %17877 = vmatprep.mubr.msk.f32.mxu1 %vm333_vm1, %v21869_v10 }
 0x37f   : > { %17878 = vmatmul.mubr.msk.f32.gmra.mrb[28].mxu1 %vm333_vm1, %v21873_v13 }
 0x380   : > { %17880 = vmatprep.mubr.msk.f32.mxu1 %vm333_vm1, %v21877_v14 }
 0x383   : > { %17881 = vmatmul.mubr.msk.f32.gmra.mrb[30].mxu1 %vm333_vm1, %v21881_v17 }
 0x384   : > { %17891 = vmatprep.mubr.msk.f32.mxu1 %vm333_vm1, %v4711_v15  ;;  %v21904_v15 = vpack.c.bf16 %v15226_v8, %v15225_v52  ;;  %v21919_v8 = vld [vmem:[#allocation2 + $0x69] sm:$0xff]  ;;  %v21923_v52 = vld [vmem:[#allocation2 + $0x71] sm:$0xff] }
 0x385   : > { %24713 = vst [vmem:[#allocation10_spill] sm:$0xff] %v21919_v8  ;;  %24714 = vst [vmem:[#allocation11_spill] sm:$0xff] %v21923_v52 }
 0x387   : > { %17892 = vmatmul.mubr.msk.f32.vlgmr.msra.gmra.mrb[0].mxu1 %vm333_vm1, %v4712_v11  ;;  %v21915_v11 = vld [vmem:[#allocation2 + $0x51] sm:$0xff] }
 0x388   : > { %19310 = vmatpush3.bf16.msra.mxu1 %v21766_v25  ;;  %17894 = vmatprep.mubr.msk.f32.mxu1 %vm333_vm1, %v21899_v63  ;;  %24712 = vst [vmem:[#allocation9_spill] sm:$0xff] %v21915_v11  ;;  %v21927_v25 = vld [vmem:[#allocation2 + $0x89] sm:$0xff] }
 0x389   : > { %19312 = vmatprep.subr.bf16.mxu1 %v19311_v9  ;;  %24715 = vst [vmem:[#allocation12_spill] sm:$0xff] %v21927_v25 }
 0x38b   : > { %17895 = vmatmul.mubr.msk.f32.gmra.mrb[2].mxu1 %vm333_vm1, %v21906_v19 }
 0x38c   : > { %17897 = vmatprep.mubr.msk.f32.mxu1 %vm333_vm1, %v21910_v21  ;;  %19314 = vmatpush3.bf16.msra.mxu1 %v19311_v9  ;;  %v21931_v9 = vld [vmem:[#allocation2 + $0x91] sm:$0xff]  ;;  %v15262_v21 = vld [vmem:[%s24377_s3 + $0xa8] sm:$0xff] }
 0x38d   : > { %19316 = vmatprep.subr.bf16.mxu1 %v21904_v15  ;;  %24716 = vst [vmem:[#allocation13_spill] sm:$0xff] %v21931_v9 }
 0x38f   : > { %17898 = vmatmul.mubr.msk.f32.gmra.mrb[4].mxu1 %vm333_vm1, %v21915_v11  ;;  %v21935_v11 = vld [vmem:[#allocation2 + $0xa9] sm:$0xff] }
 0x390   : > { %17900 = vmatprep.mubr.msk.f32.mxu1 %vm333_vm1, %v21919_v8  ;;  %24717 = vst [vmem:[#allocation14_spill] sm:$0xff] %v21935_v11  ;;  %v21939_v8 = vld [vmem:[#allocation2 + $0xb1] sm:$0xff] }
 0x391   : > { %24718 = vst [vmem:[#allocation15_spill] sm:$0xff] %v21939_v8 }
 0x393   : > { %17901 = vmatmul.mubr.msk.f32.gmra.mrb[6].mxu1 %vm333_vm1, %v21923_v52  ;;  %v21943_v52 = vld [vmem:[#allocation2 + $0xc9] sm:$0xff] }
 0x394   : > { %17903 = vmatprep.mubr.msk.f32.mxu1 %vm333_vm1, %v21927_v25  ;;  %24719 = vst [vmem:[#allocation16_spill] sm:$0xff] %v21943_v52  ;;  %v21947_v25 = vld [vmem:[#allocation2 + $0xd1] sm:$0xff] }
 0x395   : > { %24720 = vst [vmem:[#allocation17_spill] sm:$0xff] %v21947_v25 }
 0x397   : > { %17904 = vmatmul.mubr.msk.f32.gmra.mrb[8].mxu1 %vm333_vm1, %v21931_v9  ;;  %v21951_v9 = vld [vmem:[#allocation2 + $0xe9] sm:$0xff] }
 0x398   : > { %17906 = vmatprep.mubr.msk.f32.mxu1 %vm333_vm1, %v21935_v11  ;;  %24721 = vst [vmem:[#allocation18_spill] sm:$0xff] %v21951_v9  ;;  %v21955_v11 = vld [vmem:[#allocation2 + $0xf1] sm:$0xff] }
 0x399   : > { %24722 = vst [vmem:[#allocation19_spill] sm:$0xff] %v21955_v11 }
 0x39b   : > { %17907 = vmatmul.mubr.msk.f32.gmra.mrb[10].mxu1 %vm333_vm1, %v21939_v8  ;;  %v21959_v8 = vld [vmem:[#allocation2 + $0x109] sm:$0xff] }
 0x39c   : > { %17909 = vmatprep.mubr.msk.f32.mxu1 %vm333_vm1, %v21943_v52  ;;  %24723 = vst [vmem:[#allocation20_spill] sm:$0xff] %v21959_v8  ;;  %v21963_v52 = vld [vmem:[#allocation2 + $0x111] sm:$0xff] }
 0x39d   : > { %24724 = vst [vmem:[#allocation21_spill] sm:$0xff] %v21963_v52 }
 0x39f   : > { %17910 = vmatmul.mubr.msk.f32.gmra.mrb[12].mxu1 %vm333_vm1, %v21947_v25  ;;  %v21967_v25 = vld [vmem:[#allocation2 + $0x129] sm:$0xff] }
 0x3a0   : > { %17912 = vmatprep.mubr.msk.f32.mxu1 %vm333_vm1, %v21951_v9  ;;  %24725 = vst [vmem:[#allocation23_spill] sm:$0xff] %v21967_v25  ;;  %v21971_v9 = vld [vmem:[#allocation2 + $0x131] sm:$0xff] }
 0x3a1   : > { %24726 = vst [vmem:[#allocation25_spill] sm:$0xff] %v21971_v9 }
 0x3a3   : > { %17913 = vmatmul.mubr.msk.f32.gmra.mrb[14].mxu1 %vm333_vm1, %v21955_v11  ;;  %v21975_v11 = vld [vmem:[#allocation2 + $0x149] sm:$0xff] }
 0x3a4   : > { %17915 = vmatprep.mubr.msk.f32.mxu1 %vm333_vm1, %v21959_v8  ;;  %24727 = vst [vmem:[#allocation26_spill] sm:$0xff] %v21975_v11  ;;  %v21979_v8 = vld [vmem:[#allocation2 + $0x151] sm:$0xff] }
 0x3a5   : > { %24728 = vst [vmem:[#allocation28_spill] sm:$0xff] %v21979_v8 }
 0x3a7   : > { %17916 = vmatmul.mubr.msk.f32.gmra.mrb[16].mxu1 %vm333_vm1, %v21963_v52  ;;  %v21983_v52 = vld [vmem:[#allocation2 + $0x169] sm:$0xff] }
 0x3a8   : > { %17918 = vmatprep.mubr.msk.f32.mxu1 %vm333_vm1, %v21967_v25  ;;  %24729 = vst [vmem:[#allocation30_spill] sm:$0xff] %v21983_v52  ;;  %v21987_v25 = vld [vmem:[#allocation2 + $0x171] sm:$0xff] }
 0x3a9   : > { %24730 = vst [vmem:[#allocation22_spill] sm:$0xff] %v21987_v25 }
 0x3ab   : > { %17919 = vmatmul.mubr.msk.f32.gmra.mrb[18].mxu1 %vm333_vm1, %v21971_v9  ;;  %v21991_v9 = vld [vmem:[#allocation2 + $0x189] sm:$0xff] }
 0x3ac   : > { %17921 = vmatprep.mubr.msk.f32.mxu1 %vm333_vm1, %v21975_v11  ;;  %24731 = vst [vmem:[#allocation24_spill] sm:$0xff] %v21991_v9  ;;  %v21995_v11 = vld [vmem:[#allocation2 + $0x191] sm:$0xff] }
 0x3ad   : > { %24732 = vst [vmem:[#allocation27_spill] sm:$0xff] %v21995_v11 }
 0x3af   : > { %17922 = vmatmul.mubr.msk.f32.gmra.mrb[20].mxu1 %vm333_vm1, %v21979_v8  ;;  %v21999_v8 = vld [vmem:[#allocation2 + $0x1a9] sm:$0xff] }
 0x3b0   : > { %17924 = vmatprep.mubr.msk.f32.mxu1 %vm333_vm1, %v21983_v52  ;;  %24733 = vst [vmem:[#allocation29_spill] sm:$0xff] %v21999_v8  ;;  %v22003_v52 = vld [vmem:[#allocation2 + $0x1b1] sm:$0xff] }
 0x3b1   : > { %24734 = vst [vmem:[#allocation31_spill] sm:$0xff] %v22003_v52 }
 0x3b3   : > { %17925 = vmatmul.mubr.msk.f32.gmra.mrb[22].mxu1 %vm333_vm1, %v21987_v25  ;;  %v22007_v25 = vld [vmem:[#allocation2 + $0x1c9] sm:$0xff] }
 0x3b4   : > { %17927 = vmatprep.mubr.msk.f32.mxu1 %vm333_vm1, %v21991_v9  ;;  %24735 = vst [vmem:[#allocation32_spill] sm:$0xff] %v22007_v25  ;;  %v22011_v9 = vld [vmem:[#allocation2 + $0x1d1] sm:$0xff] }
 0x3b5   : > { %24736 = vst [vmem:[#allocation33_spill] sm:$0xff] %v22011_v9 }
 0x3b7   : > { %17928 = vmatmul.mubr.msk.f32.gmra.mrb[24].mxu1 %vm333_vm1, %v21995_v11  ;;  %v22015_v11 = vld [vmem:[#allocation2 + $0x1e9] sm:$0xff] }
 0x3b8   : > { %17930 = vmatprep.mubr.msk.f32.mxu1 %vm333_vm1, %v21999_v8  ;;  %24737 = vst [vmem:[#allocation34_spill] sm:$0xff] %v22015_v11  ;;  %v22019_v8 = vld [vmem:[#allocation2 + $0x1f1] sm:$0xff] }
 0x3b9   : > { %24738 = vst [vmem:[#allocation35_spill] sm:$0xff] %v22019_v8 }
 0x3bb   : > { %17931 = vmatmul.mubr.msk.f32.gmra.mrb[26].mxu1 %vm333_vm1, %v22003_v52  ;;  %v15227_v52 = vld [vmem:[%s24377_s3 + $0x90] sm:$0xff] }
 0x3bc   : > { %17933 = vmatprep.mubr.msk.f32.mxu1 %vm333_vm1, %v22007_v25  ;;  %v15228_v25 = vld [vmem:[%s24377_s3 + $0x98] sm:$0xff] }
 0x3bf   : > { %17934 = vmatmul.mubr.msk.f32.gmra.mrb[28].mxu1 %vm333_vm1, %v22011_v9  ;;  %v19319_v9 = vpack.c.bf16 %v15228_v25, %v15227_v52  ;;  %v15297_v52 = vld [vmem:[%s24377_s3 + $0xc0] sm:$0xff]  ;;  %v15298_v25 = vld [vmem:[%s24377_s3 + $0xc8] sm:$0xff] }
 0x3c0   : > { %17936 = vmatprep.mubr.msk.f32.mxu1 %vm333_vm1, %v22015_v11  ;;  %v15261_v11 = vld [vmem:[%s24377_s3 + $0xa0] sm:$0xff] }
 0x3c3   : > { %17937 = vmatmul.mubr.msk.f32.gmra.mrb[30].mxu1 %vm333_vm1, %v22019_v8  ;;  %v19323_v8 = vpack.c.bf16 %v15262_v21, %v15261_v11  ;;  %v15264_v21 = vld [vmem:[%s24377_s3 + $0xb8] sm:$0xff] }
 0x3c4   : > { %17947 = vmatprep.mubr.msk.f32.mxu1 %vm333_vm1, %v21761_v23  ;;  %v22096_v23 = vld [vmem:[#allocation2 + $0x207] sm:$0xff] }
 0x3c7   : > { %17948 = vmatmul.mubr.msk.f32.vlgmr.msra.gmra.mrb[0].mxu1 %vm333_vm1, %v21768_v27  ;;  %v22100_v27 = vld [vmem:[#allocation2 + $0x20f] sm:$0xff] }
 0x3c8   : > { %19318 = vmatpush3.bf16.msra.mxu1 %v21904_v15  ;;  %17950 = vmatprep.mubr.msk.f32.mxu1 %vm333_vm1, %v21772_v31  ;;  %v15263_v15 = vld [vmem:[%s24377_s3 + $0xb0] sm:$0xff] }
 0x3c9   : > { %19320 = vmatprep.subr.bf16.mxu1 %v19319_v9  ;;  %v19327_v11 = vpack.c.bf16 %v15264_v21, %v15263_v15  ;;  %v24758_v15 = vld [vmem:[#allocation23_spill] sm:$0xff]  ;;  %v24759_v21 = vld [vmem:[#allocation25_spill] sm:$0xff] }
 0x3cb   : > { %17951 = vmatmul.mubr.msk.f32.gmra.mrb[2].mxu1 %vm333_vm1, %v21777_v51 }
 0x3cc   : > { %17953 = vmatprep.mubr.msk.f32.mxu1 %vm333_vm1, %v21781_v32  ;;  %19322 = vmatpush3.bf16.msra.mxu1 %v19319_v9  ;;  %v19331_v9 = vpack.c.bf16 %v15298_v25, %v15297_v52  ;;  %v24761_v52 = vld [vmem:[#allocation28_spill] sm:$0xff]  ;;  %v24762_v25 = vld [vmem:[#allocation30_spill] sm:$0xff] }
 0x3cd   : > { %19324 = vmatprep.subr.bf16.mxu1 %v19323_v8 }
 0x3cf   : > { %17954 = vmatmul.mubr.msk.f32.gmra.mrb[4].mxu1 %vm333_vm1, %v21785_v38 }
 0x3d0   : > { %17956 = vmatprep.mubr.msk.f32.mxu1 %vm333_vm1, %v21789_v42 }
 0x3d3   : > { %17957 = vmatmul.mubr.msk.f32.gmra.mrb[6].mxu1 %vm333_vm1, %v21793_v2 }
 0x3d4   : > { %17959 = vmatprep.mubr.msk.f32.mxu1 %vm333_vm1, %v21797_v39 }
 0x3d7   : > { %17960 = vmatmul.mubr.msk.f32.gmra.mrb[8].mxu1 %vm333_vm1, %v21801_v1 }
 0x3d8   : > { %17962 = vmatprep.mubr.msk.f32.mxu1 %vm333_vm1, %v21805_v40 }
 0x3db   : > { %17963 = vmatmul.mubr.msk.f32.gmra.mrb[10].mxu1 %vm333_vm1, %v21809_v4 }
 0x3dc   : > { %17965 = vmatprep.mubr.msk.f32.mxu1 %vm333_vm1, %v21813_v29 }
 0x3df   : > { %17966 = vmatmul.mubr.msk.f32.gmra.mrb[12].mxu1 %vm333_vm1, %v21817_v30 }
 0x3e0   : > { %17968 = vmatprep.mubr.msk.f32.mxu1 %vm333_vm1, %v21821_v33 }
 0x3e3   : > { %17969 = vmatmul.mubr.msk.f32.gmra.mrb[14].mxu1 %vm333_vm1, %v21825_v36 }
 0x3e4   : > { %17971 = vmatprep.mubr.msk.f32.mxu1 %vm333_vm1, %v21829_v45 }
 0x3e7   : > { %17972 = vmatmul.mubr.msk.f32.gmra.mrb[16].mxu1 %vm333_vm1, %v21833_v47 }
 0x3e8   : > { %17974 = vmatprep.mubr.msk.f32.mxu1 %vm333_vm1, %v21837_v49 }
 0x3eb   : > { %17975 = vmatmul.mubr.msk.f32.gmra.mrb[18].mxu1 %vm333_vm1, %v21841_v53 }
 0x3ec   : > { %17977 = vmatprep.mubr.msk.f32.mxu1 %vm333_vm1, %v21845_v55 }
 0x3ef   : > { %17978 = vmatmul.mubr.msk.f32.gmra.mrb[20].mxu1 %vm333_vm1, %v21849_v56 }
 0x3f0   : > { %17980 = vmatprep.mubr.msk.f32.mxu1 %vm333_vm1, %v21853_v57 }
 0x3f3   : > { %17981 = vmatmul.mubr.msk.f32.gmra.mrb[22].mxu1 %vm333_vm1, %v21857_v59 }
 0x3f4   : > { %17983 = vmatprep.mubr.msk.f32.mxu1 %vm333_vm1, %v21861_v35 }
 0x3f7   : > { %17984 = vmatmul.mubr.msk.f32.gmra.mrb[24].mxu1 %vm333_vm1, %v21865_v43 }
 0x3f8   : > { %17986 = vmatprep.mubr.msk.f32.mxu1 %vm333_vm1, %v21869_v10 }
 0x3fb   : > { %17987 = vmatmul.mubr.msk.f32.gmra.mrb[26].mxu1 %vm333_vm1, %v21873_v13 }
 0x3fc   : > { %17989 = vmatprep.mubr.msk.f32.mxu1 %vm333_vm1, %v21877_v14 }
 0x3ff   : > { %17990 = vmatmul.mubr.msk.f32.gmra.mrb[28].mxu1 %vm333_vm1, %v21881_v17 }
 0x400   : > { %17992 = vmatprep.mubr.msk.f32.mxu1 %vm333_vm1, %v22096_v23 }
 0x403   : > { %17993 = vmatmul.mubr.msk.f32.gmra.mrb[30].mxu1 %vm333_vm1, %v22100_v27 }
 0x404   : > { %18003 = vmatprep.mubr.msk.f32.mxu1 %vm333_vm1, %v21575_v16  ;;  %v24739_v16 = vld [vmem:[#allocation3_spill] sm:$0xff] }
 0x407   : > { %18004 = vmatmul.mubr.msk.f32.vlgmr.msra.gmra.mrb[0].mxu1 %vm333_vm1, %v21581_v18  ;;  %v24740_v18 = vld [vmem:[#allocation4_spill] sm:$0xff] }
 0x408   : > { %19326 = vmatpush3.bf16.msra.mxu1 %v19323_v8  ;;  %18006 = vmatprep.mubr.msk.f32.mxu1 %vm333_vm1, %v21587_v24  ;;  %v24741_v24 = vld [vmem:[#allocation5_spill] sm:$0xff] }
 0x409   : > { %19328 = vmatprep.subr.bf16.mxu1 %v19327_v11  ;;  %v24757_v8 = vld [vmem:[#allocation21_spill] sm:$0xff] }
 0x40b   : > { %18007 = vmatmul.mubr.msk.f32.gmra.mrb[2].mxu1 %vm333_vm1, %v21593_v26  ;;  %v24742_v26 = vld [vmem:[#allocation6_spill] sm:$0xff] }
 0x40c   : > { %18009 = vmatprep.mubr.msk.f32.mxu1 %vm333_vm1, %v21599_v41  ;;  %19330 = vmatpush3.bf16.msra.mxu1 %v19327_v11  ;;  %v24743_v41 = vld [vmem:[#allocation7_spill] sm:$0xff]  ;;  %v24760_v11 = vld [vmem:[#allocation26_spill] sm:$0xff] }
 0x40d   : > { %19332 = vmatprep.subr.bf16.mxu1 %v19331_v9 }
 0x40f   : > { %18010 = vmatmul.mubr.msk.f32.gmra.mrb[4].mxu1 %vm333_vm1, %v21605_v62  ;;  %v22176_v62 = vld [vmem:[#allocation2 + $0x208] sm:$0xff] }
 0x410   : > { %18012 = vmatprep.mubr.msk.f32.mxu1 %vm333_vm1, %v21611_v0  ;;  %v22180_v0 = vld [vmem:[#allocation2 + $0x210] sm:$0xff] }
 0x413   : > { %18013 = vmatmul.mubr.msk.f32.gmra.mrb[6].mxu1 %vm333_vm1, %v21617_v5  ;;  %v15299_v5 = vld [vmem:[%s24377_s3 + $0xd0] sm:$0xff] }
 0x414   : > { %18015 = vmatprep.mubr.msk.f32.mxu1 %vm333_vm1, %v21623_v34  ;;  %v15300_v34 = vld [vmem:[%s24377_s3 + $0xd8] sm:$0xff] }
 0x417   : > { %18016 = vmatmul.mubr.msk.f32.gmra.mrb[8].mxu1 %vm333_vm1, %v21629_v44  ;;  %v19335_v44 = vpack.c.bf16 %v15300_v34, %v15299_v5  ;;  %v24764_v5 = vld [vmem:[#allocation24_spill] sm:$0xff]  ;;  %v24765_v34 = vld [vmem:[#allocation27_spill] sm:$0xff] }
 0x418   : > { %18018 = vmatprep.mubr.msk.f32.mxu1 %vm333_vm1, %v21635_v50  ;;  %v15333_v50 = vld [vmem:[%s24377_s3 + $0xe0] sm:$0xff] }
 0x41b   : > { %18019 = vmatmul.mubr.msk.f32.gmra.mrb[10].mxu1 %vm333_vm1, %v21641_v54  ;;  %v15334_v54 = vld [vmem:[%s24377_s3 + $0xe8] sm:$0xff] }
 0x41c   : > { %18021 = vmatprep.mubr.msk.f32.mxu1 %vm333_vm1, %v21647_v60  ;;  %v24744_v60 = vld [vmem:[#allocation8_spill] sm:$0xff] }
 0x41f   : > { %18022 = vmatmul.mubr.msk.f32.gmra.mrb[12].mxu1 %vm333_vm1, %v21653_v7  ;;  %v19339_v7 = vpack.c.bf16 %v15334_v54, %v15333_v50  ;;  %v24767_v50 = vld [vmem:[#allocation31_spill] sm:$0xff]  ;;  %v24768_v54 = vld [vmem:[#allocation32_spill] sm:$0xff] }
 0x420   : > { %18024 = vmatprep.mubr.msk.f32.mxu1 %vm333_vm1, %v21659_v6  ;;  %v24745_v6 = vld [vmem:[#allocation9_spill] sm:$0xff] }
 0x423   : > { %18025 = vmatmul.mubr.msk.f32.gmra.mrb[14].mxu1 %vm333_vm1, %v21665_v12  ;;  %v24746_v12 = vld [vmem:[#allocation10_spill] sm:$0xff] }
 0x424   : > { %18027 = vmatprep.mubr.msk.f32.mxu1 %vm333_vm1, %v21671_v20  ;;  %v24747_v20 = vld [vmem:[#allocation11_spill] sm:$0xff] }
 0x427   : > { %18028 = vmatmul.mubr.msk.f32.gmra.mrb[16].mxu1 %vm333_vm1, %v21677_v22  ;;  %v24748_v22 = vld [vmem:[#allocation12_spill] sm:$0xff] }
 0x428   : > { %18030 = vmatprep.mubr.msk.f32.mxu1 %vm333_vm1, %v21683_v37  ;;  %v24749_v37 = vld [vmem:[#allocation13_spill] sm:$0xff] }
 0x42b   : > { %18031 = vmatmul.mubr.msk.f32.gmra.mrb[18].mxu1 %vm333_vm1, %v21689_v61  ;;  %v24750_v61 = vld [vmem:[#allocation14_spill] sm:$0xff] }
 0x42c   : > { %18033 = vmatprep.mubr.msk.f32.mxu1 %vm333_vm1, %v21695_v3  ;;  %v24751_v3 = vld [vmem:[#allocation15_spill] sm:$0xff] }
 0x42f   : > { %18034 = vmatmul.mubr.msk.f32.gmra.mrb[20].mxu1 %vm333_vm1, %v21701_v28  ;;  %v24752_v28 = vld [vmem:[#allocation16_spill] sm:$0xff] }
 0x430   : > { %18036 = vmatprep.mubr.msk.f32.mxu1 %vm333_vm1, %v21707_v46  ;;  %v24753_v46 = vld [vmem:[#allocation17_spill] sm:$0xff] }
 0x433   : > { %18037 = vmatmul.mubr.msk.f32.gmra.mrb[22].mxu1 %vm333_vm1, %v21713_v48  ;;  %v24754_v48 = vld [vmem:[#allocation18_spill] sm:$0xff] }
 0x434   : > { %18039 = vmatprep.mubr.msk.f32.mxu1 %vm333_vm1, %v21719_v58 }
 0x437   : > { %18040 = vmatmul.mubr.msk.f32.gmra.mrb[24].mxu1 %vm333_vm1, %v24739_v16 }
 0x438   : > { %18042 = vmatprep.mubr.msk.f32.mxu1 %vm333_vm1, %v24740_v18 }
 0x43b   : > { %18043 = vmatmul.mubr.msk.f32.gmra.mrb[26].mxu1 %vm333_vm1, %v24741_v24 }
 0x43c   : > { %18045 = vmatprep.mubr.msk.f32.mxu1 %vm333_vm1, %v24742_v26 }
 0x43f   : > { %18046 = vmatmul.mubr.msk.f32.gmra.mrb[28].mxu1 %vm333_vm1, %v24743_v41 }
 0x440   : > { %18048 = vmatprep.mubr.msk.f32.mxu1 %vm333_vm1, %v22176_v62 }
 0x443   : > { %18049 = vmatmul.mubr.msk.f32.gmra.mrb[30].mxu1 %vm333_vm1, %v22180_v0 }
 0x444   : > { %18059 = vmatprep.mubr.msk.f32.mxu1 %vm333_vm1, %v21899_v63  ;;  %v24755_v63 = vld [vmem:[#allocation19_spill] sm:$0xff] }
 0x447   : > { %18060 = vmatmul.mubr.msk.f32.vlgmr.msra.gmra.mrb[0].mxu1 %vm333_vm1, %v21906_v19  ;;  %v24756_v19 = vld [vmem:[#allocation20_spill] sm:$0xff] }
 0x448   : > { %19334 = vmatpush3.bf16.msra.mxu1 %v19331_v9  ;;  %18062 = vmatprep.mubr.msk.f32.mxu1 %vm333_vm1, %v24744_v60  ;;  %v24763_v9 = vld [vmem:[#allocation22_spill] sm:$0xff] }
 0x449   : > { %19336 = vmatprep.subr.bf16.mxu1 %v19335_v44 }
 0x44b   : > { %18063 = vmatmul.mubr.msk.f32.gmra.mrb[2].mxu1 %vm333_vm1, %v24745_v6 }
 0x44c   : > { %18065 = vmatprep.mubr.msk.f32.mxu1 %vm333_vm1, %v24746_v12  ;;  %19338 = vmatpush3.bf16.msra.mxu1 %v19335_v44  ;;  %v24766_v44 = vld [vmem:[#allocation29_spill] sm:$0xff] }
 0x44d   : > { %19340 = vmatprep.subr.bf16.mxu1 %v19339_v7 }
 0x44f   : > { %18066 = vmatmul.mubr.msk.f32.gmra.mrb[4].mxu1 %vm333_vm1, %v24747_v20 }
 0x450   : > { %18068 = vmatprep.mubr.msk.f32.mxu1 %vm333_vm1, %v24748_v22 }
 0x453   : > { %18069 = vmatmul.mubr.msk.f32.gmra.mrb[6].mxu1 %vm333_vm1, %v24749_v37 }
 0x454   : > { %18071 = vmatprep.mubr.msk.f32.mxu1 %vm333_vm1, %v24750_v61 }
 0x457   : > { %18072 = vmatmul.mubr.msk.f32.gmra.mrb[8].mxu1 %vm333_vm1, %v24751_v3 }
 0x458   : > { %18074 = vmatprep.mubr.msk.f32.mxu1 %vm333_vm1, %v24752_v28 }
 0x45b   : > { %18075 = vmatmul.mubr.msk.f32.gmra.mrb[10].mxu1 %vm333_vm1, %v24753_v46 }
 0x45c   : > { %18077 = vmatprep.mubr.msk.f32.mxu1 %vm333_vm1, %v24754_v48 }
 0x45f   : > { %18078 = vmatmul.mubr.msk.f32.gmra.mrb[12].mxu1 %vm333_vm1, %v24755_v63 }
 0x460   : > { %18080 = vmatprep.mubr.msk.f32.mxu1 %vm333_vm1, %v24756_v19 }
 0x463   : > { %18081 = vmatmul.mubr.msk.f32.gmra.mrb[14].mxu1 %vm333_vm1, %v24757_v8 }
 0x464   : > { %18083 = vmatprep.mubr.msk.f32.mxu1 %vm333_vm1, %v24758_v15 }
 0x467   : > { %18084 = vmatmul.mubr.msk.f32.gmra.mrb[16].mxu1 %vm333_vm1, %v24759_v21 }
 0x468   : > { %18086 = vmatprep.mubr.msk.f32.mxu1 %vm333_vm1, %v24760_v11 }
 0x46b   : > { %18087 = vmatmul.mubr.msk.f32.gmra.mrb[18].mxu1 %vm333_vm1, %v24761_v52  ;;  %v24769_v52 = vld [vmem:[#allocation33_spill] sm:$0xff] }
 0x46c   : > { %18089 = vmatprep.mubr.msk.f32.mxu1 %vm333_vm1, %v24762_v25  ;;  %v24770_v25 = vld [vmem:[#allocation34_spill] sm:$0xff] }
 0x46f   : > { %18090 = vmatmul.mubr.msk.f32.gmra.mrb[20].mxu1 %vm333_vm1, %v24763_v9  ;;  %v24771_v9 = vld [vmem:[#allocation35_spill] sm:$0xff] }
 0x470   : > { %18092 = vmatprep.mubr.msk.f32.mxu1 %vm333_vm1, %v24764_v5  ;;  %v22256_v5 = vld [vmem:[#allocation2 + $0x209] sm:$0xff] }
 0x471   : > { %24772 = vst [vmem:[#allocation3_spill] sm:$0xff] %v22256_v5 }
 0x473   : > { %18093 = vmatmul.mubr.msk.f32.gmra.mrb[22].mxu1 %vm333_vm1, %v24765_v34 }
 0x474   : > { %18095 = vmatprep.mubr.msk.f32.mxu1 %vm333_vm1, %v24766_v44  ;;  %v22260_v44 = vld [vmem:[#allocation2 + $0x211] sm:$0xff] }
 0x475   : > { %24773 = vst [vmem:[#allocation4_spill] sm:$0xff] %v22260_v44 }
 0x477   : > { %18096 = vmatmul.mubr.msk.f32.gmra.mrb[24].mxu1 %vm333_vm1, %v24767_v50 }
 0x478   : > { %18098 = vmatprep.mubr.msk.f32.mxu1 %vm333_vm1, %v24768_v54  ;;  %v15335_v54 = vld [vmem:[%s24377_s3 + $0xf0] sm:$0xff] }
 0x47b   : > { %18099 = vmatmul.mubr.msk.f32.gmra.mrb[26].mxu1 %vm333_vm1, %v24769_v52  ;;  %v15336_v52 = vld [vmem:[%s24377_s3 + $0xf8] sm:$0xff] }
 0x47c   : > { %18101 = vmatprep.mubr.msk.f32.mxu1 %vm333_vm1, %v24770_v25  ;;  %v15370_v25 = vld [vmem:[%s24377_s3 + $0x108] sm:$0xff] }
 0x47f   : > { %18102 = vmatmul.mubr.msk.f32.gmra.mrb[28].mxu1 %vm333_vm1, %v24771_v9  ;;  %v19343_v9 = vpack.c.bf16 %v15336_v52, %v15335_v54  ;;  %v6681_v52 = vld [vmem:[#allocation2 + $0x188] sm:$0xff] }
 0x480   : > { %18104 = vmatprep.mubr.msk.f32.mxu1 %vm333_vm1, %v22256_v5  ;;  %v15369_v5 = vld [vmem:[%s24377_s3 + $0x100] sm:$0xff] }
 0x483   : > { %18105 = vmatmul.mubr.msk.f32.gmra.mrb[30].mxu1 %vm333_vm1, %v22260_v44  ;;  %v19347_v44 = vpack.c.bf16 %v15370_v25, %v15369_v5  ;;  %v6682_v25 = vld [vmem:[#allocation2 + $0x190] sm:$0xff]  ;;  %v22484_v5 = vld [vmem:[%s24378_s4] ss:$0 sm:$0xff] }
 0x484   : > { %18115 = vmatprep.mubr.msk.f32.mxu1 %vm333_vm1, %v21772_v31  ;;  %v6301_v31 = vld [vmem:[#allocation2 + $0x227] sm:$0xff] }
 0x487   : > { %18116 = vmatmul.mubr.msk.f32.vlgmr.msra.gmra.mrb[0].mxu1 %vm333_vm1, %v21777_v51  ;;  %v6302_v51 = vld [vmem:[#allocation2 + $0x22f] sm:$0xff] }
 0x488   : > { %19342 = vmatpush3.bf16.msra.mxu1 %v19339_v7  ;;  %18118 = vmatprep.mubr.msk.f32.mxu1 %vm333_vm1, %v21781_v32  ;;  %v6661_v32 = vld [vmem:[#allocation2 + $0x48] sm:$0xff]  ;;  %v6680_v7 = vld [vmem:[#allocation2 + $0x170] sm:$0xff] }
 0x489   : > { %19344 = vmatprep.subr.bf16.mxu1 %v19343_v9 }
 0x48b   : > { %18119 = vmatmul.mubr.msk.f32.gmra.mrb[2].mxu1 %vm333_vm1, %v21785_v38  ;;  %v15371_v38 = vld [vmem:[%s24377_s3 + $0x110] sm:$0xff] }
 0x48c   : > { %18121 = vmatprep.mubr.msk.f32.mxu1 %vm333_vm1, %v21789_v42  ;;  %19346 = vmatpush3.bf16.msra.mxu1 %v19343_v9  ;;  %v15372_v42 = vld [vmem:[%s24377_s3 + $0x118] sm:$0xff]  ;;  %v6691_v9 = vld [vmem:[#allocation2 + $0x228] sm:$0xff] }
 0x48d   : > { %19348 = vmatprep.subr.bf16.mxu1 %v19347_v44 }
 0x48f   : > { %18122 = vmatmul.mubr.msk.f32.gmra.mrb[4].mxu1 %vm333_vm1, %v21793_v2  ;;  %v15406_v2 = vld [vmem:[%s24379_s5 + $0x20] sm:$0xff] }
 0x490   : > { %18124 = vmatprep.mubr.msk.f32.mxu1 %vm333_vm1, %v21797_v39  ;;  %v15407_v39 = vld [vmem:[%s24379_s5 + $0x28] sm:$0xff] }
 0x493   : > { %18125 = vmatmul.mubr.msk.f32.gmra.mrb[6].mxu1 %vm333_vm1, %v21801_v1  ;;  %v15408_v1 = vld [vmem:[%s24379_s5 + $0x30] sm:$0xff] }
 0x494   : > { %18127 = vmatprep.mubr.msk.f32.mxu1 %vm333_vm1, %v21805_v40  ;;  %v19355_v40 = vpack.c.bf16 %v15407_v39, %v15406_v2 }
 0x496   : > { %19356 = vmatprep.subr.bf16.mxu0 %v19355_v40 }
 0x497   : > { %18128 = vmatmul.mubr.msk.f32.gmra.mrb[8].mxu1 %vm333_vm1, %v21809_v4  ;;  %v15409_v4 = vld [vmem:[%s24379_s5 + $0x38] sm:$0xff]  ;;  %19358 = vmatpush3.bf16.msra.mxu0 %v19355_v40 }
 0x498   : > { %18130 = vmatprep.mubr.msk.f32.mxu1 %vm333_vm1, %v21813_v29  ;;  %v19351_v29 = vpack.c.bf16 %v15372_v42, %v15371_v38 }
 0x49b   : > { %18131 = vmatmul.mubr.msk.f32.gmra.mrb[10].mxu1 %vm333_vm1, %v21817_v30  ;;  %v19359_v30 = vpack.c.bf16 %v15409_v4, %v15408_v1 }
 0x49c   : > { %18133 = vmatprep.mubr.msk.f32.mxu1 %vm333_vm1, %v21821_v33  ;;  %v6662_v33 = vld [vmem:[#allocation2 + $0x50] sm:$0xff] }
 0x49d   : > { %19360 = vmatprep.subr.bf16.mxu0 %v19359_v30 }
 0x49e   : > { %19362 = vmatpush3.bf16.msra.mxu0 %v19359_v30 }
 0x49f   : > { %18134 = vmatmul.mubr.msk.f32.gmra.mrb[12].mxu1 %vm333_vm1, %v21825_v36  ;;  %v6663_v36 = vld [vmem:[#allocation2 + $0x68] sm:$0xff] }
 0x4a0   : > { %18136 = vmatprep.mubr.msk.f32.mxu1 %vm333_vm1, %v21829_v45  ;;  %v6664_v45 = vld [vmem:[#allocation2 + $0x70] sm:$0xff] }
 0x4a3   : > { %18137 = vmatmul.mubr.msk.f32.gmra.mrb[14].mxu1 %vm333_vm1, %v21833_v47  ;;  %v6665_v47 = vld [vmem:[#allocation2 + $0x88] sm:$0xff] }
 0x4a4   : > { %18139 = vmatprep.mubr.msk.f32.mxu1 %vm333_vm1, %v21837_v49  ;;  %v6666_v49 = vld [vmem:[#allocation2 + $0x90] sm:$0xff] }
 0x4a7   : > { %18140 = vmatmul.mubr.msk.f32.gmra.mrb[16].mxu1 %vm333_vm1, %v21841_v53  ;;  %v6667_v53 = vld [vmem:[#allocation2 + $0xa8] sm:$0xff] }
 0x4a8   : > { %18142 = vmatprep.mubr.msk.f32.mxu1 %vm333_vm1, %v21845_v55  ;;  %v6668_v55 = vld [vmem:[#allocation2 + $0xb0] sm:$0xff] }
 0x4ab   : > { %18143 = vmatmul.mubr.msk.f32.gmra.mrb[18].mxu1 %vm333_vm1, %v21849_v56  ;;  %v6669_v56 = vld [vmem:[#allocation2 + $0xc8] sm:$0xff] }
 0x4ac   : > { %18145 = vmatprep.mubr.msk.f32.mxu1 %vm333_vm1, %v21853_v57  ;;  %v6670_v57 = vld [vmem:[#allocation2 + $0xd0] sm:$0xff] }
 0x4af   : > { %18146 = vmatmul.mubr.msk.f32.gmra.mrb[20].mxu1 %vm333_vm1, %v21857_v59  ;;  %v6671_v59 = vld [vmem:[#allocation2 + $0xe8] sm:$0xff] }
 0x4b0   : > { %18148 = vmatprep.mubr.msk.f32.mxu1 %vm333_vm1, %v21861_v35  ;;  %v6672_v35 = vld [vmem:[#allocation2 + $0xf0] sm:$0xff] }
 0x4b3   : > { %18149 = vmatmul.mubr.msk.f32.gmra.mrb[22].mxu1 %vm333_vm1, %v21865_v43  ;;  %v6673_v43 = vld [vmem:[#allocation2 + $0x108] sm:$0xff] }
 0x4b4   : > { %18151 = vmatprep.mubr.msk.f32.mxu1 %vm333_vm1, %v21869_v10  ;;  %v6674_v10 = vld [vmem:[#allocation2 + $0x110] sm:$0xff] }
 0x4b7   : > { %18152 = vmatmul.mubr.msk.f32.gmra.mrb[24].mxu1 %vm333_vm1, %v21873_v13  ;;  %v6675_v13 = vld [vmem:[#allocation2 + $0x128] sm:$0xff] }
 0x4b8   : > { %18154 = vmatprep.mubr.msk.f32.mxu1 %vm333_vm1, %v21877_v14  ;;  %v6676_v14 = vld [vmem:[#allocation2 + $0x130] sm:$0xff] }
 0x4bb   : > { %18155 = vmatmul.mubr.msk.f32.gmra.mrb[26].mxu1 %vm333_vm1, %v21881_v17  ;;  %v6677_v17 = vld [vmem:[#allocation2 + $0x148] sm:$0xff] }
 0x4bc   : > { %18157 = vmatprep.mubr.msk.f32.mxu1 %vm333_vm1, %v22096_v23  ;;  %v6678_v23 = vld [vmem:[#allocation2 + $0x150] sm:$0xff] }
 0x4bf   : > { %18158 = vmatmul.mubr.msk.f32.gmra.mrb[28].mxu1 %vm333_vm1, %v22100_v27  ;;  %v6679_v27 = vld [vmem:[#allocation2 + $0x168] sm:$0xff] }
 0x4c0   : > { %18160 = vmatprep.mubr.msk.f32.mxu1 %vm333_vm1, %v6301_v31 }
 0x4c3   : > { %18161 = vmatmul.mubr.msk.f32.gmra.mrb[30].mxu1 %vm333_vm1, %v6302_v51 }
 0x4c4   : > { %18171 = vmatprep.mubr.msk.f32.mxu1 %vm333_vm1, %v6661_v32 }
 0x4c7   : > { %18172 = vmatmul.mubr.msk.f32.vlgmr.msra.gmra.mrb[0].mxu1 %vm333_vm1, %v6662_v33 }
 0x4c8   : > { %19350 = vmatpush3.bf16.msra.mxu1 %v19347_v44  ;;  %18174 = vmatprep.mubr.msk.f32.mxu1 %vm333_vm1, %v6663_v36 }
 0x4c9   : > { %19352 = vmatprep.subr.bf16.mxu1 %v19351_v29 }
 0x4cb   : > { %18175 = vmatmul.mubr.msk.f32.gmra.mrb[2].mxu1 %vm333_vm1, %v6664_v45 }
 0x4cc   : > { %18177 = vmatprep.mubr.msk.f32.mxu1 %vm333_vm1, %v6665_v47  ;;  %19354 = vmatpush3.bf16.msra.mxu1 %v19351_v29 }
 0x4cf   : > { %18178 = vmatmul.mubr.msk.f32.gmra.mrb[4].mxu1 %vm333_vm1, %v6666_v49 }
 0x4d0   : > { %18180 = vmatprep.mubr.msk.f32.mxu1 %vm333_vm1, %v6667_v53 }
 0x4d3   : > { %18181 = vmatmul.mubr.msk.f32.gmra.mrb[6].mxu1 %vm333_vm1, %v6668_v55 }
 0x4d4   : > { %18183 = vmatprep.mubr.msk.f32.mxu1 %vm333_vm1, %v6669_v56 }
 0x4d7   : > { %18184 = vmatmul.mubr.msk.f32.gmra.mrb[8].mxu1 %vm333_vm1, %v6670_v57 }
 0x4d8   : > { %18186 = vmatprep.mubr.msk.f32.mxu1 %vm333_vm1, %v6671_v59 }
 0x4db   : > { %18187 = vmatmul.mubr.msk.f32.gmra.mrb[10].mxu1 %vm333_vm1, %v6672_v35 }
 0x4dc   : > { %18189 = vmatprep.mubr.msk.f32.mxu1 %vm333_vm1, %v6673_v43 }
 0x4df   : > { %18190 = vmatmul.mubr.msk.f32.gmra.mrb[12].mxu1 %vm333_vm1, %v6674_v10 }
 0x4e0   : > { %18192 = vmatprep.mubr.msk.f32.mxu1 %vm333_vm1, %v6675_v13 }
 0x4e3   : > { %18193 = vmatmul.mubr.msk.f32.gmra.mrb[14].mxu1 %vm333_vm1, %v6676_v14 }
 0x4e4   : > { %18195 = vmatprep.mubr.msk.f32.mxu1 %vm333_vm1, %v6677_v17 }
 0x4e7   : > { %18196 = vmatmul.mubr.msk.f32.gmra.mrb[16].mxu1 %vm333_vm1, %v6678_v23 }
 0x4e8   : > { %18198 = vmatprep.mubr.msk.f32.mxu1 %vm333_vm1, %v6679_v27 }
 0x4eb   : > { %18199 = vmatmul.mubr.msk.f32.gmra.mrb[18].mxu1 %vm333_vm1, %v6680_v7 }
 0x4ec   : > { %18201 = vmatprep.mubr.msk.f32.mxu1 %vm333_vm1, %v6681_v52 }
 0x4ef   : > { %18202 = vmatmul.mubr.msk.f32.gmra.mrb[20].mxu1 %vm333_vm1, %v6682_v25 }
 0x4f0   : > { %18204 = vmatprep.mubr.msk.f32.mxu1 %vm333_vm1, %v21719_v58  ;;  %v6692_v58 = vld [vmem:[#allocation2 + $0x230] sm:$0xff] }
 0x4f3   : > { %18205 = vmatmul.mubr.msk.f32.gmra.mrb[22].mxu1 %vm333_vm1, %v24739_v16  ;;  %v24774_v16 = vld [vmem:[#allocation28_spill] sm:$0xff] }
 0x4f4   : > { %18207 = vmatprep.mubr.msk.f32.mxu1 %vm333_vm1, %v24740_v18  ;;  %v24775_v18 = vld [vmem:[#allocation30_spill] sm:$0xff] }
 0x4f7   : > { %18208 = vmatmul.mubr.msk.f32.gmra.mrb[24].mxu1 %vm333_vm1, %v24741_v24  ;;  %v24776_v24 = vld [vmem:[#allocation22_spill] sm:$0xff] }
 0x4f8   : > { %18210 = vmatprep.mubr.msk.f32.mxu1 %vm333_vm1, %v24742_v26  ;;  %v24777_v26 = vld [vmem:[#allocation24_spill] sm:$0xff] }
 0x4fb   : > { %18211 = vmatmul.mubr.msk.f32.gmra.mrb[26].mxu1 %vm333_vm1, %v24743_v41  ;;  %v24778_v41 = vld [vmem:[#allocation29_spill] sm:$0xff] }
 0x4fc   : > { %18213 = vmatprep.mubr.msk.f32.mxu1 %vm333_vm1, %v22176_v62  ;;  %v24779_v62 = vld [vmem:[#allocation32_spill] sm:$0xff] }
 0x4ff   : > { %18214 = vmatmul.mubr.msk.f32.gmra.mrb[28].mxu1 %vm333_vm1, %v22180_v0  ;;  %v24780_v0 = vld [vmem:[#allocation33_spill] sm:$0xff] }
 0x500   : > { %18216 = vmatprep.mubr.msk.f32.mxu1 %vm333_vm1, %v6691_v9 }
 0x503   : > { %18217 = vmatmul.mubr.msk.f32.gmra.mrb[30].mxu1 %vm333_vm1, %v6692_v58 }
 0x504   : > { %18227 = vmatprep.mubr.msk.f32.mxu1 %vm333_vm1, %v24744_v60  ;;  %v24781_v60 = vld [vmem:[#allocation34_spill] sm:$0xff] }
 0x507   : > { %18228 = vmatmul.mubr.msk.f32.vlgmr.msra.gmra.mrb[0].mxu1 %vm333_vm1, %v24745_v6  ;;  %v24782_v6 = vld [vmem:[#allocation35_spill] sm:$0xff] }
 0x508   : > { %18230 = vmatprep.mubr.msk.f32.mxu1 %vm333_vm1, %v24746_v12  ;;  %v24783_v12 = vld [vmem:[#allocation3_spill] sm:$0xff] }
 0x50b   : > { %18231 = vmatmul.mubr.msk.f32.gmra.mrb[2].mxu1 %vm333_vm1, %v24747_v20  ;;  %v7081_v20 = vld [vmem:[#allocation2 + $0x229] sm:$0xff] }
 0x50c   : > { %18233 = vmatprep.mubr.msk.f32.mxu1 %vm333_vm1, %v24748_v22  ;;  %v24784_v22 = vld [vmem:[#allocation4_spill] sm:$0xff] }
 0x50f   : > { %18234 = vmatmul.mubr.msk.f32.gmra.mrb[4].mxu1 %vm333_vm1, %v24749_v37  ;;  %v7082_v37 = vld [vmem:[#allocation2 + $0x231] sm:$0xff] }
 0x510   : > { %18236 = vmatprep.mubr.msk.f32.mxu1 %vm333_vm1, %v24750_v61  ;;  %v7580_v61 = vld [vmem:[#allocation2 + $0x8] sm:$0xff] }
 0x511   : > { %18283 = vmatprep.mubr.msk.f32.mxu0 %vm333_vm1, %v7580_v61 }
 0x513   : > { %18237 = vmatmul.mubr.msk.f32.gmra.mrb[6].mxu1 %vm333_vm1, %v24751_v3  ;;  %v7581_v3 = vld [vmem:[#allocation2 + $0x10] sm:$0xff] }
 0x514   : > { %18239 = vmatprep.mubr.msk.f32.mxu1 %vm333_vm1, %v24752_v28  ;;  %v7576_v28 = vld [vmem:[%s24379_s5] sm:$0xff]  ;;  %18284 = vmatmul.mubr.msk.f32.vlgmr.msra.gmra.mrb[32].mxu0 %vm333_vm1, %v7581_v3 }
 0x517   : > { %18240 = vmatmul.mubr.msk.f32.gmra.mrb[8].mxu1 %vm333_vm1, %v24753_v46  ;;  %v7577_v46 = vld [vmem:[%s24379_s5 + $0x8] sm:$0xff] }
 0x518   : > { %18242 = vmatprep.mubr.msk.f32.mxu1 %vm333_vm1, %v24754_v48  ;;  %v19363_v48 = vpack.c.bf16 %v7577_v46, %v7576_v28 }
 0x51a   : > { %19364 = vmatprep.subr.bf16.mxu0 %v19363_v48 }
 0x51b   : > { %18243 = vmatmul.mubr.msk.f32.gmra.mrb[10].mxu1 %vm333_vm1, %v24755_v63  ;;  %19366 = vmatpush3.bf16.msra.mxu0 %v19363_v48  ;;  %v7578_v63 = vld [vmem:[%s24379_s5 + $0x10] sm:$0xff] }
 0x51c   : > { %18245 = vmatprep.mubr.msk.f32.mxu1 %vm333_vm1, %v24756_v19  ;;  %v7579_v19 = vld [vmem:[%s24379_s5 + $0x18] sm:$0xff] }
 0x51f   : > { %18246 = vmatmul.mubr.msk.f32.gmra.mrb[12].mxu1 %vm333_vm1, %v24757_v8  ;;  %v19367_v8 = vpack.c.bf16 %v7579_v19, %v7578_v63 }
 0x520   : > { %18248 = vmatprep.mubr.msk.f32.mxu1 %vm333_vm1, %v24758_v15  ;;  %v15474_v15 = vld [vmem:[%s24379_s5 + $0x40] sm:$0xff] }
 0x521   : > { %19368 = vmatprep.subr.bf16.mxu0 %v19367_v8 }
 0x522   : > { %19370 = vmatpush3.bf16.msra.mxu0 %v19367_v8 }
 0x523   : > { %18249 = vmatmul.mubr.msk.f32.gmra.mrb[14].mxu1 %vm333_vm1, %v24759_v21  ;;  %v15475_v21 = vld [vmem:[%s24379_s5 + $0x48] sm:$0xff] }
 0x524   : > { %18251 = vmatprep.mubr.msk.f32.mxu1 %vm333_vm1, %v24760_v11  ;;  %v22478_v11 = vpack.c.bf16 %v15475_v21, %v15474_v15 }
 0x526   : > { %19372 = vmatprep.subr.bf16.mxu0 %v22478_v11 }
 0x527   : > { %18252 = vmatmul.mubr.msk.f32.gmra.mrb[16].mxu1 %vm333_vm1, %v24774_v16 }
 0x528   : > { %18254 = vmatprep.mubr.msk.f32.mxu1 %vm333_vm1, %v24775_v18 }
 0x52b   : > { %18255 = vmatmul.mubr.msk.f32.gmra.mrb[18].mxu1 %vm333_vm1, %v24776_v24 }
 0x52c   : > { %18257 = vmatprep.mubr.msk.f32.mxu1 %vm333_vm1, %v24777_v26 }
 0x52f   : > { %18258 = vmatmul.mubr.msk.f32.gmra.mrb[20].mxu1 %vm333_vm1, %v24765_v34 }
 0x530   : > { %18260 = vmatprep.mubr.msk.f32.mxu1 %vm333_vm1, %v24778_v41 }
 0x533   : > { %18261 = vmatmul.mubr.msk.f32.gmra.mrb[22].mxu1 %vm333_vm1, %v24767_v50 }
 0x534   : > { %18263 = vmatprep.mubr.msk.f32.mxu1 %vm333_vm1, %v24779_v62 }
 0x537   : > { %18264 = vmatmul.mubr.msk.f32.gmra.mrb[24].mxu1 %vm333_vm1, %v24780_v0 }
 0x538   : > { %18266 = vmatprep.mubr.msk.f32.mxu1 %vm333_vm1, %v24781_v60 }
 0x53b   : > { %18267 = vmatmul.mubr.msk.f32.gmra.mrb[26].mxu1 %vm333_vm1, %v24782_v6 }
 0x53c   : > { %18269 = vmatprep.mubr.msk.f32.mxu1 %vm333_vm1, %v24783_v12 }
 0x53f   : > { %18270 = vmatmul.mubr.msk.f32.gmra.mrb[28].mxu1 %vm333_vm1, %v24784_v22 }
 0x540   : > { %18272 = vmatprep.mubr.msk.f32.mxu1 %vm333_vm1, %v7081_v20 }
 0x543   : > { %18273 = vmatmul.mubr.msk.f32.gmra.mrb[30].mxu1 %vm333_vm1, %v7082_v37 }
 0x5da   : > { %v18229_v34 = vpop.f32.mrb[0].mxu1 }
 0x5db   : > { %v7449_v44 = vadd.f32 %v18229_v34, %v22484_v5  ;;  %v7250_v50 = vpop.f32.mrb[1].mxu1 }
 0x5dc   : > { %v7448_v54 = vadd.f32 %v22484_v5, %v7250_v50 }
 0x5dd   : > { %v7481_v31 = vmax.f32 %v7449_v44, 0.0 }
 0x5de   : > { %v7480_v51 = vmax.f32 %v7448_v54, 0.0  ;;  %v18232_v32 = vpop.f32.mrb[2].mxu1 }
 0x5df   : > { %7513 = vst.msk [vmem:[#allocation2 + $0x30] sm:$0xff] %vm333_vm1, %v7481_v31  ;;  %v7451_v38 = vadd.f32 %v18232_v32, %v22484_v5  ;;  %v7260_v42 = vpop.f32.mrb[3].mxu1 }
 0x5e0   : > { %7512 = vst.msk [vmem:[#allocation2 + $0x28] sm:$0xff] %vm333_vm1, %v7480_v51  ;;  %v7450_v2 = vadd.f32 %v22484_v5, %v7260_v42 }
 0x5e1   : > { %v7483_v39 = vmax.f32 %v7451_v38, 0.0 }
 0x5e2   : > { %v7482_v1 = vmax.f32 %v7450_v2, 0.0  ;;  %v18235_v40 = vpop.f32.mrb[4].mxu1 }
 0x5e3   : > { %7515 = vst.msk [vmem:[#allocation2 + $0x50] sm:$0xff] %vm333_vm1, %v7483_v39  ;;  %v7453_v4 = vadd.f32 %v18235_v40, %v22484_v5  ;;  %v7270_v29 = vpop.f32.mrb[5].mxu1 }
 0x5e4   : > { %7514 = vst.msk [vmem:[#allocation2 + $0x48] sm:$0xff] %vm333_vm1, %v7482_v1  ;;  %v7452_v30 = vadd.f32 %v22484_v5, %v7270_v29 }
 0x5e5   : > { %v7485_v33 = vmax.f32 %v7453_v4, 0.0 }
 0x5e6   : > { %v7484_v36 = vmax.f32 %v7452_v30, 0.0  ;;  %v18238_v45 = vpop.f32.mrb[6].mxu1  ;;  %v22504_v56 = vld [vmem:[#allocation2 + $0x30] sm:$0xff] }
 0x5e7   : > { %7517 = vst.msk [vmem:[#allocation2 + $0x70] sm:$0xff] %vm333_vm1, %v7485_v33  ;;  %v7455_v47 = vadd.f32 %v18238_v45, %v22484_v5  ;;  %v7280_v49 = vpop.f32.mrb[7].mxu1  ;;  %v22498_v53 = vld [vmem:[#allocation2 + $0x28] sm:$0xff] }
 0x5e8   : > { %7516 = vst.msk [vmem:[#allocation2 + $0x68] sm:$0xff] %vm333_vm1, %v7484_v36  ;;  %v7454_v55 = vadd.f32 %v22484_v5, %v7280_v49  ;;  %18286 = vmatprep.mubr.msk.f32.mxu0 %vm333_vm1, %v22498_v53 }
 0x5e9   : > { %v7487_v57 = vmax.f32 %v7455_v47, 0.0  ;;  %18287 = vmatmul.mubr.msk.f32.gmra.mrb[34].mxu0 %vm333_vm1, %v22504_v56 }
 0x5ea   : > { %v7486_v59 = vmax.f32 %v7454_v55, 0.0  ;;  %v18241_v35 = vpop.f32.mrb[8].mxu1  ;;  %v22516_v17 = vld [vmem:[#allocation2 + $0x50] sm:$0xff] }
 0x5eb   : > { %7519 = vst.msk [vmem:[#allocation2 + $0x90] sm:$0xff] %vm333_vm1, %v7487_v57  ;;  %v7457_v43 = vadd.f32 %v18241_v35, %v22484_v5  ;;  %v7290_v10 = vpop.f32.mrb[9].mxu1  ;;  %v22510_v13 = vld [vmem:[#allocation2 + $0x48] sm:$0xff] }
 0x5ec   : > { %7518 = vst.msk [vmem:[#allocation2 + $0x88] sm:$0xff] %vm333_vm1, %v7486_v59  ;;  %v7456_v14 = vadd.f32 %v22484_v5, %v7290_v10  ;;  %18289 = vmatprep.mubr.msk.f32.mxu0 %vm333_vm1, %v22510_v13 }
 0x5ed   : > { %v7489_v23 = vmax.f32 %v7457_v43, 0.0  ;;  %18290 = vmatmul.mubr.msk.f32.gmra.mrb[36].mxu0 %vm333_vm1, %v22516_v17 }
 0x5ee   : > { %v7488_v27 = vmax.f32 %v7456_v14, 0.0  ;;  %v18244_v7 = vpop.f32.mrb[10].mxu1  ;;  %v22528_v16 = vld [vmem:[#allocation2 + $0x70] sm:$0xff] }
 0x5ef   : > { %7521 = vst.msk [vmem:[#allocation2 + $0xb0] sm:$0xff] %vm333_vm1, %v7489_v23  ;;  %v7459_v52 = vadd.f32 %v18244_v7, %v22484_v5  ;;  %v7300_v25 = vpop.f32.mrb[11].mxu1  ;;  %v22522_v9 = vld [vmem:[#allocation2 + $0x68] sm:$0xff] }
 0x5f0   : > { %7520 = vst.msk [vmem:[#allocation2 + $0xa8] sm:$0xff] %vm333_vm1, %v7488_v27  ;;  %v7458_v58 = vadd.f32 %v22484_v5, %v7300_v25  ;;  %18292 = vmatprep.mubr.msk.f32.mxu0 %vm333_vm1, %v22522_v9 }
 0x5f1   : > { %v7491_v18 = vmax.f32 %v7459_v52, 0.0  ;;  %18293 = vmatmul.mubr.msk.f32.gmra.mrb[38].mxu0 %vm333_vm1, %v22528_v16 }
 0x5f2   : > { %v7490_v24 = vmax.f32 %v7458_v58, 0.0  ;;  %v18247_v26 = vpop.f32.mrb[12].mxu1  ;;  %v22540_v6 = vld [vmem:[#allocation2 + $0x90] sm:$0xff] }
 0x5f3   : > { %7523 = vst.msk [vmem:[#allocation2 + $0xd0] sm:$0xff] %vm333_vm1, %v7491_v18  ;;  %v7461_v41 = vadd.f32 %v18247_v26, %v22484_v5  ;;  %v7310_v62 = vpop.f32.mrb[13].mxu1  ;;  %v22534_v0 = vld [vmem:[#allocation2 + $0x88] sm:$0xff] }
 0x5f4   : > { %7522 = vst.msk [vmem:[#allocation2 + $0xc8] sm:$0xff] %vm333_vm1, %v7490_v24  ;;  %v7460_v60 = vadd.f32 %v22484_v5, %v7310_v62  ;;  %18295 = vmatprep.mubr.msk.f32.mxu0 %vm333_vm1, %v22534_v0 }
 0x5f5   : > { %v7493_v12 = vmax.f32 %v7461_v41, 0.0  ;;  %18296 = vmatmul.mubr.msk.f32.gmra.mrb[40].mxu0 %vm333_vm1, %v22540_v6 }
 0x5f6   : > { %v7492_v20 = vmax.f32 %v7460_v60, 0.0  ;;  %v18250_v22 = vpop.f32.mrb[14].mxu1  ;;  %v22552_v46 = vld [vmem:[#allocation2 + $0xb0] sm:$0xff] }
 0x5f7   : > { %7525 = vst.msk [vmem:[#allocation2 + $0xf0] sm:$0xff] %vm333_vm1, %v7493_v12  ;;  %v7463_v37 = vadd.f32 %v18250_v22, %v22484_v5  ;;  %v7320_v61 = vpop.f32.mrb[15].mxu1  ;;  %v22546_v3 = vld [vmem:[#allocation2 + $0xa8] sm:$0xff] }
 0x5f8   : > { %7524 = vst.msk [vmem:[#allocation2 + $0xe8] sm:$0xff] %vm333_vm1, %v7492_v20  ;;  %v7462_v28 = vadd.f32 %v22484_v5, %v7320_v61  ;;  %18298 = vmatprep.mubr.msk.f32.mxu0 %vm333_vm1, %v22546_v3 }
 0x5f9   : > { %v7495_v48 = vmax.f32 %v7463_v37, 0.0  ;;  %18299 = vmatmul.mubr.msk.f32.gmra.mrb[42].mxu0 %vm333_vm1, %v22552_v46 }
 0x5fa   : > { %v7494_v63 = vmax.f32 %v7462_v28, 0.0  ;;  %v18253_v19 = vpop.f32.mrb[16].mxu1  ;;  %v22564_v44 = vld [vmem:[#allocation2 + $0xd0] sm:$0xff] }
 0x5fb   : > { %7527 = vst.msk [vmem:[#allocation2 + $0x110] sm:$0xff] %vm333_vm1, %v7495_v48  ;;  %v7465_v8 = vadd.f32 %v18253_v19, %v22484_v5  ;;  %v7330_v15 = vpop.f32.mrb[17].mxu1  ;;  %v22558_v21 = vld [vmem:[#allocation2 + $0xc8] sm:$0xff] }
 0x5fc   : > { %7526 = vst.msk [vmem:[#allocation2 + $0x108] sm:$0xff] %vm333_vm1, %v7494_v63  ;;  %v7464_v34 = vadd.f32 %v22484_v5, %v7330_v15  ;;  %18301 = vmatprep.mubr.msk.f32.mxu0 %vm333_vm1, %v22558_v21 }
 0x5fd   : > { %v7497_v50 = vmax.f32 %v7465_v8, 0.0  ;;  %18302 = vmatmul.mubr.msk.f32.gmra.mrb[44].mxu0 %vm333_vm1, %v22564_v44 }
 0x5fe   : > { %v7496_v54 = vmax.f32 %v7464_v34, 0.0  ;;  %v18256_v31 = vpop.f32.mrb[18].mxu1  ;;  %v22576_v2 = vld [vmem:[#allocation2 + $0xf0] sm:$0xff] }
 0x5ff   : > { %7529 = vst.msk [vmem:[#allocation2 + $0x130] sm:$0xff] %vm333_vm1, %v7497_v50  ;;  %v7467_v51 = vadd.f32 %v18256_v31, %v22484_v5  ;;  %v7340_v32 = vpop.f32.mrb[19].mxu1  ;;  %v22570_v38 = vld [vmem:[#allocation2 + $0xe8] sm:$0xff] }
 0x600   : > { %7528 = vst.msk [vmem:[#allocation2 + $0x128] sm:$0xff] %vm333_vm1, %v7496_v54  ;;  %v7466_v42 = vadd.f32 %v22484_v5, %v7340_v32  ;;  %18304 = vmatprep.mubr.msk.f32.mxu0 %vm333_vm1, %v22570_v38 }
 0x601   : > { %v7499_v39 = vmax.f32 %v7467_v51, 0.0  ;;  %18305 = vmatmul.mubr.msk.f32.gmra.mrb[46].mxu0 %vm333_vm1, %v22576_v2 }
 0x602   : > { %v7498_v1 = vmax.f32 %v7466_v42, 0.0  ;;  %v18259_v40 = vpop.f32.mrb[20].mxu1  ;;  %v22588_v36 = vld [vmem:[#allocation2 + $0x110] sm:$0xff] }
 0x603   : > { %7531 = vst.msk [vmem:[#allocation2 + $0x150] sm:$0xff] %vm333_vm1, %v7499_v39  ;;  %v7469_v4 = vadd.f32 %v18259_v40, %v22484_v5  ;;  %v7350_v29 = vpop.f32.mrb[21].mxu1  ;;  %v22582_v30 = vld [vmem:[#allocation2 + $0x108] sm:$0xff] }
 0x604   : > { %7530 = vst.msk [vmem:[#allocation2 + $0x148] sm:$0xff] %vm333_vm1, %v7498_v1  ;;  %v7468_v33 = vadd.f32 %v22484_v5, %v7350_v29  ;;  %18307 = vmatprep.mubr.msk.f32.mxu0 %vm333_vm1, %v22582_v30  ;;  %v7544_v29 = vld [vmem:[#allocation2 + $0x7] sm:$0xff] }
 0x605   : > { %v7501_v45 = vmax.f32 %v7469_v4, 0.0  ;;  %18308 = vmatmul.mubr.msk.f32.gmra.mrb[48].mxu0 %vm333_vm1, %v22588_v36 }
 0x606   : > { %v7500_v47 = vmax.f32 %v7468_v33, 0.0  ;;  %v18262_v49 = vpop.f32.mrb[22].mxu1  ;;  %v22600_v43 = vld [vmem:[#allocation2 + $0x130] sm:$0xff] }
 0x607   : > { %7533 = vst.msk [vmem:[#allocation2 + $0x170] sm:$0xff] %vm333_vm1, %v7501_v45  ;;  %v7471_v55 = vadd.f32 %v18262_v49, %v22484_v5  ;;  %v7360_v57 = vpop.f32.mrb[23].mxu1  ;;  %v22594_v59 = vld [vmem:[#allocation2 + $0x128] sm:$0xff]  ;;  %v15476_v45 = vld [vmem:[%s24379_s5 + $0x50] sm:$0xff] }
 0x608   : > { %7532 = vst.msk [vmem:[#allocation2 + $0x168] sm:$0xff] %vm333_vm1, %v7500_v47  ;;  %v7470_v35 = vadd.f32 %v22484_v5, %v7360_v57  ;;  %18310 = vmatprep.mubr.msk.f32.mxu0 %vm333_vm1, %v22594_v59  ;;  %v15477_v47 = vld [vmem:[%s24379_s5 + $0x58] sm:$0xff]  ;;  %v7545_v49 = vld [vmem:[#allocation2 + $0xf] sm:$0xff]  ;;  %v15510_v57 = vld [vmem:[%s24379_s5 + $0x60] sm:$0xff] }
 0x609   : > { %v7503_v10 = vmax.f32 %v7471_v55, 0.0  ;;  %18311 = vmatmul.mubr.msk.f32.gmra.mrb[50].mxu0 %vm333_vm1, %v22600_v43  ;;  %v19375_v55 = vpack.c.bf16 %v15477_v47, %v15476_v45 }
 0x60a   : > { %v7502_v14 = vmax.f32 %v7470_v35, 0.0  ;;  %v18265_v23 = vpop.f32.mrb[24].mxu1  ;;  %v22612_v58 = vld [vmem:[#allocation2 + $0x150] sm:$0xff]  ;;  %v15511_v35 = vld [vmem:[%s24379_s5 + $0x68] sm:$0xff] }
 0x60b   : > { %7535 = vst.msk [vmem:[#allocation2 + $0x190] sm:$0xff] %vm333_vm1, %v7503_v10  ;;  %v7473_v27 = vadd.f32 %v18265_v23, %v22484_v5  ;;  %v7370_v7 = vpop.f32.mrb[25].mxu1  ;;  %v22606_v52 = vld [vmem:[#allocation2 + $0x148] sm:$0xff] }
 0x60c   : > { %7534 = vst.msk [vmem:[#allocation2 + $0x188] sm:$0xff] %vm333_vm1, %v7502_v14  ;;  %v7472_v25 = vadd.f32 %v22484_v5, %v7370_v7  ;;  %18313 = vmatprep.mubr.msk.f32.mxu0 %vm333_vm1, %v22606_v52  ;;  %v22684_v10 = vld [vmem:[#allocation2 + $0x27] sm:$0xff]  ;;  %v22689_v14 = vpack.c.bf16 %v15511_v35, %v15510_v57  ;;  %v22691_v23 = vld [vmem:[#allocation2 + $0x2f] sm:$0xff]  ;;  %v15513_v35 = vld [vmem:[%s24379_s5 + $0x78] sm:$0xff] }
 0x60d   : > { %v7505_v18 = vmax.f32 %v7473_v27, 0.0  ;;  %18314 = vmatmul.mubr.msk.f32.gmra.mrb[52].mxu0 %vm333_vm1, %v22612_v58  ;;  %v22695_v27 = vld [vmem:[#allocation2 + $0x47] sm:$0xff]  ;;  %v15512_v57 = vld [vmem:[%s24379_s5 + $0x70] sm:$0xff] }
 0x60e   : > { %v7504_v24 = vmax.f32 %v7472_v25, 0.0  ;;  %v18268_v26 = vpop.f32.mrb[26].mxu1  ;;  %v22624_v20 = vld [vmem:[#allocation2 + $0x170] sm:$0xff]  ;;  %v22704_v7 = vld [vmem:[#allocation2 + $0x67] sm:$0xff] }
 0x60f   : > { %7537 = vst.msk [vmem:[#allocation2 + $0x1b0] sm:$0xff] %vm333_vm1, %v7505_v18  ;;  %v7475_v41 = vadd.f32 %v18268_v26, %v22484_v5  ;;  %v7380_v62 = vpop.f32.mrb[27].mxu1  ;;  %v22618_v60 = vld [vmem:[#allocation2 + $0x168] sm:$0xff] }
 0x610   : > { %7536 = vst.msk [vmem:[#allocation2 + $0x1a8] sm:$0xff] %vm333_vm1, %v7504_v24  ;;  %v7474_v12 = vadd.f32 %v22484_v5, %v7380_v62  ;;  %18316 = vmatprep.mubr.msk.f32.mxu0 %vm333_vm1, %v22618_v60  ;;  %v22708_v25 = vld [vmem:[#allocation2 + $0x6f] sm:$0xff]  ;;  %v22712_v18 = vld [vmem:[#allocation2 + $0x87] sm:$0xff] }
 0x611   : > { %v7507_v22 = vmax.f32 %v7475_v41, 0.0  ;;  %18317 = vmatmul.mubr.msk.f32.gmra.mrb[54].mxu0 %vm333_vm1, %v22624_v20  ;;  %v22716_v24 = vld [vmem:[#allocation2 + $0x8f] sm:$0xff]  ;;  %v22720_v26 = vld [vmem:[#allocation2 + $0xa7] sm:$0xff] }
 0x612   : > { %v7506_v37 = vmax.f32 %v7474_v12, 0.0  ;;  %v18271_v61 = vpop.f32.mrb[28].mxu1  ;;  %v22636_v8 = vld [vmem:[#allocation2 + $0x190] sm:$0xff]  ;;  %v22728_v62 = vld [vmem:[#allocation2 + $0xc7] sm:$0xff] }
 0x613   : > { %7539 = vst.msk [vmem:[#allocation2 + $0x1d0] sm:$0xff] %vm333_vm1, %v7507_v22  ;;  %v7477_v28 = vadd.f32 %v18271_v61, %v22484_v5  ;;  %v7390_v48 = vpop.f32.mrb[29].mxu1  ;;  %v22630_v63 = vld [vmem:[#allocation2 + $0x188] sm:$0xff] }
 0x614   : > { %7538 = vst.msk [vmem:[#allocation2 + $0x1c8] sm:$0xff] %vm333_vm1, %v7506_v37  ;;  %v7476_v19 = vadd.f32 %v22484_v5, %v7390_v48  ;;  %18319 = vmatprep.mubr.msk.f32.mxu0 %vm333_vm1, %v22630_v63  ;;  %v22724_v41 = vld [vmem:[#allocation2 + $0xaf] sm:$0xff]  ;;  %v22736_v22 = vld [vmem:[#allocation2 + $0xe7] sm:$0xff] }
 0x615   : > { %v7509_v15 = vmax.f32 %v7477_v28, 0.0  ;;  %18320 = vmatmul.mubr.msk.f32.gmra.mrb[56].mxu0 %vm333_vm1, %v22636_v8  ;;  %v22732_v12 = vld [vmem:[#allocation2 + $0xcf] sm:$0xff]  ;;  %v22744_v61 = vld [vmem:[#allocation2 + $0x107] sm:$0xff] }
 0x616   : > { %v7508_v34 = vmax.f32 %v7476_v19, 0.0  ;;  %v18274_v50 = vpop.f32.mrb[30].mxu1  ;;  %v22648_v42 = vld [vmem:[#allocation2 + $0x1b0] sm:$0xff]  ;;  %v22752_v48 = vld [vmem:[#allocation2 + $0x127] sm:$0xff] }
 0x617   : > { %7541 = vst.msk [vmem:[#allocation2 + $0x1f0] sm:$0xff] %vm333_vm1, %v7509_v15  ;;  %v7479_v54 = vadd.f32 %v18274_v50, %v22484_v5  ;;  %v7400_v31 = vpop.f32.mrb[31].mxu1  ;;  %v22642_v51 = vld [vmem:[#allocation2 + $0x1a8] sm:$0xff]  ;;  %24785 = vst [vmem:[#allocation5_spill] sm:$0xff] %v22648_v42 }
 0x618   : > { %7540 = vst.msk [vmem:[#allocation2 + $0x1e8] sm:$0xff] %vm333_vm1, %v7508_v34  ;;  %v7478_v32 = vadd.f32 %v22484_v5, %v7400_v31  ;;  %18322 = vmatprep.mubr.msk.f32.mxu0 %vm333_vm1, %v22642_v51  ;;  %v22740_v37 = vld [vmem:[#allocation2 + $0xef] sm:$0xff]  ;;  %v22760_v15 = vld [vmem:[#allocation2 + $0x147] sm:$0xff] }
 0x619   : > { %v7511_v39 = vmax.f32 %v7479_v54, 0.0  ;;  %18323 = vmatmul.mubr.msk.f32.gmra.mrb[58].mxu0 %vm333_vm1, %v22648_v42  ;;  %v22748_v28 = vld [vmem:[#allocation2 + $0x10f] sm:$0xff]  ;;  %v22768_v50 = vld [vmem:[#allocation2 + $0x167] sm:$0xff] }
 0x61a   : > { %v7510_v1 = vmax.f32 %v7478_v32, 0.0  ;;  %v22658_v5 = vld [vmem:[#allocation2 + $0x1d0] sm:$0xff]  ;;  %v22776_v31 = vld [vmem:[#allocation2 + $0x187] sm:$0xff] }
 0x61b   : > { %7543 = vst.msk [vmem:[#allocation2 + $0x210] sm:$0xff] %vm333_vm1, %v7511_v39  ;;  %v22653_v40 = vld [vmem:[#allocation2 + $0x1c8] sm:$0xff]  ;;  %24787 = vst [vmem:[#allocation7_spill] sm:$0xff] %v22658_v5 }
 0x61c   : > { %24786 = vst [vmem:[#allocation6_spill] sm:$0xff] %v22653_v40  ;;  %7542 = vst.msk [vmem:[#allocation2 + $0x208] sm:$0xff] %vm333_vm1, %v7510_v1  ;;  %18325 = vmatprep.mubr.msk.f32.mxu0 %vm333_vm1, %v22653_v40  ;;  %v22756_v19 = vld [vmem:[#allocation2 + $0x12f] sm:$0xff]  ;;  %v22784_v39 = vld [vmem:[#allocation2 + $0x1a7] sm:$0xff] }
 0x61d   : > { %18326 = vmatmul.mubr.msk.f32.gmra.mrb[60].mxu0 %vm333_vm1, %v22658_v5  ;;  %v22764_v34 = vld [vmem:[#allocation2 + $0x14f] sm:$0xff]  ;;  %v15546_v5 = vld [vmem:[%s24379_s5 + $0x80] sm:$0xff] }
 0x61e   : > { %v22666_v33 = vld [vmem:[#allocation2 + $0x1f0] sm:$0xff]  ;;  %v15547_v40 = vld [vmem:[%s24379_s5 + $0x88] sm:$0xff] }
 0x61f   : > { %v22662_v4 = vld [vmem:[#allocation2 + $0x1e8] sm:$0xff]  ;;  %24789 = vst [vmem:[#allocation9_spill] sm:$0xff] %v22666_v33 }
 0x620   : > { %24788 = vst [vmem:[#allocation8_spill] sm:$0xff] %v22662_v4  ;;  %18328 = vmatprep.mubr.msk.f32.mxu0 %vm333_vm1, %v22662_v4  ;;  %v22772_v54 = vld [vmem:[#allocation2 + $0x16f] sm:$0xff]  ;;  %v22800_v47 = vld [vmem:[#allocation2 + $0x1e7] sm:$0xff]  ;;  %v19383_v4 = vpack.c.bf16 %v15513_v35, %v15512_v57 }
 0x621   : > { %18329 = vmatmul.mubr.msk.f32.gmra.mrb[62].mxu0 %vm333_vm1, %v22666_v33  ;;  %v22780_v32 = vld [vmem:[#allocation2 + $0x18f] sm:$0xff] }
 0x622   : > { %18339 = vmatprep.mubr.msk.f32.mxu0 %vm333_vm1, %v7544_v29  ;;  %v22788_v1 = vld [vmem:[#allocation2 + $0x1af] sm:$0xff]  ;;  %v22792_v29 = vld [vmem:[#allocation2 + $0x1c7] sm:$0xff] }
 0x623   : > { %v22796_v45 = vld [vmem:[#allocation2 + $0x1cf] sm:$0xff] }
 0x624   : > { %v8260_v33 = vld [vmem:[#allocation2 + $0x11] sm:$0xff]  ;;  %v22822_v42 = vld [vmem:[#allocation2 + $0x29] sm:$0xff] }
 0x625   : > { %18340 = vmatmul.mubr.msk.f32.vlgmr.msra.gmra.mrb[32].mxu0 %vm333_vm1, %v7545_v49  ;;  %v8259_v49 = vld [vmem:[#allocation2 + $0x9] sm:$0xff]  ;;  %v22829_v57 = vld [vmem:[#allocation2 + $0x31] sm:$0xff] }
 0x626   : > { %19374 = vmatpush3.bf16.msra.mxu0 %v22478_v11  ;;  %18342 = vmatprep.mubr.msk.f32.mxu0 %vm333_vm1, %v22684_v10  ;;  %v22700_v11 = vld [vmem:[#allocation2 + $0x4f] sm:$0xff] }
 0x627   : > { %19376 = vmatprep.subr.bf16.mxu0 %v19375_v55  ;;  %v22833_v35 = vld [vmem:[#allocation2 + $0x49] sm:$0xff] }
 0x628   : > { %24790 = vst [vmem:[#allocation10_spill] sm:$0xff] %v22833_v35 }
 0x629   : > { %18343 = vmatmul.mubr.msk.f32.gmra.mrb[34].mxu0 %vm333_vm1, %v22691_v23 }
 0x62a   : > { %18345 = vmatprep.mubr.msk.f32.mxu0 %vm333_vm1, %v22695_v27  ;;  %19378 = vmatpush3.bf16.msra.mxu0 %v19375_v55  ;;  %v22804_v55 = vld [vmem:[#allocation2 + $0x1ef] sm:$0xff] }
 0x62b   : > { %19380 = vmatprep.subr.bf16.mxu0 %v22689_v14 }
 0x62d   : > { %18346 = vmatmul.mubr.msk.f32.gmra.mrb[36].mxu0 %vm333_vm1, %v22700_v11 }
 0x62e   : > { %18348 = vmatprep.mubr.msk.f32.mxu0 %vm333_vm1, %v22704_v7 }
 0x631   : > { %18349 = vmatmul.mubr.msk.f32.gmra.mrb[38].mxu0 %vm333_vm1, %v22708_v25 }
 0x632   : > { %18351 = vmatprep.mubr.msk.f32.mxu0 %vm333_vm1, %v22712_v18 }
 0x635   : > { %18352 = vmatmul.mubr.msk.f32.gmra.mrb[40].mxu0 %vm333_vm1, %v22716_v24 }
 0x636   : > { %18354 = vmatprep.mubr.msk.f32.mxu0 %vm333_vm1, %v22720_v26 }
 0x639   : > { %18355 = vmatmul.mubr.msk.f32.gmra.mrb[42].mxu0 %vm333_vm1, %v22724_v41 }
 0x63a   : > { %18357 = vmatprep.mubr.msk.f32.mxu0 %vm333_vm1, %v22728_v62 }
 0x63d   : > { %18358 = vmatmul.mubr.msk.f32.gmra.mrb[44].mxu0 %vm333_vm1, %v22732_v12 }
 0x63e   : > { %18360 = vmatprep.mubr.msk.f32.mxu0 %vm333_vm1, %v22736_v22 }
 0x641   : > { %18361 = vmatmul.mubr.msk.f32.gmra.mrb[46].mxu0 %vm333_vm1, %v22740_v37 }
 0x642   : > { %18363 = vmatprep.mubr.msk.f32.mxu0 %vm333_vm1, %v22744_v61 }
 0x645   : > { %18364 = vmatmul.mubr.msk.f32.gmra.mrb[48].mxu0 %vm333_vm1, %v22748_v28 }
 0x646   : > { %18366 = vmatprep.mubr.msk.f32.mxu0 %vm333_vm1, %v22752_v48 }
 0x649   : > { %18367 = vmatmul.mubr.msk.f32.gmra.mrb[50].mxu0 %vm333_vm1, %v22756_v19 }
 0x64a   : > { %18369 = vmatprep.mubr.msk.f32.mxu0 %vm333_vm1, %v22760_v15 }
 0x64d   : > { %18370 = vmatmul.mubr.msk.f32.gmra.mrb[52].mxu0 %vm333_vm1, %v22764_v34 }
 0x64e   : > { %18372 = vmatprep.mubr.msk.f32.mxu0 %vm333_vm1, %v22768_v50 }
 0x651   : > { %18373 = vmatmul.mubr.msk.f32.gmra.mrb[54].mxu0 %vm333_vm1, %v22772_v54 }
 0x652   : > { %18375 = vmatprep.mubr.msk.f32.mxu0 %vm333_vm1, %v22776_v31 }
 0x655   : > { %18376 = vmatmul.mubr.msk.f32.gmra.mrb[56].mxu0 %vm333_vm1, %v22780_v32 }
 0x656   : > { %18378 = vmatprep.mubr.msk.f32.mxu0 %vm333_vm1, %v22784_v39 }
 0x659   : > { %18379 = vmatmul.mubr.msk.f32.gmra.mrb[58].mxu0 %vm333_vm1, %v22788_v1 }
 0x65a   : > { %18381 = vmatprep.mubr.msk.f32.mxu0 %vm333_vm1, %v22792_v29 }
 0x65d   : > { %18382 = vmatmul.mubr.msk.f32.gmra.mrb[60].mxu0 %vm333_vm1, %v22796_v45 }
 0x65e   : > { %18384 = vmatprep.mubr.msk.f32.mxu0 %vm333_vm1, %v22800_v47 }
 0x661   : > { %18385 = vmatmul.mubr.msk.f32.gmra.mrb[62].mxu0 %vm333_vm1, %v22804_v55 }
 0x662   : > { %18395 = vmatprep.mubr.msk.f32.mxu0 %vm333_vm1, %v8259_v49  ;;  %v22827_v49 = vpack.c.bf16 %v15547_v40, %v15546_v5  ;;  %v22842_v40 = vld [vmem:[#allocation2 + $0x69] sm:$0xff]  ;;  %v22846_v5 = vld [vmem:[#allocation2 + $0x71] sm:$0xff] }
 0x663   : > { %24792 = vst [vmem:[#allocation12_spill] sm:$0xff] %v22842_v40  ;;  %24793 = vst [vmem:[#allocation13_spill] sm:$0xff] %v22846_v5 }
 0x665   : > { %18396 = vmatmul.mubr.msk.f32.vlgmr.msra.gmra.mrb[32].mxu0 %vm333_vm1, %v8260_v33  ;;  %v22838_v33 = vld [vmem:[#allocation2 + $0x51] sm:$0xff] }
 0x666   : > { %19382 = vmatpush3.bf16.msra.mxu0 %v22689_v14  ;;  %18398 = vmatprep.mubr.msk.f32.mxu0 %vm333_vm1, %v22822_v42  ;;  %24791 = vst [vmem:[#allocation11_spill] sm:$0xff] %v22838_v33  ;;  %v22850_v14 = vld [vmem:[#allocation2 + $0x89] sm:$0xff] }
 0x667   : > { %19384 = vmatprep.subr.bf16.mxu0 %v19383_v4  ;;  %24794 = vst [vmem:[#allocation14_spill] sm:$0xff] %v22850_v14 }
 0x669   : > { %18399 = vmatmul.mubr.msk.f32.gmra.mrb[34].mxu0 %vm333_vm1, %v22829_v57 }
 0x66a   : > { %18401 = vmatprep.mubr.msk.f32.mxu0 %vm333_vm1, %v22833_v35  ;;  %19386 = vmatpush3.bf16.msra.mxu0 %v19383_v4  ;;  %v22854_v4 = vld [vmem:[#allocation2 + $0x91] sm:$0xff]  ;;  %v15583_v35 = vld [vmem:[%s24379_s5 + $0xa8] sm:$0xff] }
 0x66b   : > { %19388 = vmatprep.subr.bf16.mxu0 %v22827_v49  ;;  %24795 = vst [vmem:[#allocation15_spill] sm:$0xff] %v22854_v4 }
 0x66d   : > { %18402 = vmatmul.mubr.msk.f32.gmra.mrb[36].mxu0 %vm333_vm1, %v22838_v33  ;;  %v22858_v33 = vld [vmem:[#allocation2 + $0xa9] sm:$0xff] }
 0x66e   : > { %18404 = vmatprep.mubr.msk.f32.mxu0 %vm333_vm1, %v22842_v40  ;;  %24796 = vst [vmem:[#allocation16_spill] sm:$0xff] %v22858_v33  ;;  %v22862_v40 = vld [vmem:[#allocation2 + $0xb1] sm:$0xff] }
 0x66f   : > { %24797 = vst [vmem:[#allocation17_spill] sm:$0xff] %v22862_v40 }
 0x671   : > { %18405 = vmatmul.mubr.msk.f32.gmra.mrb[38].mxu0 %vm333_vm1, %v22846_v5  ;;  %v22866_v5 = vld [vmem:[#allocation2 + $0xc9] sm:$0xff] }
 0x672   : > { %18407 = vmatprep.mubr.msk.f32.mxu0 %vm333_vm1, %v22850_v14  ;;  %24798 = vst [vmem:[#allocation18_spill] sm:$0xff] %v22866_v5  ;;  %v22870_v14 = vld [vmem:[#allocation2 + $0xd1] sm:$0xff] }
 0x673   : > { %24799 = vst [vmem:[#allocation19_spill] sm:$0xff] %v22870_v14 }
 0x675   : > { %18408 = vmatmul.mubr.msk.f32.gmra.mrb[40].mxu0 %vm333_vm1, %v22854_v4  ;;  %v22874_v4 = vld [vmem:[#allocation2 + $0xe9] sm:$0xff] }
 0x676   : > { %18410 = vmatprep.mubr.msk.f32.mxu0 %vm333_vm1, %v22858_v33  ;;  %24800 = vst [vmem:[#allocation20_spill] sm:$0xff] %v22874_v4  ;;  %v22878_v33 = vld [vmem:[#allocation2 + $0xf1] sm:$0xff] }
 0x677   : > { %24801 = vst [vmem:[#allocation21_spill] sm:$0xff] %v22878_v33 }
 0x679   : > { %18411 = vmatmul.mubr.msk.f32.gmra.mrb[42].mxu0 %vm333_vm1, %v22862_v40  ;;  %v22882_v40 = vld [vmem:[#allocation2 + $0x109] sm:$0xff] }
 0x67a   : > { %18413 = vmatprep.mubr.msk.f32.mxu0 %vm333_vm1, %v22866_v5  ;;  %24802 = vst [vmem:[#allocation23_spill] sm:$0xff] %v22882_v40  ;;  %v22886_v5 = vld [vmem:[#allocation2 + $0x111] sm:$0xff] }
 0x67b   : > { %24803 = vst [vmem:[#allocation25_spill] sm:$0xff] %v22886_v5 }
 0x67d   : > { %18414 = vmatmul.mubr.msk.f32.gmra.mrb[44].mxu0 %vm333_vm1, %v22870_v14  ;;  %v22890_v14 = vld [vmem:[#allocation2 + $0x129] sm:$0xff] }
 0x67e   : > { %18416 = vmatprep.mubr.msk.f32.mxu0 %vm333_vm1, %v22874_v4  ;;  %24804 = vst [vmem:[#allocation26_spill] sm:$0xff] %v22890_v14  ;;  %v22894_v4 = vld [vmem:[#allocation2 + $0x131] sm:$0xff] }
 0x67f   : > { %24805 = vst [vmem:[#allocation27_spill] sm:$0xff] %v22894_v4 }
 0x681   : > { %18417 = vmatmul.mubr.msk.f32.gmra.mrb[46].mxu0 %vm333_vm1, %v22878_v33  ;;  %v22898_v33 = vld [vmem:[#allocation2 + $0x149] sm:$0xff] }
 0x682   : > { %18419 = vmatprep.mubr.msk.f32.mxu0 %vm333_vm1, %v22882_v40  ;;  %24806 = vst [vmem:[#allocation31_spill] sm:$0xff] %v22898_v33  ;;  %v22902_v40 = vld [vmem:[#allocation2 + $0x151] sm:$0xff] }
 0x683   : > { %24807 = vst [vmem:[#allocation28_spill] sm:$0xff] %v22902_v40 }
 0x685   : > { %18420 = vmatmul.mubr.msk.f32.gmra.mrb[48].mxu0 %vm333_vm1, %v22886_v5  ;;  %v22906_v5 = vld [vmem:[#allocation2 + $0x169] sm:$0xff] }
 0x686   : > { %18422 = vmatprep.mubr.msk.f32.mxu0 %vm333_vm1, %v22890_v14  ;;  %24808 = vst [vmem:[#allocation30_spill] sm:$0xff] %v22906_v5  ;;  %v22910_v14 = vld [vmem:[#allocation2 + $0x171] sm:$0xff] }
 0x687   : > { %24809 = vst [vmem:[#allocation22_spill] sm:$0xff] %v22910_v14 }
 0x689   : > { %18423 = vmatmul.mubr.msk.f32.gmra.mrb[50].mxu0 %vm333_vm1, %v22894_v4  ;;  %v22914_v4 = vld [vmem:[#allocation2 + $0x189] sm:$0xff] }
 0x68a   : > { %18425 = vmatprep.mubr.msk.f32.mxu0 %vm333_vm1, %v22898_v33  ;;  %24810 = vst [vmem:[#allocation24_spill] sm:$0xff] %v22914_v4  ;;  %v22918_v33 = vld [vmem:[#allocation2 + $0x191] sm:$0xff] }
 0x68b   : > { %24811 = vst [vmem:[#allocation29_spill] sm:$0xff] %v22918_v33 }
 0x68d   : > { %18426 = vmatmul.mubr.msk.f32.gmra.mrb[52].mxu0 %vm333_vm1, %v22902_v40  ;;  %v22922_v40 = vld [vmem:[#allocation2 + $0x1a9] sm:$0xff] }
 0x68e   : > { %18428 = vmatprep.mubr.msk.f32.mxu0 %vm333_vm1, %v22906_v5  ;;  %24812 = vst [vmem:[#allocation32_spill] sm:$0xff] %v22922_v40  ;;  %v22926_v5 = vld [vmem:[#allocation2 + $0x1b1] sm:$0xff] }
 0x68f   : > { %24813 = vst [vmem:[#allocation33_spill] sm:$0xff] %v22926_v5 }
 0x691   : > { %18429 = vmatmul.mubr.msk.f32.gmra.mrb[54].mxu0 %vm333_vm1, %v22910_v14  ;;  %v22930_v14 = vld [vmem:[#allocation2 + $0x1c9] sm:$0xff] }
 0x692   : > { %18431 = vmatprep.mubr.msk.f32.mxu0 %vm333_vm1, %v22914_v4  ;;  %24814 = vst [vmem:[#allocation34_spill] sm:$0xff] %v22930_v14  ;;  %v22934_v4 = vld [vmem:[#allocation2 + $0x1d1] sm:$0xff] }
 0x693   : > { %24815 = vst [vmem:[#allocation35_spill] sm:$0xff] %v22934_v4 }
 0x695   : > { %18432 = vmatmul.mubr.msk.f32.gmra.mrb[56].mxu0 %vm333_vm1, %v22918_v33  ;;  %v22938_v33 = vld [vmem:[#allocation2 + $0x1e9] sm:$0xff] }
 0x696   : > { %18434 = vmatprep.mubr.msk.f32.mxu0 %vm333_vm1, %v22922_v40  ;;  %24816 = vst [vmem:[#allocation3_spill] sm:$0xff] %v22938_v33  ;;  %v22942_v40 = vld [vmem:[#allocation2 + $0x1f1] sm:$0xff] }
 0x697   : > { %24817 = vst [vmem:[#allocation4_spill] sm:$0xff] %v22942_v40 }
 0x699   : > { %18435 = vmatmul.mubr.msk.f32.gmra.mrb[58].mxu0 %vm333_vm1, %v22926_v5  ;;  %v15548_v5 = vld [vmem:[%s24379_s5 + $0x90] sm:$0xff] }
 0x69a   : > { %18437 = vmatprep.mubr.msk.f32.mxu0 %vm333_vm1, %v22930_v14  ;;  %v15549_v14 = vld [vmem:[%s24379_s5 + $0x98] sm:$0xff] }
 0x69d   : > { %18438 = vmatmul.mubr.msk.f32.gmra.mrb[60].mxu0 %vm333_vm1, %v22934_v4  ;;  %v19391_v4 = vpack.c.bf16 %v15549_v14, %v15548_v5  ;;  %v15618_v5 = vld [vmem:[%s24379_s5 + $0xc0] sm:$0xff]  ;;  %v15619_v14 = vld [vmem:[%s24379_s5 + $0xc8] sm:$0xff] }
 0x69e   : > { %18440 = vmatprep.mubr.msk.f32.mxu0 %vm333_vm1, %v22938_v33  ;;  %v15582_v33 = vld [vmem:[%s24379_s5 + $0xa0] sm:$0xff] }
 0x6a1   : > { %18441 = vmatmul.mubr.msk.f32.gmra.mrb[62].mxu0 %vm333_vm1, %v22942_v40  ;;  %v19395_v40 = vpack.c.bf16 %v15583_v35, %v15582_v33  ;;  %v15585_v35 = vld [vmem:[%s24379_s5 + $0xb8] sm:$0xff] }
 0x6a2   : > { %18451 = vmatprep.mubr.msk.f32.mxu0 %vm333_vm1, %v22684_v10  ;;  %v23019_v10 = vld [vmem:[#allocation2 + $0x207] sm:$0xff] }
 0x6a5   : > { %18452 = vmatmul.mubr.msk.f32.vlgmr.msra.gmra.mrb[32].mxu0 %vm333_vm1, %v22691_v23  ;;  %v23023_v23 = vld [vmem:[#allocation2 + $0x20f] sm:$0xff] }
 0x6a6   : > { %19390 = vmatpush3.bf16.msra.mxu0 %v22827_v49  ;;  %18454 = vmatprep.mubr.msk.f32.mxu0 %vm333_vm1, %v22695_v27  ;;  %v15584_v49 = vld [vmem:[%s24379_s5 + $0xb0] sm:$0xff] }
 0x6a7   : > { %19392 = vmatprep.subr.bf16.mxu0 %v19391_v4  ;;  %v19399_v33 = vpack.c.bf16 %v15585_v35, %v15584_v49  ;;  %v24837_v49 = vld [vmem:[#allocation26_spill] sm:$0xff]  ;;  %v24838_v35 = vld [vmem:[#allocation27_spill] sm:$0xff] }
 0x6a9   : > { %18455 = vmatmul.mubr.msk.f32.gmra.mrb[34].mxu0 %vm333_vm1, %v22700_v11 }
 0x6aa   : > { %18457 = vmatprep.mubr.msk.f32.mxu0 %vm333_vm1, %v22704_v7  ;;  %19394 = vmatpush3.bf16.msra.mxu0 %v19391_v4  ;;  %v19403_v4 = vpack.c.bf16 %v15619_v14, %v15618_v5  ;;  %v24840_v5 = vld [vmem:[#allocation28_spill] sm:$0xff]  ;;  %v24841_v14 = vld [vmem:[#allocation30_spill] sm:$0xff] }
 0x6ab   : > { %19396 = vmatprep.subr.bf16.mxu0 %v19395_v40 }
 0x6ad   : > { %18458 = vmatmul.mubr.msk.f32.gmra.mrb[36].mxu0 %vm333_vm1, %v22708_v25 }
 0x6ae   : > { %18460 = vmatprep.mubr.msk.f32.mxu0 %vm333_vm1, %v22712_v18 }
 0x6b1   : > { %18461 = vmatmul.mubr.msk.f32.gmra.mrb[38].mxu0 %vm333_vm1, %v22716_v24 }
 0x6b2   : > { %18463 = vmatprep.mubr.msk.f32.mxu0 %vm333_vm1, %v22720_v26 }
 0x6b5   : > { %18464 = vmatmul.mubr.msk.f32.gmra.mrb[40].mxu0 %vm333_vm1, %v22724_v41 }
 0x6b6   : > { %18466 = vmatprep.mubr.msk.f32.mxu0 %vm333_vm1, %v22728_v62 }
 0x6b9   : > { %18467 = vmatmul.mubr.msk.f32.gmra.mrb[42].mxu0 %vm333_vm1, %v22732_v12 }
 0x6ba   : > { %18469 = vmatprep.mubr.msk.f32.mxu0 %vm333_vm1, %v22736_v22 }
 0x6bd   : > { %18470 = vmatmul.mubr.msk.f32.gmra.mrb[44].mxu0 %vm333_vm1, %v22740_v37 }
 0x6be   : > { %18472 = vmatprep.mubr.msk.f32.mxu0 %vm333_vm1, %v22744_v61 }
 0x6c1   : > { %18473 = vmatmul.mubr.msk.f32.gmra.mrb[46].mxu0 %vm333_vm1, %v22748_v28 }
 0x6c2   : > { %18475 = vmatprep.mubr.msk.f32.mxu0 %vm333_vm1, %v22752_v48 }
 0x6c5   : > { %18476 = vmatmul.mubr.msk.f32.gmra.mrb[48].mxu0 %vm333_vm1, %v22756_v19 }
 0x6c6   : > { %18478 = vmatprep.mubr.msk.f32.mxu0 %vm333_vm1, %v22760_v15 }
 0x6c9   : > { %18479 = vmatmul.mubr.msk.f32.gmra.mrb[50].mxu0 %vm333_vm1, %v22764_v34 }
 0x6ca   : > { %18481 = vmatprep.mubr.msk.f32.mxu0 %vm333_vm1, %v22768_v50 }
 0x6cd   : > { %18482 = vmatmul.mubr.msk.f32.gmra.mrb[52].mxu0 %vm333_vm1, %v22772_v54 }
 0x6ce   : > { %18484 = vmatprep.mubr.msk.f32.mxu0 %vm333_vm1, %v22776_v31 }
 0x6d1   : > { %18485 = vmatmul.mubr.msk.f32.gmra.mrb[54].mxu0 %vm333_vm1, %v22780_v32 }
 0x6d2   : > { %18487 = vmatprep.mubr.msk.f32.mxu0 %vm333_vm1, %v22784_v39 }
 0x6d5   : > { %18488 = vmatmul.mubr.msk.f32.gmra.mrb[56].mxu0 %vm333_vm1, %v22788_v1 }
 0x6d6   : > { %18490 = vmatprep.mubr.msk.f32.mxu0 %vm333_vm1, %v22792_v29 }
 0x6d9   : > { %18491 = vmatmul.mubr.msk.f32.gmra.mrb[58].mxu0 %vm333_vm1, %v22796_v45 }
 0x6da   : > { %18493 = vmatprep.mubr.msk.f32.mxu0 %vm333_vm1, %v22800_v47 }
 0x6dd   : > { %18494 = vmatmul.mubr.msk.f32.gmra.mrb[60].mxu0 %vm333_vm1, %v22804_v55 }
 0x6de   : > { %18496 = vmatprep.mubr.msk.f32.mxu0 %vm333_vm1, %v23019_v10 }
 0x6e1   : > { %18497 = vmatmul.mubr.msk.f32.gmra.mrb[62].mxu0 %vm333_vm1, %v23023_v23 }
 0x6e2   : > { %18507 = vmatprep.mubr.msk.f32.mxu0 %vm333_vm1, %v22498_v53  ;;  %v24818_v53 = vld [vmem:[#allocation5_spill] sm:$0xff] }
 0x6e5   : > { %18508 = vmatmul.mubr.msk.f32.vlgmr.msra.gmra.mrb[32].mxu0 %vm333_vm1, %v22504_v56  ;;  %v24819_v56 = vld [vmem:[#allocation6_spill] sm:$0xff] }
 0x6e6   : > { %19398 = vmatpush3.bf16.msra.mxu0 %v19395_v40  ;;  %18510 = vmatprep.mubr.msk.f32.mxu0 %vm333_vm1, %v22510_v13  ;;  %v24820_v13 = vld [vmem:[#allocation7_spill] sm:$0xff]  ;;  %v24836_v40 = vld [vmem:[#allocation25_spill] sm:$0xff] }
 0x6e7   : > { %19400 = vmatprep.subr.bf16.mxu0 %v19399_v33 }
 0x6e9   : > { %18511 = vmatmul.mubr.msk.f32.gmra.mrb[34].mxu0 %vm333_vm1, %v22516_v17  ;;  %v24821_v17 = vld [vmem:[#allocation8_spill] sm:$0xff] }
 0x6ea   : > { %18513 = vmatprep.mubr.msk.f32.mxu0 %vm333_vm1, %v22522_v9  ;;  %19402 = vmatpush3.bf16.msra.mxu0 %v19399_v33  ;;  %v24822_v9 = vld [vmem:[#allocation9_spill] sm:$0xff]  ;;  %v24839_v33 = vld [vmem:[#allocation31_spill] sm:$0xff] }
 0x6eb   : > { %19404 = vmatprep.subr.bf16.mxu0 %v19403_v4 }
 0x6ed   : > { %18514 = vmatmul.mubr.msk.f32.gmra.mrb[36].mxu0 %vm333_vm1, %v22528_v16  ;;  %v23099_v16 = vld [vmem:[#allocation2 + $0x208] sm:$0xff] }
 0x6ee   : > { %18516 = vmatprep.mubr.msk.f32.mxu0 %vm333_vm1, %v22534_v0  ;;  %v23103_v0 = vld [vmem:[#allocation2 + $0x210] sm:$0xff] }
 0x6f1   : > { %18517 = vmatmul.mubr.msk.f32.gmra.mrb[38].mxu0 %vm333_vm1, %v22540_v6  ;;  %v15620_v6 = vld [vmem:[%s24379_s5 + $0xd0] sm:$0xff] }
 0x6f2   : > { %18519 = vmatprep.mubr.msk.f32.mxu0 %vm333_vm1, %v22546_v3  ;;  %v15621_v3 = vld [vmem:[%s24379_s5 + $0xd8] sm:$0xff] }
 0x6f5   : > { %18520 = vmatmul.mubr.msk.f32.gmra.mrb[40].mxu0 %vm333_vm1, %v22552_v46  ;;  %v19407_v46 = vpack.c.bf16 %v15621_v3, %v15620_v6  ;;  %v24843_v6 = vld [vmem:[#allocation24_spill] sm:$0xff]  ;;  %v24844_v3 = vld [vmem:[#allocation29_spill] sm:$0xff] }
 0x6f6   : > { %18522 = vmatprep.mubr.msk.f32.mxu0 %vm333_vm1, %v22558_v21  ;;  %v15654_v21 = vld [vmem:[%s24379_s5 + $0xe0] sm:$0xff] }
 0x6f9   : > { %18523 = vmatmul.mubr.msk.f32.gmra.mrb[42].mxu0 %vm333_vm1, %v22564_v44  ;;  %v15655_v44 = vld [vmem:[%s24379_s5 + $0xe8] sm:$0xff] }
 0x6fa   : > { %18525 = vmatprep.mubr.msk.f32.mxu0 %vm333_vm1, %v22570_v38  ;;  %v24823_v38 = vld [vmem:[#allocation10_spill] sm:$0xff] }
 0x6fd   : > { %18526 = vmatmul.mubr.msk.f32.gmra.mrb[44].mxu0 %vm333_vm1, %v22576_v2  ;;  %v19411_v2 = vpack.c.bf16 %v15655_v44, %v15654_v21  ;;  %v24846_v21 = vld [vmem:[#allocation33_spill] sm:$0xff]  ;;  %v24847_v44 = vld [vmem:[#allocation34_spill] sm:$0xff] }
 0x6fe   : > { %18528 = vmatprep.mubr.msk.f32.mxu0 %vm333_vm1, %v22582_v30  ;;  %v24824_v30 = vld [vmem:[#allocation11_spill] sm:$0xff] }
 0x701   : > { %18529 = vmatmul.mubr.msk.f32.gmra.mrb[46].mxu0 %vm333_vm1, %v22588_v36  ;;  %v24825_v36 = vld [vmem:[#allocation12_spill] sm:$0xff] }
 0x702   : > { %18531 = vmatprep.mubr.msk.f32.mxu0 %vm333_vm1, %v22594_v59  ;;  %v24826_v59 = vld [vmem:[#allocation13_spill] sm:$0xff] }
 0x705   : > { %18532 = vmatmul.mubr.msk.f32.gmra.mrb[48].mxu0 %vm333_vm1, %v22600_v43  ;;  %v24827_v43 = vld [vmem:[#allocation14_spill] sm:$0xff] }
 0x706   : > { %18534 = vmatprep.mubr.msk.f32.mxu0 %vm333_vm1, %v22606_v52  ;;  %v24828_v52 = vld [vmem:[#allocation15_spill] sm:$0xff] }
 0x709   : > { %18535 = vmatmul.mubr.msk.f32.gmra.mrb[50].mxu0 %vm333_vm1, %v22612_v58  ;;  %v24829_v58 = vld [vmem:[#allocation16_spill] sm:$0xff] }
 0x70a   : > { %18537 = vmatprep.mubr.msk.f32.mxu0 %vm333_vm1, %v22618_v60  ;;  %v24830_v60 = vld [vmem:[#allocation17_spill] sm:$0xff] }
 0x70d   : > { %18538 = vmatmul.mubr.msk.f32.gmra.mrb[52].mxu0 %vm333_vm1, %v22624_v20  ;;  %v24831_v20 = vld [vmem:[#allocation18_spill] sm:$0xff] }
 0x70e   : > { %18540 = vmatprep.mubr.msk.f32.mxu0 %vm333_vm1, %v22630_v63  ;;  %v24832_v63 = vld [vmem:[#allocation19_spill] sm:$0xff] }
 0x711   : > { %18541 = vmatmul.mubr.msk.f32.gmra.mrb[54].mxu0 %vm333_vm1, %v22636_v8  ;;  %v24833_v8 = vld [vmem:[#allocation20_spill] sm:$0xff] }
 0x712   : > { %18543 = vmatprep.mubr.msk.f32.mxu0 %vm333_vm1, %v22642_v51 }
 0x715   : > { %18544 = vmatmul.mubr.msk.f32.gmra.mrb[56].mxu0 %vm333_vm1, %v24818_v53 }
 0x716   : > { %18546 = vmatprep.mubr.msk.f32.mxu0 %vm333_vm1, %v24819_v56 }
 0x719   : > { %18547 = vmatmul.mubr.msk.f32.gmra.mrb[58].mxu0 %vm333_vm1, %v24820_v13 }
 0x71a   : > { %18549 = vmatprep.mubr.msk.f32.mxu0 %vm333_vm1, %v24821_v17 }
 0x71d   : > { %18550 = vmatmul.mubr.msk.f32.gmra.mrb[60].mxu0 %vm333_vm1, %v24822_v9 }
 0x71e   : > { %18552 = vmatprep.mubr.msk.f32.mxu0 %vm333_vm1, %v23099_v16 }
 0x721   : > { %18553 = vmatmul.mubr.msk.f32.gmra.mrb[62].mxu0 %vm333_vm1, %v23103_v0 }
 0x722   : > { %18563 = vmatprep.mubr.msk.f32.mxu0 %vm333_vm1, %v22822_v42  ;;  %v24834_v42 = vld [vmem:[#allocation21_spill] sm:$0xff] }
 0x725   : > { %18564 = vmatmul.mubr.msk.f32.vlgmr.msra.gmra.mrb[32].mxu0 %vm333_vm1, %v22829_v57  ;;  %v24835_v57 = vld [vmem:[#allocation23_spill] sm:$0xff] }
 0x726   : > { %19406 = vmatpush3.bf16.msra.mxu0 %v19403_v4  ;;  %18566 = vmatprep.mubr.msk.f32.mxu0 %vm333_vm1, %v24823_v38  ;;  %v24842_v4 = vld [vmem:[#allocation22_spill] sm:$0xff] }
 0x727   : > { %19408 = vmatprep.subr.bf16.mxu0 %v19407_v46 }
 0x729   : > { %18567 = vmatmul.mubr.msk.f32.gmra.mrb[34].mxu0 %vm333_vm1, %v24824_v30 }
 0x72a   : > { %18569 = vmatprep.mubr.msk.f32.mxu0 %vm333_vm1, %v24825_v36  ;;  %19410 = vmatpush3.bf16.msra.mxu0 %v19407_v46  ;;  %v24845_v46 = vld [vmem:[#allocation32_spill] sm:$0xff] }
 0x72b   : > { %19412 = vmatprep.subr.bf16.mxu0 %v19411_v2 }
 0x72d   : > { %18570 = vmatmul.mubr.msk.f32.gmra.mrb[36].mxu0 %vm333_vm1, %v24826_v59 }
 0x72e   : > { %18572 = vmatprep.mubr.msk.f32.mxu0 %vm333_vm1, %v24827_v43 }
 0x731   : > { %18573 = vmatmul.mubr.msk.f32.gmra.mrb[38].mxu0 %vm333_vm1, %v24828_v52 }
 0x732   : > { %18575 = vmatprep.mubr.msk.f32.mxu0 %vm333_vm1, %v24829_v58 }
 0x735   : > { %18576 = vmatmul.mubr.msk.f32.gmra.mrb[40].mxu0 %vm333_vm1, %v24830_v60 }
 0x736   : > { %18578 = vmatprep.mubr.msk.f32.mxu0 %vm333_vm1, %v24831_v20 }
 0x739   : > { %18579 = vmatmul.mubr.msk.f32.gmra.mrb[42].mxu0 %vm333_vm1, %v24832_v63 }
 0x73a   : > { %18581 = vmatprep.mubr.msk.f32.mxu0 %vm333_vm1, %v24833_v8 }
 0x73d   : > { %18582 = vmatmul.mubr.msk.f32.gmra.mrb[44].mxu0 %vm333_vm1, %v24834_v42 }
 0x73e   : > { %18584 = vmatprep.mubr.msk.f32.mxu0 %vm333_vm1, %v24835_v57 }
 0x741   : > { %18585 = vmatmul.mubr.msk.f32.gmra.mrb[46].mxu0 %vm333_vm1, %v24836_v40 }
 0x742   : > { %18587 = vmatprep.mubr.msk.f32.mxu0 %vm333_vm1, %v24837_v49 }
 0x745   : > { %18588 = vmatmul.mubr.msk.f32.gmra.mrb[48].mxu0 %vm333_vm1, %v24838_v35 }
 0x746   : > { %18590 = vmatprep.mubr.msk.f32.mxu0 %vm333_vm1, %v24839_v33 }
 0x749   : > { %18591 = vmatmul.mubr.msk.f32.gmra.mrb[50].mxu0 %vm333_vm1, %v24840_v5  ;;  %v24848_v5 = vld [vmem:[#allocation35_spill] sm:$0xff] }
 0x74a   : > { %18593 = vmatprep.mubr.msk.f32.mxu0 %vm333_vm1, %v24841_v14  ;;  %v24849_v14 = vld [vmem:[#allocation3_spill] sm:$0xff] }
 0x74d   : > { %18594 = vmatmul.mubr.msk.f32.gmra.mrb[52].mxu0 %vm333_vm1, %v24842_v4  ;;  %v24850_v4 = vld [vmem:[#allocation4_spill] sm:$0xff] }
 0x74e   : > { %18596 = vmatprep.mubr.msk.f32.mxu0 %vm333_vm1, %v24843_v6  ;;  %v23179_v6 = vld [vmem:[#allocation2 + $0x209] sm:$0xff] }
 0x74f   : > { %24851 = vst [vmem:[#allocation5_spill] sm:$0xff] %v23179_v6 }
 0x751   : > { %18597 = vmatmul.mubr.msk.f32.gmra.mrb[54].mxu0 %vm333_vm1, %v24844_v3 }
 0x752   : > { %18599 = vmatprep.mubr.msk.f32.mxu0 %vm333_vm1, %v24845_v46  ;;  %v23183_v46 = vld [vmem:[#allocation2 + $0x211] sm:$0xff] }
 0x753   : > { %24852 = vst [vmem:[#allocation6_spill] sm:$0xff] %v23183_v46 }
 0x755   : > { %18600 = vmatmul.mubr.msk.f32.gmra.mrb[56].mxu0 %vm333_vm1, %v24846_v21 }
 0x756   : > { %18602 = vmatprep.mubr.msk.f32.mxu0 %vm333_vm1, %v24847_v44  ;;  %v15656_v44 = vld [vmem:[%s24379_s5 + $0xf0] sm:$0xff] }
 0x759   : > { %18603 = vmatmul.mubr.msk.f32.gmra.mrb[58].mxu0 %vm333_vm1, %v24848_v5  ;;  %v15657_v5 = vld [vmem:[%s24379_s5 + $0xf8] sm:$0xff] }
 0x75a   : > { %18605 = vmatprep.mubr.msk.f32.mxu0 %vm333_vm1, %v24849_v14  ;;  %v15691_v14 = vld [vmem:[%s24379_s5 + $0x108] sm:$0xff] }
 0x75d   : > { %18606 = vmatmul.mubr.msk.f32.gmra.mrb[60].mxu0 %vm333_vm1, %v24850_v4  ;;  %v19415_v4 = vpack.c.bf16 %v15657_v5, %v15656_v44  ;;  %v10229_v5 = vld [vmem:[#allocation2 + $0x188] sm:$0xff] }
 0x75e   : > { %18608 = vmatprep.mubr.msk.f32.mxu0 %vm333_vm1, %v23179_v6  ;;  %v15690_v6 = vld [vmem:[%s24379_s5 + $0x100] sm:$0xff] }
 0x761   : > { %18609 = vmatmul.mubr.msk.f32.gmra.mrb[62].mxu0 %vm333_vm1, %v23183_v46  ;;  %v19419_v46 = vpack.c.bf16 %v15691_v14, %v15690_v6  ;;  %v10230_v14 = vld [vmem:[#allocation2 + $0x190] sm:$0xff]  ;;  %v23407_v6 = vld [vmem:[%s24380_s6] ss:$0 sm:$0xff] }
 0x762   : > { %18619 = vmatprep.mubr.msk.f32.mxu0 %vm333_vm1, %v22695_v27  ;;  %v9849_v27 = vld [vmem:[#allocation2 + $0x227] sm:$0xff] }
 0x765   : > { %18620 = vmatmul.mubr.msk.f32.vlgmr.msra.gmra.mrb[32].mxu0 %vm333_vm1, %v22700_v11  ;;  %v9850_v11 = vld [vmem:[#allocation2 + $0x22f] sm:$0xff] }
 0x766   : > { %19414 = vmatpush3.bf16.msra.mxu0 %v19411_v2  ;;  %18622 = vmatprep.mubr.msk.f32.mxu0 %vm333_vm1, %v22704_v7  ;;  %v10209_v7 = vld [vmem:[#allocation2 + $0x48] sm:$0xff]  ;;  %v10228_v2 = vld [vmem:[#allocation2 + $0x170] sm:$0xff] }
 0x767   : > { %19416 = vmatprep.subr.bf16.mxu0 %v19415_v4 }
 0x769   : > { %18623 = vmatmul.mubr.msk.f32.gmra.mrb[34].mxu0 %vm333_vm1, %v22708_v25  ;;  %v15692_v25 = vld [vmem:[%s24379_s5 + $0x110] sm:$0xff] }
 0x76a   : > { %18625 = vmatprep.mubr.msk.f32.mxu0 %vm333_vm1, %v22712_v18  ;;  %19418 = vmatpush3.bf16.msra.mxu0 %v19415_v4  ;;  %v15693_v18 = vld [vmem:[%s24379_s5 + $0x118] sm:$0xff]  ;;  %v10239_v4 = vld [vmem:[#allocation2 + $0x228] sm:$0xff] }
 0x76b   : > { %19420 = vmatprep.subr.bf16.mxu0 %v19419_v46 }
 0x76d   : > { %18626 = vmatmul.mubr.msk.f32.gmra.mrb[36].mxu0 %vm333_vm1, %v22716_v24  ;;  %v15727_v24 = vld [vmem:[%s24381_s7 + $0x20] sm:$0xff] }
 0x76e   : > { %18628 = vmatprep.mubr.msk.f32.mxu0 %vm333_vm1, %v22720_v26  ;;  %v15728_v26 = vld [vmem:[%s24381_s7 + $0x28] sm:$0xff] }
 0x771   : > { %18629 = vmatmul.mubr.msk.f32.gmra.mrb[38].mxu0 %vm333_vm1, %v22724_v41  ;;  %v15729_v41 = vld [vmem:[%s24381_s7 + $0x30] sm:$0xff] }
 0x772   : > { %18631 = vmatprep.mubr.msk.f32.mxu0 %vm333_vm1, %v22728_v62  ;;  %v19427_v62 = vpack.c.bf16 %v15728_v26, %v15727_v24 }
 0x774   : > { %19428 = vmatprep.subr.bf16.mxu1 %v19427_v62 }
 0x775   : > { %18632 = vmatmul.mubr.msk.f32.gmra.mrb[40].mxu0 %vm333_vm1, %v22732_v12  ;;  %v15730_v12 = vld [vmem:[%s24381_s7 + $0x38] sm:$0xff]  ;;  %19430 = vmatpush3.bf16.msra.mxu1 %v19427_v62 }
 0x776   : > { %18634 = vmatprep.mubr.msk.f32.mxu0 %vm333_vm1, %v22736_v22  ;;  %v19423_v22 = vpack.c.bf16 %v15693_v18, %v15692_v25 }
 0x779   : > { %18635 = vmatmul.mubr.msk.f32.gmra.mrb[42].mxu0 %vm333_vm1, %v22740_v37  ;;  %v19431_v37 = vpack.c.bf16 %v15730_v12, %v15729_v41 }
 0x77a   : > { %18637 = vmatprep.mubr.msk.f32.mxu0 %vm333_vm1, %v22744_v61  ;;  %v10210_v61 = vld [vmem:[#allocation2 + $0x50] sm:$0xff] }
 0x77b   : > { %19432 = vmatprep.subr.bf16.mxu1 %v19431_v37 }
 0x77c   : > { %19434 = vmatpush3.bf16.msra.mxu1 %v19431_v37 }
 0x77d   : > { %18638 = vmatmul.mubr.msk.f32.gmra.mrb[44].mxu0 %vm333_vm1, %v22748_v28  ;;  %v10211_v28 = vld [vmem:[#allocation2 + $0x68] sm:$0xff] }
 0x77e   : > { %18640 = vmatprep.mubr.msk.f32.mxu0 %vm333_vm1, %v22752_v48  ;;  %v10212_v48 = vld [vmem:[#allocation2 + $0x70] sm:$0xff] }
 0x781   : > { %18641 = vmatmul.mubr.msk.f32.gmra.mrb[46].mxu0 %vm333_vm1, %v22756_v19  ;;  %v10213_v19 = vld [vmem:[#allocation2 + $0x88] sm:$0xff] }
 0x782   : > { %18643 = vmatprep.mubr.msk.f32.mxu0 %vm333_vm1, %v22760_v15  ;;  %v10214_v15 = vld [vmem:[#allocation2 + $0x90] sm:$0xff] }
 0x785   : > { %18644 = vmatmul.mubr.msk.f32.gmra.mrb[48].mxu0 %vm333_vm1, %v22764_v34  ;;  %v10215_v34 = vld [vmem:[#allocation2 + $0xa8] sm:$0xff] }
 0x786   : > { %18646 = vmatprep.mubr.msk.f32.mxu0 %vm333_vm1, %v22768_v50  ;;  %v10216_v50 = vld [vmem:[#allocation2 + $0xb0] sm:$0xff] }
 0x789   : > { %18647 = vmatmul.mubr.msk.f32.gmra.mrb[50].mxu0 %vm333_vm1, %v22772_v54  ;;  %v10217_v54 = vld [vmem:[#allocation2 + $0xc8] sm:$0xff] }
 0x78a   : > { %18649 = vmatprep.mubr.msk.f32.mxu0 %vm333_vm1, %v22776_v31  ;;  %v10218_v31 = vld [vmem:[#allocation2 + $0xd0] sm:$0xff] }
 0x78d   : > { %18650 = vmatmul.mubr.msk.f32.gmra.mrb[52].mxu0 %vm333_vm1, %v22780_v32  ;;  %v10219_v32 = vld [vmem:[#allocation2 + $0xe8] sm:$0xff] }
 0x78e   : > { %18652 = vmatprep.mubr.msk.f32.mxu0 %vm333_vm1, %v22784_v39  ;;  %v10220_v39 = vld [vmem:[#allocation2 + $0xf0] sm:$0xff] }
 0x791   : > { %18653 = vmatmul.mubr.msk.f32.gmra.mrb[54].mxu0 %vm333_vm1, %v22788_v1  ;;  %v10221_v1 = vld [vmem:[#allocation2 + $0x108] sm:$0xff] }
 0x792   : > { %18655 = vmatprep.mubr.msk.f32.mxu0 %vm333_vm1, %v22792_v29  ;;  %v10222_v29 = vld [vmem:[#allocation2 + $0x110] sm:$0xff] }
 0x795   : > { %18656 = vmatmul.mubr.msk.f32.gmra.mrb[56].mxu0 %vm333_vm1, %v22796_v45  ;;  %v10223_v45 = vld [vmem:[#allocation2 + $0x128] sm:$0xff] }
 0x796   : > { %18658 = vmatprep.mubr.msk.f32.mxu0 %vm333_vm1, %v22800_v47  ;;  %v10224_v47 = vld [vmem:[#allocation2 + $0x130] sm:$0xff] }
 0x799   : > { %18659 = vmatmul.mubr.msk.f32.gmra.mrb[58].mxu0 %vm333_vm1, %v22804_v55  ;;  %v10225_v55 = vld [vmem:[#allocation2 + $0x148] sm:$0xff] }
 0x79a   : > { %18661 = vmatprep.mubr.msk.f32.mxu0 %vm333_vm1, %v23019_v10  ;;  %v10226_v10 = vld [vmem:[#allocation2 + $0x150] sm:$0xff] }
 0x79d   : > { %18662 = vmatmul.mubr.msk.f32.gmra.mrb[60].mxu0 %vm333_vm1, %v23023_v23  ;;  %v10227_v23 = vld [vmem:[#allocation2 + $0x168] sm:$0xff] }
 0x79e   : > { %18664 = vmatprep.mubr.msk.f32.mxu0 %vm333_vm1, %v9849_v27 }
 0x7a1   : > { %18665 = vmatmul.mubr.msk.f32.gmra.mrb[62].mxu0 %vm333_vm1, %v9850_v11 }
 0x7a2   : > { %18675 = vmatprep.mubr.msk.f32.mxu0 %vm333_vm1, %v10209_v7 }
 0x7a5   : > { %18676 = vmatmul.mubr.msk.f32.vlgmr.msra.gmra.mrb[32].mxu0 %vm333_vm1, %v10210_v61 }
 0x7a6   : > { %19422 = vmatpush3.bf16.msra.mxu0 %v19419_v46  ;;  %18678 = vmatprep.mubr.msk.f32.mxu0 %vm333_vm1, %v10211_v28 }
 0x7a7   : > { %19424 = vmatprep.subr.bf16.mxu0 %v19423_v22 }
 0x7a9   : > { %18679 = vmatmul.mubr.msk.f32.gmra.mrb[34].mxu0 %vm333_vm1, %v10212_v48 }
 0x7aa   : > { %18681 = vmatprep.mubr.msk.f32.mxu0 %vm333_vm1, %v10213_v19  ;;  %19426 = vmatpush3.bf16.msra.mxu0 %v19423_v22 }
 0x7ad   : > { %18682 = vmatmul.mubr.msk.f32.gmra.mrb[36].mxu0 %vm333_vm1, %v10214_v15 }
 0x7ae   : > { %18684 = vmatprep.mubr.msk.f32.mxu0 %vm333_vm1, %v10215_v34 }
 0x7b1   : > { %18685 = vmatmul.mubr.msk.f32.gmra.mrb[38].mxu0 %vm333_vm1, %v10216_v50 }
 0x7b2   : > { %18687 = vmatprep.mubr.msk.f32.mxu0 %vm333_vm1, %v10217_v54 }
 0x7b5   : > { %18688 = vmatmul.mubr.msk.f32.gmra.mrb[40].mxu0 %vm333_vm1, %v10218_v31 }
 0x7b6   : > { %18690 = vmatprep.mubr.msk.f32.mxu0 %vm333_vm1, %v10219_v32 }
 0x7b9   : > { %18691 = vmatmul.mubr.msk.f32.gmra.mrb[42].mxu0 %vm333_vm1, %v10220_v39 }
 0x7ba   : > { %18693 = vmatprep.mubr.msk.f32.mxu0 %vm333_vm1, %v10221_v1 }
 0x7bd   : > { %18694 = vmatmul.mubr.msk.f32.gmra.mrb[44].mxu0 %vm333_vm1, %v10222_v29 }
 0x7be   : > { %18696 = vmatprep.mubr.msk.f32.mxu0 %vm333_vm1, %v10223_v45 }
 0x7c1   : > { %18697 = vmatmul.mubr.msk.f32.gmra.mrb[46].mxu0 %vm333_vm1, %v10224_v47 }
 0x7c2   : > { %18699 = vmatprep.mubr.msk.f32.mxu0 %vm333_vm1, %v10225_v55 }
 0x7c5   : > { %18700 = vmatmul.mubr.msk.f32.gmra.mrb[48].mxu0 %vm333_vm1, %v10226_v10 }
 0x7c6   : > { %18702 = vmatprep.mubr.msk.f32.mxu0 %vm333_vm1, %v10227_v23 }
 0x7c9   : > { %18703 = vmatmul.mubr.msk.f32.gmra.mrb[50].mxu0 %vm333_vm1, %v10228_v2 }
 0x7ca   : > { %18705 = vmatprep.mubr.msk.f32.mxu0 %vm333_vm1, %v10229_v5 }
 0x7cd   : > { %18706 = vmatmul.mubr.msk.f32.gmra.mrb[52].mxu0 %vm333_vm1, %v10230_v14 }
 0x7ce   : > { %18708 = vmatprep.mubr.msk.f32.mxu0 %vm333_vm1, %v22642_v51  ;;  %v10240_v51 = vld [vmem:[#allocation2 + $0x230] sm:$0xff] }
 0x7d1   : > { %18709 = vmatmul.mubr.msk.f32.gmra.mrb[54].mxu0 %vm333_vm1, %v24818_v53  ;;  %v24853_v53 = vld [vmem:[#allocation28_spill] sm:$0xff] }
 0x7d2   : > { %18711 = vmatprep.mubr.msk.f32.mxu0 %vm333_vm1, %v24819_v56  ;;  %v24854_v56 = vld [vmem:[#allocation30_spill] sm:$0xff] }
 0x7d5   : > { %18712 = vmatmul.mubr.msk.f32.gmra.mrb[56].mxu0 %vm333_vm1, %v24820_v13  ;;  %v24855_v13 = vld [vmem:[#allocation22_spill] sm:$0xff] }
 0x7d6   : > { %18714 = vmatprep.mubr.msk.f32.mxu0 %vm333_vm1, %v24821_v17  ;;  %v24856_v17 = vld [vmem:[#allocation24_spill] sm:$0xff] }
 0x7d9   : > { %18715 = vmatmul.mubr.msk.f32.gmra.mrb[58].mxu0 %vm333_vm1, %v24822_v9  ;;  %v24857_v9 = vld [vmem:[#allocation32_spill] sm:$0xff] }
 0x7da   : > { %18717 = vmatprep.mubr.msk.f32.mxu0 %vm333_vm1, %v23099_v16  ;;  %v24858_v16 = vld [vmem:[#allocation34_spill] sm:$0xff] }
 0x7dd   : > { %18718 = vmatmul.mubr.msk.f32.gmra.mrb[60].mxu0 %vm333_vm1, %v23103_v0  ;;  %v24859_v0 = vld [vmem:[#allocation35_spill] sm:$0xff] }
 0x7de   : > { %18720 = vmatprep.mubr.msk.f32.mxu0 %vm333_vm1, %v10239_v4 }
 0x7e1   : > { %18721 = vmatmul.mubr.msk.f32.gmra.mrb[62].mxu0 %vm333_vm1, %v10240_v51 }
 0x7e2   : > { %18731 = vmatprep.mubr.msk.f32.mxu0 %vm333_vm1, %v24823_v38  ;;  %v24860_v38 = vld [vmem:[#allocation3_spill] sm:$0xff] }
 0x7e5   : > { %18732 = vmatmul.mubr.msk.f32.vlgmr.msra.gmra.mrb[32].mxu0 %vm333_vm1, %v24824_v30  ;;  %v24861_v30 = vld [vmem:[#allocation4_spill] sm:$0xff] }
 0x7e6   : > { %18734 = vmatprep.mubr.msk.f32.mxu0 %vm333_vm1, %v24825_v36  ;;  %v24862_v36 = vld [vmem:[#allocation5_spill] sm:$0xff] }
 0x7e9   : > { %18735 = vmatmul.mubr.msk.f32.gmra.mrb[34].mxu0 %vm333_vm1, %v24826_v59  ;;  %v10629_v59 = vld [vmem:[#allocation2 + $0x229] sm:$0xff] }
 0x7ea   : > { %18737 = vmatprep.mubr.msk.f32.mxu0 %vm333_vm1, %v24827_v43  ;;  %v24863_v43 = vld [vmem:[#allocation6_spill] sm:$0xff] }
 0x7ed   : > { %18738 = vmatmul.mubr.msk.f32.gmra.mrb[36].mxu0 %vm333_vm1, %v24828_v52  ;;  %v10630_v52 = vld [vmem:[#allocation2 + $0x231] sm:$0xff] }
 0x7ee   : > { %18740 = vmatprep.mubr.msk.f32.mxu0 %vm333_vm1, %v24829_v58  ;;  %v11128_v58 = vld [vmem:[#allocation2 + $0x8] sm:$0xff] }
 0x7ef   : > { %18787 = vmatprep.mubr.msk.f32.mxu1 %vm333_vm1, %v11128_v58 }
 0x7f1   : > { %18741 = vmatmul.mubr.msk.f32.gmra.mrb[38].mxu0 %vm333_vm1, %v24830_v60  ;;  %v11129_v60 = vld [vmem:[#allocation2 + $0x10] sm:$0xff] }
 0x7f2   : > { %18743 = vmatprep.mubr.msk.f32.mxu0 %vm333_vm1, %v24831_v20  ;;  %v11124_v20 = vld [vmem:[%s24381_s7] sm:$0xff]  ;;  %18788 = vmatmul.mubr.msk.f32.vlgmr.msra.gmra.mrb[32].mxu1 %vm333_vm1, %v11129_v60 }
 0x7f5   : > { %18744 = vmatmul.mubr.msk.f32.gmra.mrb[40].mxu0 %vm333_vm1, %v24832_v63  ;;  %v11125_v63 = vld [vmem:[%s24381_s7 + $0x8] sm:$0xff] }
 0x7f6   : > { %18746 = vmatprep.mubr.msk.f32.mxu0 %vm333_vm1, %v24833_v8  ;;  %v19435_v8 = vpack.c.bf16 %v11125_v63, %v11124_v20 }
 0x7f8   : > { %19436 = vmatprep.subr.bf16.mxu1 %v19435_v8 }
 0x7f9   : > { %18747 = vmatmul.mubr.msk.f32.gmra.mrb[42].mxu0 %vm333_vm1, %v24834_v42  ;;  %19438 = vmatpush3.bf16.msra.mxu1 %v19435_v8  ;;  %v11126_v42 = vld [vmem:[%s24381_s7 + $0x10] sm:$0xff] }
 0x7fa   : > { %18749 = vmatprep.mubr.msk.f32.mxu0 %vm333_vm1, %v24835_v57  ;;  %v11127_v57 = vld [vmem:[%s24381_s7 + $0x18] sm:$0xff] }
 0x7fd   : > { %18750 = vmatmul.mubr.msk.f32.gmra.mrb[44].mxu0 %vm333_vm1, %v24836_v40  ;;  %v19439_v40 = vpack.c.bf16 %v11127_v57, %v11126_v42 }
 0x7fe   : > { %18752 = vmatprep.mubr.msk.f32.mxu0 %vm333_vm1, %v24837_v49  ;;  %v15795_v49 = vld [vmem:[%s24381_s7 + $0x40] sm:$0xff] }
 0x7ff   : > { %19440 = vmatprep.subr.bf16.mxu1 %v19439_v40 }
 0x800   : > { %19442 = vmatpush3.bf16.msra.mxu1 %v19439_v40 }
 0x801   : > { %18753 = vmatmul.mubr.msk.f32.gmra.mrb[46].mxu0 %vm333_vm1, %v24838_v35  ;;  %v15796_v35 = vld [vmem:[%s24381_s7 + $0x48] sm:$0xff] }
 0x802   : > { %18755 = vmatprep.mubr.msk.f32.mxu0 %vm333_vm1, %v24839_v33  ;;  %v23401_v33 = vpack.c.bf16 %v15796_v35, %v15795_v49 }
 0x804   : > { %19444 = vmatprep.subr.bf16.mxu1 %v23401_v33 }
 0x805   : > { %18756 = vmatmul.mubr.msk.f32.gmra.mrb[48].mxu0 %vm333_vm1, %v24853_v53 }
 0x806   : > { %18758 = vmatprep.mubr.msk.f32.mxu0 %vm333_vm1, %v24854_v56 }
 0x809   : > { %18759 = vmatmul.mubr.msk.f32.gmra.mrb[50].mxu0 %vm333_vm1, %v24855_v13 }
 0x80a   : > { %18761 = vmatprep.mubr.msk.f32.mxu0 %vm333_vm1, %v24856_v17 }
 0x80d   : > { %18762 = vmatmul.mubr.msk.f32.gmra.mrb[52].mxu0 %vm333_vm1, %v24844_v3 }
 0x80e   : > { %18764 = vmatprep.mubr.msk.f32.mxu0 %vm333_vm1, %v24857_v9 }
 0x811   : > { %18765 = vmatmul.mubr.msk.f32.gmra.mrb[54].mxu0 %vm333_vm1, %v24846_v21 }
 0x812   : > { %18767 = vmatprep.mubr.msk.f32.mxu0 %vm333_vm1, %v24858_v16 }
 0x815   : > { %18768 = vmatmul.mubr.msk.f32.gmra.mrb[56].mxu0 %vm333_vm1, %v24859_v0 }
 0x816   : > { %18770 = vmatprep.mubr.msk.f32.mxu0 %vm333_vm1, %v24860_v38 }
 0x819   : > { %18771 = vmatmul.mubr.msk.f32.gmra.mrb[58].mxu0 %vm333_vm1, %v24861_v30 }
 0x81a   : > { %18773 = vmatprep.mubr.msk.f32.mxu0 %vm333_vm1, %v24862_v36 }
 0x81d   : > { %18774 = vmatmul.mubr.msk.f32.gmra.mrb[60].mxu0 %vm333_vm1, %v24863_v43 }
 0x81e   : > { %18776 = vmatprep.mubr.msk.f32.mxu0 %vm333_vm1, %v10629_v59 }
 0x821   : > { %18777 = vmatmul.mubr.msk.f32.gmra.mrb[62].mxu0 %vm333_vm1, %v10630_v52 }
 0x8b8   : > { %v18733_v3 = vpop.f32.mrb[32].mxu0 }
 0x8b9   : > { %v10997_v46 = vadd.f32 %v18733_v3, %v23407_v6  ;;  %v10798_v21 = vpop.f32.mrb[33].mxu0 }
 0x8ba   : > { %v10996_v44 = vadd.f32 %v23407_v6, %v10798_v21 }
 0x8bb   : > { %v11029_v27 = vmax.f32 %v10997_v46, 0.0 }
 0x8bc   : > { %v11028_v11 = vmax.f32 %v10996_v44, 0.0  ;;  %v18736_v7 = vpop.f32.mrb[34].mxu0 }
 0x8bd   : > { %11061 = vst.msk [vmem:[#allocation2 + $0x30] sm:$0xff] %vm333_vm1, %v11029_v27  ;;  %v10999_v25 = vadd.f32 %v18736_v7, %v23407_v6  ;;  %v10808_v18 = vpop.f32.mrb[35].mxu0 }
 0x8be   : > { %11060 = vst.msk [vmem:[#allocation2 + $0x28] sm:$0xff] %vm333_vm1, %v11028_v11  ;;  %v10998_v24 = vadd.f32 %v23407_v6, %v10808_v18 }
 0x8bf   : > { %v11031_v26 = vmax.f32 %v10999_v25, 0.0 }
 0x8c0   : > { %v11030_v41 = vmax.f32 %v10998_v24, 0.0  ;;  %v18739_v62 = vpop.f32.mrb[36].mxu0 }
 0x8c1   : > { %11063 = vst.msk [vmem:[#allocation2 + $0x50] sm:$0xff] %vm333_vm1, %v11031_v26  ;;  %v11001_v12 = vadd.f32 %v18739_v62, %v23407_v6  ;;  %v10818_v22 = vpop.f32.mrb[37].mxu0 }
 0x8c2   : > { %11062 = vst.msk [vmem:[#allocation2 + $0x48] sm:$0xff] %vm333_vm1, %v11030_v41  ;;  %v11000_v37 = vadd.f32 %v23407_v6, %v10818_v22 }
 0x8c3   : > { %v11033_v61 = vmax.f32 %v11001_v12, 0.0 }
 0x8c4   : > { %v11032_v28 = vmax.f32 %v11000_v37, 0.0  ;;  %v18742_v48 = vpop.f32.mrb[38].mxu0  ;;  %v23427_v54 = vld [vmem:[#allocation2 + $0x30] sm:$0xff] }
 0x8c5   : > { %11065 = vst.msk [vmem:[#allocation2 + $0x70] sm:$0xff] %vm333_vm1, %v11033_v61  ;;  %v11003_v19 = vadd.f32 %v18742_v48, %v23407_v6  ;;  %v10828_v15 = vpop.f32.mrb[39].mxu0  ;;  %v23421_v34 = vld [vmem:[#allocation2 + $0x28] sm:$0xff] }
 0x8c6   : > { %11064 = vst.msk [vmem:[#allocation2 + $0x68] sm:$0xff] %vm333_vm1, %v11032_v28  ;;  %v11002_v50 = vadd.f32 %v23407_v6, %v10828_v15  ;;  %18790 = vmatprep.mubr.msk.f32.mxu1 %vm333_vm1, %v23421_v34 }
 0x8c7   : > { %v11035_v31 = vmax.f32 %v11003_v19, 0.0  ;;  %18791 = vmatmul.mubr.msk.f32.gmra.mrb[34].mxu1 %vm333_vm1, %v23427_v54 }
 0x8c8   : > { %v11034_v32 = vmax.f32 %v11002_v50, 0.0  ;;  %v18745_v39 = vpop.f32.mrb[40].mxu0  ;;  %v23439_v55 = vld [vmem:[#allocation2 + $0x50] sm:$0xff] }
 0x8c9   : > { %11067 = vst.msk [vmem:[#allocation2 + $0x90] sm:$0xff] %vm333_vm1, %v11035_v31  ;;  %v11005_v1 = vadd.f32 %v18745_v39, %v23407_v6  ;;  %v10838_v29 = vpop.f32.mrb[41].mxu0  ;;  %v23433_v45 = vld [vmem:[#allocation2 + $0x48] sm:$0xff] }
 0x8ca   : > { %11066 = vst.msk [vmem:[#allocation2 + $0x88] sm:$0xff] %vm333_vm1, %v11034_v32  ;;  %v11004_v47 = vadd.f32 %v23407_v6, %v10838_v29  ;;  %18793 = vmatprep.mubr.msk.f32.mxu1 %vm333_vm1, %v23433_v45 }
 0x8cb   : > { %v11037_v10 = vmax.f32 %v11005_v1, 0.0  ;;  %18794 = vmatmul.mubr.msk.f32.gmra.mrb[36].mxu1 %vm333_vm1, %v23439_v55 }
 0x8cc   : > { %v11036_v23 = vmax.f32 %v11004_v47, 0.0  ;;  %v18748_v2 = vpop.f32.mrb[42].mxu0  ;;  %v23451_v53 = vld [vmem:[#allocation2 + $0x70] sm:$0xff] }
 0x8cd   : > { %11069 = vst.msk [vmem:[#allocation2 + $0xb0] sm:$0xff] %vm333_vm1, %v11037_v10  ;;  %v11007_v5 = vadd.f32 %v18748_v2, %v23407_v6  ;;  %v10848_v14 = vpop.f32.mrb[43].mxu0  ;;  %v23445_v4 = vld [vmem:[#allocation2 + $0x68] sm:$0xff] }
 0x8ce   : > { %11068 = vst.msk [vmem:[#allocation2 + $0xa8] sm:$0xff] %vm333_vm1, %v11036_v23  ;;  %v11006_v51 = vadd.f32 %v23407_v6, %v10848_v14  ;;  %18796 = vmatprep.mubr.msk.f32.mxu1 %vm333_vm1, %v23445_v4 }
 0x8cf   : > { %v11039_v56 = vmax.f32 %v11007_v5, 0.0  ;;  %18797 = vmatmul.mubr.msk.f32.gmra.mrb[38].mxu1 %vm333_vm1, %v23451_v53 }
 0x8d0   : > { %v11038_v13 = vmax.f32 %v11006_v51, 0.0  ;;  %v18751_v17 = vpop.f32.mrb[44].mxu0  ;;  %v23463_v30 = vld [vmem:[#allocation2 + $0x90] sm:$0xff] }
 0x8d1   : > { %11071 = vst.msk [vmem:[#allocation2 + $0xd0] sm:$0xff] %vm333_vm1, %v11039_v56  ;;  %v11009_v9 = vadd.f32 %v18751_v17, %v23407_v6  ;;  %v10858_v16 = vpop.f32.mrb[45].mxu0  ;;  %v23457_v0 = vld [vmem:[#allocation2 + $0x88] sm:$0xff] }
 0x8d2   : > { %11070 = vst.msk [vmem:[#allocation2 + $0xc8] sm:$0xff] %vm333_vm1, %v11038_v13  ;;  %v11008_v38 = vadd.f32 %v23407_v6, %v10858_v16  ;;  %18799 = vmatprep.mubr.msk.f32.mxu1 %vm333_vm1, %v23457_v0 }
 0x8d3   : > { %v11041_v36 = vmax.f32 %v11009_v9, 0.0  ;;  %18800 = vmatmul.mubr.msk.f32.gmra.mrb[40].mxu1 %vm333_vm1, %v23463_v30 }
 0x8d4   : > { %v11040_v59 = vmax.f32 %v11008_v38, 0.0  ;;  %v18754_v43 = vpop.f32.mrb[46].mxu0  ;;  %v23475_v63 = vld [vmem:[#allocation2 + $0xb0] sm:$0xff] }
 0x8d5   : > { %11073 = vst.msk [vmem:[#allocation2 + $0xf0] sm:$0xff] %vm333_vm1, %v11041_v36  ;;  %v11011_v52 = vadd.f32 %v18754_v43, %v23407_v6  ;;  %v10868_v58 = vpop.f32.mrb[47].mxu0  ;;  %v23469_v60 = vld [vmem:[#allocation2 + $0xa8] sm:$0xff] }
 0x8d6   : > { %11072 = vst.msk [vmem:[#allocation2 + $0xe8] sm:$0xff] %vm333_vm1, %v11040_v59  ;;  %v11010_v20 = vadd.f32 %v23407_v6, %v10868_v58  ;;  %18802 = vmatprep.mubr.msk.f32.mxu1 %vm333_vm1, %v23469_v60 }
 0x8d7   : > { %v11043_v8 = vmax.f32 %v11011_v52, 0.0  ;;  %18803 = vmatmul.mubr.msk.f32.gmra.mrb[42].mxu1 %vm333_vm1, %v23475_v63 }
 0x8d8   : > { %v11042_v42 = vmax.f32 %v11010_v20, 0.0  ;;  %v18757_v57 = vpop.f32.mrb[48].mxu0  ;;  %v23487_v46 = vld [vmem:[#allocation2 + $0xd0] sm:$0xff] }
 0x8d9   : > { %11075 = vst.msk [vmem:[#allocation2 + $0x110] sm:$0xff] %vm333_vm1, %v11043_v8  ;;  %v11013_v40 = vadd.f32 %v18757_v57, %v23407_v6  ;;  %v10878_v49 = vpop.f32.mrb[49].mxu0  ;;  %v23481_v35 = vld [vmem:[#allocation2 + $0xc8] sm:$0xff] }
 0x8da   : > { %11074 = vst.msk [vmem:[#allocation2 + $0x108] sm:$0xff] %vm333_vm1, %v11042_v42  ;;  %v11012_v3 = vadd.f32 %v23407_v6, %v10878_v49  ;;  %18805 = vmatprep.mubr.msk.f32.mxu1 %vm333_vm1, %v23481_v35 }
 0x8db   : > { %v11045_v21 = vmax.f32 %v11013_v40, 0.0  ;;  %18806 = vmatmul.mubr.msk.f32.gmra.mrb[44].mxu1 %vm333_vm1, %v23487_v46 }
 0x8dc   : > { %v11044_v44 = vmax.f32 %v11012_v3, 0.0  ;;  %v18760_v27 = vpop.f32.mrb[50].mxu0  ;;  %v23499_v24 = vld [vmem:[#allocation2 + $0xf0] sm:$0xff] }
 0x8dd   : > { %11077 = vst.msk [vmem:[#allocation2 + $0x130] sm:$0xff] %vm333_vm1, %v11045_v21  ;;  %v11015_v11 = vadd.f32 %v18760_v27, %v23407_v6  ;;  %v10888_v7 = vpop.f32.mrb[51].mxu0  ;;  %v23493_v25 = vld [vmem:[#allocation2 + $0xe8] sm:$0xff] }
 0x8de   : > { %11076 = vst.msk [vmem:[#allocation2 + $0x128] sm:$0xff] %vm333_vm1, %v11044_v44  ;;  %v11014_v18 = vadd.f32 %v23407_v6, %v10888_v7  ;;  %18808 = vmatprep.mubr.msk.f32.mxu1 %vm333_vm1, %v23493_v25 }
 0x8df   : > { %v11047_v26 = vmax.f32 %v11015_v11, 0.0  ;;  %18809 = vmatmul.mubr.msk.f32.gmra.mrb[46].mxu1 %vm333_vm1, %v23499_v24 }
 0x8e0   : > { %v11046_v41 = vmax.f32 %v11014_v18, 0.0  ;;  %v18763_v62 = vpop.f32.mrb[52].mxu0  ;;  %v23511_v28 = vld [vmem:[#allocation2 + $0x110] sm:$0xff] }
 0x8e1   : > { %11079 = vst.msk [vmem:[#allocation2 + $0x150] sm:$0xff] %vm333_vm1, %v11047_v26  ;;  %v11017_v12 = vadd.f32 %v18763_v62, %v23407_v6  ;;  %v10898_v22 = vpop.f32.mrb[53].mxu0  ;;  %v23505_v37 = vld [vmem:[#allocation2 + $0x108] sm:$0xff] }
 0x8e2   : > { %11078 = vst.msk [vmem:[#allocation2 + $0x148] sm:$0xff] %vm333_vm1, %v11046_v41  ;;  %v11016_v61 = vadd.f32 %v23407_v6, %v10898_v22  ;;  %18811 = vmatprep.mubr.msk.f32.mxu1 %vm333_vm1, %v23505_v37  ;;  %v11092_v22 = vld [vmem:[#allocation2 + $0x7] sm:$0xff] }
 0x8e3   : > { %v11049_v48 = vmax.f32 %v11017_v12, 0.0  ;;  %18812 = vmatmul.mubr.msk.f32.gmra.mrb[48].mxu1 %vm333_vm1, %v23511_v28 }
 0x8e4   : > { %v11048_v19 = vmax.f32 %v11016_v61, 0.0  ;;  %v18766_v15 = vpop.f32.mrb[54].mxu0  ;;  %v23523_v1 = vld [vmem:[#allocation2 + $0x130] sm:$0xff] }
 0x8e5   : > { %11081 = vst.msk [vmem:[#allocation2 + $0x170] sm:$0xff] %vm333_vm1, %v11049_v48  ;;  %v11019_v50 = vadd.f32 %v18766_v15, %v23407_v6  ;;  %v10908_v31 = vpop.f32.mrb[55].mxu0  ;;  %v23517_v32 = vld [vmem:[#allocation2 + $0x128] sm:$0xff]  ;;  %v15797_v48 = vld [vmem:[%s24381_s7 + $0x50] sm:$0xff] }
 0x8e6   : > { %11080 = vst.msk [vmem:[#allocation2 + $0x168] sm:$0xff] %vm333_vm1, %v11048_v19  ;;  %v11018_v39 = vadd.f32 %v23407_v6, %v10908_v31  ;;  %18814 = vmatprep.mubr.msk.f32.mxu1 %vm333_vm1, %v23517_v32  ;;  %v15798_v19 = vld [vmem:[%s24381_s7 + $0x58] sm:$0xff]  ;;  %v11093_v15 = vld [vmem:[#allocation2 + $0xf] sm:$0xff]  ;;  %v15831_v31 = vld [vmem:[%s24381_s7 + $0x60] sm:$0xff] }
 0x8e7   : > { %v11051_v29 = vmax.f32 %v11019_v50, 0.0  ;;  %18815 = vmatmul.mubr.msk.f32.gmra.mrb[50].mxu1 %vm333_vm1, %v23523_v1  ;;  %v19447_v50 = vpack.c.bf16 %v15798_v19, %v15797_v48 }
 0x8e8   : > { %v11050_v47 = vmax.f32 %v11018_v39, 0.0  ;;  %v18769_v10 = vpop.f32.mrb[56].mxu0  ;;  %v23535_v51 = vld [vmem:[#allocation2 + $0x150] sm:$0xff]  ;;  %v15832_v39 = vld [vmem:[%s24381_s7 + $0x68] sm:$0xff] }
 0x8e9   : > { %11083 = vst.msk [vmem:[#allocation2 + $0x190] sm:$0xff] %vm333_vm1, %v11051_v29  ;;  %v11021_v23 = vadd.f32 %v18769_v10, %v23407_v6  ;;  %v10918_v2 = vpop.f32.mrb[57].mxu0  ;;  %v23529_v5 = vld [vmem:[#allocation2 + $0x148] sm:$0xff] }
 0x8ea   : > { %11082 = vst.msk [vmem:[#allocation2 + $0x188] sm:$0xff] %vm333_vm1, %v11050_v47  ;;  %v11020_v14 = vadd.f32 %v23407_v6, %v10918_v2  ;;  %18817 = vmatprep.mubr.msk.f32.mxu1 %vm333_vm1, %v23529_v5  ;;  %v23607_v29 = vld [vmem:[#allocation2 + $0x27] sm:$0xff]  ;;  %v23612_v47 = vpack.c.bf16 %v15832_v39, %v15831_v31  ;;  %v23614_v10 = vld [vmem:[#allocation2 + $0x2f] sm:$0xff]  ;;  %v15834_v39 = vld [vmem:[%s24381_s7 + $0x78] sm:$0xff] }
 0x8eb   : > { %v11053_v56 = vmax.f32 %v11021_v23, 0.0  ;;  %18818 = vmatmul.mubr.msk.f32.gmra.mrb[52].mxu1 %vm333_vm1, %v23535_v51  ;;  %v23618_v23 = vld [vmem:[#allocation2 + $0x47] sm:$0xff]  ;;  %v15833_v31 = vld [vmem:[%s24381_s7 + $0x70] sm:$0xff] }
 0x8ec   : > { %v11052_v13 = vmax.f32 %v11020_v14, 0.0  ;;  %v18772_v17 = vpop.f32.mrb[58].mxu0  ;;  %v23547_v59 = vld [vmem:[#allocation2 + $0x170] sm:$0xff]  ;;  %v23627_v2 = vld [vmem:[#allocation2 + $0x67] sm:$0xff] }
 0x8ed   : > { %11085 = vst.msk [vmem:[#allocation2 + $0x1b0] sm:$0xff] %vm333_vm1, %v11053_v56  ;;  %v11023_v9 = vadd.f32 %v18772_v17, %v23407_v6  ;;  %v10928_v16 = vpop.f32.mrb[59].mxu0  ;;  %v23541_v38 = vld [vmem:[#allocation2 + $0x168] sm:$0xff] }
 0x8ee   : > { %11084 = vst.msk [vmem:[#allocation2 + $0x1a8] sm:$0xff] %vm333_vm1, %v11052_v13  ;;  %v11022_v36 = vadd.f32 %v23407_v6, %v10928_v16  ;;  %18820 = vmatprep.mubr.msk.f32.mxu1 %vm333_vm1, %v23541_v38  ;;  %v23631_v14 = vld [vmem:[#allocation2 + $0x6f] sm:$0xff]  ;;  %v23635_v56 = vld [vmem:[#allocation2 + $0x87] sm:$0xff] }
 0x8ef   : > { %v11055_v43 = vmax.f32 %v11023_v9, 0.0  ;;  %18821 = vmatmul.mubr.msk.f32.gmra.mrb[54].mxu1 %vm333_vm1, %v23547_v59  ;;  %v23639_v13 = vld [vmem:[#allocation2 + $0x8f] sm:$0xff]  ;;  %v23643_v17 = vld [vmem:[#allocation2 + $0xa7] sm:$0xff] }
 0x8f0   : > { %v11054_v52 = vmax.f32 %v11022_v36, 0.0  ;;  %v18775_v58 = vpop.f32.mrb[60].mxu0  ;;  %v23559_v40 = vld [vmem:[#allocation2 + $0x190] sm:$0xff]  ;;  %v23651_v16 = vld [vmem:[#allocation2 + $0xc7] sm:$0xff] }
 0x8f1   : > { %11087 = vst.msk [vmem:[#allocation2 + $0x1d0] sm:$0xff] %vm333_vm1, %v11055_v43  ;;  %v11025_v20 = vadd.f32 %v18775_v58, %v23407_v6  ;;  %v10938_v8 = vpop.f32.mrb[61].mxu0  ;;  %v23553_v42 = vld [vmem:[#allocation2 + $0x188] sm:$0xff] }
 0x8f2   : > { %11086 = vst.msk [vmem:[#allocation2 + $0x1c8] sm:$0xff] %vm333_vm1, %v11054_v52  ;;  %v11024_v57 = vadd.f32 %v23407_v6, %v10938_v8  ;;  %18823 = vmatprep.mubr.msk.f32.mxu1 %vm333_vm1, %v23553_v42  ;;  %v23647_v9 = vld [vmem:[#allocation2 + $0xaf] sm:$0xff]  ;;  %v23659_v43 = vld [vmem:[#allocation2 + $0xe7] sm:$0xff] }
 0x8f3   : > { %v11057_v49 = vmax.f32 %v11025_v20, 0.0  ;;  %18824 = vmatmul.mubr.msk.f32.gmra.mrb[56].mxu1 %vm333_vm1, %v23559_v40  ;;  %v23655_v36 = vld [vmem:[#allocation2 + $0xcf] sm:$0xff]  ;;  %v23667_v58 = vld [vmem:[#allocation2 + $0x107] sm:$0xff] }
 0x8f4   : > { %v11056_v3 = vmax.f32 %v11024_v57, 0.0  ;;  %v18778_v21 = vpop.f32.mrb[62].mxu0  ;;  %v23571_v18 = vld [vmem:[#allocation2 + $0x1b0] sm:$0xff]  ;;  %v23675_v8 = vld [vmem:[#allocation2 + $0x127] sm:$0xff] }
 0x8f5   : > { %11089 = vst.msk [vmem:[#allocation2 + $0x1f0] sm:$0xff] %vm333_vm1, %v11057_v49  ;;  %v11027_v44 = vadd.f32 %v18778_v21, %v23407_v6  ;;  %v10948_v27 = vpop.f32.mrb[63].mxu0  ;;  %v23565_v11 = vld [vmem:[#allocation2 + $0x1a8] sm:$0xff]  ;;  %24864 = vst [vmem:[#allocation7_spill] sm:$0xff] %v23571_v18 }
 0x8f6   : > { %11088 = vst.msk [vmem:[#allocation2 + $0x1e8] sm:$0xff] %vm333_vm1, %v11056_v3  ;;  %v11026_v7 = vadd.f32 %v23407_v6, %v10948_v27  ;;  %18826 = vmatprep.mubr.msk.f32.mxu1 %vm333_vm1, %v23565_v11  ;;  %v23663_v52 = vld [vmem:[#allocation2 + $0xef] sm:$0xff]  ;;  %v23683_v49 = vld [vmem:[#allocation2 + $0x147] sm:$0xff] }
 0x8f7   : > { %v11059_v26 = vmax.f32 %v11027_v44, 0.0  ;;  %18827 = vmatmul.mubr.msk.f32.gmra.mrb[58].mxu1 %vm333_vm1, %v23571_v18  ;;  %v23671_v20 = vld [vmem:[#allocation2 + $0x10f] sm:$0xff]  ;;  %v23691_v21 = vld [vmem:[#allocation2 + $0x167] sm:$0xff] }
 0x8f8   : > { %v11058_v41 = vmax.f32 %v11026_v7, 0.0  ;;  %v23581_v6 = vld [vmem:[#allocation2 + $0x1d0] sm:$0xff]  ;;  %v23699_v27 = vld [vmem:[#allocation2 + $0x187] sm:$0xff] }
 0x8f9   : > { %11091 = vst.msk [vmem:[#allocation2 + $0x210] sm:$0xff] %vm333_vm1, %v11059_v26  ;;  %v23576_v62 = vld [vmem:[#allocation2 + $0x1c8] sm:$0xff]  ;;  %24866 = vst [vmem:[#allocation9_spill] sm:$0xff] %v23581_v6 }
 0x8fa   : > { %24865 = vst [vmem:[#allocation8_spill] sm:$0xff] %v23576_v62  ;;  %11090 = vst.msk [vmem:[#allocation2 + $0x208] sm:$0xff] %vm333_vm1, %v11058_v41  ;;  %18829 = vmatprep.mubr.msk.f32.mxu1 %vm333_vm1, %v23576_v62  ;;  %v23679_v57 = vld [vmem:[#allocation2 + $0x12f] sm:$0xff]  ;;  %v23707_v26 = vld [vmem:[#allocation2 + $0x1a7] sm:$0xff] }
 0x8fb   : > { %18830 = vmatmul.mubr.msk.f32.gmra.mrb[60].mxu1 %vm333_vm1, %v23581_v6  ;;  %v23687_v3 = vld [vmem:[#allocation2 + $0x14f] sm:$0xff]  ;;  %v15867_v6 = vld [vmem:[%s24381_s7 + $0x80] sm:$0xff] }
 0x8fc   : > { %v23589_v61 = vld [vmem:[#allocation2 + $0x1f0] sm:$0xff]  ;;  %v15868_v62 = vld [vmem:[%s24381_s7 + $0x88] sm:$0xff] }
 0x8fd   : > { %v23585_v12 = vld [vmem:[#allocation2 + $0x1e8] sm:$0xff]  ;;  %24868 = vst [vmem:[#allocation11_spill] sm:$0xff] %v23589_v61 }
 0x8fe   : > { %24867 = vst [vmem:[#allocation10_spill] sm:$0xff] %v23585_v12  ;;  %18832 = vmatprep.mubr.msk.f32.mxu1 %vm333_vm1, %v23585_v12  ;;  %v23695_v44 = vld [vmem:[#allocation2 + $0x16f] sm:$0xff]  ;;  %v23723_v19 = vld [vmem:[#allocation2 + $0x1e7] sm:$0xff]  ;;  %v19455_v12 = vpack.c.bf16 %v15834_v39, %v15833_v31 }
 0x8ff   : > { %18833 = vmatmul.mubr.msk.f32.gmra.mrb[62].mxu1 %vm333_vm1, %v23589_v61  ;;  %v23703_v7 = vld [vmem:[#allocation2 + $0x18f] sm:$0xff] }
 0x900   : > { %18843 = vmatprep.mubr.msk.f32.mxu1 %vm333_vm1, %v11092_v22  ;;  %v23711_v41 = vld [vmem:[#allocation2 + $0x1af] sm:$0xff]  ;;  %v23715_v22 = vld [vmem:[#allocation2 + $0x1c7] sm:$0xff] }
 0x901   : > { %v23719_v48 = vld [vmem:[#allocation2 + $0x1cf] sm:$0xff] }
 0x902   : > { %v11808_v61 = vld [vmem:[#allocation2 + $0x11] sm:$0xff]  ;;  %v23745_v18 = vld [vmem:[#allocation2 + $0x29] sm:$0xff] }
 0x903   : > { %18844 = vmatmul.mubr.msk.f32.vlgmr.msra.gmra.mrb[32].mxu1 %vm333_vm1, %v11093_v15  ;;  %v11807_v15 = vld [vmem:[#allocation2 + $0x9] sm:$0xff]  ;;  %v23752_v31 = vld [vmem:[#allocation2 + $0x31] sm:$0xff] }
 0x904   : > { %19446 = vmatpush3.bf16.msra.mxu1 %v23401_v33  ;;  %18846 = vmatprep.mubr.msk.f32.mxu1 %vm333_vm1, %v23607_v29  ;;  %v23623_v33 = vld [vmem:[#allocation2 + $0x4f] sm:$0xff] }
 0x905   : > { %19448 = vmatprep.subr.bf16.mxu1 %v19447_v50  ;;  %v23756_v39 = vld [vmem:[#allocation2 + $0x49] sm:$0xff] }
 0x906   : > { %24869 = vst [vmem:[#allocation12_spill] sm:$0xff] %v23756_v39 }
 0x907   : > { %18847 = vmatmul.mubr.msk.f32.gmra.mrb[34].mxu1 %vm333_vm1, %v23614_v10 }
 0x908   : > { %18849 = vmatprep.mubr.msk.f32.mxu1 %vm333_vm1, %v23618_v23  ;;  %19450 = vmatpush3.bf16.msra.mxu1 %v19447_v50  ;;  %v23727_v50 = vld [vmem:[#allocation2 + $0x1ef] sm:$0xff] }
 0x909   : > { %19452 = vmatprep.subr.bf16.mxu1 %v23612_v47 }
 0x90b   : > { %18850 = vmatmul.mubr.msk.f32.gmra.mrb[36].mxu1 %vm333_vm1, %v23623_v33 }
 0x90c   : > { %18852 = vmatprep.mubr.msk.f32.mxu1 %vm333_vm1, %v23627_v2 }
 0x90f   : > { %18853 = vmatmul.mubr.msk.f32.gmra.mrb[38].mxu1 %vm333_vm1, %v23631_v14 }
 0x910   : > { %18855 = vmatprep.mubr.msk.f32.mxu1 %vm333_vm1, %v23635_v56 }
 0x913   : > { %18856 = vmatmul.mubr.msk.f32.gmra.mrb[40].mxu1 %vm333_vm1, %v23639_v13 }
 0x914   : > { %18858 = vmatprep.mubr.msk.f32.mxu1 %vm333_vm1, %v23643_v17 }
 0x917   : > { %18859 = vmatmul.mubr.msk.f32.gmra.mrb[42].mxu1 %vm333_vm1, %v23647_v9 }
 0x918   : > { %18861 = vmatprep.mubr.msk.f32.mxu1 %vm333_vm1, %v23651_v16 }
 0x91b   : > { %18862 = vmatmul.mubr.msk.f32.gmra.mrb[44].mxu1 %vm333_vm1, %v23655_v36 }
 0x91c   : > { %18864 = vmatprep.mubr.msk.f32.mxu1 %vm333_vm1, %v23659_v43 }
 0x91f   : > { %18865 = vmatmul.mubr.msk.f32.gmra.mrb[46].mxu1 %vm333_vm1, %v23663_v52 }
 0x920   : > { %18867 = vmatprep.mubr.msk.f32.mxu1 %vm333_vm1, %v23667_v58 }
 0x923   : > { %18868 = vmatmul.mubr.msk.f32.gmra.mrb[48].mxu1 %vm333_vm1, %v23671_v20 }
 0x924   : > { %18870 = vmatprep.mubr.msk.f32.mxu1 %vm333_vm1, %v23675_v8 }
 0x927   : > { %18871 = vmatmul.mubr.msk.f32.gmra.mrb[50].mxu1 %vm333_vm1, %v23679_v57 }
 0x928   : > { %18873 = vmatprep.mubr.msk.f32.mxu1 %vm333_vm1, %v23683_v49 }
 0x92b   : > { %18874 = vmatmul.mubr.msk.f32.gmra.mrb[52].mxu1 %vm333_vm1, %v23687_v3 }
 0x92c   : > { %18876 = vmatprep.mubr.msk.f32.mxu1 %vm333_vm1, %v23691_v21 }
 0x92f   : > { %18877 = vmatmul.mubr.msk.f32.gmra.mrb[54].mxu1 %vm333_vm1, %v23695_v44 }
 0x930   : > { %18879 = vmatprep.mubr.msk.f32.mxu1 %vm333_vm1, %v23699_v27 }
 0x933   : > { %18880 = vmatmul.mubr.msk.f32.gmra.mrb[56].mxu1 %vm333_vm1, %v23703_v7 }
 0x934   : > { %18882 = vmatprep.mubr.msk.f32.mxu1 %vm333_vm1, %v23707_v26 }
 0x937   : > { %18883 = vmatmul.mubr.msk.f32.gmra.mrb[58].mxu1 %vm333_vm1, %v23711_v41 }
 0x938   : > { %18885 = vmatprep.mubr.msk.f32.mxu1 %vm333_vm1, %v23715_v22 }
 0x93b   : > { %18886 = vmatmul.mubr.msk.f32.gmra.mrb[60].mxu1 %vm333_vm1, %v23719_v48 }
 0x93c   : > { %18888 = vmatprep.mubr.msk.f32.mxu1 %vm333_vm1, %v23723_v19 }
 0x93f   : > { %18889 = vmatmul.mubr.msk.f32.gmra.mrb[62].mxu1 %vm333_vm1, %v23727_v50 }
 0x940   : > { %18899 = vmatprep.mubr.msk.f32.mxu1 %vm333_vm1, %v11807_v15  ;;  %v23750_v15 = vpack.c.bf16 %v15868_v62, %v15867_v6  ;;  %v23765_v62 = vld [vmem:[#allocation2 + $0x69] sm:$0xff]  ;;  %v23769_v6 = vld [vmem:[#allocation2 + $0x71] sm:$0xff] }
 0x941   : > { %24871 = vst [vmem:[#allocation14_spill] sm:$0xff] %v23765_v62  ;;  %24872 = vst [vmem:[#allocation15_spill] sm:$0xff] %v23769_v6 }
 0x943   : > { %18900 = vmatmul.mubr.msk.f32.vlgmr.msra.gmra.mrb[32].mxu1 %vm333_vm1, %v11808_v61  ;;  %v23761_v61 = vld [vmem:[#allocation2 + $0x51] sm:$0xff] }
 0x944   : > { %19454 = vmatpush3.bf16.msra.mxu1 %v23612_v47  ;;  %18902 = vmatprep.mubr.msk.f32.mxu1 %vm333_vm1, %v23745_v18  ;;  %24870 = vst [vmem:[#allocation13_spill] sm:$0xff] %v23761_v61  ;;  %v23773_v47 = vld [vmem:[#allocation2 + $0x89] sm:$0xff] }
 0x945   : > { %19456 = vmatprep.subr.bf16.mxu1 %v19455_v12  ;;  %24873 = vst [vmem:[#allocation16_spill] sm:$0xff] %v23773_v47 }
 0x947   : > { %18903 = vmatmul.mubr.msk.f32.gmra.mrb[34].mxu1 %vm333_vm1, %v23752_v31 }
 0x948   : > { %18905 = vmatprep.mubr.msk.f32.mxu1 %vm333_vm1, %v23756_v39  ;;  %19458 = vmatpush3.bf16.msra.mxu1 %v19455_v12  ;;  %v23777_v12 = vld [vmem:[#allocation2 + $0x91] sm:$0xff]  ;;  %v15904_v39 = vld [vmem:[%s24381_s7 + $0xa8] sm:$0xff] }
 0x949   : > { %19460 = vmatprep.subr.bf16.mxu1 %v23750_v15  ;;  %24874 = vst [vmem:[#allocation17_spill] sm:$0xff] %v23777_v12 }
 0x94b   : > { %18906 = vmatmul.mubr.msk.f32.gmra.mrb[36].mxu1 %vm333_vm1, %v23761_v61  ;;  %v23781_v61 = vld [vmem:[#allocation2 + $0xa9] sm:$0xff] }
 0x94c   : > { %18908 = vmatprep.mubr.msk.f32.mxu1 %vm333_vm1, %v23765_v62  ;;  %24875 = vst [vmem:[#allocation18_spill] sm:$0xff] %v23781_v61  ;;  %v23785_v62 = vld [vmem:[#allocation2 + $0xb1] sm:$0xff] }
 0x94d   : > { %24876 = vst [vmem:[#allocation19_spill] sm:$0xff] %v23785_v62 }
 0x94f   : > { %18909 = vmatmul.mubr.msk.f32.gmra.mrb[38].mxu1 %vm333_vm1, %v23769_v6  ;;  %v23789_v6 = vld [vmem:[#allocation2 + $0xc9] sm:$0xff] }
 0x950   : > { %18911 = vmatprep.mubr.msk.f32.mxu1 %vm333_vm1, %v23773_v47  ;;  %24877 = vst [vmem:[#allocation20_spill] sm:$0xff] %v23789_v6  ;;  %v23793_v47 = vld [vmem:[#allocation2 + $0xd1] sm:$0xff] }
 0x951   : > { %24878 = vst [vmem:[#allocation21_spill] sm:$0xff] %v23793_v47 }
 0x953   : > { %18912 = vmatmul.mubr.msk.f32.gmra.mrb[40].mxu1 %vm333_vm1, %v23777_v12  ;;  %v23797_v12 = vld [vmem:[#allocation2 + $0xe9] sm:$0xff] }
 0x954   : > { %18914 = vmatprep.mubr.msk.f32.mxu1 %vm333_vm1, %v23781_v61  ;;  %24879 = vst [vmem:[#allocation23_spill] sm:$0xff] %v23797_v12  ;;  %v23801_v61 = vld [vmem:[#allocation2 + $0xf1] sm:$0xff] }
 0x955   : > { %24880 = vst [vmem:[#allocation25_spill] sm:$0xff] %v23801_v61 }
 0x957   : > { %18915 = vmatmul.mubr.msk.f32.gmra.mrb[42].mxu1 %vm333_vm1, %v23785_v62  ;;  %v23805_v62 = vld [vmem:[#allocation2 + $0x109] sm:$0xff] }
 0x958   : > { %18917 = vmatprep.mubr.msk.f32.mxu1 %vm333_vm1, %v23789_v6  ;;  %24881 = vst [vmem:[#allocation26_spill] sm:$0xff] %v23805_v62  ;;  %v23809_v6 = vld [vmem:[#allocation2 + $0x111] sm:$0xff] }
 0x959   : > { %24882 = vst [vmem:[#allocation27_spill] sm:$0xff] %v23809_v6 }
 0x95b   : > { %18918 = vmatmul.mubr.msk.f32.gmra.mrb[44].mxu1 %vm333_vm1, %v23793_v47  ;;  %v23813_v47 = vld [vmem:[#allocation2 + $0x129] sm:$0xff] }
 0x95c   : > { %18920 = vmatprep.mubr.msk.f32.mxu1 %vm333_vm1, %v23797_v12  ;;  %24883 = vst [vmem:[#allocation31_spill] sm:$0xff] %v23813_v47  ;;  %v23817_v12 = vld [vmem:[#allocation2 + $0x131] sm:$0xff] }
 0x95d   : > { %24884 = vst [vmem:[#allocation29_spill] sm:$0xff] %v23817_v12 }
 0x95f   : > { %18921 = vmatmul.mubr.msk.f32.gmra.mrb[46].mxu1 %vm333_vm1, %v23801_v61  ;;  %v23821_v61 = vld [vmem:[#allocation2 + $0x149] sm:$0xff] }
 0x960   : > { %18923 = vmatprep.mubr.msk.f32.mxu1 %vm333_vm1, %v23805_v62  ;;  %24885 = vst [vmem:[#allocation33_spill] sm:$0xff] %v23821_v61  ;;  %v23825_v62 = vld [vmem:[#allocation2 + $0x151] sm:$0xff] }
 0x961   : > { %24886 = vst [vmem:[#allocation28_spill] sm:$0xff] %v23825_v62 }
 0x963   : > { %18924 = vmatmul.mubr.msk.f32.gmra.mrb[48].mxu1 %vm333_vm1, %v23809_v6  ;;  %v23829_v6 = vld [vmem:[#allocation2 + $0x169] sm:$0xff] }
 0x964   : > { %18926 = vmatprep.mubr.msk.f32.mxu1 %vm333_vm1, %v23813_v47  ;;  %24887 = vst [vmem:[#allocation30_spill] sm:$0xff] %v23829_v6  ;;  %v23833_v47 = vld [vmem:[#allocation2 + $0x171] sm:$0xff] }
 0x965   : > { %24888 = vst [vmem:[#allocation22_spill] sm:$0xff] %v23833_v47 }
 0x967   : > { %18927 = vmatmul.mubr.msk.f32.gmra.mrb[50].mxu1 %vm333_vm1, %v23817_v12  ;;  %v23837_v12 = vld [vmem:[#allocation2 + $0x189] sm:$0xff] }
 0x968   : > { %18929 = vmatprep.mubr.msk.f32.mxu1 %vm333_vm1, %v23821_v61  ;;  %24889 = vst [vmem:[#allocation24_spill] sm:$0xff] %v23837_v12  ;;  %v23841_v61 = vld [vmem:[#allocation2 + $0x191] sm:$0xff] }
 0x969   : > { %24890 = vst [vmem:[#allocation32_spill] sm:$0xff] %v23841_v61 }
 0x96b   : > { %18930 = vmatmul.mubr.msk.f32.gmra.mrb[52].mxu1 %vm333_vm1, %v23825_v62  ;;  %v23845_v62 = vld [vmem:[#allocation2 + $0x1a9] sm:$0xff] }
 0x96c   : > { %18932 = vmatprep.mubr.msk.f32.mxu1 %vm333_vm1, %v23829_v6  ;;  %24891 = vst [vmem:[#allocation34_spill] sm:$0xff] %v23845_v62  ;;  %v23849_v6 = vld [vmem:[#allocation2 + $0x1b1] sm:$0xff] }
 0x96d   : > { %24892 = vst [vmem:[#allocation35_spill] sm:$0xff] %v23849_v6 }
 0x96f   : > { %18933 = vmatmul.mubr.msk.f32.gmra.mrb[54].mxu1 %vm333_vm1, %v23833_v47  ;;  %v23853_v47 = vld [vmem:[#allocation2 + $0x1c9] sm:$0xff] }
 0x970   : > { %18935 = vmatprep.mubr.msk.f32.mxu1 %vm333_vm1, %v23837_v12  ;;  %24893 = vst [vmem:[#allocation3_spill] sm:$0xff] %v23853_v47  ;;  %v23857_v12 = vld [vmem:[#allocation2 + $0x1d1] sm:$0xff] }
 0x971   : > { %24894 = vst [vmem:[#allocation4_spill] sm:$0xff] %v23857_v12 }
 0x973   : > { %18936 = vmatmul.mubr.msk.f32.gmra.mrb[56].mxu1 %vm333_vm1, %v23841_v61  ;;  %v23861_v61 = vld [vmem:[#allocation2 + $0x1e9] sm:$0xff] }
 0x974   : > { %18938 = vmatprep.mubr.msk.f32.mxu1 %vm333_vm1, %v23845_v62  ;;  %24895 = vst [vmem:[#allocation5_spill] sm:$0xff] %v23861_v61  ;;  %v23865_v62 = vld [vmem:[#allocation2 + $0x1f1] sm:$0xff] }
 0x975   : > { %24896 = vst [vmem:[#allocation6_spill] sm:$0xff] %v23865_v62 }
 0x977   : > { %18939 = vmatmul.mubr.msk.f32.gmra.mrb[58].mxu1 %vm333_vm1, %v23849_v6  ;;  %v15869_v6 = vld [vmem:[%s24381_s7 + $0x90] sm:$0xff] }
 0x978   : > { %18941 = vmatprep.mubr.msk.f32.mxu1 %vm333_vm1, %v23853_v47  ;;  %v15870_v47 = vld [vmem:[%s24381_s7 + $0x98] sm:$0xff] }
 0x97b   : > { %18942 = vmatmul.mubr.msk.f32.gmra.mrb[60].mxu1 %vm333_vm1, %v23857_v12  ;;  %v19463_v12 = vpack.c.bf16 %v15870_v47, %v15869_v6  ;;  %v15939_v6 = vld [vmem:[%s24381_s7 + $0xc0] sm:$0xff]  ;;  %v15940_v47 = vld [vmem:[%s24381_s7 + $0xc8] sm:$0xff] }
 0x97c   : > { %18944 = vmatprep.mubr.msk.f32.mxu1 %vm333_vm1, %v23861_v61  ;;  %v15903_v61 = vld [vmem:[%s24381_s7 + $0xa0] sm:$0xff] }
 0x97f   : > { %18945 = vmatmul.mubr.msk.f32.gmra.mrb[62].mxu1 %vm333_vm1, %v23865_v62  ;;  %v19467_v62 = vpack.c.bf16 %v15904_v39, %v15903_v61  ;;  %v15906_v39 = vld [vmem:[%s24381_s7 + $0xb8] sm:$0xff] }
 0x980   : > { %18955 = vmatprep.mubr.msk.f32.mxu1 %vm333_vm1, %v23607_v29  ;;  %v23942_v29 = vld [vmem:[#allocation2 + $0x207] sm:$0xff] }
 0x983   : > { %18956 = vmatmul.mubr.msk.f32.vlgmr.msra.gmra.mrb[32].mxu1 %vm333_vm1, %v23614_v10  ;;  %v23946_v10 = vld [vmem:[#allocation2 + $0x20f] sm:$0xff] }
 0x984   : > { %19462 = vmatpush3.bf16.msra.mxu1 %v23750_v15  ;;  %18958 = vmatprep.mubr.msk.f32.mxu1 %vm333_vm1, %v23618_v23  ;;  %v15905_v15 = vld [vmem:[%s24381_s7 + $0xb0] sm:$0xff] }
 0x985   : > { %19464 = vmatprep.subr.bf16.mxu1 %v19463_v12  ;;  %v19471_v61 = vpack.c.bf16 %v15906_v39, %v15905_v15  ;;  %v24916_v15 = vld [vmem:[#allocation31_spill] sm:$0xff]  ;;  %v24917_v39 = vld [vmem:[#allocation29_spill] sm:$0xff] }
 0x987   : > { %18959 = vmatmul.mubr.msk.f32.gmra.mrb[34].mxu1 %vm333_vm1, %v23623_v33 }
 0x988   : > { %18961 = vmatprep.mubr.msk.f32.mxu1 %vm333_vm1, %v23627_v2  ;;  %19466 = vmatpush3.bf16.msra.mxu1 %v19463_v12  ;;  %v19475_v12 = vpack.c.bf16 %v15940_v47, %v15939_v6  ;;  %v24919_v6 = vld [vmem:[#allocation28_spill] sm:$0xff]  ;;  %v24920_v47 = vld [vmem:[#allocation30_spill] sm:$0xff] }
 0x989   : > { %19468 = vmatprep.subr.bf16.mxu1 %v19467_v62 }
 0x98b   : > { %18962 = vmatmul.mubr.msk.f32.gmra.mrb[36].mxu1 %vm333_vm1, %v23631_v14 }
 0x98c   : > { %18964 = vmatprep.mubr.msk.f32.mxu1 %vm333_vm1, %v23635_v56 }
 0x98f   : > { %18965 = vmatmul.mubr.msk.f32.gmra.mrb[38].mxu1 %vm333_vm1, %v23639_v13 }
 0x990   : > { %18967 = vmatprep.mubr.msk.f32.mxu1 %vm333_vm1, %v23643_v17 }
 0x993   : > { %18968 = vmatmul.mubr.msk.f32.gmra.mrb[40].mxu1 %vm333_vm1, %v23647_v9 }
 0x994   : > { %18970 = vmatprep.mubr.msk.f32.mxu1 %vm333_vm1, %v23651_v16 }
 0x997   : > { %18971 = vmatmul.mubr.msk.f32.gmra.mrb[42].mxu1 %vm333_vm1, %v23655_v36 }
 0x998   : > { %18973 = vmatprep.mubr.msk.f32.mxu1 %vm333_vm1, %v23659_v43 }
 0x99b   : > { %18974 = vmatmul.mubr.msk.f32.gmra.mrb[44].mxu1 %vm333_vm1, %v23663_v52 }
 0x99c   : > { %18976 = vmatprep.mubr.msk.f32.mxu1 %vm333_vm1, %v23667_v58 }
 0x99f   : > { %18977 = vmatmul.mubr.msk.f32.gmra.mrb[46].mxu1 %vm333_vm1, %v23671_v20 }
 0x9a0   : > { %18979 = vmatprep.mubr.msk.f32.mxu1 %vm333_vm1, %v23675_v8 }
 0x9a3   : > { %18980 = vmatmul.mubr.msk.f32.gmra.mrb[48].mxu1 %vm333_vm1, %v23679_v57 }
 0x9a4   : > { %18982 = vmatprep.mubr.msk.f32.mxu1 %vm333_vm1, %v23683_v49 }
 0x9a7   : > { %18983 = vmatmul.mubr.msk.f32.gmra.mrb[50].mxu1 %vm333_vm1, %v23687_v3 }
 0x9a8   : > { %18985 = vmatprep.mubr.msk.f32.mxu1 %vm333_vm1, %v23691_v21 }
 0x9ab   : > { %18986 = vmatmul.mubr.msk.f32.gmra.mrb[52].mxu1 %vm333_vm1, %v23695_v44 }
 0x9ac   : > { %18988 = vmatprep.mubr.msk.f32.mxu1 %vm333_vm1, %v23699_v27 }
 0x9af   : > { %18989 = vmatmul.mubr.msk.f32.gmra.mrb[54].mxu1 %vm333_vm1, %v23703_v7 }
 0x9b0   : > { %18991 = vmatprep.mubr.msk.f32.mxu1 %vm333_vm1, %v23707_v26 }
 0x9b3   : > { %18992 = vmatmul.mubr.msk.f32.gmra.mrb[56].mxu1 %vm333_vm1, %v23711_v41 }
 0x9b4   : > { %18994 = vmatprep.mubr.msk.f32.mxu1 %vm333_vm1, %v23715_v22 }
 0x9b7   : > { %18995 = vmatmul.mubr.msk.f32.gmra.mrb[58].mxu1 %vm333_vm1, %v23719_v48 }
 0x9b8   : > { %18997 = vmatprep.mubr.msk.f32.mxu1 %vm333_vm1, %v23723_v19 }
 0x9bb   : > { %18998 = vmatmul.mubr.msk.f32.gmra.mrb[60].mxu1 %vm333_vm1, %v23727_v50 }
 0x9bc   : > { %19000 = vmatprep.mubr.msk.f32.mxu1 %vm333_vm1, %v23942_v29 }
 0x9bf   : > { %19001 = vmatmul.mubr.msk.f32.gmra.mrb[62].mxu1 %vm333_vm1, %v23946_v10 }
 0x9c0   : > { %19011 = vmatprep.mubr.msk.f32.mxu1 %vm333_vm1, %v23421_v34  ;;  %v24897_v34 = vld [vmem:[#allocation7_spill] sm:$0xff] }
 0x9c3   : > { %19012 = vmatmul.mubr.msk.f32.vlgmr.msra.gmra.mrb[32].mxu1 %vm333_vm1, %v23427_v54  ;;  %v24898_v54 = vld [vmem:[#allocation8_spill] sm:$0xff] }
 0x9c4   : > { %19470 = vmatpush3.bf16.msra.mxu1 %v19467_v62  ;;  %19014 = vmatprep.mubr.msk.f32.mxu1 %vm333_vm1, %v23433_v45  ;;  %v24899_v45 = vld [vmem:[#allocation9_spill] sm:$0xff]  ;;  %v24915_v62 = vld [vmem:[#allocation27_spill] sm:$0xff] }
 0x9c5   : > { %19472 = vmatprep.subr.bf16.mxu1 %v19471_v61 }
 0x9c7   : > { %19015 = vmatmul.mubr.msk.f32.gmra.mrb[34].mxu1 %vm333_vm1, %v23439_v55  ;;  %v24900_v55 = vld [vmem:[#allocation10_spill] sm:$0xff] }
 0x9c8   : > { %19017 = vmatprep.mubr.msk.f32.mxu1 %vm333_vm1, %v23445_v4  ;;  %19474 = vmatpush3.bf16.msra.mxu1 %v19471_v61  ;;  %v24901_v4 = vld [vmem:[#allocation11_spill] sm:$0xff]  ;;  %v24918_v61 = vld [vmem:[#allocation33_spill] sm:$0xff] }
 0x9c9   : > { %19476 = vmatprep.subr.bf16.mxu1 %v19475_v12 }
 0x9cb   : > { %19018 = vmatmul.mubr.msk.f32.gmra.mrb[36].mxu1 %vm333_vm1, %v23451_v53  ;;  %v24022_v53 = vld [vmem:[#allocation2 + $0x208] sm:$0xff] }
 0x9cc   : > { %19020 = vmatprep.mubr.msk.f32.mxu1 %vm333_vm1, %v23457_v0  ;;  %v24026_v0 = vld [vmem:[#allocation2 + $0x210] sm:$0xff] }
 0x9cf   : > { %19021 = vmatmul.mubr.msk.f32.gmra.mrb[38].mxu1 %vm333_vm1, %v23463_v30  ;;  %v15941_v30 = vld [vmem:[%s24381_s7 + $0xd0] sm:$0xff] }
 0x9d0   : > { %19023 = vmatprep.mubr.msk.f32.mxu1 %vm333_vm1, %v23469_v60  ;;  %v15942_v60 = vld [vmem:[%s24381_s7 + $0xd8] sm:$0xff] }
 0x9d3   : > { %19024 = vmatmul.mubr.msk.f32.gmra.mrb[40].mxu1 %vm333_vm1, %v23475_v63  ;;  %v19479_v63 = vpack.c.bf16 %v15942_v60, %v15941_v30  ;;  %v24922_v30 = vld [vmem:[#allocation24_spill] sm:$0xff] }
 0x9d4   : > { %19026 = vmatprep.mubr.msk.f32.mxu1 %vm333_vm1, %v23481_v35  ;;  %v15975_v35 = vld [vmem:[%s24381_s7 + $0xe0] sm:$0xff]  ;;  %v24923_v60 = vld [vmem:[#allocation32_spill] sm:$0xff] }
 0x9d7   : > { %19027 = vmatmul.mubr.msk.f32.gmra.mrb[42].mxu1 %vm333_vm1, %v23487_v46  ;;  %v15976_v46 = vld [vmem:[%s24381_s7 + $0xe8] sm:$0xff] }
 0x9d8   : > { %19029 = vmatprep.mubr.msk.f32.mxu1 %vm333_vm1, %v23493_v25  ;;  %v24902_v25 = vld [vmem:[#allocation12_spill] sm:$0xff] }
 0x9db   : > { %19030 = vmatmul.mubr.msk.f32.gmra.mrb[44].mxu1 %vm333_vm1, %v23499_v24  ;;  %v19483_v24 = vpack.c.bf16 %v15976_v46, %v15975_v35  ;;  %v24925_v35 = vld [vmem:[#allocation35_spill] sm:$0xff] }
 0x9dc   : > { %19032 = vmatprep.mubr.msk.f32.mxu1 %vm333_vm1, %v23505_v37  ;;  %v24903_v37 = vld [vmem:[#allocation13_spill] sm:$0xff]  ;;  %v24926_v46 = vld [vmem:[#allocation3_spill] sm:$0xff] }
 0x9df   : > { %19033 = vmatmul.mubr.msk.f32.gmra.mrb[46].mxu1 %vm333_vm1, %v23511_v28  ;;  %v24904_v28 = vld [vmem:[#allocation14_spill] sm:$0xff] }
 0x9e0   : > { %19035 = vmatprep.mubr.msk.f32.mxu1 %vm333_vm1, %v23517_v32  ;;  %v24905_v32 = vld [vmem:[#allocation15_spill] sm:$0xff] }
 0x9e3   : > { %19036 = vmatmul.mubr.msk.f32.gmra.mrb[48].mxu1 %vm333_vm1, %v23523_v1  ;;  %v24906_v1 = vld [vmem:[#allocation16_spill] sm:$0xff] }
 0x9e4   : > { %19038 = vmatprep.mubr.msk.f32.mxu1 %vm333_vm1, %v23529_v5  ;;  %v24907_v5 = vld [vmem:[#allocation17_spill] sm:$0xff] }
 0x9e7   : > { %19039 = vmatmul.mubr.msk.f32.gmra.mrb[50].mxu1 %vm333_vm1, %v23535_v51  ;;  %v24908_v51 = vld [vmem:[#allocation18_spill] sm:$0xff] }
 0x9e8   : > { %19041 = vmatprep.mubr.msk.f32.mxu1 %vm333_vm1, %v23541_v38  ;;  %v24909_v38 = vld [vmem:[#allocation19_spill] sm:$0xff] }
 0x9eb   : > { %19042 = vmatmul.mubr.msk.f32.gmra.mrb[52].mxu1 %vm333_vm1, %v23547_v59  ;;  %v24910_v59 = vld [vmem:[#allocation20_spill] sm:$0xff] }
 0x9ec   : > { %19044 = vmatprep.mubr.msk.f32.mxu1 %vm333_vm1, %v23553_v42  ;;  %v24911_v42 = vld [vmem:[#allocation21_spill] sm:$0xff] }
 0x9ef   : > { %19045 = vmatmul.mubr.msk.f32.gmra.mrb[54].mxu1 %vm333_vm1, %v23559_v40  ;;  %v24912_v40 = vld [vmem:[#allocation23_spill] sm:$0xff] }
 0x9f0   : > { %19047 = vmatprep.mubr.msk.f32.mxu1 %vm333_vm1, %v23565_v11 }
 0x9f3   : > { %19048 = vmatmul.mubr.msk.f32.gmra.mrb[56].mxu1 %vm333_vm1, %v24897_v34 }
 0x9f4   : > { %19050 = vmatprep.mubr.msk.f32.mxu1 %vm333_vm1, %v24898_v54 }
 0x9f7   : > { %19051 = vmatmul.mubr.msk.f32.gmra.mrb[58].mxu1 %vm333_vm1, %v24899_v45 }
 0x9f8   : > { %19053 = vmatprep.mubr.msk.f32.mxu1 %vm333_vm1, %v24900_v55 }
 0x9fb   : > { %19054 = vmatmul.mubr.msk.f32.gmra.mrb[60].mxu1 %vm333_vm1, %v24901_v4 }
 0x9fc   : > { %19056 = vmatprep.mubr.msk.f32.mxu1 %vm333_vm1, %v24022_v53 }
 0x9ff   : > { %19057 = vmatmul.mubr.msk.f32.gmra.mrb[62].mxu1 %vm333_vm1, %v24026_v0 }
 0xa00   : > { %19067 = vmatprep.mubr.msk.f32.mxu1 %vm333_vm1, %v23745_v18  ;;  %v24913_v18 = vld [vmem:[#allocation25_spill] sm:$0xff] }
 0xa03   : > { %19068 = vmatmul.mubr.msk.f32.vlgmr.msra.gmra.mrb[32].mxu1 %vm333_vm1, %v23752_v31  ;;  %v24914_v31 = vld [vmem:[#allocation26_spill] sm:$0xff] }
 0xa04   : > { %19478 = vmatpush3.bf16.msra.mxu1 %v19475_v12  ;;  %19070 = vmatprep.mubr.msk.f32.mxu1 %vm333_vm1, %v24902_v25  ;;  %v24921_v12 = vld [vmem:[#allocation22_spill] sm:$0xff] }
 0xa05   : > { %19480 = vmatprep.subr.bf16.mxu1 %v19479_v63 }
 0xa07   : > { %19071 = vmatmul.mubr.msk.f32.gmra.mrb[34].mxu1 %vm333_vm1, %v24903_v37 }
 0xa08   : > { %19073 = vmatprep.mubr.msk.f32.mxu1 %vm333_vm1, %v24904_v28  ;;  %19482 = vmatpush3.bf16.msra.mxu1 %v19479_v63  ;;  %v24924_v63 = vld [vmem:[#allocation34_spill] sm:$0xff] }
 0xa09   : > { %19484 = vmatprep.subr.bf16.mxu1 %v19483_v24 }
 0xa0b   : > { %19074 = vmatmul.mubr.msk.f32.gmra.mrb[36].mxu1 %vm333_vm1, %v24905_v32 }
 0xa0c   : > { %19076 = vmatprep.mubr.msk.f32.mxu1 %vm333_vm1, %v24906_v1 }
 0xa0f   : > { %19077 = vmatmul.mubr.msk.f32.gmra.mrb[38].mxu1 %vm333_vm1, %v24907_v5 }
 0xa10   : > { %19079 = vmatprep.mubr.msk.f32.mxu1 %vm333_vm1, %v24908_v51 }
 0xa13   : > { %19080 = vmatmul.mubr.msk.f32.gmra.mrb[40].mxu1 %vm333_vm1, %v24909_v38 }
 0xa14   : > { %19082 = vmatprep.mubr.msk.f32.mxu1 %vm333_vm1, %v24910_v59 }
 0xa17   : > { %19083 = vmatmul.mubr.msk.f32.gmra.mrb[42].mxu1 %vm333_vm1, %v24911_v42 }
 0xa18   : > { %19085 = vmatprep.mubr.msk.f32.mxu1 %vm333_vm1, %v24912_v40 }
 0xa1b   : > { %19086 = vmatmul.mubr.msk.f32.gmra.mrb[44].mxu1 %vm333_vm1, %v24913_v18 }
 0xa1c   : > { %19088 = vmatprep.mubr.msk.f32.mxu1 %vm333_vm1, %v24914_v31 }
 0xa1f   : > { %19089 = vmatmul.mubr.msk.f32.gmra.mrb[46].mxu1 %vm333_vm1, %v24915_v62 }
 0xa20   : > { %19091 = vmatprep.mubr.msk.f32.mxu1 %vm333_vm1, %v24916_v15 }
 0xa23   : > { %19092 = vmatmul.mubr.msk.f32.gmra.mrb[48].mxu1 %vm333_vm1, %v24917_v39 }
 0xa24   : > { %19094 = vmatprep.mubr.msk.f32.mxu1 %vm333_vm1, %v24918_v61 }
 0xa27   : > { %19095 = vmatmul.mubr.msk.f32.gmra.mrb[50].mxu1 %vm333_vm1, %v24919_v6  ;;  %v24927_v6 = vld [vmem:[#allocation4_spill] sm:$0xff] }
 0xa28   : > { %19097 = vmatprep.mubr.msk.f32.mxu1 %vm333_vm1, %v24920_v47  ;;  %v24928_v47 = vld [vmem:[#allocation5_spill] sm:$0xff] }
 0xa2b   : > { %19098 = vmatmul.mubr.msk.f32.gmra.mrb[52].mxu1 %vm333_vm1, %v24921_v12  ;;  %v24929_v12 = vld [vmem:[#allocation6_spill] sm:$0xff] }
 0xa2c   : > { %19100 = vmatprep.mubr.msk.f32.mxu1 %vm333_vm1, %v24922_v30  ;;  %v24102_v30 = vld [vmem:[#allocation2 + $0x209] sm:$0xff] }
 0xa2d   : > { %24930 = vst [vmem:[#allocation7_spill] sm:$0xff] %v24102_v30 }
 0xa2f   : > { %19101 = vmatmul.mubr.msk.f32.gmra.mrb[54].mxu1 %vm333_vm1, %v24923_v60 }
 0xa30   : > { %19103 = vmatprep.mubr.msk.f32.mxu1 %vm333_vm1, %v24924_v63  ;;  %v24106_v63 = vld [vmem:[#allocation2 + $0x211] sm:$0xff] }
 0xa31   : > { %24931 = vst [vmem:[#allocation8_spill] sm:$0xff] %v24106_v63 }
 0xa33   : > { %19104 = vmatmul.mubr.msk.f32.gmra.mrb[56].mxu1 %vm333_vm1, %v24925_v35 }
 0xa34   : > { %19106 = vmatprep.mubr.msk.f32.mxu1 %vm333_vm1, %v24926_v46  ;;  %v15977_v46 = vld [vmem:[%s24381_s7 + $0xf0] sm:$0xff] }
 0xa37   : > { %19107 = vmatmul.mubr.msk.f32.gmra.mrb[58].mxu1 %vm333_vm1, %v24927_v6  ;;  %v15978_v6 = vld [vmem:[%s24381_s7 + $0xf8] sm:$0xff] }
 0xa38   : > { %19109 = vmatprep.mubr.msk.f32.mxu1 %vm333_vm1, %v24928_v47  ;;  %v16012_v47 = vld [vmem:[%s24381_s7 + $0x108] sm:$0xff] }
 0xa3b   : > { %19110 = vmatmul.mubr.msk.f32.gmra.mrb[60].mxu1 %vm333_vm1, %v24929_v12  ;;  %v19487_v12 = vpack.c.bf16 %v15978_v6, %v15977_v46  ;;  %v14578_v6 = vld [vmem:[%s20675_s19 + $0x10] sm:$0xff] }
 0xa3c   : > { %19112 = vmatprep.mubr.msk.f32.mxu1 %vm333_vm1, %v24102_v30  ;;  %v16011_v30 = vld [vmem:[%s24381_s7 + $0x100] sm:$0xff] }
 0xa3f   : > { %19113 = vmatmul.mubr.msk.f32.gmra.mrb[62].mxu1 %vm333_vm1, %v24106_v63  ;;  %v19491_v63 = vpack.c.bf16 %v16012_v47, %v16011_v30 }
 0xa40   : > { %19123 = vmatprep.mubr.msk.f32.mxu1 %vm333_vm1, %v23618_v23  ;;  %v13397_v23 = vld [vmem:[#allocation2 + $0x227] sm:$0xff] }
 0xa43   : > { %19124 = vmatmul.mubr.msk.f32.vlgmr.msra.gmra.mrb[32].mxu1 %vm333_vm1, %v23623_v33  ;;  %v13398_v33 = vld [vmem:[#allocation2 + $0x22f] sm:$0xff] }
 0xa44   : > { %19486 = vmatpush3.bf16.msra.mxu1 %v19483_v24  ;;  %19126 = vmatprep.mubr.msk.f32.mxu1 %vm333_vm1, %v23627_v2  ;;  %v16013_v2 = vld [vmem:[%s24381_s7 + $0x110] sm:$0xff] }
 0xa45   : > { %19488 = vmatprep.subr.bf16.mxu1 %v19487_v12  ;;  %v14177_v24 = vld [vmem:[#allocation2 + $0x229] sm:$0xff] }
 0xa47   : > { %19127 = vmatmul.mubr.msk.f32.gmra.mrb[34].mxu1 %vm333_vm1, %v23631_v14  ;;  %v16014_v14 = vld [vmem:[%s24381_s7 + $0x118] sm:$0xff] }
 0xa48   : > { %19129 = vmatprep.mubr.msk.f32.mxu1 %vm333_vm1, %v23635_v56  ;;  %19490 = vmatpush3.bf16.msra.mxu1 %v19487_v12  ;;  %v13757_v56 = vld [vmem:[#allocation2 + $0x48] sm:$0xff] }
 0xa49   : > { %19492 = vmatprep.subr.bf16.mxu1 %v19491_v63 }
 0xa4b   : > { %19130 = vmatmul.mubr.msk.f32.gmra.mrb[36].mxu1 %vm333_vm1, %v23639_v13  ;;  %v19495_v13 = vpack.c.bf16 %v16014_v14, %v16013_v2  ;;  %v14580_v2 = vld [vmem:[%s20675_s19 + $0x20] sm:$0xff] }
 0xa4c   : > { %19132 = vmatprep.mubr.msk.f32.mxu1 %vm333_vm1, %v23643_v17  ;;  %v13758_v17 = vld [vmem:[#allocation2 + $0x50] sm:$0xff] }
 0xa4f   : > { %19133 = vmatmul.mubr.msk.f32.gmra.mrb[38].mxu1 %vm333_vm1, %v23647_v9  ;;  %v13759_v9 = vld [vmem:[#allocation2 + $0x68] sm:$0xff] }
 0xa50   : > { %19135 = vmatprep.mubr.msk.f32.mxu1 %vm333_vm1, %v23651_v16  ;;  %v13760_v16 = vld [vmem:[#allocation2 + $0x70] sm:$0xff] }
 0xa53   : > { %19136 = vmatmul.mubr.msk.f32.gmra.mrb[40].mxu1 %vm333_vm1, %v23655_v36  ;;  %v13761_v36 = vld [vmem:[#allocation2 + $0x88] sm:$0xff] }
 0xa54   : > { %19138 = vmatprep.mubr.msk.f32.mxu1 %vm333_vm1, %v23659_v43  ;;  %v13762_v43 = vld [vmem:[#allocation2 + $0x90] sm:$0xff] }
 0xa57   : > { %19139 = vmatmul.mubr.msk.f32.gmra.mrb[42].mxu1 %vm333_vm1, %v23663_v52  ;;  %v13763_v52 = vld [vmem:[#allocation2 + $0xa8] sm:$0xff] }
 0xa58   : > { %19141 = vmatprep.mubr.msk.f32.mxu1 %vm333_vm1, %v23667_v58  ;;  %v13764_v58 = vld [vmem:[#allocation2 + $0xb0] sm:$0xff] }
 0xa5b   : > { %19142 = vmatmul.mubr.msk.f32.gmra.mrb[44].mxu1 %vm333_vm1, %v23671_v20  ;;  %v13765_v20 = vld [vmem:[#allocation2 + $0xc8] sm:$0xff] }
 0xa5c   : > { %19144 = vmatprep.mubr.msk.f32.mxu1 %vm333_vm1, %v23675_v8  ;;  %v13766_v8 = vld [vmem:[#allocation2 + $0xd0] sm:$0xff] }
 0xa5f   : > { %19145 = vmatmul.mubr.msk.f32.gmra.mrb[46].mxu1 %vm333_vm1, %v23679_v57  ;;  %v13767_v57 = vld [vmem:[#allocation2 + $0xe8] sm:$0xff] }
 0xa60   : > { %19147 = vmatprep.mubr.msk.f32.mxu1 %vm333_vm1, %v23683_v49  ;;  %v13768_v49 = vld [vmem:[#allocation2 + $0xf0] sm:$0xff] }
 0xa63   : > { %19148 = vmatmul.mubr.msk.f32.gmra.mrb[48].mxu1 %vm333_vm1, %v23687_v3  ;;  %v13769_v3 = vld [vmem:[#allocation2 + $0x108] sm:$0xff] }
 0xa64   : > { %19150 = vmatprep.mubr.msk.f32.mxu1 %vm333_vm1, %v23691_v21  ;;  %v13770_v21 = vld [vmem:[#allocation2 + $0x110] sm:$0xff] }
 0xa67   : > { %19151 = vmatmul.mubr.msk.f32.gmra.mrb[50].mxu1 %vm333_vm1, %v23695_v44  ;;  %v13771_v44 = vld [vmem:[#allocation2 + $0x128] sm:$0xff] }
 0xa68   : > { %19153 = vmatprep.mubr.msk.f32.mxu1 %vm333_vm1, %v23699_v27  ;;  %v13772_v27 = vld [vmem:[#allocation2 + $0x130] sm:$0xff] }
 0xa6b   : > { %19154 = vmatmul.mubr.msk.f32.gmra.mrb[52].mxu1 %vm333_vm1, %v23703_v7  ;;  %v13773_v7 = vld [vmem:[#allocation2 + $0x148] sm:$0xff] }
 0xa6c   : > { %19156 = vmatprep.mubr.msk.f32.mxu1 %vm333_vm1, %v23707_v26  ;;  %v13774_v26 = vld [vmem:[#allocation2 + $0x150] sm:$0xff] }
 0xa6f   : > { %19157 = vmatmul.mubr.msk.f32.gmra.mrb[54].mxu1 %vm333_vm1, %v23711_v41  ;;  %v13775_v41 = vld [vmem:[#allocation2 + $0x168] sm:$0xff] }
 0xa70   : > { %19159 = vmatprep.mubr.msk.f32.mxu1 %vm333_vm1, %v23715_v22  ;;  %v13776_v22 = vld [vmem:[#allocation2 + $0x170] sm:$0xff] }
 0xa73   : > { %19160 = vmatmul.mubr.msk.f32.gmra.mrb[56].mxu1 %vm333_vm1, %v23719_v48  ;;  %v13777_v48 = vld [vmem:[#allocation2 + $0x188] sm:$0xff] }
 0xa74   : > { %19162 = vmatprep.mubr.msk.f32.mxu1 %vm333_vm1, %v23723_v19  ;;  %v13778_v19 = vld [vmem:[#allocation2 + $0x190] sm:$0xff] }
 0xa77   : > { %19163 = vmatmul.mubr.msk.f32.gmra.mrb[58].mxu1 %vm333_vm1, %v23727_v50  ;;  %v13787_v50 = vld [vmem:[#allocation2 + $0x228] sm:$0xff] }
 0xa78   : > { %19165 = vmatprep.mubr.msk.f32.mxu1 %vm333_vm1, %v23942_v29  ;;  %v24932_v29 = vld [vmem:[#allocation28_spill] sm:$0xff] }
 0xa7b   : > { %19166 = vmatmul.mubr.msk.f32.gmra.mrb[60].mxu1 %vm333_vm1, %v23946_v10  ;;  %v24933_v10 = vld [vmem:[#allocation30_spill] sm:$0xff] }
 0xa7c   : > { %19168 = vmatprep.mubr.msk.f32.mxu1 %vm333_vm1, %v13397_v23 }
 0xa7f   : > { %19169 = vmatmul.mubr.msk.f32.gmra.mrb[62].mxu1 %vm333_vm1, %v13398_v33 }
 0xa80   : > { %19179 = vmatprep.mubr.msk.f32.mxu1 %vm333_vm1, %v13757_v56 }
 0xa83   : > { %19180 = vmatmul.mubr.msk.f32.vlgmr.msra.gmra.mrb[32].mxu1 %vm333_vm1, %v13758_v17 }
 0xa84   : > { %19494 = vmatpush3.bf16.msra.mxu1 %v19491_v63  ;;  %19182 = vmatprep.mubr.msk.f32.mxu1 %vm333_vm1, %v13759_v9  ;;  %v14579_v63 = vld [vmem:[%s20675_s19 + $0x18] sm:$0xff]  ;;  %v14581_v9 = vld [vmem:[%s20675_s19 + $0x28] sm:$0xff] }
 0xa85   : > { %19496 = vmatprep.subr.bf16.mxu1 %v19495_v13 }
 0xa87   : > { %19183 = vmatmul.mubr.msk.f32.gmra.mrb[34].mxu1 %vm333_vm1, %v13760_v16 }
 0xa88   : > { %19185 = vmatprep.mubr.msk.f32.mxu1 %vm333_vm1, %v13761_v36  ;;  %19498 = vmatpush3.bf16.msra.mxu1 %v19495_v13 }
 0xa8b   : > { %19186 = vmatmul.mubr.msk.f32.gmra.mrb[36].mxu1 %vm333_vm1, %v13762_v43 }
 0xa8c   : > { %19188 = vmatprep.mubr.msk.f32.mxu1 %vm333_vm1, %v13763_v52 }
 0xa8f   : > { %19189 = vmatmul.mubr.msk.f32.gmra.mrb[38].mxu1 %vm333_vm1, %v13764_v58  ;;  %v14582_v58 = vld [vmem:[%s20675_s19 + $0x30] sm:$0xff] }
 0xa90   : > { %19191 = vmatprep.mubr.msk.f32.mxu1 %vm333_vm1, %v13765_v20 }
 0xa93   : > { %19192 = vmatmul.mubr.msk.f32.gmra.mrb[40].mxu1 %vm333_vm1, %v13766_v8 }
 0xa94   : > { %19194 = vmatprep.mubr.msk.f32.mxu1 %vm333_vm1, %v13767_v57 }
 0xa97   : > { %19195 = vmatmul.mubr.msk.f32.gmra.mrb[42].mxu1 %vm333_vm1, %v13768_v49 }
 0xa98   : > { %19197 = vmatprep.mubr.msk.f32.mxu1 %vm333_vm1, %v13769_v3  ;;  %v14583_v3 = vld [vmem:[%s20675_s19 + $0x38] sm:$0xff] }
 0xa9b   : > { %19198 = vmatmul.mubr.msk.f32.gmra.mrb[44].mxu1 %vm333_vm1, %v13770_v21 }
 0xa9c   : > { %19200 = vmatprep.mubr.msk.f32.mxu1 %vm333_vm1, %v13771_v44 }
 0xa9f   : > { %19201 = vmatmul.mubr.msk.f32.gmra.mrb[46].mxu1 %vm333_vm1, %v13772_v27 }
 0xaa0   : > { %19203 = vmatprep.mubr.msk.f32.mxu1 %vm333_vm1, %v13773_v7 }
 0xaa3   : > { %19204 = vmatmul.mubr.msk.f32.gmra.mrb[48].mxu1 %vm333_vm1, %v13774_v26  ;;  %v14584_v26 = vld [vmem:[%s20675_s19 + $0x40] sm:$0xff] }
 0xaa4   : > { %19206 = vmatprep.mubr.msk.f32.mxu1 %vm333_vm1, %v13775_v41  ;;  %v14592_v41 = vld [vmem:[%s20675_s19 + $0x80] sm:$0xff] }
 0xaa7   : > { %19207 = vmatmul.mubr.msk.f32.gmra.mrb[50].mxu1 %vm333_vm1, %v13776_v22 }
 0xaa8   : > { %19209 = vmatprep.mubr.msk.f32.mxu1 %vm333_vm1, %v13777_v48 }
 0xaab   : > { %19210 = vmatmul.mubr.msk.f32.gmra.mrb[52].mxu1 %vm333_vm1, %v13778_v19 }
 0xaac   : > { %19212 = vmatprep.mubr.msk.f32.mxu1 %vm333_vm1, %v23565_v11  ;;  %v13788_v11 = vld [vmem:[#allocation2 + $0x230] sm:$0xff] }
 0xaaf   : > { %19213 = vmatmul.mubr.msk.f32.gmra.mrb[54].mxu1 %vm333_vm1, %v24897_v34  ;;  %v24934_v34 = vld [vmem:[#allocation22_spill] sm:$0xff] }
 0xab0   : > { %19215 = vmatprep.mubr.msk.f32.mxu1 %vm333_vm1, %v24898_v54  ;;  %v24935_v54 = vld [vmem:[#allocation24_spill] sm:$0xff] }
 0xab3   : > { %19216 = vmatmul.mubr.msk.f32.gmra.mrb[56].mxu1 %vm333_vm1, %v24899_v45  ;;  %v24936_v45 = vld [vmem:[#allocation34_spill] sm:$0xff] }
 0xab4   : > { %19218 = vmatprep.mubr.msk.f32.mxu1 %vm333_vm1, %v24900_v55  ;;  %v24937_v55 = vld [vmem:[#allocation3_spill] sm:$0xff] }
 0xab7   : > { %19219 = vmatmul.mubr.msk.f32.gmra.mrb[58].mxu1 %vm333_vm1, %v24901_v4  ;;  %v24938_v4 = vld [vmem:[#allocation4_spill] sm:$0xff] }
 0xab8   : > { %19221 = vmatprep.mubr.msk.f32.mxu1 %vm333_vm1, %v24022_v53  ;;  %v24939_v53 = vld [vmem:[#allocation5_spill] sm:$0xff] }
 0xabb   : > { %19222 = vmatmul.mubr.msk.f32.gmra.mrb[60].mxu1 %vm333_vm1, %v24026_v0  ;;  %v24940_v0 = vld [vmem:[#allocation6_spill] sm:$0xff] }
 0xabc   : > { %19224 = vmatprep.mubr.msk.f32.mxu1 %vm333_vm1, %v13787_v50 }
 0xabf   : > { %19225 = vmatmul.mubr.msk.f32.gmra.mrb[62].mxu1 %vm333_vm1, %v13788_v11 }
 0xac0   : > { %19235 = vmatprep.mubr.msk.f32.mxu1 %vm333_vm1, %v24902_v25  ;;  %v24941_v25 = vld [vmem:[#allocation7_spill] sm:$0xff] }
 0xac3   : > { %19236 = vmatmul.mubr.msk.f32.vlgmr.msra.gmra.mrb[32].mxu1 %vm333_vm1, %v24903_v37  ;;  %v24942_v37 = vld [vmem:[#allocation8_spill] sm:$0xff] }
 0xac4   : > { %19238 = vmatprep.mubr.msk.f32.mxu1 %vm333_vm1, %v24904_v28  ;;  %v14178_v28 = vld [vmem:[#allocation2 + $0x231] sm:$0xff] }
 0xac7   : > { %19239 = vmatmul.mubr.msk.f32.gmra.mrb[34].mxu1 %vm333_vm1, %v24905_v32  ;;  %v24295_v32 = vld [vmem:[%s24382_s8] ss:$0 sm:$0xff] }
 0xac8   : > { %19241 = vmatprep.mubr.msk.f32.mxu1 %vm333_vm1, %v24906_v1 }
 0xacb   : > { %19242 = vmatmul.mubr.msk.f32.gmra.mrb[36].mxu1 %vm333_vm1, %v24907_v5 }
 0xacc   : > { %19244 = vmatprep.mubr.msk.f32.mxu1 %vm333_vm1, %v24908_v51  ;;  %v14576_v51 = vld [vmem:[%s20675_s19] sm:$0xff] }
 0xacf   : > { %19245 = vmatmul.mubr.msk.f32.gmra.mrb[38].mxu1 %vm333_vm1, %v24909_v38 }
 0xad0   : > { %19247 = vmatprep.mubr.msk.f32.mxu1 %vm333_vm1, %v24910_v59 }
 0xad3   : > { %19248 = vmatmul.mubr.msk.f32.gmra.mrb[40].mxu1 %vm333_vm1, %v24911_v42 }
 0xad4   : > { %19250 = vmatprep.mubr.msk.f32.mxu1 %vm333_vm1, %v24912_v40 }
 0xad7   : > { %19251 = vmatmul.mubr.msk.f32.gmra.mrb[42].mxu1 %vm333_vm1, %v24913_v18 }
 0xad8   : > { %19253 = vmatprep.mubr.msk.f32.mxu1 %vm333_vm1, %v24914_v31  ;;  %v14577_v31 = vld [vmem:[%s20675_s19 + $0x8] sm:$0xff] }
 0xadb   : > { %19254 = vmatmul.mubr.msk.f32.gmra.mrb[44].mxu1 %vm333_vm1, %v24915_v62 }
 0xadc   : > { %19256 = vmatprep.mubr.msk.f32.mxu1 %vm333_vm1, %v24916_v15 }
 0xadf   : > { %19257 = vmatmul.mubr.msk.f32.gmra.mrb[46].mxu1 %vm333_vm1, %v24917_v39 }
 0xae0   : > { %19259 = vmatprep.mubr.msk.f32.mxu1 %vm333_vm1, %v24918_v61 }
 0xae3   : > { %19260 = vmatmul.mubr.msk.f32.gmra.mrb[48].mxu1 %vm333_vm1, %v24932_v29 }
 0xae4   : > { %19262 = vmatprep.mubr.msk.f32.mxu1 %vm333_vm1, %v24933_v10 }
 0xae7   : > { %19263 = vmatmul.mubr.msk.f32.gmra.mrb[50].mxu1 %vm333_vm1, %v24934_v34  ;;  %v14585_v34 = vld [vmem:[%s20675_s19 + $0x48] sm:$0xff] }
 0xae8   : > { %19265 = vmatprep.mubr.msk.f32.mxu1 %vm333_vm1, %v24935_v54  ;;  %v14593_v54 = vld [vmem:[%s20675_s19 + $0x88] sm:$0xff] }
 0xaeb   : > { %19266 = vmatmul.mubr.msk.f32.gmra.mrb[52].mxu1 %vm333_vm1, %v24923_v60 }
 0xaec   : > { %19268 = vmatprep.mubr.msk.f32.mxu1 %vm333_vm1, %v24936_v45 }
 0xaef   : > { %19269 = vmatmul.mubr.msk.f32.gmra.mrb[54].mxu1 %vm333_vm1, %v24925_v35 }
 0xaf0   : > { %19271 = vmatprep.mubr.msk.f32.mxu1 %vm333_vm1, %v24937_v55 }
 0xaf3   : > { %19272 = vmatmul.mubr.msk.f32.gmra.mrb[56].mxu1 %vm333_vm1, %v24938_v4 }
 0xaf4   : > { %19274 = vmatprep.mubr.msk.f32.mxu1 %vm333_vm1, %v24939_v53 }
 0xaf7   : > { %19275 = vmatmul.mubr.msk.f32.gmra.mrb[58].mxu1 %vm333_vm1, %v24940_v0 }
 0xaf8   : > { %19277 = vmatprep.mubr.msk.f32.mxu1 %vm333_vm1, %v24941_v25 }
 0xafb   : > { %19278 = vmatmul.mubr.msk.f32.gmra.mrb[60].mxu1 %vm333_vm1, %v24942_v37  ;;  %v14594_v37 = vld [vmem:[%s20675_s19 + $0x90] sm:$0xff] }
 0xafc   : > { %19280 = vmatprep.mubr.msk.f32.mxu1 %vm333_vm1, %v14177_v24  ;;  %v14586_v24 = vld [vmem:[%s20675_s19 + $0x50] sm:$0xff] }
 0xaff   : > { %19281 = vmatmul.mubr.msk.f32.gmra.mrb[62].mxu1 %vm333_vm1, %v14178_v28 }
 0xb96   : > { %v19237_v1 = vpop.f32.mrb[32].mxu1 }
 0xb97   : > { %v14346_v5 = vpop.f32.mrb[33].mxu1  ;;  %v14545_v59 = vadd.f32 %v19237_v1, %v24295_v32 }
 0xb98   : > { %v14544_v38 = vadd.f32 %v24295_v32, %v14346_v5 }
 0xb99   : > { %v14609_v39 = vadd.f32 %v14577_v31, %v14545_v59 }
 0xb9a   : > { %v19240_v42 = vpop.f32.mrb[34].mxu1  ;;  %v14608_v40 = vadd.f32 %v14576_v51, %v14544_v38 }
 0xb9b   : > { %v14356_v18 = vpop.f32.mrb[35].mxu1  ;;  %v14547_v47 = vadd.f32 %v19240_v42, %v24295_v32  ;;  %v14587_v42 = vld [vmem:[%s20675_s19 + $0x58] sm:$0xff] }
 0xb9c   : > { %14640 = vxpose.xlu0.b32.start [1/16] (narrow) %v14608_v40, 8  ;;  %v14546_v62 = vadd.f32 %v24295_v32, %v14356_v18  ;;  %v14595_v40 = vld [vmem:[%s20675_s19 + $0x98] sm:$0xff] }
 0xb9d   : > { %v14611_v23 = vadd.f32 %v14579_v63, %v14547_v47  ;;  %v14588_v47 = vld [vmem:[%s20675_s19 + $0x60] sm:$0xff] }
 0xb9e   : > { %v19243_v15 = vpop.f32.mrb[36].mxu1  ;;  %v14610_v30 = vadd.f32 %v14578_v6, %v14546_v62 }
 0xb9f   : > { %v14366_v61 = vpop.f32.mrb[37].mxu1  ;;  %v14549_v14 = vadd.f32 %v19243_v15, %v24295_v32 }
 0xba0   : > { %14641 = vxpose.xlu0.b32.cont [2/16] (narrow) %v14609_v39, 8  ;;  %v14548_v35 = vadd.f32 %v24295_v32, %v14366_v61 }
 0xba1   : > { %v14613_v43 = vadd.f32 %v14581_v9, %v14549_v14  ;;  %v14589_v14 = vld [vmem:[%s20675_s19 + $0x68] sm:$0xff] }
 0xba2   : > { %v19246_v12 = vpop.f32.mrb[38].mxu1  ;;  %v14612_v13 = vadd.f32 %v14580_v2, %v14548_v35 }
 0xba3   : > { %v14376_v60 = vpop.f32.mrb[39].mxu1  ;;  %v14551_v20 = vadd.f32 %v19246_v12, %v24295_v32  ;;  %v14596_v12 = vld [vmem:[%s20675_s19 + $0xa0] sm:$0xff] }
 0xba4   : > { %14642 = vxpose.xlu0.b32.cont [3/16] (narrow) %v14610_v30, 8  ;;  %v14550_v16 = vadd.f32 %v24295_v32, %v14376_v60 }
 0xba5   : > { %v14615_v27 = vadd.f32 %v14583_v3, %v14551_v20  ;;  %v14590_v20 = vld [vmem:[%s20675_s19 + $0x70] sm:$0xff] }
 0xba6   : > { %v19249_v46 = vpop.f32.mrb[40].mxu1  ;;  %v14614_v57 = vadd.f32 %v14582_v58, %v14550_v16 }
 0xba7   : > { %v14386_v33 = vpop.f32.mrb[41].mxu1  ;;  %v14553_v48 = vadd.f32 %v19249_v46, %v24295_v32 }
 0xba8   : > { %14643 = vxpose.xlu0.b32.cont [4/16] (narrow) %v14611_v23, 8  ;;  %v14552_v21 = vadd.f32 %v24295_v32, %v14386_v33 }
 0xba9   : > { %v14617_v53 = vadd.f32 %v14585_v34, %v14553_v48  ;;  %v14599_v48 = vld [vmem:[%s20675_s19 + $0xb8] sm:$0xff] }
 0xbaa   : > { %v19252_v56 = vpop.f32.mrb[42].mxu1  ;;  %v14616_v11 = vadd.f32 %v14584_v26, %v14552_v21 }
 0xbab   : > { %v14396_v17 = vpop.f32.mrb[43].mxu1  ;;  %v14555_v28 = vadd.f32 %v19252_v56, %v24295_v32  ;;  %v14597_v56 = vld [vmem:[%s20675_s19 + $0xa8] sm:$0xff] }
 0xbac   : > { %14644 = vxpose.xlu0.b32.cont [5/16] (narrow) %v14612_v13, 8  ;;  %v14554_v45 = vadd.f32 %v24295_v32, %v14396_v17 }
 0xbad   : > { %v14619_v15 = vadd.f32 %v14587_v42, %v14555_v28  ;;  %v14607_v28 = vld [vmem:[%s20675_s19 + $0xf8] sm:$0xff] }
 0xbae   : > { %v19255_v36 = vpop.f32.mrb[44].mxu1  ;;  %v14618_v51 = vadd.f32 %v14586_v24, %v14554_v45  ;;  %v14606_v24 = vld [vmem:[%s20675_s19 + $0xf0] sm:$0xff] }
 0xbaf   : > { %v14406_v52 = vpop.f32.mrb[45].mxu1  ;;  %v14557_v60 = vadd.f32 %v19255_v36, %v24295_v32 }
 0xbb0   : > { %14645 = vxpose.xlu0.b32.cont [6/16] (narrow) %v14613_v43, 8  ;;  %v14556_v18 = vadd.f32 %v24295_v32, %v14406_v52 }
 0xbb1   : > { %v14621_v36 = vadd.f32 %v14589_v14, %v14557_v60 }
 0xbb2   : > { %v24312_v8 = vpop.f32.mrb[46].mxu1  ;;  %v14620_v46 = vadd.f32 %v14588_v47, %v14556_v18 }
 0xbb3   : > { %v24314_v49 = vpop.f32.mrb[47].mxu1 }
 0xbb4   : > { %14646 = vxpose.xlu0.b32.cont [7/16] (narrow) %v14614_v57, 8  ;;  %v14558_v17 = vadd.f32 %v24295_v32, %v24314_v49  ;;  %v14598_v57 = vld [vmem:[%s20675_s19 + $0xb0] sm:$0xff]  ;;  %v14559_v49 = vadd.f32 %v24312_v8, %v24295_v32 }
 0xbb6   : > { %v19261_v44 = vpop.f32.mrb[48].mxu1 }
 0xbb7   : > { %v14426_v7 = vpop.f32.mrb[49].mxu1  ;;  %v14561_v19 = vadd.f32 %v19261_v44, %v24295_v32 }
 0xbb8   : > { %v14560_v22 = vadd.f32 %v24295_v32, %v14426_v7  ;;  %14647 = vxpose.xlu0.b32.cont [8/16] (narrow) %v14615_v27, 8  ;;  %v14622_v27 = vadd.f32 %v14590_v20, %v14558_v17 }
 0xbb9   : > { %v14625_v0 = vadd.f32 %v14593_v54, %v14561_v19  ;;  %v14602_v54 = vld [vmem:[%s20675_s19 + $0xd0] sm:$0xff] }
 0xbba   : > { %v19264_v50 = vpop.f32.mrb[50].mxu1  ;;  %v14624_v29 = vadd.f32 %v14592_v41, %v14560_v22  ;;  %v14591_v22 = vld [vmem:[%s20675_s19 + $0x78] sm:$0xff] }
 0xbbb   : > { %v14436_v10 = vpop.f32.mrb[51].mxu1  ;;  %v14563_v1 = vadd.f32 %v19264_v50, %v24295_v32  ;;  %v14623_v50 = vadd.f32 %v14591_v22, %v14559_v49 }
 0xbbc   : > { %14648 = vxpose.xlu0.b32.cont [9/16] (narrow) %v14616_v11, 8  ;;  %14672 = vxpose.xlu1.b32.start [1/16] (narrow) %v14624_v29, 8  ;;  %v14562_v55 = vadd.f32 %v24295_v32, %v14436_v10  ;;  %v14600_v11 = vld [vmem:[%s20675_s19 + $0xc0] sm:$0xff]  ;;  %v14601_v10 = vld [vmem:[%s20675_s19 + $0xc8] sm:$0xff] }
 0xbbd   : > { %v14627_v39 = vadd.f32 %v14595_v40, %v14563_v1 }
 0xbbe   : > { %v19267_v4 = vpop.f32.mrb[52].mxu1  ;;  %v14626_v38 = vadd.f32 %v14594_v37, %v14562_v55  ;;  %v14603_v55 = vld [vmem:[%s20675_s19 + $0xd8] sm:$0xff] }
 0xbbf   : > { %v14446_v25 = vpop.f32.mrb[53].mxu1  ;;  %v14565_v63 = vadd.f32 %v19267_v4, %v24295_v32  ;;  %v14604_v4 = vld [vmem:[%s20675_s19 + $0xe0] sm:$0xff] }
 0xbc0   : > { %14649 = vxpose.xlu0.b32.cont [10/16] (narrow) %v14617_v53, 8  ;;  %14673 = vxpose.xlu1.b32.cont [2/16] (narrow) %v14625_v0, 8  ;;  %v14564_v31 = vadd.f32 %v24295_v32, %v14446_v25  ;;  %v14605_v0 = vld [vmem:[%s20675_s19 + $0xe8] sm:$0xff] }
 0xbc1   : > { %v14629_v43 = vadd.f32 %v14597_v56, %v14565_v63 }
 0xbc2   : > { %v19270_v5 = vpop.f32.mrb[54].mxu1  ;;  %v14628_v23 = vadd.f32 %v14596_v12, %v14564_v31 }
 0xbc3   : > { %v14456_v59 = vpop.f32.mrb[55].mxu1  ;;  %v14567_v21 = vadd.f32 %v19270_v5, %v24295_v32 }
 0xbc4   : > { %14650 = vxpose.xlu0.b32.cont [11/16] (narrow) %v14618_v51, 8  ;;  %14674 = vxpose.xlu1.b32.cont [3/16] (narrow) %v14626_v38, 8  ;;  %v14566_v9 = vadd.f32 %v24295_v32, %v14456_v59 }
 0xbc5   : > { %v14631_v8 = vadd.f32 %v14599_v48, %v14567_v21 }
 0xbc6   : > { %v19273_v62 = vpop.f32.mrb[56].mxu1  ;;  %v14630_v7 = vadd.f32 %v14598_v57, %v14566_v9 }
 0xbc7   : > { %v14569_v61 = vadd.f32 %v19273_v62, %v24295_v32  ;;  %v14466_v6 = vpop.f32.mrb[57].mxu1 }
 0xbc8   : > { %v14568_v30 = vadd.f32 %v24295_v32, %v14466_v6  ;;  %14651 = vxpose.xlu0.b32.cont [12/16] (narrow) %v14619_v15, 8  ;;  %14675 = vxpose.xlu1.b32.cont [4/16] (narrow) %v14627_v39, 8 }
 0xbc9   : > { %v14633_v34 = vadd.f32 %v14601_v10, %v14569_v61 }
 0xbca   : > { %v19276_v35 = vpop.f32.mrb[58].mxu1  ;;  %v14632_v29 = vadd.f32 %v14600_v11, %v14568_v30 }
 0xbcb   : > { %v14571_v33 = vadd.f32 %v19276_v35, %v24295_v32  ;;  %v14476_v2 = vpop.f32.mrb[59].mxu1 }
 0xbcc   : > { %v14570_v13 = vadd.f32 %v24295_v32, %v14476_v2  ;;  %14652 = vxpose.xlu0.b32.cont [13/16] (narrow) %v14620_v46, 8  ;;  %14676 = vxpose.xlu1.b32.cont [5/16] (narrow) %v14628_v23, 8 }
 0xbce   : > { %v19279_v16 = vpop.f32.mrb[60].mxu1  ;;  %v14634_v45 = vadd.f32 %v14602_v54, %v14570_v13 }
 0xbcf   : > { %v14573_v52 = vadd.f32 %v19279_v16, %v24295_v32  ;;  %v14486_v58 = vpop.f32.mrb[61].mxu1 }
 0xbd0   : > { %v14572_v3 = vadd.f32 %v24295_v32, %v14486_v58  ;;  %14653 = vxpose.xlu0.b32.cont [14/16] (narrow) %v14621_v36, 8  ;;  %14677 = vxpose.xlu1.b32.cont [6/16] (narrow) %v14629_v43, 8 }
 0xbd1   : > { %v14637_v25 = vadd.f32 %v14605_v0, %v14573_v52 }
 0xbd2   : > { %v19282_v44 = vpop.f32.mrb[62].mxu1  ;;  %v14636_v53 = vadd.f32 %v14604_v4, %v14572_v3 }
 0xbd3   : > { %v14575_v26 = vadd.f32 %v19282_v44, %v24295_v32  ;;  %v14496_v41 = vpop.f32.mrb[63].mxu1 }
 0xbd4   : > { %v14574_v19 = vadd.f32 %v24295_v32, %v14496_v41  ;;  %14654 = vxpose.xlu0.b32.cont [15/16] (narrow) %v14622_v27, 8  ;;  %14678 = vxpose.xlu1.b32.cont [7/16] (narrow) %v14630_v7, 8  ;;  %v14635_v32 = vadd.f32 %v14603_v55, %v14571_v33 }
 0xbd5   : > { %v14639_v1 = vadd.f32 %v14607_v28, %v14575_v26 }
 0xbd6   : > { %v14638_v37 = vadd.f32 %v14606_v24, %v14574_v19 }
 0xbd8   : > { %14655 = vxpose.xlu0.b32.end [16/16] (narrow) %v14623_v50, 8  ;;  %14679 = vxpose.xlu1.b32.cont [8/16] (narrow) %v14631_v8, 8 }
 0xbdc   : > { %14680 = vxpose.xlu1.b32.cont [9/16] (narrow) %v14632_v29, 8 }
 0xbe0   : > { %14681 = vxpose.xlu1.b32.cont [10/16] (narrow) %v14633_v34, 8 }
 0xbe4   : > { %14682 = vxpose.xlu1.b32.cont [11/16] (narrow) %v14634_v45, 8 }
 0xbe8   : > { %14683 = vxpose.xlu1.b32.cont [12/16] (narrow) %v14635_v32, 8 }
 0xbec   : > { %14684 = vxpose.xlu1.b32.cont [13/16] (narrow) %v14636_v53, 8 }
 0xbf0   : > { %14685 = vxpose.xlu1.b32.cont [14/16] (narrow) %v14637_v25, 8 }
 0xbf4   : > { %14686 = vxpose.xlu1.b32.cont [15/16] (narrow) %v14638_v37, 8 }
 0xbf8   : > { %14687 = vxpose.xlu1.b32.end [16/16] (narrow) %v14639_v1, 8 }
 0xc1c   : > { %v14656_v5 = vpop.trf.xlu0 }
 0xc1d   : > { %v14704_v51 = vmul.f32 0.25, %v14656_v5 }
 0xc1f   : > { %20532 = vtanh.f32 %v14704_v51 }
 0xc29   : > { %v20533_v42 = vpop.eup %20532 }
 0xc2a   : > { %v14708_v40 = vmul.f32 4.0, %v20533_v42 }
 0xc3c   : > { %v14688_v38 = vpop.trf.xlu1 }
 0xc3d   : > { %v14705_v59 = vmul.f32 0.25, %v14688_v38 }
 0xc3f   : > { %20534 = vtanh.f32 %v14705_v59 }
 0xc49   : > { %v20535_v18 = vpop.eup %20534 }
 0xc4a   : > { %v14709_v31 = vmul.f32 4.0, %v20535_v18 }
 0xc4c   : > { %v14712_v62 = vcombine.low %v14708_v40, %v14709_v31 }
 0xc4e   : > { %14714 = vst [vmem:[%s332_s27] sm:$0x77] %v14712_v62 }
 0xc4f PF: > { %s19_s30 = sadd.s32 1, %s20542_s30  }
 0xc50   : > { %p16_p4 = scmp.ge.s32.totalorder %s19_s30, 4  }
 0xc52   :  { %18 = sbr.rel (!%p16_p4) target bundleno = 1 (0x1), region = 121 }

</bundles_post_ra>
